<compile_context>
chip_gen: v7x
topology: tpu7x:2x2x1
jax: 0.10.0
libtpu: 0.0.40
codegen_flags: <defaults>
</compile_context>

<pallas_src>
import math

import jax
import jax.numpy as jnp
from jax.experimental import pallas as pl
from jax.experimental.pallas import tpu as pltpu

FIELD_CHANNELS = 4  # stand-in for config.FIELD_CHANNELS


def _ceil_to(n, m):
    return ((n + m - 1) // m) * m


# -----------------------------------------------------------------------------
# Pallas kernels
# -----------------------------------------------------------------------------
def _pointnet_conv_kernel(e_ref, w1_ref, b1_ref, w2_ref, b2_ref, ws_ref, bs_ref, o_ref):
    """ResMLP(edge) + trailing ReLU + max-aggregation over the K neighbours.

    e_ref : (TM*K, Cin_pad)  bf16 edge features [x_j | pos_j - pos_i | 0-pad],
            destination-major contiguous groups of K rows.
    o_ref : (TM, Cout_pad)   f32 max-aggregated per-destination features.
    Weights bf16 (MXU), biases f32, accumulation f32 (elementwise path stays f32, v5e-safe).
    Padded weight rows/cols are exactly zero so the padding is bit-exact.
    """
    tmk = e_ref.shape[0]
    tm, cout = o_ref.shape
    k = tmk // tm

    e = e_ref[...]

    # Linear 1 + ReLU (hidden dim zero-padded to a lane-dense multiple of 128).
    h = jnp.dot(e, w1_ref[...], preferred_element_type=jnp.float32)
    h = jnp.maximum(h + b1_ref[...], 0.0)

    # Linear 2 + shortcut Linear + trailing ReLU of the SA module.
    y = jnp.dot(h.astype(w2_ref.dtype), w2_ref[...], preferred_element_type=jnp.float32)
    y = y + jnp.dot(e, ws_ref[...], preferred_element_type=jnp.float32)
    y = jnp.maximum(y + b2_ref[...] + bs_ref[...], 0.0)

    # Vectorized max over each destination's K neighbours: one reshape + reduce, then one
    # unmasked full-block store (k=16 keeps the reshape layout-free).
    o_ref[...] = jnp.max(y.reshape(tm, k, cout), axis=1)


def _pool_head_kernel(x_ref, c_ref, w1y_ref, w1c_ref, b1_ref, w2_ref, b2_ref,
                      wsy_ref, wsc_ref, bs_ref, wout_ref, bout_ref, o_ref):
    """global_max_pool + implicit concat([y_feat, c]) via split weight slabs +
    final ResMLP(+ReLU) + fused [mu | log_var | 0-pad] head (lane-dense 128-wide store)."""
    y_feat = jnp.max(x_ref[...], axis=1)                       # (B, 256) f32
    yb = y_feat.astype(jnp.bfloat16)
    cb = c_ref[...].astype(jnp.bfloat16)

    h = jnp.dot(yb, w1y_ref[...], preferred_element_type=jnp.float32)
    h = h + jnp.dot(cb, w1c_ref[...], preferred_element_type=jnp.float32)
    h = jnp.maximum(h + b1_ref[...], 0.0)

    r = jnp.dot(h.astype(jnp.bfloat16), w2_ref[...], preferred_element_type=jnp.float32)
    r = r + jnp.dot(yb, wsy_ref[...], preferred_element_type=jnp.float32)
    r = r + jnp.dot(cb, wsc_ref[...], preferred_element_type=jnp.float32)
    r = jnp.maximum(r + b2_ref[...] + bs_ref[...], 0.0)

    o_ref[...] = (jnp.dot(r.astype(jnp.bfloat16), wout_ref[...],
                          preferred_element_type=jnp.float32) + bout_ref[...])


# -----------------------------------------------------------------------------
# Pallas wrappers
# -----------------------------------------------------------------------------
def _num_tensorcores():
    """Best-effort TensorCores-per-chip (v7x has 2; v5e/v6e have 1)."""
    try:
        kind = (jax.devices()[0].device_kind or "").lower()
    except Exception:
        return 1
    return 2 if ("v7" in kind or "7x" in kind) else 1


def _choose_tm(m, k, two_cores):
    """Destination-tile size: divisor of m, multiple of 8, edge-row block <= ~4096 rows.
    On 2-TC parts keep >=4 grid steps (>=2 per core) so the parallel axis pipelines;
    on single-TC parts take the largest tile (extra grid steps are pure overhead)."""
    if m <= 8 or m % 8 != 0:
        return m
    cap = max(8, min(256, (4096 // k) // 8 * 8))
    divs = [d for d in range(8, min(m, cap) + 1, 8) if m % d == 0]
    if not divs:
        return m
    if two_cores:
        small = [d for d in divs if m // d >= 4]
        if small:
            return max(small)
    return max(divs)


def _conv_vmem_budget(tm, k, cin, hid, cout):
    """Scoped-VMEM budget from the actual lane-padded, double-buffered block footprint."""
    lane = lambda n: _ceil_to(n, 128)
    sub = lambda n: _ceil_to(n, 8)
    edge = 2 * sub(tm * k) * lane(cin) * 2                   # bf16 input, double-buffered
    outb = 2 * sub(tm) * lane(cout) * 4                      # f32 output, double-buffered
    wts = 2 * 2 * (sub(cin) * lane(hid) + sub(hid) * lane(cout) + sub(cin) * lane(cout))
    bias = 2 * 4 * 8 * (lane(hid) + 2 * lane(cout))
    inter = sub(tm * k) * (6 * lane(hid) + 4 * lane(cout))   # h (f32 + bf16 cast), y (f32)
    total = edge + outb + wts + bias + inter
    return int(min(48 << 20, max(8 << 20, 2 * total)))


def pointnet_conv(edge, p, k):
    """edge: (M*k, Cin_pad) bf16 -> (M, Cout_pad) f32 max-aggregated features."""
    mk, cin = edge.shape
    m = mk // k
    hid = p["w1"].shape[1]
    cout = p["w2"].shape[1]
    assert p["w1"].shape[0] == cin and mk == m * k

    tm = _choose_tm(m, k, _num_tensorcores() >= 2)
    assert m % tm == 0

    flops = 2 * mk * (cin * hid + hid * cout + cin * cout)
    bytes_accessed = int(
        edge.size * edge.dtype.itemsize + m * cout * 4
        + sum(int(v.size) * v.dtype.itemsize for v in p.values()))

    return pl.pallas_call(
        _pointnet_conv_kernel,
        out_shape=jax.ShapeDtypeStruct((m, cout), jnp.float32),
        grid=(m // tm,),
        in_specs=[
            pl.BlockSpec((tm * k, cin), lambda i: (i, 0)),
            pl.BlockSpec((cin, hid), lambda i: (0, 0)),
            pl.BlockSpec((1, hid), lambda i: (0, 0)),
            pl.BlockSpec((hid, cout), lambda i: (0, 0)),
            pl.BlockSpec((1, cout), lambda i: (0, 0)),
            pl.BlockSpec((cin, cout), lambda i: (0, 0)),
            pl.BlockSpec((1, cout), lambda i: (0, 0)),
        ],
        out_specs=pl.BlockSpec((tm, cout), lambda i: (i, 0)),
        compiler_params=pltpu.CompilerParams(
            dimension_semantics=("parallel",),
            vmem_limit_bytes=_conv_vmem_budget(tm, k, cin, hid, cout)),
        cost_estimate=pl.CostEstimate(
            flops=int(flops), transcendentals=0, bytes_accessed=bytes_accessed),
    )(edge, p["w1"], p["b1"], p["w2"], p["b2"], p["ws"], p["bs"])


def pool_and_head(x3, c, p, latent_dim):
    """x3: (B, Npts, 256) f32, c: (B, cond) f32 -> (mu, log_var), each (B, latent)."""
    bsz = x3.shape[0]
    out_pad = p["wout"].shape[1]
    names = ("w1y", "w1c", "b1", "w2", "b2", "wsy", "wsc", "bs", "wout", "bout")
    out = pl.pallas_call(
        _pool_head_kernel,
        out_shape=jax.ShapeDtypeStruct((bsz, out_pad), jnp.float32),
        grid=(1,),
        in_specs=[pl.BlockSpec(x3.shape, lambda i: (0, 0, 0)),
                  pl.BlockSpec(c.shape, lambda i: (0, 0))]
                 + [pl.BlockSpec(p[n].shape, lambda i: (0, 0)) for n in names],
        out_specs=pl.BlockSpec((bsz, out_pad), lambda i: (0, 0)),
        compiler_params=pltpu.CompilerParams(
            dimension_semantics=("arbitrary",), vmem_limit_bytes=16 << 20),
    )(x3, c, *[p[n] for n in names])
    return out[:, :latent_dim], out[:, latent_dim:2 * latent_dim]


# -----------------------------------------------------------------------------
# Graph-construction glue (plain JAX): fps / knn / gather
# -----------------------------------------------------------------------------
def fps(pos, m):
    """Farthest point sampling. pos: (B, Np, 3) -> (B, m) indices into Np.
    TODO(synk): torch_geometric fps uses a random start point; we start at index 0
    deterministically (otherwise identical greedy farthest-point selection)."""
    def single(p):
        sel0 = jnp.zeros((m,), jnp.int32)
        d0 = jnp.sum((p - p[0]) ** 2, axis=-1)

        def body(i, carry):
            sel, d = carry
            nxt = jnp.argmax(d).astype(jnp.int32)
            sel = sel.at[i].set(nxt)
            d = jnp.minimum(d, jnp.sum((p - p[nxt]) ** 2, axis=-1))
            return sel, d

        sel, _ = jax.lax.fori_loop(1, m, body, (sel0, d0))
        return sel

    return jax.vmap(single)(pos)


def knn(pos_src, pos_q, k):
    """pos_src: (B, Np, 3), pos_q: (B, M, 3) -> (B, M, k) nearest-neighbour indices."""
    d = jnp.sum((pos_q[:, :, None, :] - pos_src[:, None, :, :]) ** 2, axis=-1)
    _, idx = jax.lax.top_k(-d, k)
    return idx


def sa_module(x, pos, params, ratio, k):
    """Set-abstraction block. x: (B, Np, C), pos: (B, Np, 3) -> (B, m, Cout_pad), (B, m, 3)."""
    # TODO(synk): torch_geometric PointNetConv defaults add_self_loops=True; omitted here
    # (matches canonical PointNet++ SA usage with add_self_loops=False).
    # TODO(synk): the k-times neighbour gather is still materialized in HBM by plain JAX;
    # for large clouds move it into the kernel (memory_space=pl.ANY + scalar-prefetch
    # neighbour table + in-kernel gather) -- at these sizes the gather is not the bottleneck.
    bsz, npts, _ = pos.shape
    m = int(math.ceil(ratio * npts))
    idx = fps(pos, m)                                              # (B, m)
    pos_sel = jnp.take_along_axis(pos, idx[..., None], axis=1)     # (B, m, 3)
    nbr = knn(pos, pos_sel, k)                                     # (B, m, k)
    gather = jax.vmap(lambda a, i: a[i])
    pos_j = gather(pos, nbr)                                       # (B, m, k, 3)
    x_j = gather(x, nbr)                                           # (B, m, k, C)
    rel = pos_j - pos_sel[:, :, None, :]                           # (B, m, k, 3)

    # Single merged edge operand [x_j | rel | 0-pad] (one HBM stream, 8-multiple channels).
    # TODO(synk): rel is cast to bf16 for the MXU; keep it f32 if neighbourhoods are tight.
    cin_pad = params["w1"].shape[0]
    edge = jnp.concatenate([x_j, rel], axis=-1)
    pad = cin_pad - edge.shape[-1]
    if pad:
        edge = jnp.pad(edge, ((0, 0), (0, 0), (0, 0), (0, pad)))
    out = pointnet_conv(edge.reshape(bsz * m * k, cin_pad).astype(jnp.bfloat16), params, k)
    return out.reshape(bsz, m, out.shape[-1]), pos_sel


# -----------------------------------------------------------------------------
# Forward pass
# -----------------------------------------------------------------------------
def posterior_encoder_forward(params, y, query_pos, query_pos_batch, c, latent_dim):
    """y: (N, FIELD_CHANNELS), query_pos: (N, 3), query_pos_batch: (N,), c: (B, cond).
    Points are assumed sorted by batch with equal per-batch counts (query_pos_batch is
    consistent with that layout), so the flat torch_geometric layout maps to (B, Npb, .)."""
    del query_pos_batch  # structure encoded by the (B, Npb) reshape below
    bsz = c.shape[0]
    npb = y.shape[0] // bsz
    y_b = y.reshape(bsz, npb, -1).astype(jnp.float32)
    pos_b = query_pos.reshape(bsz, npb, 3).astype(jnp.float32)

    x1, pos1 = sa_module(y_b, pos_b, params["sa1"], 0.25, 16)   # (B, m1, 128) [64 real + pad]
    x1 = x1[..., :64]   # drop zero-pad lanes BEFORE sa2's k-times gather (halves sa2 stream)
    x2, pos2 = sa_module(x1, pos1, params["sa2"], 0.25, 16)     # (B, m2, 128)
    x3, _ = sa_module(x2, pos2, params["sa3"], 0.25, 16)        # (B, m3, 256)

    # TODO(synk): reference calls global_max_pool(x3, batch2) whose index length mismatches
    # x3's node count; we pool x3 with its own consistent per-batch assignment.
    # TODO(synk): the pool+head could be fused into sa3's pallas_call (one fewer launch).
    mu, log_var = pool_and_head(x3, c.astype(jnp.float32), params["head"], latent_dim)
    return mu, log_var


# -----------------------------------------------------------------------------
# Deterministic parameter init (mimics torch.nn.Linear default init)
# -----------------------------------------------------------------------------
def _uniform(key, shape, bound):
    return jax.random.uniform(key, shape, jnp.float32, -bound, bound)


def init_sa_params(key, cx, cout, *, cin_pad=None, hidden_pad=None, cout_pad=None):
    """ResMLP(cx+3, cx+3, cout) of the SA module, stored transposed ([in, out]) with exact
    zero padding: input channels -> cin_pad, hidden -> hidden_pad (padded b1 entries and
    padded w2 rows are zero => bit-identical through the ReLU), output cols -> cout_pad."""
    cin = cx + 3
    hidden = cx + 3
    cin_pad = cin if cin_pad is None else cin_pad
    hidden_pad = hidden if hidden_pad is None else hidden_pad
    cout_pad = cout if cout_pad is None else cout_pad
    k1, k1b, k2, k2b, ks, ksb = jax.random.split(key, 6)
    b_in = 1.0 / math.sqrt(cin)
    b_hid = 1.0 / math.sqrt(hidden)

    w1 = jnp.zeros((cin_pad, hidden_pad), jnp.float32).at[:cin, :hidden].set(
        _uniform(k1, (cin, hidden), b_in))
    b1 = jnp.zeros((1, hidden_pad), jnp.float32).at[:, :hidden].set(
        _uniform(k1b, (1, hidden), b_in))
    w2 = jnp.zeros((hidden_pad, cout_pad), jnp.float32).at[:hidden, :cout].set(
        _uniform(k2, (hidden, cout), b_hid))
    b2 = jnp.zeros((1, cout_pad), jnp.float32).at[:, :cout].set(
        _uniform(k2b, (1, cout), b_hid))
    ws = jnp.zeros((cin_pad, cout_pad), jnp.float32).at[:cin, :cout].set(
        _uniform(ks, (cin, cout), b_in))
    bs = jnp.zeros((1, cout_pad), jnp.float32).at[:, :cout].set(
        _uniform(ksb, (1, cout), b_in))

    # MXU operands bf16, biases f32 (elementwise path stays f32 on v5e).
    return dict(w1=w1.astype(jnp.bfloat16), b1=b1,
                w2=w2.astype(jnp.bfloat16), b2=b2,
                ws=ws.astype(jnp.bfloat16), bs=bs)


def init_head_params(key, feat_dim, cond_dim, latent_dim):
    """final ResMLP(feat+cond, 512, 512) with input split into y/c slabs (implicit concat),
    bf16 weights, plus a fused lane-dense [mu | log_var | 0-pad] output head."""
    hidden, out = 512, 512
    head_pad = max(128, _ceil_to(2 * latent_dim, 128))
    ks = jax.random.split(key, 12)
    b_in = 1.0 / math.sqrt(feat_dim + cond_dim)
    b_hid = 1.0 / math.sqrt(hidden)
    b_out = 1.0 / math.sqrt(out)

    wmu = _uniform(ks[8], (out, latent_dim), b_out)
    bmu = _uniform(ks[9], (1, latent_dim), b_out)
    wlv = _uniform(ks[10], (out, latent_dim), b_out)
    blv = _uniform(ks[11], (1, latent_dim), b_out)
    wout = (jnp.zeros((out, head_pad), jnp.float32)
            .at[:, :latent_dim].set(wmu)
            .at[:, latent_dim:2 * latent_dim].set(wlv))
    bout = (jnp.zeros((1, head_pad), jnp.float32)
            .at[:, :latent_dim].set(bmu)
            .at[:, latent_dim:2 * latent_dim].set(blv))

    return dict(
        w1y=_uniform(ks[0], (feat_dim, hidden), b_in).astype(jnp.bfloat16),
        w1c=_uniform(ks[1], (cond_dim, hidden), b_in).astype(jnp.bfloat16),
        b1=_uniform(ks[2], (1, hidden), b_in),
        w2=_uniform(ks[3], (hidden, out), b_hid).astype(jnp.bfloat16),
        b2=_uniform(ks[4], (1, out), b_hid),
        wsy=_uniform(ks[5], (feat_dim, out), b_in).astype(jnp.bfloat16),
        wsc=_uniform(ks[6], (cond_dim, out), b_in).astype(jnp.bfloat16),
        bs=_uniform(ks[7], (1, out), b_in),
        wout=wout.astype(jnp.bfloat16),
        bout=bout)


def init_params(key, condition_dim, latent_dim):
    ks = jax.random.split(key, 4)
    p = {}
    # sa1: cin 7 -> 8, hidden 7 -> 128, cout 64 -> 128 lanes (lane-dense store; sliced back
    #      to 64 real channels before the sa2 gather so pad lanes aren't gathered k times).
    p["sa1"] = init_sa_params(ks[0], FIELD_CHANNELS, 64,
                              cin_pad=8, hidden_pad=128, cout_pad=128)
    # sa2: consumes the real 64 channels; cin 67 -> 72, hidden 67 -> 128, cout 128.
    p["sa2"] = init_sa_params(ks[1], 64, 128, cin_pad=72, hidden_pad=128)
    # sa3: cin 131 -> 136, hidden 131 -> 256, cout 256.
    p["sa3"] = init_sa_params(ks[2], 128, 256, cin_pad=136, hidden_pad=256)
    p["head"] = init_head_params(ks[3], 256, condition_dim, latent_dim)
    return p


# -----------------------------------------------------------------------------
# Main
# -----------------------------------------------------------------------------
if __name__ == "__main__":
    B, NPB = 2, 256            # 256 points per batch so k=16 knn is valid at every SA level
    condition_dim, latent_dim = 16, 8
    N = B * NPB

    key = jax.random.PRNGKey(0)
    k_param, k_y, k_pos, k_c = jax.random.split(key, 4)

    params = init_params(k_param, condition_dim, latent_dim)
    y = jax.random.normal(k_y, (N, FIELD_CHANNELS), jnp.float32)
    query_pos = jax.random.normal(k_pos, (N, 3), jnp.float32)
    query_pos_batch = jnp.repeat(jnp.arange(B, dtype=jnp.int32), NPB)
    c = jax.random.normal(k_c, (B, condition_dim), jnp.float32)

    fwd = jax.jit(posterior_encoder_forward, static_argnums=(5,))
    mu, log_var = fwd(params, y, query_pos, query_pos_batch, c, latent_dim)
    jax.block_until_ready((mu, log_var))

    assert mu.shape == (B, latent_dim) and log_var.shape == (B, latent_dim)
    assert bool(jnp.all(jnp.isfinite(mu))) and bool(jnp.all(jnp.isfinite(log_var)))
    print("KERNEL_OK")
</pallas_src>

<mosaic_0001>
module attributes {stable_mosaic.version = 11 : i64} {
  func.func @_pointnet_conv_kernel(%arg0: i32, %arg1: memref<2048x8xbf16, #tpu.memory_space<vmem>>, %arg2: memref<8x128xbf16, #tpu.memory_space<vmem>>, %arg3: memref<1x128xf32, #tpu.memory_space<vmem>>, %arg4: memref<128x128xbf16, #tpu.memory_space<vmem>>, %arg5: memref<1x128xf32, #tpu.memory_space<vmem>>, %arg6: memref<8x128xbf16, #tpu.memory_space<vmem>>, %arg7: memref<1x128xf32, #tpu.memory_space<vmem>>, %arg8: memref<128x128xf32, #tpu.memory_space<vmem>>) attributes {dimension_semantics = [#tpu.dimension_semantics<parallel>], iteration_bounds = array<i64: 1>, scalar_prefetch = 0 : i64, scratch_operands = 0 : i64, tpu.core_type = #tpu.core_type<tc>, window_params = [{transform_indices = @transform_0, window_bounds = array<i64: 2048, 8>}, {pipeline_mode = #tpu.pipeline_mode<synchronous>, transform_indices = @transform_1, window_bounds = array<i64: 8, 128>}, {pipeline_mode = #tpu.pipeline_mode<synchronous>, transform_indices = @transform_2, window_bounds = array<i64: 1, 128>}, {pipeline_mode = #tpu.pipeline_mode<synchronous>, transform_indices = @transform_3, window_bounds = array<i64: 128, 128>}, {pipeline_mode = #tpu.pipeline_mode<synchronous>, transform_indices = @transform_4, window_bounds = array<i64: 1, 128>}, {pipeline_mode = #tpu.pipeline_mode<synchronous>, transform_indices = @transform_5, window_bounds = array<i64: 8, 128>}, {pipeline_mode = #tpu.pipeline_mode<synchronous>, transform_indices = @transform_6, window_bounds = array<i64: 1, 128>}, {transform_indices = @transform_7, window_bounds = array<i64: 128, 128>}]} {
    %c0 = arith.constant 0 : index
    %c0_0 = arith.constant 0 : index
    %0 = vector.load %arg1[%c0, %c0_0] : memref<2048x8xbf16, #tpu.memory_space<vmem>>, vector<2048x8xbf16>
    %c0_1 = arith.constant 0 : index
    %c0_2 = arith.constant 0 : index
    %1 = vector.load %arg2[%c0_1, %c0_2] : memref<8x128xbf16, #tpu.memory_space<vmem>>, vector<8x128xbf16>
    %cst = arith.constant dense<0.000000e+00> : vector<2048x128xf32>
    %2 = tpu.matmul %0, %1, %cst {dimension_numbers = #tpu.dot_dimension_numbers<[1], [0], [0], [1], [0, 0, 1, 1], [], []>} : vector<2048x8xbf16>, vector<8x128xbf16>, vector<2048x128xf32> -> vector<2048x128xf32>
    %c0_3 = arith.constant 0 : index
    %c0_4 = arith.constant 0 : index
    %3 = vector.load %arg3[%c0_3, %c0_4] : memref<1x128xf32, #tpu.memory_space<vmem>>, vector<1x128xf32>
    %4 = vector.broadcast %3 : vector<1x128xf32> to vector<2048x128xf32>
    %5 = arith.addf %2, %4 : vector<2048x128xf32>
    %cst_5 = arith.constant 0.000000e+00 : f32
    %6 = vector.broadcast %cst_5 : f32 to vector<2048x128xf32>
    %7 = arith.maximumf %5, %6 : vector<2048x128xf32>
    %8 = arith.truncf %7 : vector<2048x128xf32> to vector<2048x128xbf16>
    %c0_6 = arith.constant 0 : index
    %c0_7 = arith.constant 0 : index
    %9 = vector.load %arg4[%c0_6, %c0_7] : memref<128x128xbf16, #tpu.memory_space<vmem>>, vector<128x128xbf16>
    %cst_8 = arith.constant dense<0.000000e+00> : vector<2048x128xf32>
    %10 = tpu.matmul %8, %9, %cst_8 {dimension_numbers = #tpu.dot_dimension_numbers<[1], [0], [0], [1], [0, 0, 1, 1], [], []>} : vector<2048x128xbf16>, vector<128x128xbf16>, vector<2048x128xf32> -> vector<2048x128xf32>
    %c0_9 = arith.constant 0 : index
    %c0_10 = arith.constant 0 : index
    %11 = vector.load %arg6[%c0_9, %c0_10] : memref<8x128xbf16, #tpu.memory_space<vmem>>, vector<8x128xbf16>
    %cst_11 = arith.constant dense<0.000000e+00> : vector<2048x128xf32>
    %12 = tpu.matmul %0, %11, %cst_11 {dimension_numbers = #tpu.dot_dimension_numbers<[1], [0], [0], [1], [0, 0, 1, 1], [], []>} : vector<2048x8xbf16>, vector<8x128xbf16>, vector<2048x128xf32> -> vector<2048x128xf32>
    %13 = arith.addf %10, %12 : vector<2048x128xf32>
    %c0_12 = arith.constant 0 : index
    %c0_13 = arith.constant 0 : index
    %14 = vector.load %arg5[%c0_12, %c0_13] : memref<1x128xf32, #tpu.memory_space<vmem>>, vector<1x128xf32>
    %15 = vector.broadcast %14 : vector<1x128xf32> to vector<2048x128xf32>
    %16 = arith.addf %13, %15 : vector<2048x128xf32>
    %c0_14 = arith.constant 0 : index
    %c0_15 = arith.constant 0 : index
    %17 = vector.load %arg7[%c0_14, %c0_15] : memref<1x128xf32, #tpu.memory_space<vmem>>, vector<1x128xf32>
    %18 = vector.broadcast %17 : vector<1x128xf32> to vector<2048x128xf32>
    %19 = arith.addf %16, %18 : vector<2048x128xf32>
    %cst_16 = arith.constant 0.000000e+00 : f32
    %20 = vector.broadcast %cst_16 : f32 to vector<2048x128xf32>
    %21 = arith.maximumf %19, %20 : vector<2048x128xf32>
    %22 = vector.shape_cast %21 : vector<2048x128xf32> to vector<128x16x128xf32>
    %cst_17 = arith.constant dense<0xFF800000> : vector<128x128xf32>
    %23 = vector.multi_reduction <maximumf>, %22, %cst_17 [1] : vector<128x16x128xf32> to vector<128x128xf32>
    %c0_18 = arith.constant 0 : index
    %c0_19 = arith.constant 0 : index
    %24 = vector.load %arg8[%c0_18, %c0_19] : memref<128x128xf32, #tpu.memory_space<vmem>>, vector<128x128xf32>
    tpu.vector_store %arg8[%c0_18, %c0_19], %23 {strides = array<i32>} : memref<128x128xf32, #tpu.memory_space<vmem>>, vector<128x128xf32>,
    return
  }
  func.func @transform_0(%arg0: i32) -> (i32, i32) {
    %c0_i32 = arith.constant 0 : i32
    %c0_i32_0 = arith.constant 0 : i32
    return %arg0, %c0_i32 : i32, i32
  }
  func.func @transform_1(%arg0: i32) -> (i32, i32) {
    %c0_i32 = arith.constant 0 : i32
    %c0_i32_0 = arith.constant 0 : i32
    %c0_i32_1 = arith.constant 0 : i32
    return %c0_i32, %c0_i32_0 : i32, i32
  }
  func.func @transform_2(%arg0: i32) -> (i32, i32) {
    %c0_i32 = arith.constant 0 : i32
    %c0_i32_0 = arith.constant 0 : i32
    %c0_i32_1 = arith.constant 0 : i32
    return %c0_i32, %c0_i32_0 : i32, i32
  }
  func.func @transform_3(%arg0: i32) -> (i32, i32) {
    %c0_i32 = arith.constant 0 : i32
    %c0_i32_0 = arith.constant 0 : i32
    %c0_i32_1 = arith.constant 0 : i32
    return %c0_i32, %c0_i32_0 : i32, i32
  }
  func.func @transform_4(%arg0: i32) -> (i32, i32) {
    %c0_i32 = arith.constant 0 : i32
    %c0_i32_0 = arith.constant 0 : i32
    %c0_i32_1 = arith.constant 0 : i32
    return %c0_i32, %c0_i32_0 : i32, i32
  }
  func.func @transform_5(%arg0: i32) -> (i32, i32) {
    %c0_i32 = arith.constant 0 : i32
    %c0_i32_0 = arith.constant 0 : i32
    %c0_i32_1 = arith.constant 0 : i32
    return %c0_i32, %c0_i32_0 : i32, i32
  }
  func.func @transform_6(%arg0: i32) -> (i32, i32) {
    %c0_i32 = arith.constant 0 : i32
    %c0_i32_0 = arith.constant 0 : i32
    %c0_i32_1 = arith.constant 0 : i32
    return %c0_i32, %c0_i32_0 : i32, i32
  }
  func.func @transform_7(%arg0: i32) -> (i32, i32) {
    %c0_i32 = arith.constant 0 : i32
    %c0_i32_0 = arith.constant 0 : i32
    return %arg0, %c0_i32 : i32, i32
  }
}

module attributes {stable_mosaic.version = 11 : i64} {
  func.func @_pointnet_conv_kernel(%arg0: i32, %arg1: memref<512x72xbf16, #tpu.memory_space<vmem>>, %arg2: memref<72x128xbf16, #tpu.memory_space<vmem>>, %arg3: memref<1x128xf32, #tpu.memory_space<vmem>>, %arg4: memref<128x128xbf16, #tpu.memory_space<vmem>>, %arg5: memref<1x128xf32, #tpu.memory_space<vmem>>, %arg6: memref<72x128xbf16, #tpu.memory_space<vmem>>, %arg7: memref<1x128xf32, #tpu.memory_space<vmem>>, %arg8: memref<32x128xf32, #tpu.memory_space<vmem>>) attributes {dimension_semantics = [#tpu.dimension_semantics<parallel>], iteration_bounds = array<i64: 1>, scalar_prefetch = 0 : i64, scratch_operands = 0 : i64, tpu.core_type = #tpu.core_type<tc>, window_params = [{transform_indices = @transform_0, window_bounds = array<i64: 512, 72>}, {pipeline_mode = #tpu.pipeline_mode<synchronous>, transform_indices = @transform_1, window_bounds = array<i64: 72, 128>}, {pipeline_mode = #tpu.pipeline_mode<synchronous>, transform_indices = @transform_2, window_bounds = array<i64: 1, 128>}, {pipeline_mode = #tpu.pipeline_mode<synchronous>, transform_indices = @transform_3, window_bounds = array<i64: 128, 128>}, {pipeline_mode = #tpu.pipeline_mode<synchronous>, transform_indices = @transform_4, window_bounds = array<i64: 1, 128>}, {pipeline_mode = #tpu.pipeline_mode<synchronous>, transform_indices = @transform_5, window_bounds = array<i64: 72, 128>}, {pipeline_mode = #tpu.pipeline_mode<synchronous>, transform_indices = @transform_6, window_bounds = array<i64: 1, 128>}, {transform_indices = @transform_7, window_bounds = array<i64: 32, 128>}]} {
    %c0 = arith.constant 0 : index
    %c0_0 = arith.constant 0 : index
    %0 = vector.load %arg1[%c0, %c0_0] : memref<512x72xbf16, #tpu.memory_space<vmem>>, vector<512x72xbf16>
    %c0_1 = arith.constant 0 : index
    %c0_2 = arith.constant 0 : index
    %1 = vector.load %arg2[%c0_1, %c0_2] : memref<72x128xbf16, #tpu.memory_space<vmem>>, vector<72x128xbf16>
    %cst = arith.constant dense<0.000000e+00> : vector<512x128xf32>
    %2 = tpu.matmul %0, %1, %cst {dimension_numbers = #tpu.dot_dimension_numbers<[1], [0], [0], [1], [0, 0, 1, 1], [], []>} : vector<512x72xbf16>, vector<72x128xbf16>, vector<512x128xf32> -> vector<512x128xf32>
    %c0_3 = arith.constant 0 : index
    %c0_4 = arith.constant 0 : index
    %3 = vector.load %arg3[%c0_3, %c0_4] : memref<1x128xf32, #tpu.memory_space<vmem>>, vector<1x128xf32>
    %4 = vector.broadcast %3 : vector<1x128xf32> to vector<512x128xf32>
    %5 = arith.addf %2, %4 : vector<512x128xf32>
    %cst_5 = arith.constant 0.000000e+00 : f32
    %6 = vector.broadcast %cst_5 : f32 to vector<512x128xf32>
    %7 = arith.maximumf %5, %6 : vector<512x128xf32>
    %8 = arith.truncf %7 : vector<512x128xf32> to vector<512x128xbf16>
    %c0_6 = arith.constant 0 : index
    %c0_7 = arith.constant 0 : index
    %9 = vector.load %arg4[%c0_6, %c0_7] : memref<128x128xbf16, #tpu.memory_space<vmem>>, vector<128x128xbf16>
    %cst_8 = arith.constant dense<0.000000e+00> : vector<512x128xf32>
    %10 = tpu.matmul %8, %9, %cst_8 {dimension_numbers = #tpu.dot_dimension_numbers<[1], [0], [0], [1], [0, 0, 1, 1], [], []>} : vector<512x128xbf16>, vector<128x128xbf16>, vector<512x128xf32> -> vector<512x128xf32>
    %c0_9 = arith.constant 0 : index
    %c0_10 = arith.constant 0 : index
    %11 = vector.load %arg6[%c0_9, %c0_10] : memref<72x128xbf16, #tpu.memory_space<vmem>>, vector<72x128xbf16>
    %cst_11 = arith.constant dense<0.000000e+00> : vector<512x128xf32>
    %12 = tpu.matmul %0, %11, %cst_11 {dimension_numbers = #tpu.dot_dimension_numbers<[1], [0], [0], [1], [0, 0, 1, 1], [], []>} : vector<512x72xbf16>, vector<72x128xbf16>, vector<512x128xf32> -> vector<512x128xf32>
    %13 = arith.addf %10, %12 : vector<512x128xf32>
    %c0_12 = arith.constant 0 : index
    %c0_13 = arith.constant 0 : index
    %14 = vector.load %arg5[%c0_12, %c0_13] : memref<1x128xf32, #tpu.memory_space<vmem>>, vector<1x128xf32>
    %15 = vector.broadcast %14 : vector<1x128xf32> to vector<512x128xf32>
    %16 = arith.addf %13, %15 : vector<512x128xf32>
    %c0_14 = arith.constant 0 : index
    %c0_15 = arith.constant 0 : index
    %17 = vector.load %arg7[%c0_14, %c0_15] : memref<1x128xf32, #tpu.memory_space<vmem>>, vector<1x128xf32>
    %18 = vector.broadcast %17 : vector<1x128xf32> to vector<512x128xf32>
    %19 = arith.addf %16, %18 : vector<512x128xf32>
    %cst_16 = arith.constant 0.000000e+00 : f32
    %20 = vector.broadcast %cst_16 : f32 to vector<512x128xf32>
    %21 = arith.maximumf %19, %20 : vector<512x128xf32>
    %22 = vector.shape_cast %21 : vector<512x128xf32> to vector<32x16x128xf32>
    %cst_17 = arith.constant dense<0xFF800000> : vector<32x128xf32>
    %23 = vector.multi_reduction <maximumf>, %22, %cst_17 [1] : vector<32x16x128xf32> to vector<32x128xf32>
    %c0_18 = arith.constant 0 : index
    %c0_19 = arith.constant 0 : index
    %24 = vector.load %arg8[%c0_18, %c0_19] : memref<32x128xf32, #tpu.memory_space<vmem>>, vector<32x128xf32>
    tpu.vector_store %arg8[%c0_18, %c0_19], %23 {strides = array<i32>} : memref<32x128xf32, #tpu.memory_space<vmem>>, vector<32x128xf32>,
    return
  }
  func.func @transform_0(%arg0: i32) -> (i32, i32) {
    %c0_i32 = arith.constant 0 : i32
    %c0_i32_0 = arith.constant 0 : i32
    return %arg0, %c0_i32 : i32, i32
  }
  func.func @transform_1(%arg0: i32) -> (i32, i32) {
    %c0_i32 = arith.constant 0 : i32
    %c0_i32_0 = arith.constant 0 : i32
    %c0_i32_1 = arith.constant 0 : i32
    return %c0_i32, %c0_i32_0 : i32, i32
  }
  func.func @transform_2(%arg0: i32) -> (i32, i32) {
    %c0_i32 = arith.constant 0 : i32
    %c0_i32_0 = arith.constant 0 : i32
    %c0_i32_1 = arith.constant 0 : i32
    return %c0_i32, %c0_i32_0 : i32, i32
  }
  func.func @transform_3(%arg0: i32) -> (i32, i32) {
    %c0_i32 = arith.constant 0 : i32
    %c0_i32_0 = arith.constant 0 : i32
    %c0_i32_1 = arith.constant 0 : i32
    return %c0_i32, %c0_i32_0 : i32, i32
  }
  func.func @transform_4(%arg0: i32) -> (i32, i32) {
    %c0_i32 = arith.constant 0 : i32
    %c0_i32_0 = arith.constant 0 : i32
    %c0_i32_1 = arith.constant 0 : i32
    return %c0_i32, %c0_i32_0 : i32, i32
  }
  func.func @transform_5(%arg0: i32) -> (i32, i32) {
    %c0_i32 = arith.constant 0 : i32
    %c0_i32_0 = arith.constant 0 : i32
    %c0_i32_1 = arith.constant 0 : i32
    return %c0_i32, %c0_i32_0 : i32, i32
  }
  func.func @transform_6(%arg0: i32) -> (i32, i32) {
    %c0_i32 = arith.constant 0 : i32
    %c0_i32_0 = arith.constant 0 : i32
    %c0_i32_1 = arith.constant 0 : i32
    return %c0_i32, %c0_i32_0 : i32, i32
  }
  func.func @transform_7(%arg0: i32) -> (i32, i32) {
    %c0_i32 = arith.constant 0 : i32
    %c0_i32_0 = arith.constant 0 : i32
    return %arg0, %c0_i32 : i32, i32
  }
}

module attributes {stable_mosaic.version = 11 : i64} {
  func.func @_pointnet_conv_kernel(%arg0: i32, %arg1: memref<128x136xbf16, #tpu.memory_space<vmem>>, %arg2: memref<136x256xbf16, #tpu.memory_space<vmem>>, %arg3: memref<1x256xf32, #tpu.memory_space<vmem>>, %arg4: memref<256x256xbf16, #tpu.memory_space<vmem>>, %arg5: memref<1x256xf32, #tpu.memory_space<vmem>>, %arg6: memref<136x256xbf16, #tpu.memory_space<vmem>>, %arg7: memref<1x256xf32, #tpu.memory_space<vmem>>, %arg8: memref<8x256xf32, #tpu.memory_space<vmem>>) attributes {dimension_semantics = [#tpu.dimension_semantics<parallel>], iteration_bounds = array<i64: 1>, scalar_prefetch = 0 : i64, scratch_operands = 0 : i64, tpu.core_type = #tpu.core_type<tc>, window_params = [{transform_indices = @transform_0, window_bounds = array<i64: 128, 136>}, {pipeline_mode = #tpu.pipeline_mode<synchronous>, transform_indices = @transform_1, window_bounds = array<i64: 136, 256>}, {pipeline_mode = #tpu.pipeline_mode<synchronous>, transform_indices = @transform_2, window_bounds = array<i64: 1, 256>}, {pipeline_mode = #tpu.pipeline_mode<synchronous>, transform_indices = @transform_3, window_bounds = array<i64: 256, 256>}, {pipeline_mode = #tpu.pipeline_mode<synchronous>, transform_indices = @transform_4, window_bounds = array<i64: 1, 256>}, {pipeline_mode = #tpu.pipeline_mode<synchronous>, transform_indices = @transform_5, window_bounds = array<i64: 136, 256>}, {pipeline_mode = #tpu.pipeline_mode<synchronous>, transform_indices = @transform_6, window_bounds = array<i64: 1, 256>}, {transform_indices = @transform_7, window_bounds = array<i64: 8, 256>}]} {
    %c0 = arith.constant 0 : index
    %c0_0 = arith.constant 0 : index
    %0 = vector.load %arg1[%c0, %c0_0] : memref<128x136xbf16, #tpu.memory_space<vmem>>, vector<128x136xbf16>
    %c0_1 = arith.constant 0 : index
    %c0_2 = arith.constant 0 : index
    %1 = vector.load %arg2[%c0_1, %c0_2] : memref<136x256xbf16, #tpu.memory_space<vmem>>, vector<136x256xbf16>
    %cst = arith.constant dense<0.000000e+00> : vector<128x256xf32>
    %2 = tpu.matmul %0, %1, %cst {dimension_numbers = #tpu.dot_dimension_numbers<[1], [0], [0], [1], [0, 0, 1, 1], [], []>} : vector<128x136xbf16>, vector<136x256xbf16>, vector<128x256xf32> -> vector<128x256xf32>
    %c0_3 = arith.constant 0 : index
    %c0_4 = arith.constant 0 : index
    %3 = vector.load %arg3[%c0_3, %c0_4] : memref<1x256xf32, #tpu.memory_space<vmem>>, vector<1x256xf32>
    %4 = vector.broadcast %3 : vector<1x256xf32> to vector<128x256xf32>
    %5 = arith.addf %2, %4 : vector<128x256xf32>
    %cst_5 = arith.constant 0.000000e+00 : f32
    %6 = vector.broadcast %cst_5 : f32 to vector<128x256xf32>
    %7 = arith.maximumf %5, %6 : vector<128x256xf32>
    %8 = arith.truncf %7 : vector<128x256xf32> to vector<128x256xbf16>
    %c0_6 = arith.constant 0 : index
    %c0_7 = arith.constant 0 : index
    %9 = vector.load %arg4[%c0_6, %c0_7] : memref<256x256xbf16, #tpu.memory_space<vmem>>, vector<256x256xbf16>
    %cst_8 = arith.constant dense<0.000000e+00> : vector<128x256xf32>
    %10 = tpu.matmul %8, %9, %cst_8 {dimension_numbers = #tpu.dot_dimension_numbers<[1], [0], [0], [1], [0, 0, 1, 1], [], []>} : vector<128x256xbf16>, vector<256x256xbf16>, vector<128x256xf32> -> vector<128x256xf32>
    %c0_9 = arith.constant 0 : index
    %c0_10 = arith.constant 0 : index
    %11 = vector.load %arg6[%c0_9, %c0_10] : memref<136x256xbf16, #tpu.memory_space<vmem>>, vector<136x256xbf16>
    %cst_11 = arith.constant dense<0.000000e+00> : vector<128x256xf32>
    %12 = tpu.matmul %0, %11, %cst_11 {dimension_numbers = #tpu.dot_dimension_numbers<[1], [0], [0], [1], [0, 0, 1, 1], [], []>} : vector<128x136xbf16>, vector<136x256xbf16>, vector<128x256xf32> -> vector<128x256xf32>
    %13 = arith.addf %10, %12 : vector<128x256xf32>
    %c0_12 = arith.constant 0 : index
    %c0_13 = arith.constant 0 : index
    %14 = vector.load %arg5[%c0_12, %c0_13] : memref<1x256xf32, #tpu.memory_space<vmem>>, vector<1x256xf32>
    %15 = vector.broadcast %14 : vector<1x256xf32> to vector<128x256xf32>
    %16 = arith.addf %13, %15 : vector<128x256xf32>
    %c0_14 = arith.constant 0 : index
    %c0_15 = arith.constant 0 : index
    %17 = vector.load %arg7[%c0_14, %c0_15] : memref<1x256xf32, #tpu.memory_space<vmem>>, vector<1x256xf32>
    %18 = vector.broadcast %17 : vector<1x256xf32> to vector<128x256xf32>
    %19 = arith.addf %16, %18 : vector<128x256xf32>
    %cst_16 = arith.constant 0.000000e+00 : f32
    %20 = vector.broadcast %cst_16 : f32 to vector<128x256xf32>
    %21 = arith.maximumf %19, %20 : vector<128x256xf32>
    %22 = vector.shape_cast %21 : vector<128x256xf32> to vector<8x16x256xf32>
    %cst_17 = arith.constant dense<0xFF800000> : vector<8x256xf32>
    %23 = vector.multi_reduction <maximumf>, %22, %cst_17 [1] : vector<8x16x256xf32> to vector<8x256xf32>
    %c0_18 = arith.constant 0 : index
    %c0_19 = arith.constant 0 : index
    %24 = vector.load %arg8[%c0_18, %c0_19] : memref<8x256xf32, #tpu.memory_space<vmem>>, vector<8x256xf32>
    tpu.vector_store %arg8[%c0_18, %c0_19], %23 {strides = array<i32>} : memref<8x256xf32, #tpu.memory_space<vmem>>, vector<8x256xf32>,
    return
  }
  func.func @transform_0(%arg0: i32) -> (i32, i32) {
    %c0_i32 = arith.constant 0 : i32
    %c0_i32_0 = arith.constant 0 : i32
    return %arg0, %c0_i32 : i32, i32
  }
  func.func @transform_1(%arg0: i32) -> (i32, i32) {
    %c0_i32 = arith.constant 0 : i32
    %c0_i32_0 = arith.constant 0 : i32
    %c0_i32_1 = arith.constant 0 : i32
    return %c0_i32, %c0_i32_0 : i32, i32
  }
  func.func @transform_2(%arg0: i32) -> (i32, i32) {
    %c0_i32 = arith.constant 0 : i32
    %c0_i32_0 = arith.constant 0 : i32
    %c0_i32_1 = arith.constant 0 : i32
    return %c0_i32, %c0_i32_0 : i32, i32
  }
  func.func @transform_3(%arg0: i32) -> (i32, i32) {
    %c0_i32 = arith.constant 0 : i32
    %c0_i32_0 = arith.constant 0 : i32
    %c0_i32_1 = arith.constant 0 : i32
    return %c0_i32, %c0_i32_0 : i32, i32
  }
  func.func @transform_4(%arg0: i32) -> (i32, i32) {
    %c0_i32 = arith.constant 0 : i32
    %c0_i32_0 = arith.constant 0 : i32
    %c0_i32_1 = arith.constant 0 : i32
    return %c0_i32, %c0_i32_0 : i32, i32
  }
  func.func @transform_5(%arg0: i32) -> (i32, i32) {
    %c0_i32 = arith.constant 0 : i32
    %c0_i32_0 = arith.constant 0 : i32
    %c0_i32_1 = arith.constant 0 : i32
    return %c0_i32, %c0_i32_0 : i32, i32
  }
  func.func @transform_6(%arg0: i32) -> (i32, i32) {
    %c0_i32 = arith.constant 0 : i32
    %c0_i32_0 = arith.constant 0 : i32
    %c0_i32_1 = arith.constant 0 : i32
    return %c0_i32, %c0_i32_0 : i32, i32
  }
  func.func @transform_7(%arg0: i32) -> (i32, i32) {
    %c0_i32 = arith.constant 0 : i32
    %c0_i32_0 = arith.constant 0 : i32
    return %arg0, %c0_i32 : i32, i32
  }
}

module attributes {stable_mosaic.version = 11 : i64} {
  func.func @_pool_head_kernel(%arg0: i32, %arg1: memref<2x4x256xf32, #tpu.memory_space<vmem>>, %arg2: memref<2x16xf32, #tpu.memory_space<vmem>>, %arg3: memref<256x512xbf16, #tpu.memory_space<vmem>>, %arg4: memref<16x512xbf16, #tpu.memory_space<vmem>>, %arg5: memref<1x512xf32, #tpu.memory_space<vmem>>, %arg6: memref<512x512xbf16, #tpu.memory_space<vmem>>, %arg7: memref<1x512xf32, #tpu.memory_space<vmem>>, %arg8: memref<256x512xbf16, #tpu.memory_space<vmem>>, %arg9: memref<16x512xbf16, #tpu.memory_space<vmem>>, %arg10: memref<1x512xf32, #tpu.memory_space<vmem>>, %arg11: memref<512x128xbf16, #tpu.memory_space<vmem>>, %arg12: memref<1x128xf32, #tpu.memory_space<vmem>>, %arg13: memref<2x128xf32, #tpu.memory_space<vmem>>) attributes {dimension_semantics = [#tpu.dimension_semantics<arbitrary>], iteration_bounds = array<i64: 1>, scalar_prefetch = 0 : i64, scratch_operands = 0 : i64, tpu.core_type = #tpu.core_type<tc>, window_params = [{pipeline_mode = #tpu.pipeline_mode<synchronous>, transform_indices = @transform_0, window_bounds = array<i64: 2, 4, 256>}, {pipeline_mode = #tpu.pipeline_mode<synchronous>, transform_indices = @transform_1, window_bounds = array<i64: 2, 16>}, {pipeline_mode = #tpu.pipeline_mode<synchronous>, transform_indices = @transform_2, window_bounds = array<i64: 256, 512>}, {pipeline_mode = #tpu.pipeline_mode<synchronous>, transform_indices = @transform_3, window_bounds = array<i64: 16, 512>}, {pipeline_mode = #tpu.pipeline_mode<synchronous>, transform_indices = @transform_4, window_bounds = array<i64: 1, 512>}, {pipeline_mode = #tpu.pipeline_mode<synchronous>, transform_indices = @transform_5, window_bounds = array<i64: 512, 512>}, {pipeline_mode = #tpu.pipeline_mode<synchronous>, transform_indices = @transform_6, window_bounds = array<i64: 1, 512>}, {pipeline_mode = #tpu.pipeline_mode<synchronous>, transform_indices = @transform_7, window_bounds = array<i64: 256, 512>}, {pipeline_mode = #tpu.pipeline_mode<synchronous>, transform_indices = @transform_8, window_bounds = array<i64: 16, 512>}, {pipeline_mode = #tpu.pipeline_mode<synchronous>, transform_indices = @transform_9, window_bounds = array<i64: 1, 512>}, {pipeline_mode = #tpu.pipeline_mode<synchronous>, transform_indices = @transform_10, window_bounds = array<i64: 512, 128>}, {pipeline_mode = #tpu.pipeline_mode<synchronous>, transform_indices = @transform_11, window_bounds = array<i64: 1, 128>}, {pipeline_mode = #tpu.pipeline_mode<synchronous>, transform_indices = @transform_12, window_bounds = array<i64: 2, 128>}]} {
    %c0 = arith.constant 0 : index
    %c0_0 = arith.constant 0 : index
    %c0_1 = arith.constant 0 : index
    %0 = vector.load %arg1[%c0, %c0_0, %c0_1] : memref<2x4x256xf32, #tpu.memory_space<vmem>>, vector<2x4x256xf32>
    %cst = arith.constant dense<0xFF800000> : vector<2x256xf32>
    %1 = vector.multi_reduction <maximumf>, %0, %cst [1] : vector<2x4x256xf32> to vector<2x256xf32>
    %2 = arith.truncf %1 : vector<2x256xf32> to vector<2x256xbf16>
    %c0_2 = arith.constant 0 : index
    %c0_3 = arith.constant 0 : index
    %3 = vector.load %arg2[%c0_2, %c0_3] : memref<2x16xf32, #tpu.memory_space<vmem>>, vector<2x16xf32>
    %4 = arith.truncf %3 : vector<2x16xf32> to vector<2x16xbf16>
    %c0_4 = arith.constant 0 : index
    %c0_5 = arith.constant 0 : index
    %5 = vector.load %arg3[%c0_4, %c0_5] : memref<256x512xbf16, #tpu.memory_space<vmem>>, vector<256x512xbf16>
    %cst_6 = arith.constant dense<0.000000e+00> : vector<2x512xf32>
    %6 = tpu.matmul %2, %5, %cst_6 {dimension_numbers = #tpu.dot_dimension_numbers<[1], [0], [0], [1], [0, 0, 1, 1], [], []>} : vector<2x256xbf16>, vector<256x512xbf16>, vector<2x512xf32> -> vector<2x512xf32>
    %c0_7 = arith.constant 0 : index
    %c0_8 = arith.constant 0 : index
    %7 = vector.load %arg4[%c0_7, %c0_8] : memref<16x512xbf16, #tpu.memory_space<vmem>>, vector<16x512xbf16>
    %cst_9 = arith.constant dense<0.000000e+00> : vector<2x512xf32>
    %8 = tpu.matmul %4, %7, %cst_9 {dimension_numbers = #tpu.dot_dimension_numbers<[1], [0], [0], [1], [0, 0, 1, 1], [], []>} : vector<2x16xbf16>, vector<16x512xbf16>, vector<2x512xf32> -> vector<2x512xf32>
    %9 = arith.addf %6, %8 : vector<2x512xf32>
    %c0_10 = arith.constant 0 : index
    %c0_11 = arith.constant 0 : index
    %10 = vector.load %arg5[%c0_10, %c0_11] : memref<1x512xf32, #tpu.memory_space<vmem>>, vector<1x512xf32>
    %11 = vector.broadcast %10 : vector<1x512xf32> to vector<2x512xf32>
    %12 = arith.addf %9, %11 : vector<2x512xf32>
    %cst_12 = arith.constant 0.000000e+00 : f32
    %13 = vector.broadcast %cst_12 : f32 to vector<2x512xf32>
    %14 = arith.maximumf %12, %13 : vector<2x512xf32>
    %15 = arith.truncf %14 : vector<2x512xf32> to vector<2x512xbf16>
    %c0_13 = arith.constant 0 : index
    %c0_14 = arith.constant 0 : index
    %16 = vector.load %arg6[%c0_13, %c0_14] : memref<512x512xbf16, #tpu.memory_space<vmem>>, vector<512x512xbf16>
    %cst_15 = arith.constant dense<0.000000e+00> : vector<2x512xf32>
    %17 = tpu.matmul %15, %16, %cst_15 {dimension_numbers = #tpu.dot_dimension_numbers<[1], [0], [0], [1], [0, 0, 1, 1], [], []>} : vector<2x512xbf16>, vector<512x512xbf16>, vector<2x512xf32> -> vector<2x512xf32>
    %c0_16 = arith.constant 0 : index
    %c0_17 = arith.constant 0 : index
    %18 = vector.load %arg8[%c0_16, %c0_17] : memref<256x512xbf16, #tpu.memory_space<vmem>>, vector<256x512xbf16>
    %cst_18 = arith.constant dense<0.000000e+00> : vector<2x512xf32>
    %19 = tpu.matmul %2, %18, %cst_18 {dimension_numbers = #tpu.dot_dimension_numbers<[1], [0], [0], [1], [0, 0, 1, 1], [], []>} : vector<2x256xbf16>, vector<256x512xbf16>, vector<2x512xf32> -> vector<2x512xf32>
    %20 = arith.addf %17, %19 : vector<2x512xf32>
    %c0_19 = arith.constant 0 : index
    %c0_20 = arith.constant 0 : index
    %21 = vector.load %arg9[%c0_19, %c0_20] : memref<16x512xbf16, #tpu.memory_space<vmem>>, vector<16x512xbf16>
    %cst_21 = arith.constant dense<0.000000e+00> : vector<2x512xf32>
    %22 = tpu.matmul %4, %21, %cst_21 {dimension_numbers = #tpu.dot_dimension_numbers<[1], [0], [0], [1], [0, 0, 1, 1], [], []>} : vector<2x16xbf16>, vector<16x512xbf16>, vector<2x512xf32> -> vector<2x512xf32>
    %23 = arith.addf %20, %22 : vector<2x512xf32>
    %c0_22 = arith.constant 0 : index
    %c0_23 = arith.constant 0 : index
    %24 = vector.load %arg7[%c0_22, %c0_23] : memref<1x512xf32, #tpu.memory_space<vmem>>, vector<1x512xf32>
    %25 = vector.broadcast %24 : vector<1x512xf32> to vector<2x512xf32>
    %26 = arith.addf %23, %25 : vector<2x512xf32>
    %c0_24 = arith.constant 0 : index
    %c0_25 = arith.constant 0 : index
    %27 = vector.load %arg10[%c0_24, %c0_25] : memref<1x512xf32, #tpu.memory_space<vmem>>, vector<1x512xf32>
    %28 = vector.broadcast %27 : vector<1x512xf32> to vector<2x512xf32>
    %29 = arith.addf %26, %28 : vector<2x512xf32>
    %cst_26 = arith.constant 0.000000e+00 : f32
    %30 = vector.broadcast %cst_26 : f32 to vector<2x512xf32>
    %31 = arith.maximumf %29, %30 : vector<2x512xf32>
    %32 = arith.truncf %31 : vector<2x512xf32> to vector<2x512xbf16>
    %c0_27 = arith.constant 0 : index
    %c0_28 = arith.constant 0 : index
    %33 = vector.load %arg11[%c0_27, %c0_28] : memref<512x128xbf16, #tpu.memory_space<vmem>>, vector<512x128xbf16>
    %cst_29 = arith.constant dense<0.000000e+00> : vector<2x128xf32>
    %34 = tpu.matmul %32, %33, %cst_29 {dimension_numbers = #tpu.dot_dimension_numbers<[1], [0], [0], [1], [0, 0, 1, 1], [], []>} : vector<2x512xbf16>, vector<512x128xbf16>, vector<2x128xf32> -> vector<2x128xf32>
    %c0_30 = arith.constant 0 : index
    %c0_31 = arith.constant 0 : index
    %35 = vector.load %arg12[%c0_30, %c0_31] : memref<1x128xf32, #tpu.memory_space<vmem>>, vector<1x128xf32>
    %36 = vector.broadcast %35 : vector<1x128xf32> to vector<2x128xf32>
    %37 = arith.addf %34, %36 : vector<2x128xf32>
    %c0_32 = arith.constant 0 : index
    %c0_33 = arith.constant 0 : index
    %38 = vector.load %arg13[%c0_32, %c0_33] : memref<2x128xf32, #tpu.memory_space<vmem>>, vector<2x128xf32>
    tpu.vector_store %arg13[%c0_32, %c0_33], %37 {strides = array<i32>} : memref<2x128xf32, #tpu.memory_space<vmem>>, vector<2x128xf32>,
    return
  }
  func.func @transform_0(%arg0: i32) -> (i32, i32, i32) {
    %c0_i32 = arith.constant 0 : i32
    %c0_i32_0 = arith.constant 0 : i32
    %c0_i32_1 = arith.constant 0 : i32
    %c0_i32_2 = arith.constant 0 : i32
    return %c0_i32, %c0_i32_0, %c0_i32_1 : i32, i32, i32
  }
  func.func @transform_1(%arg0: i32) -> (i32, i32) {
    %c0_i32 = arith.constant 0 : i32
    %c0_i32_0 = arith.constant 0 : i32
    %c0_i32_1 = arith.constant 0 : i32
    return %c0_i32, %c0_i32_0 : i32, i32
  }
  func.func @transform_2(%arg0: i32) -> (i32, i32) {
    %c0_i32 = arith.constant 0 : i32
    %c0_i32_0 = arith.constant 0 : i32
    %c0_i32_1 = arith.constant 0 : i32
    return %c0_i32, %c0_i32_0 : i32, i32
  }
  func.func @transform_3(%arg0: i32) -> (i32, i32) {
    %c0_i32 = arith.constant 0 : i32
    %c0_i32_0 = arith.constant 0 : i32
    %c0_i32_1 = arith.constant 0 : i32
    return %c0_i32, %c0_i32_0 : i32, i32
  }
  func.func @transform_4(%arg0: i32) -> (i32, i32) {
    %c0_i32 = arith.constant 0 : i32
    %c0_i32_0 = arith.constant 0 : i32
    %c0_i32_1 = arith.constant 0 : i32
    return %c0_i32, %c0_i32_0 : i32, i32
  }
  func.func @transform_5(%arg0: i32) -> (i32, i32) {
    %c0_i32 = arith.constant 0 : i32
    %c0_i32_0 = arith.constant 0 : i32
    %c0_i32_1 = arith.constant 0 : i32
    return %c0_i32, %c0_i32_0 : i32, i32
  }
  func.func @transform_6(%arg0: i32) -> (i32, i32) {
    %c0_i32 = arith.constant 0 : i32
    %c0_i32_0 = arith.constant 0 : i32
    %c0_i32_1 = arith.constant 0 : i32
    return %c0_i32, %c0_i32_0 : i32, i32
  }
  func.func @transform_7(%arg0: i32) -> (i32, i32) {
    %c0_i32 = arith.constant 0 : i32
    %c0_i32_0 = arith.constant 0 : i32
    %c0_i32_1 = arith.constant 0 : i32
    return %c0_i32, %c0_i32_0 : i32, i32
  }
  func.func @transform_8(%arg0: i32) -> (i32, i32) {
    %c0_i32 = arith.constant 0 : i32
    %c0_i32_0 = arith.constant 0 : i32
    %c0_i32_1 = arith.constant 0 : i32
    return %c0_i32, %c0_i32_0 : i32, i32
  }
  func.func @transform_9(%arg0: i32) -> (i32, i32) {
    %c0_i32 = arith.constant 0 : i32
    %c0_i32_0 = arith.constant 0 : i32
    %c0_i32_1 = arith.constant 0 : i32
    return %c0_i32, %c0_i32_0 : i32, i32
  }
  func.func @transform_10(%arg0: i32) -> (i32, i32) {
    %c0_i32 = arith.constant 0 : i32
    %c0_i32_0 = arith.constant 0 : i32
    %c0_i32_1 = arith.constant 0 : i32
    return %c0_i32, %c0_i32_0 : i32, i32
  }
  func.func @transform_11(%arg0: i32) -> (i32, i32) {
    %c0_i32 = arith.constant 0 : i32
    %c0_i32_0 = arith.constant 0 : i32
    %c0_i32_1 = arith.constant 0 : i32
    return %c0_i32, %c0_i32_0 : i32, i32
  }
  func.func @transform_12(%arg0: i32) -> (i32, i32) {
    %c0_i32 = arith.constant 0 : i32
    %c0_i32_0 = arith.constant 0 : i32
    %c0_i32_1 = arith.constant 0 : i32
    return %c0_i32, %c0_i32_0 : i32, i32
  }
}

</mosaic_0001>

<bundles_post_ra>
// kernel: neg.4
= control target key start
LH: loop header
LB: loop body
LE: loop exit
PB: predicated region body
PF: predicated region fallthrough
CT: control target
= control target key end

     0   :  { %s72_s0 = inlined_call_operand.vmem [shape: f32[2,16,64], index: 0, kind: input, shape index: {}]   ;;  %s73_s1 = inlined_call_operand.vmem [shape: f32[2,16,64], index: 1, kind: output, shape index: {}]  }
   0x1   :  { %v2_v0 = vld [vmem:[%s72_s0] sm:$0xff]  ;;  %v32_v1 = vld [vmem:[%s72_s0 + $0x10] sm:$0xff]  ;;  %v34_v2 = vld [vmem:[%s72_s0 + $0x8] sm:$0xff] }
   0x2   :  { %v5_v3 = vxor.u32 2147483648, %v2_v0  ;;  %v12_v4 = vxor.u32 2147483648, %v32_v1  ;;  %v20_v5 = vxor.u32 2147483648, %v34_v2  ;;  %v36_v6 = vld [vmem:[%s72_s0 + $0x18] sm:$0xff] }
   0x3   :  { %v28_v7 = vxor.u32 2147483648, %v36_v6 }
   0x4   :  { %7 = vst [vmem:[%s73_s1] sm:$0xff] %v5_v3  ;;  %33 = vst [vmem:[%s73_s1 + $0x10] sm:$0xff] %v12_v4 }
   0x5   :  { %35 = vst [vmem:[%s73_s1 + $0x8] sm:$0xff] %v20_v5  ;;  %37 = vst [vmem:[%s73_s1 + $0x18] sm:$0xff] %v28_v7 }

// kernel: neg.3
= control target key start
LH: loop header
LB: loop body
LE: loop exit
PB: predicated region body
PF: predicated region fallthrough
CT: control target
= control target key end

     0   :  { %s520_s0 = inlined_call_operand.vmem [shape: f32[2,64,256], index: 0, kind: input, shape index: {}]   ;;  %s521_s1 = inlined_call_operand.vmem [shape: f32[2,64,256], index: 1, kind: output, shape index: {}]  }
   0x1   :  { %v2_v0 = vld [vmem:[%s520_s0] sm:$0xff]  ;;  %v258_v2 = vld [vmem:[%s520_s0 + $0x10] sm:$0xff]  ;;  %v286_v31 = vld [vmem:[%s520_s0 + $0x8] sm:$0xff] }
   0x2   :  { %v256_v1 = vld [vmem:[%s520_s0 + $0x80] sm:$0xff]  ;;  %v5_v3 = vxor.u32 2147483648, %v2_v0  ;;  %v20_v5 = vxor.u32 2147483648, %v258_v2  ;;  %v260_v6 = vld [vmem:[%s520_s0 + $0x90] sm:$0xff]  ;;  %v288_v32 = vld [vmem:[%s520_s0 + $0x88] sm:$0xff]  ;;  %v132_v34 = vxor.u32 2147483648, %v286_v31 }
   0x3   :  { %v12_v4 = vxor.u32 2147483648, %v256_v1  ;;  %v262_v7 = vld [vmem:[%s520_s0 + $0x20] sm:$0xff]  ;;  %v28_v9 = vxor.u32 2147483648, %v260_v6  ;;  %v266_v12 = vld [vmem:[%s520_s0 + $0x30] sm:$0xff]  ;;  %v140_v35 = vxor.u32 2147483648, %v288_v32  ;;  %v290_v36 = vld [vmem:[%s520_s0 + $0x18] sm:$0xff] }
   0x4   :  { %v264_v8 = vld [vmem:[%s520_s0 + $0xa0] sm:$0xff]  ;;  %v36_v10 = vxor.u32 2147483648, %v262_v7  ;;  %v268_v13 = vld [vmem:[%s520_s0 + $0xb0] sm:$0xff]  ;;  %7 = vst [vmem:[%s521_s1] sm:$0xff] %v5_v3  ;;  %259 = vst [vmem:[%s521_s1 + $0x10] sm:$0xff] %v20_v5  ;;  %v52_v15 = vxor.u32 2147483648, %v266_v12  ;;  %v148_v39 = vxor.u32 2147483648, %v290_v36 }
   0x5   :  { %v44_v11 = vxor.u32 2147483648, %v264_v8  ;;  %v270_v14 = vld [vmem:[%s520_s0 + $0x40] sm:$0xff]  ;;  %257 = vst [vmem:[%s521_s1 + $0x80] sm:$0xff] %v12_v4  ;;  %v60_v16 = vxor.u32 2147483648, %v268_v13  ;;  %v274_v19 = vld [vmem:[%s520_s0 + $0x50] sm:$0xff]  ;;  %261 = vst [vmem:[%s521_s1 + $0x90] sm:$0xff] %v28_v9 }
   0x6   :  { %v68_v17 = vxor.u32 2147483648, %v270_v14  ;;  %v272_v18 = vld [vmem:[%s520_s0 + $0xc0] sm:$0xff]  ;;  %v276_v20 = vld [vmem:[%s520_s0 + $0xd0] sm:$0xff]  ;;  %263 = vst [vmem:[%s521_s1 + $0x20] sm:$0xff] %v36_v10  ;;  %v84_v22 = vxor.u32 2147483648, %v274_v19  ;;  %267 = vst [vmem:[%s521_s1 + $0x30] sm:$0xff] %v52_v15 }
   0x7   :  { %265 = vst [vmem:[%s521_s1 + $0xa0] sm:$0xff] %v44_v11  ;;  %v76_v21 = vxor.u32 2147483648, %v272_v18  ;;  %v92_v23 = vxor.u32 2147483648, %v276_v20  ;;  %v278_v24 = vld [vmem:[%s520_s0 + $0x60] sm:$0xff]  ;;  %v282_v26 = vld [vmem:[%s520_s0 + $0x70] sm:$0xff]  ;;  %269 = vst [vmem:[%s521_s1 + $0xb0] sm:$0xff] %v60_v16 }
   0x8   :  { %v280_v25 = vld [vmem:[%s520_s0 + $0xe0] sm:$0xff]  ;;  %271 = vst [vmem:[%s521_s1 + $0x40] sm:$0xff] %v68_v17  ;;  %v100_v27 = vxor.u32 2147483648, %v278_v24  ;;  %v116_v29 = vxor.u32 2147483648, %v282_v26  ;;  %v284_v30 = vld [vmem:[%s520_s0 + $0xf0] sm:$0xff]  ;;  %275 = vst [vmem:[%s521_s1 + $0x50] sm:$0xff] %v84_v22 }
   0x9   :  { %v108_v28 = vxor.u32 2147483648, %v280_v25  ;;  %273 = vst [vmem:[%s521_s1 + $0xc0] sm:$0xff] %v76_v21  ;;  %277 = vst [vmem:[%s521_s1 + $0xd0] sm:$0xff] %v92_v23  ;;  %v124_v33 = vxor.u32 2147483648, %v284_v30  ;;  %v292_v37 = vld [vmem:[%s520_s0 + $0x98] sm:$0xff]  ;;  %v294_v38 = vld [vmem:[%s520_s0 + $0x28] sm:$0xff] }
   0xa   :  { %279 = vst [vmem:[%s521_s1 + $0x60] sm:$0xff] %v100_v27  ;;  %283 = vst [vmem:[%s521_s1 + $0x70] sm:$0xff] %v116_v29  ;;  %v156_v40 = vxor.u32 2147483648, %v292_v37  ;;  %v164_v41 = vxor.u32 2147483648, %v294_v38  ;;  %v296_v42 = vld [vmem:[%s520_s0 + $0xa8] sm:$0xff]  ;;  %v298_v43 = vld [vmem:[%s520_s0 + $0x38] sm:$0xff] }
   0xb   :  { %281 = vst [vmem:[%s521_s1 + $0xe0] sm:$0xff] %v108_v28  ;;  %v300_v44 = vld [vmem:[%s520_s0 + $0xb8] sm:$0xff]  ;;  %285 = vst [vmem:[%s521_s1 + $0xf0] sm:$0xff] %v124_v33  ;;  %v172_v45 = vxor.u32 2147483648, %v296_v42  ;;  %v180_v46 = vxor.u32 2147483648, %v298_v43  ;;  %v302_v48 = vld [vmem:[%s520_s0 + $0x48] sm:$0xff] }
   0xc   :  { %287 = vst [vmem:[%s521_s1 + $0x8] sm:$0xff] %v132_v34  ;;  %289 = vst [vmem:[%s521_s1 + $0x88] sm:$0xff] %v140_v35  ;;  %v188_v47 = vxor.u32 2147483648, %v300_v44  ;;  %v304_v49 = vld [vmem:[%s520_s0 + $0xc8] sm:$0xff]  ;;  %v306_v50 = vld [vmem:[%s520_s0 + $0x58] sm:$0xff]  ;;  %v196_v51 = vxor.u32 2147483648, %v302_v48 }
   0xd   :  { %291 = vst [vmem:[%s521_s1 + $0x18] sm:$0xff] %v148_v39  ;;  %293 = vst [vmem:[%s521_s1 + $0x98] sm:$0xff] %v156_v40  ;;  %v204_v52 = vxor.u32 2147483648, %v304_v49  ;;  %v212_v53 = vxor.u32 2147483648, %v306_v50  ;;  %v308_v54 = vld [vmem:[%s520_s0 + $0xd8] sm:$0xff]  ;;  %v310_v55 = vld [vmem:[%s520_s0 + $0x68] sm:$0xff] }
   0xe   :  { %295 = vst [vmem:[%s521_s1 + $0x28] sm:$0xff] %v164_v41  ;;  %v312_v56 = vld [vmem:[%s520_s0 + $0xe8] sm:$0xff]  ;;  %297 = vst [vmem:[%s521_s1 + $0xa8] sm:$0xff] %v172_v45  ;;  %v220_v57 = vxor.u32 2147483648, %v308_v54  ;;  %v228_v58 = vxor.u32 2147483648, %v310_v55  ;;  %v314_v60 = vld [vmem:[%s520_s0 + $0x78] sm:$0xff] }
   0xf   :  { %299 = vst [vmem:[%s521_s1 + $0x38] sm:$0xff] %v180_v46  ;;  %301 = vst [vmem:[%s521_s1 + $0xb8] sm:$0xff] %v188_v47  ;;  %v236_v59 = vxor.u32 2147483648, %v312_v56  ;;  %v316_v61 = vld [vmem:[%s520_s0 + $0xf8] sm:$0xff]  ;;  %v244_v62 = vxor.u32 2147483648, %v314_v60 }
  0x10   :  { %303 = vst [vmem:[%s521_s1 + $0x48] sm:$0xff] %v196_v51  ;;  %305 = vst [vmem:[%s521_s1 + $0xc8] sm:$0xff] %v204_v52  ;;  %v252_v63 = vxor.u32 2147483648, %v316_v61 }
  0x11   :  { %307 = vst [vmem:[%s521_s1 + $0x58] sm:$0xff] %v212_v53  ;;  %309 = vst [vmem:[%s521_s1 + $0xd8] sm:$0xff] %v220_v57 }
  0x12   :  { %311 = vst [vmem:[%s521_s1 + $0x68] sm:$0xff] %v228_v58  ;;  %313 = vst [vmem:[%s521_s1 + $0xe8] sm:$0xff] %v236_v59 }
  0x13   :  { %315 = vst [vmem:[%s521_s1 + $0x78] sm:$0xff] %v244_v62  ;;  %317 = vst [vmem:[%s521_s1 + $0xf8] sm:$0xff] %v252_v63 }

// kernel: posterior_encoder_forward.4
= control target key start
LH: loop header
LB: loop body
LE: loop exit
PB: predicated region body
PF: predicated region fallthrough
CT: control target
= control target key end

     0   :  { %vm1316_vm0 = vcmask 1043456   ;;  %vm931_vm1 = vcmask 64512   ;;  %vm6749_vm2 = vcmask 1041409   ;;  %vm6751_vm3 = vcmask 1042434   ;;  %s12671_s1 = inlined_call_operand.vmem [shape: bf16[8,128], index: 1, kind: input, shape index: {}]   ;;  %s12672_s5 = inlined_call_operand.vmem [shape: bf16[8,128], index: 5, kind: input, shape index: {}]   ;;  %s12673_s0 = inlined_call_operand.vmem [shape: bf16[2048,8], index: 0, kind: input, shape index: {}]   ;;  %s12674_s3 = inlined_call_operand.vmem [shape: bf16[128,128], index: 3, kind: input, shape index: {}]   ;;  %s12675_s2 = inlined_call_operand.vmem [shape: f32[1,128], index: 2, kind: input, shape index: {}]   ;;  %s12676_s4 = inlined_call_operand.vmem [shape: f32[1,128], index: 4, kind: input, shape index: {}]   ;;  %s12677_s6 = inlined_call_operand.vmem [shape: f32[1,128], index: 6, kind: input, shape index: {}]   ;;  %s12678_s7 = inlined_call_operand.vmem [shape: f32[128,128], index: 7, kind: output, shape index: {}]  }
   0x1   :  { %v283_v0 = vld [vmem:[%s12671_s1] sm:$0xf]  ;;  %v8744_v6 = vld [vmem:[%s12673_s0 + $0x8] sm:$0xff]   ;;  %v8747_v9 = vld [vmem:[%s12673_s0 + $0x10] sm:$0xff]   ;;  %vm6753_vm4 = vcmask 1043459   ;;  %vm6755_vm5 = vcmask 1044484  }
   0x2   :  { %v2777_v1 = vld [vmem:[%s12672_s5] sm:$0xf]  ;;  %8739 = vmatprep.subr.msk.bf16.mxu0 %vm1316_vm0, %v283_v0  ;;  %v1318_v2 = vsel %vm1316_vm0, %v283_v0, 0  ;;  %v8745_v7 = vld [vmem:[%s12673_s0 + $0x208] sm:$0xff]   ;;  %v8748_v10 = vld [vmem:[%s12673_s0 + $0x210] sm:$0xff]   ;;  %vm6757_vm6 = vcmask 1045509  }
   0x3   :  { %8741 = vmatprep.subr.msk.bf16.mxu1 %vm1316_vm0, %v2777_v1  ;;  %v2779_v3 = vsel %vm1316_vm0, %v2777_v1, 0  ;;  %v8742_v4 = vld [vmem:[%s12673_s0] sm:$0xff]   ;;  %7694 = vmatpush3.bf16.msra.mxu0 %v1318_v2  ;;  %v8749_v11 = vld [vmem:[%s12673_s0 + $0x18] sm:$0xff]   ;;  %v8753_v15 = vld [vmem:[%s12673_s0 + $0x28] sm:$0xff]   ;;  %vm6759_vm7 = vcmask 1046534   ;;  %vm6761_vm8 = vcmask 1047559  }
   0x4   :  { %v8743_v5 = vld [vmem:[%s12673_s0 + $0x200] sm:$0xff]   ;;  %8482 = vmatpush3.bf16.msra.mxu1 %v2779_v3  ;;  %7695 = vmatprep.mubr.msk.bf16.mxu0 %vm931_vm1, %v8742_v4  ;;  %v8750_v12 = vld [vmem:[%s12673_s0 + $0x218] sm:$0xff]   ;;  %v8754_v16 = vld [vmem:[%s12673_s0 + $0x228] sm:$0xff]  }
   0x5   :  { %8081 = vmatprep.mubr.msk.bf16.mxu1 %vm931_vm1, %v8743_v5  ;;  %8740 = vmatprep.subr.msk.bf16.mxu0 %vm1316_vm0, %v2777_v1  ;;  %v8746_v8 = vld [vmem:[%s12674_s3] sm:$0xff]   ;;  %v8755_v17 = vld [vmem:[%s12673_s0 + $0x30] sm:$0xff]   ;;  %v8763_v19 = vld [vmem:[%s12674_s3 + $0x8] sm:$0xff]  }
   0x6   :  { %7696 = vmatmul.mubr.msk.bf16.vlgmr.msra.gmra.mrb[0].mxu0 %vm931_vm1, %v8744_v6  ;;  %8209 = vmatprep.subr.bf16.mxu1 %v8746_v8  ;;  %v8751_v13 = vld [vmem:[%s12673_s0 + $0x20] sm:$0xff]   ;;  %v8756_v18 = vld [vmem:[%s12673_s0 + $0x230] sm:$0xff]   ;;  %v8757_v20 = vld [vmem:[%s12673_s0 + $0x38] sm:$0xff]  }
   0x7   :  { %8082 = vmatmul.mubr.msk.bf16.vlgmr.msra.gmra.mrb[0].mxu1 %vm931_vm1, %v8745_v7  ;;  %7952 = vmatpush3.bf16.msra.mxu0 %v2779_v3  ;;  %v8752_v14 = vld [vmem:[%s12673_s0 + $0x220] sm:$0xff]   ;;  %v8758_v21 = vld [vmem:[%s12673_s0 + $0x238] sm:$0xff]   ;;  %v8761_v24 = vld [vmem:[%s12673_s0 + $0x48] sm:$0xff]  }
   0x8   :  { %8210 = vmatpush3.bf16.msra.mxu1 %v8746_v8  ;;  %7699 = vmatprep.mubr.msk.bf16.mxu0 %vm931_vm1, %v8747_v9  ;;  %v8759_v22 = vld [vmem:[%s12673_s0 + $0x40] sm:$0xff]   ;;  %v8762_v25 = vld [vmem:[%s12673_s0 + $0x248] sm:$0xff]   ;;  %v8764_v26 = vld [vmem:[%s12673_s0 + $0x50] sm:$0xff]  }
   0x9   :  { %8085 = vmatprep.mubr.msk.bf16.mxu1 %vm931_vm1, %v8748_v10  ;;  %8211 = vmatprep.subr.bf16.mxu1 %v8763_v19  ;;  %v8760_v23 = vld [vmem:[%s12673_s0 + $0x240] sm:$0xff]   ;;  %v8765_v27 = vld [vmem:[%s12673_s0 + $0x250] sm:$0xff]   ;;  %v8766_v29 = vld [vmem:[%s12673_s0 + $0x58] sm:$0xff]  }
   0xa   :  { %v8780_v28 = vld [vmem:[%s12674_s3 + $0x10] sm:$0xff]   ;;  %v8767_v30 = vld [vmem:[%s12673_s0 + $0x258] sm:$0xff]   ;;  %v8768_v31 = vld [vmem:[%s12673_s0 + $0x60] sm:$0xff]  }
   0xb   :  { %v8769_v32 = vld [vmem:[%s12673_s0 + $0x260] sm:$0xff]   ;;  %v8770_v33 = vld [vmem:[%s12673_s0 + $0x68] sm:$0xff]   ;;  %v8772_v35 = vld [vmem:[%s12673_s0 + $0x70] sm:$0xff]  }
   0xc   :  { %8212 = vmatpush3.bf16.msra.mxu1 %v8763_v19  ;;  %v8771_v34 = vld [vmem:[%s12673_s0 + $0x268] sm:$0xff]   ;;  %v8773_v36 = vld [vmem:[%s12673_s0 + $0x270] sm:$0xff]   ;;  %v8774_v37 = vld [vmem:[%s12673_s0 + $0x78] sm:$0xff]  }
   0xd   :  { %8213 = vmatprep.subr.bf16.mxu1 %v8780_v28  ;;  %v8797_v38 = vld [vmem:[%s12674_s3 + $0x18] sm:$0xff]   ;;  %v8776_v40 = vld [vmem:[%s12673_s0 + $0x80] sm:$0xff]   ;;  %v8778_v42 = vld [vmem:[%s12673_s0 + $0x88] sm:$0xff]  }
   0xe   :  { %7700 = vmatmul.mubr.msk.bf16.gmra.mrb[4].mxu0 %vm931_vm1, %v8749_v11  ;;  %v8775_v39 = vld [vmem:[%s12673_s0 + $0x278] sm:$0xff]   ;;  %v8777_v41 = vld [vmem:[%s12673_s0 + $0x280] sm:$0xff]   ;;  %v8779_v43 = vld [vmem:[%s12673_s0 + $0x288] sm:$0xff]  }
   0xf   :  { %8086 = vmatmul.mubr.msk.bf16.gmra.mrb[4].mxu1 %vm931_vm1, %v8750_v12  ;;  %7703 = vmatprep.mubr.msk.bf16.mxu0 %vm931_vm1, %v8751_v13  ;;  %v8781_v44 = vld [vmem:[%s12673_s0 + $0x90] sm:$0xff]   ;;  %v8783_v46 = vld [vmem:[%s12673_s0 + $0x98] sm:$0xff]   ;;  %v8814_v48 = vld [vmem:[%s12674_s3 + $0x20] sm:$0xff]  }
  0x10   :  { %8089 = vmatprep.mubr.msk.bf16.mxu1 %vm931_vm1, %v8752_v14  ;;  %8214 = vmatpush3.bf16.msra.mxu1 %v8780_v28  ;;  %v8782_v45 = vld [vmem:[%s12673_s0 + $0x290] sm:$0xff]   ;;  %v8784_v47 = vld [vmem:[%s12673_s0 + $0x298] sm:$0xff]   ;;  %v8785_v49 = vld [vmem:[%s12673_s0 + $0xa0] sm:$0xff]  }
  0x11   :  { %8215 = vmatprep.subr.bf16.mxu1 %v8797_v38  ;;  %v8786_v50 = vld [vmem:[%s12673_s0 + $0x2a0] sm:$0xff]   ;;  %v8787_v51 = vld [vmem:[%s12673_s0 + $0xa8] sm:$0xff]   ;;  %v8789_v53 = vld [vmem:[%s12673_s0 + $0xb0] sm:$0xff]  }
  0x12   :  { %v8788_v52 = vld [vmem:[%s12673_s0 + $0x2a8] sm:$0xff]   ;;  %v8790_v54 = vld [vmem:[%s12673_s0 + $0x2b0] sm:$0xff]   ;;  %v8791_v55 = vld [vmem:[%s12673_s0 + $0xb8] sm:$0xff]  }
  0x13   :  { %v8792_v56 = vld [vmem:[%s12673_s0 + $0x2b8] sm:$0xff]   ;;  %v8793_v57 = vld [vmem:[%s12673_s0 + $0xc0] sm:$0xff]   ;;  %v8831_v58 = vld [vmem:[%s12674_s3 + $0x28] sm:$0xff]  }
  0x14   :  { %8216 = vmatpush3.bf16.msra.mxu1 %v8797_v38  ;;  %v8794_v59 = vld [vmem:[%s12673_s0 + $0x2c0] sm:$0xff]   ;;  %v8795_v60 = vld [vmem:[%s12673_s0 + $0xc8] sm:$0xff]   ;;  %v8798_v62 = vld [vmem:[%s12673_s0 + $0xd0] sm:$0xff]  }
  0x15   :  { %8217 = vmatprep.subr.bf16.mxu1 %v8814_v48  ;;  %v8796_v61 = vld [vmem:[%s12673_s0 + $0x2c8] sm:$0xff]   ;;  %v8799_v63 = vld [vmem:[%s12673_s0 + $0x2d0] sm:$0xff]   ;;  %v8800_v0 = vld [vmem:[%s12673_s0 + $0xd8] sm:$0xff]  }
  0x16   :  { %7704 = vmatmul.mubr.msk.bf16.gmra.mrb[8].mxu0 %vm931_vm1, %v8753_v15  ;;  %v8801_v1 = vld [vmem:[%s12673_s0 + $0x2d8] sm:$0xff]   ;;  %v8802_v2 = vld [vmem:[%s12673_s0 + $0xe0] sm:$0xff]   ;;  %v8848_v4 = vld [vmem:[%s12674_s3 + $0x30] sm:$0xff]  }
  0x17   :  { %8090 = vmatmul.mubr.msk.bf16.gmra.mrb[8].mxu1 %vm931_vm1, %v8754_v16  ;;  %7707 = vmatprep.mubr.msk.bf16.mxu0 %vm931_vm1, %v8755_v17  ;;  %v8803_v3 = vld [vmem:[%s12673_s0 + $0x2e0] sm:$0xff]   ;;  %v8804_v5 = vld [vmem:[%s12673_s0 + $0xe8] sm:$0xff]   ;;  %v8806_v7 = vld [vmem:[%s12673_s0 + $0xf0] sm:$0xff]  }
  0x18   :  { %8093 = vmatprep.mubr.msk.bf16.mxu1 %vm931_vm1, %v8756_v18  ;;  %8218 = vmatpush3.bf16.msra.mxu1 %v8814_v48  ;;  %v8805_v6 = vld [vmem:[%s12673_s0 + $0x2e8] sm:$0xff]   ;;  %v8807_v8 = vld [vmem:[%s12673_s0 + $0x2f0] sm:$0xff]   ;;  %v8808_v9 = vld [vmem:[%s12673_s0 + $0xf8] sm:$0xff]  }
  0x19   :  { %8219 = vmatprep.subr.bf16.mxu1 %v8831_v58  ;;  %v8809_v10 = vld [vmem:[%s12673_s0 + $0x2f8] sm:$0xff]   ;;  %v8810_v11 = vld [vmem:[%s12673_s0 + $0x100] sm:$0xff]   ;;  %v8812_v14 = vld [vmem:[%s12673_s0 + $0x108] sm:$0xff]  }
  0x1a   :  { %v8811_v12 = vld [vmem:[%s12673_s0 + $0x300] sm:$0xff]   ;;  %v8865_v13 = vld [vmem:[%s12674_s3 + $0x38] sm:$0xff]   ;;  %v9357_v15 = vld [vmem:[%s12673_s0 + $0x308] sm:$0xff]  }
  0x1b   :  { %v8815_v16 = vld [vmem:[%s12673_s0 + $0x110] sm:$0xff]   ;;  %v8817_v18 = vld [vmem:[%s12673_s0 + $0x118] sm:$0xff]   ;;  %v8827_v28 = vld [vmem:[%s12673_s0 + $0x140] sm:$0xff]  }
  0x1c   :  { %8220 = vmatpush3.bf16.msra.mxu1 %v8831_v58  ;;  %v9365_v17 = vld [vmem:[%s12673_s0 + $0x310] sm:$0xff]   ;;  %v9379_v19 = vld [vmem:[%s12673_s0 + $0x318] sm:$0xff]   ;;  %v8838_v38 = vld [vmem:[%s12673_s0 + $0x168] sm:$0xff]  }
  0x1d   :  { %8221 = vmatprep.subr.bf16.mxu1 %v8848_v4  ;;  %v8849_v48 = vld [vmem:[%s12673_s0 + $0x190] sm:$0xff]   ;;  %v9540_v58 = vld [vmem:[%s12675_s2] ss:$0 sm:$0xff] }
  0x1e   :  { %7708 = vmatmul.mubr.msk.bf16.gmra.mrb[12].mxu0 %vm931_vm1, %v8757_v20  ;;  %v8819_v20 = vld [vmem:[%s12673_s0 + $0x120] sm:$0xff]  }
  0x1f   :  { %8094 = vmatmul.mubr.msk.bf16.gmra.mrb[12].mxu1 %vm931_vm1, %v8758_v21  ;;  %7711 = vmatprep.mubr.msk.bf16.mxu0 %vm931_vm1, %v8759_v22  ;;  %v9387_v21 = vld [vmem:[%s12673_s0 + $0x320] sm:$0xff]   ;;  %v8821_v22 = vld [vmem:[%s12673_s0 + $0x128] sm:$0xff]  }
  0x20   :  { %8097 = vmatprep.mubr.msk.bf16.mxu1 %vm931_vm1, %v8760_v23  ;;  %8222 = vmatpush3.bf16.msra.mxu1 %v8848_v4  ;;  %v8822_v23 = vld [vmem:[%s12673_s0 + $0x328] sm:$0xff]  }
  0x21   :  { %8223 = vmatprep.subr.bf16.mxu1 %v8865_v13 }
  0x24   :  { %8224 = vmatpush3.bf16.msra.mxu1 %v8865_v13 }
  0x26   :  { %7712 = vmatmul.mubr.msk.bf16.gmra.mrb[16].mxu0 %vm931_vm1, %v8761_v24  ;;  %v8823_v24 = vld [vmem:[%s12673_s0 + $0x130] sm:$0xff]  }
  0x27   :  { %8098 = vmatmul.mubr.msk.bf16.gmra.mrb[16].mxu1 %vm931_vm1, %v8762_v25  ;;  %7715 = vmatprep.mubr.msk.bf16.mxu0 %vm931_vm1, %v8764_v26  ;;  %v8824_v25 = vld [vmem:[%s12673_s0 + $0x330] sm:$0xff]   ;;  %v8825_v26 = vld [vmem:[%s12673_s0 + $0x138] sm:$0xff]  }
  0x28   :  { %8101 = vmatprep.mubr.msk.bf16.mxu1 %vm931_vm1, %v8765_v27  ;;  %v8826_v27 = vld [vmem:[%s12673_s0 + $0x338] sm:$0xff]  }
  0x2e   :  { %7716 = vmatmul.mubr.msk.bf16.gmra.mrb[20].mxu0 %vm931_vm1, %v8766_v29  ;;  %v8828_v29 = vld [vmem:[%s12673_s0 + $0x340] sm:$0xff]  }
  0x2f   :  { %8102 = vmatmul.mubr.msk.bf16.gmra.mrb[20].mxu1 %vm931_vm1, %v8767_v30  ;;  %7719 = vmatprep.mubr.msk.bf16.mxu0 %vm931_vm1, %v8768_v31  ;;  %v8829_v30 = vld [vmem:[%s12673_s0 + $0x148] sm:$0xff]  }
  0x30   :  { %8105 = vmatprep.mubr.msk.bf16.mxu1 %vm931_vm1, %v8769_v32  ;;  %v8830_v31 = vld [vmem:[%s12673_s0 + $0x348] sm:$0xff]   ;;  %v8832_v32 = vld [vmem:[%s12673_s0 + $0x150] sm:$0xff]  }
  0x36   :  { %7720 = vmatmul.mubr.msk.bf16.gmra.mrb[24].mxu0 %vm931_vm1, %v8770_v33  ;;  %v8833_v33 = vld [vmem:[%s12673_s0 + $0x350] sm:$0xff]  }
  0x37   :  { %8106 = vmatmul.mubr.msk.bf16.gmra.mrb[24].mxu1 %vm931_vm1, %v8771_v34  ;;  %7723 = vmatprep.mubr.msk.bf16.mxu0 %vm931_vm1, %v8772_v35  ;;  %v8834_v34 = vld [vmem:[%s12673_s0 + $0x158] sm:$0xff]  }
  0x38   :  { %8109 = vmatprep.mubr.msk.bf16.mxu1 %vm931_vm1, %v8773_v36  ;;  %v8835_v35 = vld [vmem:[%s12673_s0 + $0x358] sm:$0xff]   ;;  %v8836_v36 = vld [vmem:[%s12673_s0 + $0x160] sm:$0xff]  }
  0x3e   :  { %7724 = vmatmul.mubr.msk.bf16.gmra.mrb[28].mxu0 %vm931_vm1, %v8774_v37  ;;  %v8837_v37 = vld [vmem:[%s12673_s0 + $0x360] sm:$0xff]  }
  0x3f   :  { %8110 = vmatmul.mubr.msk.bf16.gmra.mrb[28].mxu1 %vm931_vm1, %v8775_v39  ;;  %7727 = vmatprep.mubr.msk.bf16.mxu0 %vm931_vm1, %v8776_v40  ;;  %v8839_v39 = vld [vmem:[%s12673_s0 + $0x368] sm:$0xff]   ;;  %v8840_v40 = vld [vmem:[%s12673_s0 + $0x170] sm:$0xff]  }
  0x40   :  { %8113 = vmatprep.mubr.msk.bf16.mxu1 %vm931_vm1, %v8777_v41  ;;  %v8841_v41 = vld [vmem:[%s12673_s0 + $0x370] sm:$0xff]  }
  0x46   :  { %7728 = vmatmul.mubr.msk.bf16.gmra.mrb[32].mxu0 %vm931_vm1, %v8778_v42  ;;  %v8842_v42 = vld [vmem:[%s12673_s0 + $0x178] sm:$0xff]  }
  0x47   :  { %8114 = vmatmul.mubr.msk.bf16.gmra.mrb[32].mxu1 %vm931_vm1, %v8779_v43  ;;  %7731 = vmatprep.mubr.msk.bf16.mxu0 %vm931_vm1, %v8781_v44  ;;  %v8843_v43 = vld [vmem:[%s12673_s0 + $0x378] sm:$0xff]   ;;  %v8844_v44 = vld [vmem:[%s12673_s0 + $0x180] sm:$0xff]  }
  0x48   :  { %8117 = vmatprep.mubr.msk.bf16.mxu1 %vm931_vm1, %v8782_v45  ;;  %v8845_v45 = vld [vmem:[%s12673_s0 + $0x380] sm:$0xff]  }
  0x4e   :  { %7732 = vmatmul.mubr.msk.bf16.gmra.mrb[36].mxu0 %vm931_vm1, %v8783_v46  ;;  %v8846_v46 = vld [vmem:[%s12673_s0 + $0x188] sm:$0xff]  }
  0x4f   :  { %8118 = vmatmul.mubr.msk.bf16.gmra.mrb[36].mxu1 %vm931_vm1, %v8784_v47  ;;  %7735 = vmatprep.mubr.msk.bf16.mxu0 %vm931_vm1, %v8785_v49  ;;  %v8847_v47 = vld [vmem:[%s12673_s0 + $0x388] sm:$0xff]   ;;  %v8850_v49 = vld [vmem:[%s12673_s0 + $0x390] sm:$0xff]  }
  0x50   :  { %8121 = vmatprep.mubr.msk.bf16.mxu1 %vm931_vm1, %v8786_v50  ;;  %v8851_v50 = vld [vmem:[%s12673_s0 + $0x198] sm:$0xff]  }
  0x56   :  { %7736 = vmatmul.mubr.msk.bf16.gmra.mrb[40].mxu0 %vm931_vm1, %v8787_v51  ;;  %v8852_v51 = vld [vmem:[%s12673_s0 + $0x398] sm:$0xff]  }
  0x57   :  { %8122 = vmatmul.mubr.msk.bf16.gmra.mrb[40].mxu1 %vm931_vm1, %v8788_v52  ;;  %7739 = vmatprep.mubr.msk.bf16.mxu0 %vm931_vm1, %v8789_v53  ;;  %v8853_v52 = vld [vmem:[%s12673_s0 + $0x1a0] sm:$0xff]  }
  0x58   :  { %8125 = vmatprep.mubr.msk.bf16.mxu1 %vm931_vm1, %v8790_v54  ;;  %v8854_v53 = vld [vmem:[%s12673_s0 + $0x3a0] sm:$0xff]   ;;  %v8855_v54 = vld [vmem:[%s12673_s0 + $0x1a8] sm:$0xff]  }
  0x5e   :  { %7740 = vmatmul.mubr.msk.bf16.gmra.mrb[44].mxu0 %vm931_vm1, %v8791_v55  ;;  %v8856_v55 = vld [vmem:[%s12673_s0 + $0x3a8] sm:$0xff]  }
  0x5f   :  { %8126 = vmatmul.mubr.msk.bf16.gmra.mrb[44].mxu1 %vm931_vm1, %v8792_v56  ;;  %7743 = vmatprep.mubr.msk.bf16.mxu0 %vm931_vm1, %v8793_v57  ;;  %v8857_v56 = vld [vmem:[%s12673_s0 + $0x1b0] sm:$0xff]  }
  0x60   :  { %8129 = vmatprep.mubr.msk.bf16.mxu1 %vm931_vm1, %v8794_v59  ;;  %v8858_v57 = vld [vmem:[%s12673_s0 + $0x3b0] sm:$0xff]  }
  0x66   :  { %7744 = vmatmul.mubr.msk.bf16.gmra.mrb[48].mxu0 %vm931_vm1, %v8795_v60 }
  0x67   :  { %8130 = vmatmul.mubr.msk.bf16.gmra.mrb[48].mxu1 %vm931_vm1, %v8796_v61  ;;  %7747 = vmatprep.mubr.msk.bf16.mxu0 %vm931_vm1, %v8798_v62  ;;  %v8859_v62 = vld [vmem:[%s12673_s0 + $0x1b8] sm:$0xff]  }
  0x68   :  { %8133 = vmatprep.mubr.msk.bf16.mxu1 %vm931_vm1, %v8799_v63 }
  0x6e   :  { %7748 = vmatmul.mubr.msk.bf16.gmra.mrb[52].mxu0 %vm931_vm1, %v8800_v0 }
  0x6f   :  { %8134 = vmatmul.mubr.msk.bf16.gmra.mrb[52].mxu1 %vm931_vm1, %v8801_v1  ;;  %7751 = vmatprep.mubr.msk.bf16.mxu0 %vm931_vm1, %v8802_v2  ;;  %v8860_v1 = vld [vmem:[%s12673_s0 + $0x3b8] sm:$0xff]   ;;  %v8861_v2 = vld [vmem:[%s12673_s0 + $0x1c0] sm:$0xff]  }
  0x70   :  { %8137 = vmatprep.mubr.msk.bf16.mxu1 %vm931_vm1, %v8803_v3 }
  0x76   :  { %7752 = vmatmul.mubr.msk.bf16.gmra.mrb[56].mxu0 %vm931_vm1, %v8804_v5  ;;  %v8862_v5 = vld [vmem:[%s12673_s0 + $0x3c0] sm:$0xff]  }
  0x77   :  { %8138 = vmatmul.mubr.msk.bf16.gmra.mrb[56].mxu1 %vm931_vm1, %v8805_v6  ;;  %7755 = vmatprep.mubr.msk.bf16.mxu0 %vm931_vm1, %v8806_v7 }
  0x78   :  { %8141 = vmatprep.mubr.msk.bf16.mxu1 %vm931_vm1, %v8807_v8 }
  0x7e   :  { %7756 = vmatmul.mubr.msk.bf16.gmra.mrb[60].mxu0 %vm931_vm1, %v8808_v9 }
  0x7f   :  { %8142 = vmatmul.mubr.msk.bf16.gmra.mrb[60].mxu1 %vm931_vm1, %v8809_v10  ;;  %7759 = vmatprep.mubr.msk.bf16.mxu0 %vm931_vm1, %v8810_v11 }
  0x80   :  { %8145 = vmatprep.mubr.msk.bf16.mxu1 %vm931_vm1, %v8811_v12 }
  0x86   :  { %7760 = vmatmul.mubr.msk.bf16.gmra.mrb[64].mxu0 %vm931_vm1, %v8812_v14 }
  0x87   :  { %8146 = vmatmul.mubr.msk.bf16.gmra.mrb[64].mxu1 %vm931_vm1, %v9357_v15  ;;  %7763 = vmatprep.mubr.msk.bf16.mxu0 %vm931_vm1, %v8815_v16 }
  0x88   :  { %8149 = vmatprep.mubr.msk.bf16.mxu1 %vm931_vm1, %v9365_v17 }
  0x8e   :  { %7764 = vmatmul.mubr.msk.bf16.gmra.mrb[68].mxu0 %vm931_vm1, %v8817_v18  ;;  %v8863_v18 = vld [vmem:[%s12673_s0 + $0x1c8] sm:$0xff]  }
  0x8f   :  { %8150 = vmatmul.mubr.msk.bf16.gmra.mrb[68].mxu1 %vm931_vm1, %v9379_v19  ;;  %7767 = vmatprep.mubr.msk.bf16.mxu0 %vm931_vm1, %v8819_v20 }
  0x90   :  { %8153 = vmatprep.mubr.msk.bf16.mxu1 %vm931_vm1, %v9387_v21 }
  0x96   :  { %7768 = vmatmul.mubr.msk.bf16.gmra.mrb[72].mxu0 %vm931_vm1, %v8821_v22 }
  0x97   :  { %8154 = vmatmul.mubr.msk.bf16.gmra.mrb[72].mxu1 %vm931_vm1, %v8822_v23  ;;  %7771 = vmatprep.mubr.msk.bf16.mxu0 %vm931_vm1, %v8823_v24  ;;  %v8864_v23 = vld [vmem:[%s12673_s0 + $0x3c8] sm:$0xff]   ;;  %v8866_v24 = vld [vmem:[%s12673_s0 + $0x1d0] sm:$0xff]  }
  0x98   :  { %8157 = vmatprep.mubr.msk.bf16.mxu1 %vm931_vm1, %v8824_v25 }
  0x9e   :  { %7772 = vmatmul.mubr.msk.bf16.gmra.mrb[76].mxu0 %vm931_vm1, %v8825_v26 }
  0x9f   :  { %8158 = vmatmul.mubr.msk.bf16.gmra.mrb[76].mxu1 %vm931_vm1, %v8826_v27  ;;  %7775 = vmatprep.mubr.msk.bf16.mxu0 %vm931_vm1, %v8827_v28  ;;  %v8867_v27 = vld [vmem:[%s12673_s0 + $0x3d0] sm:$0xff]  }
  0xa0   :  { %8161 = vmatprep.mubr.msk.bf16.mxu1 %vm931_vm1, %v8828_v29 }
  0xa6   :  { %7776 = vmatmul.mubr.msk.bf16.gmra.mrb[80].mxu0 %vm931_vm1, %v8829_v30 }
  0xa7   :  { %8162 = vmatmul.mubr.msk.bf16.gmra.mrb[80].mxu1 %vm931_vm1, %v8830_v31  ;;  %7779 = vmatprep.mubr.msk.bf16.mxu0 %vm931_vm1, %v8832_v32 }
  0xa8   :  { %8165 = vmatprep.mubr.msk.bf16.mxu1 %vm931_vm1, %v8833_v33 }
  0xae   :  { %7780 = vmatmul.mubr.msk.bf16.gmra.mrb[84].mxu0 %vm931_vm1, %v8834_v34 }
  0xaf   :  { %8166 = vmatmul.mubr.msk.bf16.gmra.mrb[84].mxu1 %vm931_vm1, %v8835_v35  ;;  %7783 = vmatprep.mubr.msk.bf16.mxu0 %vm931_vm1, %v8836_v36 }
  0xb0   :  { %8169 = vmatprep.mubr.msk.bf16.mxu1 %vm931_vm1, %v8837_v37 }
  0xb6   :  { %7784 = vmatmul.mubr.msk.bf16.gmra.mrb[88].mxu0 %vm931_vm1, %v8838_v38  ;;  %v8868_v38 = vld [vmem:[%s12673_s0 + $0x1d8] sm:$0xff]  }
  0xb7   :  { %8170 = vmatmul.mubr.msk.bf16.gmra.mrb[88].mxu1 %vm931_vm1, %v8839_v39  ;;  %7787 = vmatprep.mubr.msk.bf16.mxu0 %vm931_vm1, %v8840_v40 }
  0xb8   :  { %8173 = vmatprep.mubr.msk.bf16.mxu1 %vm931_vm1, %v8841_v41  ;;  %v8869_v41 = vld [vmem:[%s12673_s0 + $0x3d8] sm:$0xff]  }
  0xbe   :  { %7788 = vmatmul.mubr.msk.bf16.gmra.mrb[92].mxu0 %vm931_vm1, %v8842_v42  ;;  %v8870_v42 = vld [vmem:[%s12673_s0 + $0x1e0] sm:$0xff]  }
  0xbf   :  { %8174 = vmatmul.mubr.msk.bf16.gmra.mrb[92].mxu1 %vm931_vm1, %v8843_v43  ;;  %7791 = vmatprep.mubr.msk.bf16.mxu0 %vm931_vm1, %v8844_v44 }
  0xc0   :  { %8177 = vmatprep.mubr.msk.bf16.mxu1 %vm931_vm1, %v8845_v45  ;;  %v8871_v45 = vld [vmem:[%s12673_s0 + $0x3e0] sm:$0xff]  }
  0xc6   :  { %7792 = vmatmul.mubr.msk.bf16.gmra.mrb[96].mxu0 %vm931_vm1, %v8846_v46 }
  0xc7   :  { %8178 = vmatmul.mubr.msk.bf16.gmra.mrb[96].mxu1 %vm931_vm1, %v8847_v47  ;;  %7795 = vmatprep.mubr.msk.bf16.mxu0 %vm931_vm1, %v8849_v48 }
  0xc8   :  { %8181 = vmatprep.mubr.msk.bf16.mxu1 %vm931_vm1, %v8850_v49 }
  0xce   :  { %7796 = vmatmul.mubr.msk.bf16.gmra.mrb[100].mxu0 %vm931_vm1, %v8851_v50 }
  0xcf   :  { %8182 = vmatmul.mubr.msk.bf16.gmra.mrb[100].mxu1 %vm931_vm1, %v8852_v51  ;;  %7799 = vmatprep.mubr.msk.bf16.mxu0 %vm931_vm1, %v8853_v52 }
  0xd0   :  { %8185 = vmatprep.mubr.msk.bf16.mxu1 %vm931_vm1, %v8854_v53 }
  0xd6   :  { %7800 = vmatmul.mubr.msk.bf16.gmra.mrb[104].mxu0 %vm931_vm1, %v8855_v54 }
  0xd7   :  { %8186 = vmatmul.mubr.msk.bf16.gmra.mrb[104].mxu1 %vm931_vm1, %v8856_v55  ;;  %7803 = vmatprep.mubr.msk.bf16.mxu0 %vm931_vm1, %v8857_v56  ;;  %v8872_v56 = vld [vmem:[%s12673_s0 + $0x1e8] sm:$0xff]  }
  0xd8   :  { %8189 = vmatprep.mubr.msk.bf16.mxu1 %vm931_vm1, %v8858_v57 }
  0xd9   :  { %v7697_v59 = vpop.f32.mrb[0].mxu0 }
  0xda   :  { %v1363_v60 = vadd.f32 %v7697_v59, %v9540_v58  ;;  %v1354_v61 = vpop.f32.mrb[1].mxu0 }
  0xdb   :  { %v1355_v63 = vadd.f32 %v9540_v58, %v1354_v61  ;;  %v7698_v0 = vpop.f32.mrb[2].mxu0  ;;  %v8874_v61 = vld [vmem:[%s12673_s0 + $0x1f0] sm:$0xff]  }
  0xdc   :  { %v1366_v3 = vadd.f32 %v7698_v0, %v9540_v58  ;;  %v1357_v4 = vpop.f32.mrb[3].mxu0  ;;  %v2379_v7 = vmax.f32 %v1363_v60, 0.0  ;;  %v8873_v60 = vld [vmem:[%s12673_s0 + $0x3e8] sm:$0xff]   ;;  %v8875_v0 = vld [vmem:[%s12673_s0 + $0x3f0] sm:$0xff]  }
  0xdd   :  { %v1358_v6 = vadd.f32 %v9540_v58, %v1357_v4  ;;  %v2377_v9 = vmax.f32 %v1355_v63, 0.0 }
  0xde   :  { %v2380_v8 = vmax.f32 %v1366_v3, 0.0  ;;  %7804 = vmatmul.mubr.msk.bf16.gmra.mrb[108].mxu0 %vm931_vm1, %v8859_v62 }
  0xdf   :  { %v2378_v10 = vmax.f32 %v1358_v6, 0.0  ;;  %8190 = vmatmul.mubr.msk.bf16.gmra.mrb[108].mxu1 %vm931_vm1, %v8860_v1  ;;  %7807 = vmatprep.mubr.msk.bf16.mxu0 %vm931_vm1, %v8861_v2 }
  0xe0   :  { %v9563_v11 = vpack.c.bf16 %v2380_v8, %v2379_v7  ;;  %8193 = vmatprep.mubr.msk.bf16.mxu1 %vm931_vm1, %v8862_v5 }
  0xe1   :  { %v7701_v12 = vpop.f32.mrb[4].mxu0  ;;  %v9566_v13 = vpack.c.bf16 %v2378_v10, %v2377_v9 }
  0xe2   :  { %v1379_v14 = vadd.f32 %v7701_v12, %v9540_v58  ;;  %v1370_v16 = vpop.f32.mrb[5].mxu0  ;;  %v8876_v12 = vld [vmem:[%s12673_s0 + $0x1f8] sm:$0xff]  }
  0xe3   :  { %v1371_v20 = vadd.f32 %v9540_v58, %v1370_v16  ;;  %v7702_v22 = vpop.f32.mrb[6].mxu0 }
  0xe4   :  { %v1382_v25 = vadd.f32 %v7702_v22, %v9540_v58  ;;  %v1373_v26 = vpop.f32.mrb[7].mxu0  ;;  %v2383_v29 = vmax.f32 %v1379_v14, 0.0 }
  0xe5   :  { %v1374_v28 = vadd.f32 %v9540_v58, %v1373_v26  ;;  %v2381_v31 = vmax.f32 %v1371_v20, 0.0 }
  0xe6   :  { %v2384_v30 = vmax.f32 %v1382_v25, 0.0  ;;  %7808 = vmatmul.mubr.msk.bf16.gmra.mrb[112].mxu0 %vm931_vm1, %v8863_v18  ;;  %v8877_v18 = vld [vmem:[%s12673_s0 + $0x3f8] sm:$0xff]  }
  0xe7   :  { %v2382_v32 = vmax.f32 %v1374_v28, 0.0  ;;  %8194 = vmatmul.mubr.msk.bf16.gmra.mrb[112].mxu1 %vm931_vm1, %v8864_v23  ;;  %7811 = vmatprep.mubr.msk.bf16.mxu0 %vm931_vm1, %v8866_v24  ;;  %v8878_v28 = vld [vmem:[%s12673_s0 + $0x200] sm:$0xff]  }
  0xe8   :  { %8197 = vmatprep.mubr.msk.bf16.mxu1 %vm931_vm1, %v8867_v27  ;;  %v9588_v33 = vpack.c.bf16 %v2384_v30, %v2383_v29 }
  0xe9   :  { %v7705_v34 = vpop.f32.mrb[8].mxu0  ;;  %v9590_v35 = vpack.c.bf16 %v2382_v32, %v2381_v31 }
  0xea   :  { %v1395_v36 = vadd.f32 %v7705_v34, %v9540_v58  ;;  %v1386_v37 = vpop.f32.mrb[9].mxu0 }
  0xeb   :  { %v1387_v39 = vadd.f32 %v9540_v58, %v1386_v37  ;;  %v7706_v40 = vpop.f32.mrb[10].mxu0 }
  0xec   :  { %v1398_v43 = vadd.f32 %v7706_v40, %v9540_v58  ;;  %v1389_v44 = vpop.f32.mrb[11].mxu0  ;;  %v2387_v47 = vmax.f32 %v1395_v36, 0.0 }
  0xed   :  { %v1390_v46 = vadd.f32 %v9540_v58, %v1389_v44  ;;  %v2385_v49 = vmax.f32 %v1387_v39, 0.0 }
  0xee   :  { %v2388_v48 = vmax.f32 %v1398_v43, 0.0  ;;  %7812 = vmatmul.mubr.msk.bf16.gmra.mrb[116].mxu0 %vm931_vm1, %v8868_v38 }
  0xef   :  { %v2386_v50 = vmax.f32 %v1390_v46, 0.0  ;;  %8198 = vmatmul.mubr.msk.bf16.gmra.mrb[116].mxu1 %vm931_vm1, %v8869_v41  ;;  %7815 = vmatprep.mubr.msk.bf16.mxu0 %vm931_vm1, %v8870_v42 }
  0xf0   :  { %8201 = vmatprep.mubr.msk.bf16.mxu1 %vm931_vm1, %v8871_v45  ;;  %v9612_v51 = vpack.c.bf16 %v2388_v48, %v2387_v47  ;;  %v8880_v45 = vld [vmem:[%s12673_s0 + $0x210] sm:$0xff]  }
  0xf1   :  { %v7709_v52 = vpop.f32.mrb[12].mxu0  ;;  %v9614_v53 = vpack.c.bf16 %v2386_v50, %v2385_v49 }
  0xf2   :  { %v1411_v54 = vadd.f32 %v7709_v52, %v9540_v58  ;;  %v1402_v55 = vpop.f32.mrb[13].mxu0 }
  0xf3   :  { %v1403_v57 = vadd.f32 %v9540_v58, %v1402_v55  ;;  %v7710_v59 = vpop.f32.mrb[14].mxu0 }
  0xf4   :  { %v1414_v62 = vadd.f32 %v7710_v59, %v9540_v58  ;;  %v1405_v63 = vpop.f32.mrb[15].mxu0  ;;  %v2391_v2 = vmax.f32 %v1411_v54, 0.0 }
  0xf5   :  { %v1406_v1 = vadd.f32 %v9540_v58, %v1405_v63  ;;  %v2389_v4 = vmax.f32 %v1403_v57, 0.0 }
  0xf6   :  { %v2392_v3 = vmax.f32 %v1414_v62, 0.0  ;;  %7816 = vmatmul.mubr.msk.bf16.gmra.mrb[120].mxu0 %vm931_vm1, %v8872_v56  ;;  %v8882_v62 = vld [vmem:[%s12673_s0 + $0x220] sm:$0xff]  }
  0xf7   :  { %v2390_v5 = vmax.f32 %v1406_v1, 0.0  ;;  %8202 = vmatmul.mubr.msk.bf16.gmra.mrb[120].mxu1 %vm931_vm1, %v8873_v60  ;;  %7819 = vmatprep.mubr.msk.bf16.mxu0 %vm931_vm1, %v8874_v61 }
  0xf8   :  { %8205 = vmatprep.mubr.msk.bf16.mxu1 %vm931_vm1, %v8875_v0  ;;  %v9636_v6 = vpack.c.bf16 %v2392_v3, %v2391_v2 }
  0xf9   :  { %v7713_v7 = vpop.f32.mrb[16].mxu0  ;;  %v9638_v8 = vpack.c.bf16 %v2390_v5, %v2389_v4 }
  0xfa   :  { %v1427_v9 = vadd.f32 %v7713_v7, %v9540_v58  ;;  %v1418_v10 = vpop.f32.mrb[17].mxu0 }
  0xfb   :  { %v1419_v14 = vadd.f32 %v9540_v58, %v1418_v10  ;;  %v7714_v16 = vpop.f32.mrb[18].mxu0 }
  0xfc   :  { %v1430_v20 = vadd.f32 %v7714_v16, %v9540_v58  ;;  %v1421_v22 = vpop.f32.mrb[19].mxu0  ;;  %v2395_v24 = vmax.f32 %v1427_v9, 0.0 }
  0xfd   :  { %v1422_v23 = vadd.f32 %v9540_v58, %v1421_v22  ;;  %v2393_v26 = vmax.f32 %v1419_v14, 0.0 }
  0xfe   :  { %v2396_v25 = vmax.f32 %v1430_v20, 0.0  ;;  %7820 = vmatmul.mubr.msk.bf16.gmra.mrb[124].mxu0 %vm931_vm1, %v8876_v12 }
  0xff   :  { %v2394_v27 = vmax.f32 %v1422_v23, 0.0  ;;  %8206 = vmatmul.mubr.msk.bf16.gmra.mrb[124].mxu1 %vm931_vm1, %v8877_v18  ;;  %7823 = vmatprep.mubr.msk.bf16.mxu0 %vm931_vm1, %v8878_v28  ;;  %v8884_v18 = vld [vmem:[%s12673_s0 + $0x230] sm:$0xff]  }
 0x100   :  { %8225 = vmatprep.mubr.bf16.mxu1 %v9566_v13  ;;  %v9657_v29 = vpack.c.bf16 %v2396_v25, %v2395_v24  ;;  %v8879_v13 = vld [vmem:[%s12673_s0 + $0x208] sm:$0xff]  }
 0x101   :  { %v7717_v30 = vpop.f32.mrb[20].mxu0  ;;  %v9659_v31 = vpack.c.bf16 %v2394_v27, %v2393_v26 }
 0x102   :  { %v1443_v32 = vadd.f32 %v7717_v30, %v9540_v58  ;;  %v1434_v34 = vpop.f32.mrb[21].mxu0 }
 0x103   :  { %v1435_v36 = vadd.f32 %v9540_v58, %v1434_v34  ;;  %v7718_v37 = vpop.f32.mrb[22].mxu0 }
 0x104   :  { %v1446_v38 = vadd.f32 %v7718_v37, %v9540_v58  ;;  %v1437_v39 = vpop.f32.mrb[23].mxu0  ;;  %v2399_v41 = vmax.f32 %v1443_v32, 0.0 }
 0x105   :  { %v1438_v40 = vadd.f32 %v9540_v58, %v1437_v39  ;;  %v2397_v43 = vmax.f32 %v1435_v36, 0.0 }
 0x106   :  { %v2400_v42 = vmax.f32 %v1446_v38, 0.0  ;;  %7824 = vmatmul.mubr.msk.bf16.gmra.mrb[128].mxu0 %vm931_vm1, %v8879_v13  ;;  %v8886_v38 = vld [vmem:[%s12673_s0 + $0x240] sm:$0xff]  }
 0x107   :  { %v2398_v44 = vmax.f32 %v1438_v40, 0.0  ;;  %8226 = vmatmul.mubr.bf16.vlgmr.msra.gmra.mrb[128].mxu1 %v9563_v11  ;;  %7827 = vmatprep.mubr.msk.bf16.mxu0 %vm931_vm1, %v8880_v45 }
 0x108   :  { %8229 = vmatprep.mubr.bf16.mxu1 %v9590_v35  ;;  %v9675_v46 = vpack.c.bf16 %v2400_v42, %v2399_v41  ;;  %v8881_v35 = vld [vmem:[%s12673_s0 + $0x218] sm:$0xff]  }
 0x109   :  { %v7721_v47 = vpop.f32.mrb[24].mxu0  ;;  %v9677_v48 = vpack.c.bf16 %v2398_v44, %v2397_v43 }
 0x10a   :  { %v1459_v49 = vadd.f32 %v7721_v47, %v9540_v58  ;;  %v1450_v50 = vpop.f32.mrb[25].mxu0 }
 0x10b   :  { %v1451_v52 = vadd.f32 %v9540_v58, %v1450_v50  ;;  %v7722_v54 = vpop.f32.mrb[26].mxu0 }
 0x10c   :  { %v1462_v11 = vadd.f32 %v7722_v54, %v9540_v58  ;;  %v1453_v55 = vpop.f32.mrb[27].mxu0  ;;  %v2403_v57 = vmax.f32 %v1459_v49, 0.0 }
 0x10d   :  { %v1454_v56 = vadd.f32 %v9540_v58, %v1453_v55  ;;  %v2401_v60 = vmax.f32 %v1451_v52, 0.0 }
 0x10e   :  { %v2404_v59 = vmax.f32 %v1462_v11, 0.0  ;;  %7828 = vmatmul.mubr.msk.bf16.gmra.mrb[132].mxu0 %vm931_vm1, %v8881_v35  ;;  %v8888_v11 = vld [vmem:[%s12673_s0 + $0x250] sm:$0xff]  }
 0x10f   :  { %v2402_v61 = vmax.f32 %v1454_v56, 0.0  ;;  %8230 = vmatmul.mubr.bf16.gmra.mrb[132].mxu1 %v9588_v33  ;;  %7831 = vmatprep.mubr.msk.bf16.mxu0 %vm931_vm1, %v8882_v62 }
 0x110   :  { %8233 = vmatprep.mubr.bf16.mxu1 %v9614_v53  ;;  %v9693_v63 = vpack.c.bf16 %v2404_v59, %v2403_v57  ;;  %v8883_v53 = vld [vmem:[%s12673_s0 + $0x228] sm:$0xff]  }
 0x111   :  { %v7725_v0 = vpop.f32.mrb[28].mxu0  ;;  %v9695_v1 = vpack.c.bf16 %v2402_v61, %v2401_v60 }
 0x112   :  { %v1475_v2 = vadd.f32 %v7725_v0, %v9540_v58  ;;  %v1466_v3 = vpop.f32.mrb[29].mxu0 }
 0x113   :  { %v1467_v4 = vadd.f32 %v9540_v58, %v1466_v3  ;;  %v7726_v5 = vpop.f32.mrb[30].mxu0 }
 0x114   :  { %v1478_v33 = vadd.f32 %v7726_v5, %v9540_v58  ;;  %v1469_v7 = vpop.f32.mrb[31].mxu0  ;;  %v2407_v10 = vmax.f32 %v1475_v2, 0.0 }
 0x115   :  { %v1470_v9 = vadd.f32 %v9540_v58, %v1469_v7  ;;  %v2405_v14 = vmax.f32 %v1467_v4, 0.0 }
 0x116   :  { %v2408_v12 = vmax.f32 %v1478_v33, 0.0  ;;  %7832 = vmatmul.mubr.msk.bf16.gmra.mrb[136].mxu0 %vm931_vm1, %v8883_v53  ;;  %v8890_v33 = vld [vmem:[%s12673_s0 + $0x260] sm:$0xff]  }
 0x117   :  { %v2406_v16 = vmax.f32 %v1470_v9, 0.0  ;;  %8234 = vmatmul.mubr.bf16.gmra.mrb[136].mxu1 %v9612_v51  ;;  %7835 = vmatprep.mubr.msk.bf16.mxu0 %vm931_vm1, %v8884_v18 }
 0x118   :  { %8237 = vmatprep.mubr.bf16.mxu1 %v9638_v8  ;;  %v9711_v20 = vpack.c.bf16 %v2408_v12, %v2407_v10  ;;  %v8885_v8 = vld [vmem:[%s12673_s0 + $0x238] sm:$0xff]  }
 0x119   :  { %v7729_v22 = vpop.f32.mrb[32].mxu0  ;;  %v9713_v23 = vpack.c.bf16 %v2406_v16, %v2405_v14 }
 0x11a   :  { %v1491_v24 = vadd.f32 %v7729_v22, %v9540_v58  ;;  %v1482_v25 = vpop.f32.mrb[33].mxu0 }
 0x11b   :  { %v1483_v26 = vadd.f32 %v9540_v58, %v1482_v25  ;;  %v7730_v27 = vpop.f32.mrb[34].mxu0 }
 0x11c   :  { %v1494_v51 = vadd.f32 %v7730_v27, %v9540_v58  ;;  %v1485_v28 = vpop.f32.mrb[35].mxu0  ;;  %v2411_v32 = vmax.f32 %v1491_v24, 0.0 }
 0x11d   :  { %v1486_v30 = vadd.f32 %v9540_v58, %v1485_v28  ;;  %v2409_v36 = vmax.f32 %v1483_v26, 0.0 }
 0x11e   :  { %v2412_v34 = vmax.f32 %v1494_v51, 0.0  ;;  %7836 = vmatmul.mubr.msk.bf16.gmra.mrb[140].mxu0 %vm931_vm1, %v8885_v8  ;;  %v8892_v51 = vld [vmem:[%s12673_s0 + $0x270] sm:$0xff]  }
 0x11f   :  { %v2410_v37 = vmax.f32 %v1486_v30, 0.0  ;;  %8238 = vmatmul.mubr.bf16.gmra.mrb[140].mxu1 %v9636_v6  ;;  %7839 = vmatprep.mubr.msk.bf16.mxu0 %vm931_vm1, %v8886_v38 }
 0x120   :  { %8241 = vmatprep.mubr.bf16.mxu1 %v9659_v31  ;;  %v9729_v39 = vpack.c.bf16 %v2412_v34, %v2411_v32  ;;  %v8887_v31 = vld [vmem:[%s12673_s0 + $0x248] sm:$0xff]  }
 0x121   :  { %v7733_v40 = vpop.f32.mrb[36].mxu0  ;;  %v9731_v41 = vpack.c.bf16 %v2410_v37, %v2409_v36 }
 0x122   :  { %v1507_v42 = vadd.f32 %v7733_v40, %v9540_v58  ;;  %v1498_v13 = vpop.f32.mrb[37].mxu0 }
 0x123   :  { %v1499_v43 = vadd.f32 %v9540_v58, %v1498_v13  ;;  %v7734_v44 = vpop.f32.mrb[38].mxu0 }
 0x124   :  { %v1510_v6 = vadd.f32 %v7734_v44, %v9540_v58  ;;  %v1501_v45 = vpop.f32.mrb[39].mxu0  ;;  %v2415_v49 = vmax.f32 %v1507_v42, 0.0 }
 0x125   :  { %v1502_v47 = vadd.f32 %v9540_v58, %v1501_v45  ;;  %v2413_v52 = vmax.f32 %v1499_v43, 0.0 }
 0x126   :  { %v2416_v50 = vmax.f32 %v1510_v6, 0.0  ;;  %7840 = vmatmul.mubr.msk.bf16.gmra.mrb[144].mxu0 %vm931_vm1, %v8887_v31  ;;  %v8894_v6 = vld [vmem:[%s12673_s0 + $0x280] sm:$0xff]  }
 0x127   :  { %v2414_v54 = vmax.f32 %v1502_v47, 0.0  ;;  %8242 = vmatmul.mubr.bf16.gmra.mrb[144].mxu1 %v9657_v29  ;;  %7843 = vmatprep.mubr.msk.bf16.mxu0 %vm931_vm1, %v8888_v11 }
 0x128   :  { %8245 = vmatprep.mubr.bf16.mxu1 %v9677_v48  ;;  %v9747_v55 = vpack.c.bf16 %v2416_v50, %v2415_v49  ;;  %v8889_v48 = vld [vmem:[%s12673_s0 + $0x258] sm:$0xff]  }
 0x129   :  { %v7737_v56 = vpop.f32.mrb[40].mxu0  ;;  %v9749_v57 = vpack.c.bf16 %v2414_v54, %v2413_v52 }
 0x12a   :  { %v1523_v59 = vadd.f32 %v7737_v56, %v9540_v58  ;;  %v1514_v35 = vpop.f32.mrb[41].mxu0 }
 0x12b   :  { %v1515_v60 = vadd.f32 %v9540_v58, %v1514_v35  ;;  %v7738_v61 = vpop.f32.mrb[42].mxu0 }
 0x12c   :  { %v1526_v29 = vadd.f32 %v7738_v61, %v9540_v58  ;;  %v1517_v62 = vpop.f32.mrb[43].mxu0  ;;  %v2419_v2 = vmax.f32 %v1523_v59, 0.0 }
 0x12d   :  { %v1518_v0 = vadd.f32 %v9540_v58, %v1517_v62  ;;  %v2417_v4 = vmax.f32 %v1515_v60, 0.0 }
 0x12e   :  { %v2420_v3 = vmax.f32 %v1526_v29, 0.0  ;;  %7844 = vmatmul.mubr.msk.bf16.gmra.mrb[148].mxu0 %vm931_vm1, %v8889_v48  ;;  %v8896_v29 = vld [vmem:[%s12673_s0 + $0x290] sm:$0xff]  }
 0x12f   :  { %v2418_v5 = vmax.f32 %v1518_v0, 0.0  ;;  %8246 = vmatmul.mubr.bf16.gmra.mrb[148].mxu1 %v9675_v46  ;;  %7847 = vmatprep.mubr.msk.bf16.mxu0 %vm931_vm1, %v8890_v33 }
 0x130   :  { %8249 = vmatprep.mubr.bf16.mxu1 %v9695_v1  ;;  %v9765_v7 = vpack.c.bf16 %v2420_v3, %v2419_v2  ;;  %v8891_v1 = vld [vmem:[%s12673_s0 + $0x268] sm:$0xff]  }
 0x131   :  { %v7741_v9 = vpop.f32.mrb[44].mxu0  ;;  %v9767_v10 = vpack.c.bf16 %v2418_v5, %v2417_v4 }
 0x132   :  { %v1539_v12 = vadd.f32 %v7741_v9, %v9540_v58  ;;  %v1530_v53 = vpop.f32.mrb[45].mxu0 }
 0x133   :  { %v1531_v14 = vadd.f32 %v9540_v58, %v1530_v53  ;;  %v7742_v16 = vpop.f32.mrb[46].mxu0 }
 0x134   :  { %v1542_v46 = vadd.f32 %v7742_v16, %v9540_v58  ;;  %v1533_v18 = vpop.f32.mrb[47].mxu0  ;;  %v2423_v24 = vmax.f32 %v1539_v12, 0.0 }
 0x135   :  { %v1534_v22 = vadd.f32 %v9540_v58, %v1533_v18  ;;  %v2421_v26 = vmax.f32 %v1531_v14, 0.0 }
 0x136   :  { %v2424_v25 = vmax.f32 %v1542_v46, 0.0  ;;  %7848 = vmatmul.mubr.msk.bf16.gmra.mrb[152].mxu0 %vm931_vm1, %v8891_v1  ;;  %v8898_v46 = vld [vmem:[%s12673_s0 + $0x2a0] sm:$0xff]  }
 0x137   :  { %v2422_v27 = vmax.f32 %v1534_v22, 0.0  ;;  %8250 = vmatmul.mubr.bf16.gmra.mrb[152].mxu1 %v9693_v63  ;;  %7851 = vmatprep.mubr.msk.bf16.mxu0 %vm931_vm1, %v8892_v51 }
 0x138   :  { %8253 = vmatprep.mubr.bf16.mxu1 %v9713_v23  ;;  %v9783_v28 = vpack.c.bf16 %v2424_v25, %v2423_v24  ;;  %v8893_v23 = vld [vmem:[%s12673_s0 + $0x278] sm:$0xff]  }
 0x139   :  { %v7745_v30 = vpop.f32.mrb[48].mxu0  ;;  %v9785_v32 = vpack.c.bf16 %v2422_v27, %v2421_v26 }
 0x13a   :  { %v1555_v34 = vadd.f32 %v7745_v30, %v9540_v58  ;;  %v1546_v8 = vpop.f32.mrb[49].mxu0 }
 0x13b   :  { %v1547_v36 = vadd.f32 %v9540_v58, %v1546_v8  ;;  %v7746_v37 = vpop.f32.mrb[50].mxu0 }
 0x13c   :  { %v1558_v63 = vadd.f32 %v7746_v37, %v9540_v58  ;;  %v1549_v38 = vpop.f32.mrb[51].mxu0  ;;  %v2427_v42 = vmax.f32 %v1555_v34, 0.0 }
 0x13d   :  { %v1550_v40 = vadd.f32 %v9540_v58, %v1549_v38  ;;  %v2425_v43 = vmax.f32 %v1547_v36, 0.0 }
 0x13e   :  { %v2428_v13 = vmax.f32 %v1558_v63, 0.0  ;;  %7852 = vmatmul.mubr.msk.bf16.gmra.mrb[156].mxu0 %vm931_vm1, %v8893_v23  ;;  %v8900_v63 = vld [vmem:[%s12673_s0 + $0x2b0] sm:$0xff]  }
 0x13f   :  { %v2426_v44 = vmax.f32 %v1550_v40, 0.0  ;;  %8254 = vmatmul.mubr.bf16.gmra.mrb[156].mxu1 %v9711_v20  ;;  %7855 = vmatprep.mubr.msk.bf16.mxu0 %vm931_vm1, %v8894_v6 }
 0x140   :  { %8257 = vmatprep.mubr.bf16.mxu1 %v9731_v41  ;;  %v9801_v45 = vpack.c.bf16 %v2428_v13, %v2427_v42  ;;  %v8895_v41 = vld [vmem:[%s12673_s0 + $0x288] sm:$0xff]  }
 0x141   :  { %v7749_v47 = vpop.f32.mrb[52].mxu0  ;;  %v9803_v49 = vpack.c.bf16 %v2426_v44, %v2425_v43 }
 0x142   :  { %v1571_v50 = vadd.f32 %v7749_v47, %v9540_v58  ;;  %v1562_v31 = vpop.f32.mrb[53].mxu0 }
 0x143   :  { %v1563_v52 = vadd.f32 %v9540_v58, %v1562_v31  ;;  %v7750_v54 = vpop.f32.mrb[54].mxu0 }
 0x144   :  { %v1574_v20 = vadd.f32 %v7750_v54, %v9540_v58  ;;  %v1565_v11 = vpop.f32.mrb[55].mxu0  ;;  %v2431_v59 = vmax.f32 %v1571_v50, 0.0 }
 0x145   :  { %v1566_v56 = vadd.f32 %v9540_v58, %v1565_v11  ;;  %v2429_v60 = vmax.f32 %v1563_v52, 0.0 }
 0x146   :  { %v2432_v35 = vmax.f32 %v1574_v20, 0.0  ;;  %7856 = vmatmul.mubr.msk.bf16.gmra.mrb[160].mxu0 %vm931_vm1, %v8895_v41  ;;  %v8902_v20 = vld [vmem:[%s12673_s0 + $0x2c0] sm:$0xff]  }
 0x147   :  { %v2430_v61 = vmax.f32 %v1566_v56, 0.0  ;;  %8258 = vmatmul.mubr.bf16.gmra.mrb[160].mxu1 %v9729_v39  ;;  %7859 = vmatprep.mubr.msk.bf16.mxu0 %vm931_vm1, %v8896_v29 }
 0x148   :  { %8261 = vmatprep.mubr.bf16.mxu1 %v9749_v57  ;;  %v9819_v62 = vpack.c.bf16 %v2432_v35, %v2431_v59  ;;  %v8897_v57 = vld [vmem:[%s12673_s0 + $0x298] sm:$0xff]  }
 0x149   :  { %v7753_v0 = vpop.f32.mrb[56].mxu0  ;;  %v9821_v2 = vpack.c.bf16 %v2430_v61, %v2429_v60 }
 0x14a   :  { %v1587_v3 = vadd.f32 %v7753_v0, %v9540_v58  ;;  %v1578_v48 = vpop.f32.mrb[57].mxu0 }
 0x14b   :  { %v1579_v4 = vadd.f32 %v9540_v58, %v1578_v48  ;;  %v7754_v5 = vpop.f32.mrb[58].mxu0 }
 0x14c   :  { %v1590_v39 = vadd.f32 %v7754_v5, %v9540_v58  ;;  %v1581_v33 = vpop.f32.mrb[59].mxu0  ;;  %v2435_v12 = vmax.f32 %v1587_v3, 0.0 }
 0x14d   :  { %v1582_v9 = vadd.f32 %v9540_v58, %v1581_v33  ;;  %v2433_v14 = vmax.f32 %v1579_v4, 0.0 }
 0x14e   :  { %v2436_v53 = vmax.f32 %v1590_v39, 0.0  ;;  %7860 = vmatmul.mubr.msk.bf16.gmra.mrb[164].mxu0 %vm931_vm1, %v8897_v57  ;;  %v8904_v39 = vld [vmem:[%s12673_s0 + $0x2d0] sm:$0xff]  }
 0x14f   :  { %v2434_v16 = vmax.f32 %v1582_v9, 0.0  ;;  %8262 = vmatmul.mubr.bf16.gmra.mrb[164].mxu1 %v9747_v55  ;;  %7863 = vmatprep.mubr.msk.bf16.mxu0 %vm931_vm1, %v8898_v46 }
 0x150   :  { %8265 = vmatprep.mubr.bf16.mxu1 %v9767_v10  ;;  %v9837_v18 = vpack.c.bf16 %v2436_v53, %v2435_v12  ;;  %v8899_v10 = vld [vmem:[%s12673_s0 + $0x2a8] sm:$0xff]  }
 0x151   :  { %v7757_v22 = vpop.f32.mrb[60].mxu0  ;;  %v9839_v24 = vpack.c.bf16 %v2434_v16, %v2433_v14 }
 0x152   :  { %v1603_v25 = vadd.f32 %v7757_v22, %v9540_v58  ;;  %v1594_v1 = vpop.f32.mrb[61].mxu0 }
 0x153   :  { %v1595_v26 = vadd.f32 %v9540_v58, %v1594_v1  ;;  %v7758_v27 = vpop.f32.mrb[62].mxu0 }
 0x154   :  { %v1606_v55 = vadd.f32 %v7758_v27, %v9540_v58  ;;  %v1597_v51 = vpop.f32.mrb[63].mxu0  ;;  %v2439_v34 = vmax.f32 %v1603_v25, 0.0 }
 0x155   :  { %v1598_v30 = vadd.f32 %v9540_v58, %v1597_v51  ;;  %v2437_v36 = vmax.f32 %v1595_v26, 0.0 }
 0x156   :  { %v2440_v8 = vmax.f32 %v1606_v55, 0.0  ;;  %7864 = vmatmul.mubr.msk.bf16.gmra.mrb[168].mxu0 %vm931_vm1, %v8899_v10  ;;  %v8906_v55 = vld [vmem:[%s12673_s0 + $0x2e0] sm:$0xff]  }
 0x157   :  { %v2438_v37 = vmax.f32 %v1598_v30, 0.0  ;;  %8266 = vmatmul.mubr.bf16.gmra.mrb[168].mxu1 %v9765_v7  ;;  %7867 = vmatprep.mubr.msk.bf16.mxu0 %vm931_vm1, %v8900_v63 }
 0x158   :  { %8269 = vmatprep.mubr.bf16.mxu1 %v9785_v32  ;;  %v9855_v38 = vpack.c.bf16 %v2440_v8, %v2439_v34  ;;  %v8901_v32 = vld [vmem:[%s12673_s0 + $0x2b8] sm:$0xff]  }
 0x159   :  { %v7761_v40 = vpop.f32.mrb[64].mxu0  ;;  %v9857_v42 = vpack.c.bf16 %v2438_v37, %v2437_v36 }
 0x15a   :  { %v1619_v13 = vadd.f32 %v7761_v40, %v9540_v58  ;;  %v1610_v23 = vpop.f32.mrb[65].mxu0 }
 0x15b   :  { %v1611_v43 = vadd.f32 %v9540_v58, %v1610_v23  ;;  %v7762_v44 = vpop.f32.mrb[66].mxu0 }
 0x15c   :  { %v1622_v7 = vadd.f32 %v7762_v44, %v9540_v58  ;;  %v1613_v6 = vpop.f32.mrb[67].mxu0  ;;  %v2443_v50 = vmax.f32 %v1619_v13, 0.0 }
 0x15d   :  { %v1614_v47 = vadd.f32 %v9540_v58, %v1613_v6  ;;  %v2441_v52 = vmax.f32 %v1611_v43, 0.0 }
 0x15e   :  { %v2444_v31 = vmax.f32 %v1622_v7, 0.0  ;;  %7868 = vmatmul.mubr.msk.bf16.gmra.mrb[172].mxu0 %vm931_vm1, %v8901_v32  ;;  %v8908_v7 = vld [vmem:[%s12673_s0 + $0x2f0] sm:$0xff]  }
 0x15f   :  { %v2442_v54 = vmax.f32 %v1614_v47, 0.0  ;;  %8270 = vmatmul.mubr.bf16.gmra.mrb[172].mxu1 %v9783_v28  ;;  %7871 = vmatprep.mubr.msk.bf16.mxu0 %vm931_vm1, %v8902_v20 }
 0x160   :  { %8273 = vmatprep.mubr.bf16.mxu1 %v9803_v49  ;;  %v9873_v11 = vpack.c.bf16 %v2444_v31, %v2443_v50  ;;  %v8903_v49 = vld [vmem:[%s12673_s0 + $0x2c8] sm:$0xff]  }
 0x161   :  { %v7765_v56 = vpop.f32.mrb[68].mxu0  ;;  %v9875_v59 = vpack.c.bf16 %v2442_v54, %v2441_v52 }
 0x162   :  { %v1635_v35 = vadd.f32 %v7765_v56, %v9540_v58  ;;  %v1626_v41 = vpop.f32.mrb[69].mxu0 }
 0x163   :  { %v1627_v60 = vadd.f32 %v9540_v58, %v1626_v41  ;;  %v7766_v61 = vpop.f32.mrb[70].mxu0 }
 0x164   :  { %v1638_v28 = vadd.f32 %v7766_v61, %v9540_v58  ;;  %v1629_v29 = vpop.f32.mrb[71].mxu0  ;;  %v2447_v3 = vmax.f32 %v1635_v35, 0.0 }
 0x165   :  { %v1630_v0 = vadd.f32 %v9540_v58, %v1629_v29  ;;  %v2445_v4 = vmax.f32 %v1627_v60, 0.0 }
 0x166   :  { %v2448_v48 = vmax.f32 %v1638_v28, 0.0  ;;  %7872 = vmatmul.mubr.msk.bf16.gmra.mrb[176].mxu0 %vm931_vm1, %v8903_v49  ;;  %v8910_v28 = vld [vmem:[%s12673_s0 + $0x300] sm:$0xff]  }
 0x167   :  { %v2446_v5 = vmax.f32 %v1630_v0, 0.0  ;;  %8274 = vmatmul.mubr.bf16.gmra.mrb[176].mxu1 %v9801_v45  ;;  %7875 = vmatprep.mubr.msk.bf16.mxu0 %vm931_vm1, %v8904_v39 }
 0x168   :  { %8277 = vmatprep.mubr.bf16.mxu1 %v9821_v2  ;;  %v9891_v33 = vpack.c.bf16 %v2448_v48, %v2447_v3  ;;  %v8905_v2 = vld [vmem:[%s12673_s0 + $0x2d8] sm:$0xff]  }
 0x169   :  { %v7769_v9 = vpop.f32.mrb[72].mxu0  ;;  %v9893_v12 = vpack.c.bf16 %v2446_v5, %v2445_v4 }
 0x16a   :  { %v1651_v53 = vadd.f32 %v7769_v9, %v9540_v58  ;;  %v1642_v57 = vpop.f32.mrb[73].mxu0 }
 0x16b   :  { %v1643_v14 = vadd.f32 %v9540_v58, %v1642_v57  ;;  %v7770_v16 = vpop.f32.mrb[74].mxu0 }
 0x16c   :  { %v1654_v45 = vadd.f32 %v7770_v16, %v9540_v58  ;;  %v1645_v46 = vpop.f32.mrb[75].mxu0  ;;  %v2451_v25 = vmax.f32 %v1651_v53, 0.0 }
 0x16d   :  { %v1646_v22 = vadd.f32 %v9540_v58, %v1645_v46  ;;  %v2449_v26 = vmax.f32 %v1643_v14, 0.0 }
 0x16e   :  { %v2452_v1 = vmax.f32 %v1654_v45, 0.0  ;;  %7876 = vmatmul.mubr.msk.bf16.gmra.mrb[180].mxu0 %vm931_vm1, %v8905_v2 }
 0x16f   :  { %v2450_v27 = vmax.f32 %v1646_v22, 0.0  ;;  %8278 = vmatmul.mubr.bf16.gmra.mrb[180].mxu1 %v9819_v62  ;;  %7879 = vmatprep.mubr.msk.bf16.mxu0 %vm931_vm1, %v8906_v55 }
 0x170   :  { %8281 = vmatprep.mubr.bf16.mxu1 %v9839_v24  ;;  %v9909_v51 = vpack.c.bf16 %v2452_v1, %v2451_v25  ;;  %v8907_v24 = vld [vmem:[%s12673_s0 + $0x2e8] sm:$0xff]  }
 0x171   :  { %v7773_v30 = vpop.f32.mrb[76].mxu0  ;;  %v9911_v34 = vpack.c.bf16 %v2450_v27, %v2449_v26 }
 0x172   :  { %v1667_v8 = vadd.f32 %v7773_v30, %v9540_v58  ;;  %v1658_v10 = vpop.f32.mrb[77].mxu0 }
 0x173   :  { %v1659_v36 = vadd.f32 %v9540_v58, %v1658_v10  ;;  %v7774_v37 = vpop.f32.mrb[78].mxu0 }
 0x174   :  { %v1670_v62 = vadd.f32 %v7774_v37, %v9540_v58  ;;  %v1661_v63 = vpop.f32.mrb[79].mxu0  ;;  %v2455_v13 = vmax.f32 %v1667_v8, 0.0 }
 0x175   :  { %v1662_v40 = vadd.f32 %v9540_v58, %v1661_v63  ;;  %v2453_v43 = vmax.f32 %v1659_v36, 0.0 }
 0x176   :  { %v2456_v23 = vmax.f32 %v1670_v62, 0.0  ;;  %7880 = vmatmul.mubr.msk.bf16.gmra.mrb[184].mxu0 %vm931_vm1, %v8907_v24 }
 0x177   :  { %v2454_v44 = vmax.f32 %v1662_v40, 0.0  ;;  %8282 = vmatmul.mubr.bf16.gmra.mrb[184].mxu1 %v9837_v18  ;;  %7883 = vmatprep.mubr.msk.bf16.mxu0 %vm931_vm1, %v8908_v7 }
 0x178   :  { %8285 = vmatprep.mubr.bf16.mxu1 %v9857_v42  ;;  %v9927_v6 = vpack.c.bf16 %v2456_v23, %v2455_v13  ;;  %v8909_v42 = vld [vmem:[%s12673_s0 + $0x2f8] sm:$0xff]  }
 0x179   :  { %v7777_v47 = vpop.f32.mrb[80].mxu0  ;;  %v9929_v50 = vpack.c.bf16 %v2454_v44, %v2453_v43  ;;  %v8912_v43 = vld [vmem:[%s12673_s0 + $0x330] sm:$0xff]  }
 0x17a   :  { %v1683_v31 = vadd.f32 %v7777_v47, %v9540_v58  ;;  %v1674_v32 = vpop.f32.mrb[81].mxu0 }
 0x17b   :  { %v1675_v52 = vadd.f32 %v9540_v58, %v1674_v32  ;;  %v7778_v54 = vpop.f32.mrb[82].mxu0 }
 0x17c   :  { %v1686_v18 = vadd.f32 %v7778_v54, %v9540_v58  ;;  %v1677_v20 = vpop.f32.mrb[83].mxu0  ;;  %v2459_v35 = vmax.f32 %v1683_v31, 0.0 }
 0x17d   :  { %v1678_v56 = vadd.f32 %v9540_v58, %v1677_v20  ;;  %v2457_v60 = vmax.f32 %v1675_v52, 0.0 }
 0x17e   :  { %v2460_v41 = vmax.f32 %v1686_v18, 0.0  ;;  %7884 = vmatmul.mubr.msk.bf16.gmra.mrb[188].mxu0 %vm931_vm1, %v8909_v42 }
 0x17f   :  { %v2458_v61 = vmax.f32 %v1678_v56, 0.0  ;;  %8286 = vmatmul.mubr.bf16.gmra.mrb[188].mxu1 %v9855_v38  ;;  %7887 = vmatprep.mubr.msk.bf16.mxu0 %vm931_vm1, %v8910_v28 }
 0x180   :  { %8289 = vmatprep.mubr.bf16.mxu1 %v9875_v59  ;;  %v9945_v29 = vpack.c.bf16 %v2460_v41, %v2459_v35 }
 0x181   :  { %v7781_v0 = vpop.f32.mrb[84].mxu0  ;;  %v9947_v3 = vpack.c.bf16 %v2458_v61, %v2457_v60  ;;  %v8914_v60 = vld [vmem:[%s12673_s0 + $0x340] sm:$0xff]  }
 0x182   :  { %v1699_v48 = vadd.f32 %v7781_v0, %v9540_v58  ;;  %v1690_v49 = vpop.f32.mrb[85].mxu0 }
 0x183   :  { %v1691_v4 = vadd.f32 %v9540_v58, %v1690_v49  ;;  %v7782_v5 = vpop.f32.mrb[86].mxu0 }
 0x184   :  { %v1702_v38 = vadd.f32 %v7782_v5, %v9540_v58  ;;  %v1693_v39 = vpop.f32.mrb[87].mxu0  ;;  %v2463_v53 = vmax.f32 %v1699_v48, 0.0 }
 0x185   :  { %v1694_v9 = vadd.f32 %v9540_v58, %v1693_v39  ;;  %v2461_v59 = vmax.f32 %v1691_v4, 0.0 }
 0x186   :  { %v2464_v57 = vmax.f32 %v1702_v38, 0.0  ;;  %7888 = vmatmul.mubr.msk.bf16.gmra.mrb[192].mxu0 %vm931_vm1, %v9357_v15 }
 0x187   :  { %v2462_v14 = vmax.f32 %v1694_v9, 0.0  ;;  %8290 = vmatmul.mubr.bf16.gmra.mrb[192].mxu1 %v9873_v11  ;;  %7891 = vmatprep.mubr.msk.bf16.mxu0 %vm931_vm1, %v9365_v17 }
 0x188   :  { %8293 = vmatprep.mubr.bf16.mxu1 %v9893_v12  ;;  %v9959_v16 = vpack.c.bf16 %v2464_v57, %v2463_v53 }
 0x189   :  { %v7785_v45 = vpop.f32.mrb[88].mxu0  ;;  %v9961_v46 = vpack.c.bf16 %v2462_v14, %v2461_v59  ;;  %v8916_v14 = vld [vmem:[%s12673_s0 + $0x350] sm:$0xff]  }
 0x18a   :  { %v1715_v22 = vadd.f32 %v7785_v45, %v9540_v58  ;;  %v1706_v25 = vpop.f32.mrb[89].mxu0 }
 0x18b   :  { %v1707_v1 = vadd.f32 %v9540_v58, %v1706_v25  ;;  %v7786_v15 = vpop.f32.mrb[90].mxu0 }
 0x18c   :  { %v1718_v2 = vadd.f32 %v7786_v15, %v9540_v58  ;;  %v1709_v26 = vpop.f32.mrb[91].mxu0  ;;  %v2467_v27 = vmax.f32 %v1715_v22, 0.0 }
 0x18d   :  { %v1710_v11 = vadd.f32 %v9540_v58, %v1709_v26  ;;  %v2465_v12 = vmax.f32 %v1707_v1, 0.0 }
 0x18e   :  { %v2468_v17 = vmax.f32 %v1718_v2, 0.0  ;;  %7892 = vmatmul.mubr.msk.bf16.gmra.mrb[196].mxu0 %vm931_vm1, %v9379_v19 }
 0x18f   :  { %v2466_v55 = vmax.f32 %v1710_v11, 0.0  ;;  %8294 = vmatmul.mubr.bf16.gmra.mrb[196].mxu1 %v9891_v33  ;;  %7895 = vmatprep.mubr.msk.bf16.mxu0 %vm931_vm1, %v9387_v21 }
 0x190   :  { %8297 = vmatprep.mubr.bf16.mxu1 %v9911_v34  ;;  %v9973_v30 = vpack.c.bf16 %v2468_v17, %v2467_v27  ;;  %v8911_v34 = vld [vmem:[%s12673_s0 + $0x328] sm:$0xff]  }
 0x191   :  { %v7789_v8 = vpop.f32.mrb[92].mxu0  ;;  %v9975_v10 = vpack.c.bf16 %v2466_v55, %v2465_v12 }
 0x192   :  { %v1731_v36 = vadd.f32 %v7789_v8, %v9540_v58  ;;  %v1722_v37 = vpop.f32.mrb[93].mxu0 }
 0x193   :  { %v1723_v62 = vadd.f32 %v9540_v58, %v1722_v37  ;;  %v7790_v19 = vpop.f32.mrb[94].mxu0 }
 0x194   :  { %v1734_v63 = vadd.f32 %v7790_v19, %v9540_v58  ;;  %v1725_v40 = vpop.f32.mrb[95].mxu0  ;;  %v2471_v13 = vmax.f32 %v1731_v36, 0.0  ;;  %v8918_v36 = vld [vmem:[%s12673_s0 + $0x360] sm:$0xff]  }
 0x195   :  { %v1726_v33 = vadd.f32 %v9540_v58, %v1725_v40  ;;  %v2469_v23 = vmax.f32 %v1723_v62, 0.0 }
 0x196   :  { %v2472_v21 = vmax.f32 %v1734_v63, 0.0  ;;  %7896 = vmatmul.mubr.msk.bf16.gmra.mrb[200].mxu0 %vm931_vm1, %v8911_v34 }
 0x197   :  { %v2470_v24 = vmax.f32 %v1726_v33, 0.0  ;;  %8298 = vmatmul.mubr.bf16.gmra.mrb[200].mxu1 %v9909_v51  ;;  %7899 = vmatprep.mubr.msk.bf16.mxu0 %vm931_vm1, %v8912_v43  ;;  %v8920_v43 = vld [vmem:[%s12673_s0 + $0x368] sm:$0xff]  }
 0x198   :  { %8301 = vmatprep.mubr.bf16.mxu1 %v9929_v50  ;;  %v9991_v44 = vpack.c.bf16 %v2472_v21, %v2471_v13  ;;  %v8913_v50 = vld [vmem:[%s12673_s0 + $0x338] sm:$0xff]  }
 0x199   :  { %v7793_v7 = vpop.f32.mrb[96].mxu0  ;;  %v9993_v47 = vpack.c.bf16 %v2470_v24, %v2469_v23 }
 0x19a   :  { %v1747_v31 = vadd.f32 %v7793_v7, %v9540_v58  ;;  %v1738_v32 = vpop.f32.mrb[97].mxu0 }
 0x19b   :  { %v1739_v52 = vadd.f32 %v9540_v58, %v1738_v32  ;;  %v7794_v54 = vpop.f32.mrb[98].mxu0 }
 0x19c   :  { %v1750_v51 = vadd.f32 %v7794_v54, %v9540_v58  ;;  %v1741_v18 = vpop.f32.mrb[99].mxu0  ;;  %v2475_v56 = vmax.f32 %v1747_v31, 0.0  ;;  %v8921_v31 = vld [vmem:[%s12673_s0 + $0x370] sm:$0xff]  }
 0x19d   :  { %v1742_v20 = vadd.f32 %v9540_v58, %v1741_v18  ;;  %v2473_v41 = vmax.f32 %v1739_v52, 0.0 }
 0x19e   :  { %v2476_v35 = vmax.f32 %v1750_v51, 0.0  ;;  %7900 = vmatmul.mubr.msk.bf16.gmra.mrb[204].mxu0 %vm931_vm1, %v8913_v50 }
 0x19f   :  { %v2474_v42 = vmax.f32 %v1742_v20, 0.0  ;;  %8302 = vmatmul.mubr.bf16.gmra.mrb[204].mxu1 %v9927_v6  ;;  %7903 = vmatprep.mubr.msk.bf16.mxu0 %vm931_vm1, %v8914_v60 }
 0x1a0   :  { %8305 = vmatprep.mubr.bf16.mxu1 %v9947_v3  ;;  %v10009_v61 = vpack.c.bf16 %v2476_v35, %v2475_v56  ;;  %v8915_v3 = vld [vmem:[%s12673_s0 + $0x348] sm:$0xff]  }
 0x1a1   :  { %v7797_v28 = vpop.f32.mrb[100].mxu0  ;;  %v10011_v0 = vpack.c.bf16 %v2474_v42, %v2473_v41 }
 0x1a2   :  { %v1763_v48 = vadd.f32 %v7797_v28, %v9540_v58  ;;  %v1754_v49 = vpop.f32.mrb[101].mxu0 }
 0x1a3   :  { %v1755_v4 = vadd.f32 %v9540_v58, %v1754_v49  ;;  %v7798_v5 = vpop.f32.mrb[102].mxu0 }
 0x1a4   :  { %v1766_v6 = vadd.f32 %v7798_v5, %v9540_v58  ;;  %v1757_v38 = vpop.f32.mrb[103].mxu0  ;;  %v2479_v9 = vmax.f32 %v1763_v48, 0.0  ;;  %v8923_v48 = vld [vmem:[%s12673_s0 + $0x380] sm:$0xff]  }
 0x1a5   :  { %v1758_v39 = vadd.f32 %v9540_v58, %v1757_v38  ;;  %v2477_v57 = vmax.f32 %v1755_v4, 0.0 }
 0x1a6   :  { %v2480_v53 = vmax.f32 %v1766_v6, 0.0  ;;  %7904 = vmatmul.mubr.msk.bf16.gmra.mrb[208].mxu0 %vm931_vm1, %v8915_v3 }
 0x1a7   :  { %v2478_v59 = vmax.f32 %v1758_v39, 0.0  ;;  %8306 = vmatmul.mubr.bf16.gmra.mrb[208].mxu1 %v9945_v29  ;;  %7907 = vmatprep.mubr.msk.bf16.mxu0 %vm931_vm1, %v8916_v14 }
 0x1a8   :  { %8309 = vmatprep.mubr.bf16.mxu1 %v9961_v46  ;;  %v10027_v45 = vpack.c.bf16 %v2480_v53, %v2479_v9  ;;  %v8917_v46 = vld [vmem:[%s12673_s0 + $0x358] sm:$0xff]  }
 0x1a9   :  { %v7801_v22 = vpop.f32.mrb[104].mxu0  ;;  %v10029_v25 = vpack.c.bf16 %v2478_v59, %v2477_v57 }
 0x1aa   :  { %v1779_v1 = vadd.f32 %v7801_v22, %v9540_v58  ;;  %v1770_v15 = vpop.f32.mrb[105].mxu0 }
 0x1ab   :  { %v1771_v2 = vadd.f32 %v9540_v58, %v1770_v15  ;;  %v7802_v26 = vpop.f32.mrb[106].mxu0 }
 0x1ac   :  { %v1782_v29 = vadd.f32 %v7802_v26, %v9540_v58  ;;  %v1773_v11 = vpop.f32.mrb[107].mxu0  ;;  %v2483_v17 = vmax.f32 %v1779_v1, 0.0  ;;  %v8925_v1 = vld [vmem:[%s12673_s0 + $0x390] sm:$0xff]  }
 0x1ad   :  { %v1774_v27 = vadd.f32 %v9540_v58, %v1773_v11  ;;  %v2481_v55 = vmax.f32 %v1771_v2, 0.0 }
 0x1ae   :  { %v2484_v12 = vmax.f32 %v1782_v29, 0.0  ;;  %7908 = vmatmul.mubr.msk.bf16.gmra.mrb[212].mxu0 %vm931_vm1, %v8917_v46 }
 0x1af   :  { %v2482_v8 = vmax.f32 %v1774_v27, 0.0  ;;  %8310 = vmatmul.mubr.bf16.gmra.mrb[212].mxu1 %v9959_v16  ;;  %7911 = vmatprep.mubr.msk.bf16.mxu0 %vm931_vm1, %v8918_v36  ;;  %v10054_v16 = vld [vmem:[%s12675_s2] ss:$0 sm:$0xff] }
 0x1b0   :  { %8313 = vmatprep.mubr.bf16.mxu1 %v9975_v10  ;;  %v10045_v37 = vpack.c.bf16 %v2484_v12, %v2483_v17 }
 0x1b1   :  { %v7805_v62 = vpop.f32.mrb[108].mxu0  ;;  %v10047_v19 = vpack.c.bf16 %v2482_v8, %v2481_v55 }
 0x1b2   :  { %v1795_v63 = vadd.f32 %v7805_v62, %v9540_v58  ;;  %v1786_v40 = vpop.f32.mrb[109].mxu0 }
 0x1b3   :  { %v1787_v33 = vadd.f32 %v9540_v58, %v1786_v40  ;;  %v7806_v13 = vpop.f32.mrb[110].mxu0 }
 0x1b4   :  { %v1798_v21 = vadd.f32 %v10054_v16, %v7806_v13  ;;  %v1789_v34 = vpop.f32.mrb[111].mxu0  ;;  %v2487_v23 = vmax.f32 %v1795_v63, 0.0  ;;  %v8927_v63 = vld [vmem:[%s12673_s0 + $0x3a0] sm:$0xff]  }
 0x1b5   :  { %v1790_v10 = vadd.f32 %v10054_v16, %v1789_v34  ;;  %v2485_v58 = vmax.f32 %v1787_v33, 0.0 }
 0x1b6   :  { %v2488_v24 = vmax.f32 %v1798_v21, 0.0  ;;  %7912 = vmatmul.mubr.msk.bf16.gmra.mrb[216].mxu0 %vm931_vm1, %v8920_v43 }
 0x1b7   :  { %v2486_v7 = vmax.f32 %v1790_v10, 0.0  ;;  %8314 = vmatmul.mubr.bf16.gmra.mrb[216].mxu1 %v9973_v30  ;;  %7915 = vmatprep.mubr.msk.bf16.mxu0 %vm931_vm1, %v8921_v31 }
 0x1b8   :  { %8317 = vmatprep.mubr.bf16.mxu1 %v9993_v47  ;;  %v10068_v32 = vpack.c.bf16 %v2488_v24, %v2487_v23  ;;  %v8922_v47 = vld [vmem:[%s12673_s0 + $0x378] sm:$0xff]  }
 0x1b9   :  { %v7809_v52 = vpop.f32.mrb[112].mxu0  ;;  %v10070_v54 = vpack.c.bf16 %v2486_v7, %v2485_v58 }
 0x1ba   :  { %v1811_v51 = vadd.f32 %v10054_v16, %v7809_v52  ;;  %v1802_v18 = vpop.f32.mrb[113].mxu0 }
 0x1bb   :  { %v1803_v20 = vadd.f32 %v10054_v16, %v1802_v18  ;;  %v7810_v56 = vpop.f32.mrb[114].mxu0 }
 0x1bc   :  { %v1814_v30 = vadd.f32 %v10054_v16, %v7810_v56  ;;  %v1805_v35 = vpop.f32.mrb[115].mxu0  ;;  %v2491_v41 = vmax.f32 %v1811_v51, 0.0  ;;  %v8929_v51 = vld [vmem:[%s12673_s0 + $0x3b0] sm:$0xff]  }
 0x1bd   :  { %v1806_v50 = vadd.f32 %v10054_v16, %v1805_v35  ;;  %v2489_v60 = vmax.f32 %v1803_v20, 0.0 }
 0x1be   :  { %v2492_v42 = vmax.f32 %v1814_v30, 0.0  ;;  %7916 = vmatmul.mubr.msk.bf16.gmra.mrb[220].mxu0 %vm931_vm1, %v8922_v47 }
 0x1bf   :  { %v2490_v28 = vmax.f32 %v1806_v50, 0.0  ;;  %8318 = vmatmul.mubr.bf16.gmra.mrb[220].mxu1 %v9991_v44  ;;  %7919 = vmatprep.mubr.msk.bf16.mxu0 %vm931_vm1, %v8923_v48 }
 0x1c0   :  { %8321 = vmatprep.mubr.bf16.mxu1 %v10011_v0  ;;  %v10086_v49 = vpack.c.bf16 %v2492_v42, %v2491_v41  ;;  %v8924_v0 = vld [vmem:[%s12673_s0 + $0x388] sm:$0xff]  }
 0x1c1   :  { %v7813_v4 = vpop.f32.mrb[116].mxu0  ;;  %v10088_v5 = vpack.c.bf16 %v2490_v28, %v2489_v60 }
 0x1c2   :  { %v1827_v6 = vadd.f32 %v10054_v16, %v7813_v4  ;;  %v1818_v38 = vpop.f32.mrb[117].mxu0 }
 0x1c3   :  { %v1819_v39 = vadd.f32 %v10054_v16, %v1818_v38  ;;  %v7814_v9 = vpop.f32.mrb[118].mxu0  ;;  %v8930_v38 = vld [vmem:[%s12673_s0 + $0x3b8] sm:$0xff]  }
 0x1c4   :  { %v1830_v44 = vadd.f32 %v10054_v16, %v7814_v9  ;;  %v1821_v53 = vpop.f32.mrb[119].mxu0  ;;  %v2495_v57 = vmax.f32 %v1827_v6, 0.0 }
 0x1c5   :  { %v1822_v3 = vadd.f32 %v10054_v16, %v1821_v53  ;;  %v2493_v14 = vmax.f32 %v1819_v39, 0.0 }
 0x1c6   :  { %v2496_v59 = vmax.f32 %v1830_v44, 0.0  ;;  %7920 = vmatmul.mubr.msk.bf16.gmra.mrb[224].mxu0 %vm931_vm1, %v8924_v0  ;;  %v8931_v44 = vld [vmem:[%s12673_s0 + $0x3c0] sm:$0xff]  }
 0x1c7   :  { %v2494_v22 = vmax.f32 %v1822_v3, 0.0  ;;  %8322 = vmatmul.mubr.bf16.gmra.mrb[224].mxu1 %v10009_v61  ;;  %7923 = vmatprep.mubr.msk.bf16.mxu0 %vm931_vm1, %v8925_v1 }
 0x1c8   :  { %8325 = vmatprep.mubr.bf16.mxu1 %v10029_v25  ;;  %v10104_v15 = vpack.c.bf16 %v2496_v59, %v2495_v57  ;;  %v8926_v25 = vld [vmem:[%s12673_s0 + $0x398] sm:$0xff]  }
 0x1c9   :  { %v7817_v2 = vpop.f32.mrb[120].mxu0  ;;  %v10106_v26 = vpack.c.bf16 %v2494_v22, %v2493_v14 }
 0x1ca   :  { %v1843_v29 = vadd.f32 %v10054_v16, %v7817_v2  ;;  %v1834_v11 = vpop.f32.mrb[121].mxu0 }
 0x1cb   :  { %v1835_v27 = vadd.f32 %v10054_v16, %v1834_v11  ;;  %v7818_v17 = vpop.f32.mrb[122].mxu0 }
 0x1cc   :  { %v1846_v61 = vadd.f32 %v10054_v16, %v7818_v17  ;;  %v1837_v12 = vpop.f32.mrb[123].mxu0  ;;  %v2499_v55 = vmax.f32 %v1843_v29, 0.0 }
 0x1cd   :  { %v1838_v46 = vadd.f32 %v10054_v16, %v1837_v12  ;;  %v2497_v36 = vmax.f32 %v1835_v27, 0.0  ;;  %v8932_v12 = vld [vmem:[%s12673_s0 + $0x3c8] sm:$0xff]  }
 0x1ce   :  { %v2500_v8 = vmax.f32 %v1846_v61, 0.0  ;;  %7924 = vmatmul.mubr.msk.bf16.gmra.mrb[228].mxu0 %vm931_vm1, %v8926_v25 }
 0x1cf   :  { %v2498_v62 = vmax.f32 %v1838_v46, 0.0  ;;  %8326 = vmatmul.mubr.bf16.gmra.mrb[228].mxu1 %v10027_v45  ;;  %7927 = vmatprep.mubr.msk.bf16.mxu0 %vm931_vm1, %v8927_v63 }
 0x1d0   :  { %8329 = vmatprep.mubr.bf16.mxu1 %v10047_v19  ;;  %v10122_v40 = vpack.c.bf16 %v2500_v8, %v2499_v55  ;;  %v8928_v19 = vld [vmem:[%s12673_s0 + $0x3a8] sm:$0xff]   ;;  %v8933_v8 = vld [vmem:[%s12673_s0 + $0x3d0] sm:$0xff]  }
 0x1d1   :  { %v7821_v33 = vpop.f32.mrb[124].mxu0  ;;  %v10124_v13 = vpack.c.bf16 %v2498_v62, %v2497_v36 }
 0x1d2   :  { %v1859_v21 = vadd.f32 %v10054_v16, %v7821_v33  ;;  %v1850_v34 = vpop.f32.mrb[125].mxu0 }
 0x1d3   :  { %v1851_v10 = vadd.f32 %v10054_v16, %v1850_v34  ;;  %v7822_v23 = vpop.f32.mrb[126].mxu0 }
 0x1d4   :  { %v1862_v45 = vadd.f32 %v10054_v16, %v7822_v23  ;;  %v1853_v24 = vpop.f32.mrb[127].mxu0  ;;  %v2503_v58 = vmax.f32 %v1859_v21, 0.0 }
 0x1d5   :  { %v1854_v43 = vadd.f32 %v10054_v16, %v1853_v24  ;;  %v2501_v31 = vmax.f32 %v1851_v10, 0.0 }
 0x1d6   :  { %v2504_v7 = vmax.f32 %v1862_v45, 0.0  ;;  %7928 = vmatmul.mubr.msk.bf16.gmra.mrb[232].mxu0 %vm931_vm1, %v8928_v19  ;;  %v8934_v19 = vld [vmem:[%s12673_s0 + $0x3d8] sm:$0xff]  }
 0x1d7   :  { %v2502_v52 = vmax.f32 %v1854_v43, 0.0  ;;  %8330 = vmatmul.mubr.bf16.gmra.mrb[232].mxu1 %v10045_v37  ;;  %7931 = vmatprep.mubr.msk.bf16.mxu0 %vm931_vm1, %v8929_v51  ;;  %v8935_v51 = vld [vmem:[%s12673_s0 + $0x3e0] sm:$0xff]  }
 0x1d8   :  { %8333 = vmatprep.mubr.bf16.mxu1 %v10070_v54  ;;  %v10140_v18 = vpack.c.bf16 %v2504_v7, %v2503_v58 }
 0x1d9   :  { %v7825_v20 = vpop.f32.mrb[128].mxu0  ;;  %v10142_v56 = vpack.c.bf16 %v2502_v52, %v2501_v31 }
 0x1da   :  { %v1875_v30 = vadd.f32 %v10054_v16, %v7825_v20  ;;  %v10145_v35 = vpop.f32.mrb[128].mxu1  ;;  %v1866_v50 = vpop.f32.mrb[129].mxu0 }
 0x1db   :  { %v1867_v37 = vadd.f32 %v10054_v16, %v1866_v50  ;;  %v10148_v41 = vpop.f32.mrb[129].mxu1  ;;  %v7826_v42 = vpop.f32.mrb[130].mxu0 }
 0x1dc   :  { %v1878_v47 = vadd.f32 %v10054_v16, %v7826_v42  ;;  %v10151_v60 = vpop.f32.mrb[130].mxu1  ;;  %v1869_v54 = vpop.f32.mrb[131].mxu0  ;;  %v2507_v4 = vmax.f32 %v1875_v30, 0.0 }
 0x1dd   :  { %v1870_v28 = vadd.f32 %v10054_v16, %v1869_v54  ;;  %v10154_v48 = vpop.f32.mrb[131].mxu1  ;;  %v2505_v39 = vmax.f32 %v1867_v37, 0.0 }
 0x1de   :  { %v2508_v6 = vmax.f32 %v1878_v47, 0.0  ;;  %7932 = vmatmul.mubr.msk.bf16.gmra.mrb[236].mxu0 %vm931_vm1, %v8930_v38 }
 0x1df   :  { %v2506_v9 = vmax.f32 %v1870_v28, 0.0  ;;  %8334 = vmatmul.mubr.bf16.gmra.mrb[236].mxu1 %v10068_v32  ;;  %7935 = vmatprep.mubr.msk.bf16.mxu0 %vm931_vm1, %v8931_v44 }
 0x1e0   :  { %v10165_v53 = vpack.c.bf16 %v2508_v6, %v2507_v4  ;;  %8337 = vmatprep.mubr.bf16.mxu1 %v10088_v5 }
 0x1e1   :  { %v10168_v3 = vpack.c.bf16 %v2506_v9, %v2505_v39  ;;  %v7829_v57 = vpop.f32.mrb[132].mxu0 }
 0x1e2   :  { %v1891_v59 = vadd.f32 %v10054_v16, %v7829_v57  ;;  %v10171_v0 = vpop.f32.mrb[132].mxu1  ;;  %v1882_v14 = vpop.f32.mrb[133].mxu0  ;;  %v8936_v57 = vld [vmem:[%s12673_s0 + $0x3e8] sm:$0xff]  }
 0x1e3   :  { %v1883_v32 = vadd.f32 %v10054_v16, %v1882_v14  ;;  %v10174_v22 = vpop.f32.mrb[133].mxu1  ;;  %v7830_v1 = vpop.f32.mrb[134].mxu0 }
 0x1e4   :  { %v1894_v2 = vadd.f32 %v10054_v16, %v7830_v1  ;;  %v10177_v29 = vpop.f32.mrb[134].mxu1  ;;  %v1885_v11 = vpop.f32.mrb[135].mxu0  ;;  %v2511_v17 = vmax.f32 %v1891_v59, 0.0 }
 0x1e5   :  { %v1886_v5 = vadd.f32 %v10054_v16, %v1885_v11  ;;  %v10180_v27 = vpop.f32.mrb[135].mxu1  ;;  %v2509_v46 = vmax.f32 %v1883_v32, 0.0  ;;  %v8937_v32 = vld [vmem:[%s12673_s0 + $0x3f0] sm:$0xff]  }
 0x1e6   :  { %v2512_v61 = vmax.f32 %v1894_v2, 0.0  ;;  %7936 = vmatmul.mubr.msk.bf16.gmra.mrb[240].mxu0 %vm931_vm1, %v8932_v12 }
 0x1e7   :  { %v2510_v55 = vmax.f32 %v1886_v5, 0.0  ;;  %8338 = vmatmul.mubr.bf16.gmra.mrb[240].mxu1 %v10086_v49  ;;  %7939 = vmatprep.mubr.msk.bf16.mxu0 %vm931_vm1, %v8933_v8 }
 0x1e8   :  { %v10191_v25 = vpack.c.bf16 %v2512_v61, %v2511_v17  ;;  %8341 = vmatprep.mubr.bf16.mxu1 %v10106_v26 }
 0x1e9   :  { %v10194_v36 = vpack.c.bf16 %v2510_v55, %v2509_v46  ;;  %v7833_v62 = vpop.f32.mrb[136].mxu0 }
 0x1ea   :  { %v1907_v63 = vadd.f32 %v10054_v16, %v7833_v62  ;;  %v10197_v33 = vpop.f32.mrb[136].mxu1  ;;  %v1898_v21 = vpop.f32.mrb[137].mxu0 }
 0x1eb   :  { %v1899_v49 = vadd.f32 %v10054_v16, %v1898_v21  ;;  %v10200_v34 = vpop.f32.mrb[137].mxu1  ;;  %v7834_v10 = vpop.f32.mrb[138].mxu0 }
 0x1ec   :  { %v1910_v23 = vadd.f32 %v10054_v16, %v7834_v10  ;;  %v10203_v45 = vpop.f32.mrb[138].mxu1  ;;  %v1901_v24 = vpop.f32.mrb[139].mxu0  ;;  %v2515_v58 = vmax.f32 %v1907_v63, 0.0  ;;  %v8938_v10 = vld [vmem:[%s12673_s0 + $0x3f8] sm:$0xff]  }
 0x1ed   :  { %v1902_v26 = vadd.f32 %v10054_v16, %v1901_v24  ;;  %v10206_v43 = vpop.f32.mrb[139].mxu1  ;;  %v2513_v31 = vmax.f32 %v1899_v49, 0.0 }
 0x1ee   :  { %v2516_v7 = vmax.f32 %v1910_v23, 0.0  ;;  %7940 = vmatmul.mubr.msk.bf16.gmra.mrb[244].mxu0 %vm931_vm1, %v8934_v19 }
 0x1ef   :  { %v2514_v52 = vmax.f32 %v1902_v26, 0.0  ;;  %8342 = vmatmul.mubr.bf16.gmra.mrb[244].mxu1 %v10104_v15  ;;  %7943 = vmatprep.mubr.msk.bf16.mxu0 %vm931_vm1, %v8935_v51  ;;  %v8939_v26 = vld [vmem:[%s12673_s0] sm:$0xff]  }
 0x1f0   :  { %v10217_v20 = vpack.c.bf16 %v2516_v7, %v2515_v58  ;;  %8345 = vmatprep.mubr.bf16.mxu1 %v10124_v13 }
 0x1f1   :  { %v10220_v30 = vpack.c.bf16 %v2514_v52, %v2513_v31  ;;  %v7837_v50 = vpop.f32.mrb[140].mxu0 }
 0x1f2   :  { %v1923_v37 = vadd.f32 %v10054_v16, %v7837_v50  ;;  %v10223_v42 = vpop.f32.mrb[140].mxu1  ;;  %v1914_v47 = vpop.f32.mrb[141].mxu0 }
 0x1f3   :  { %v1915_v15 = vadd.f32 %v10054_v16, %v1914_v47  ;;  %v10226_v54 = vpop.f32.mrb[141].mxu1  ;;  %v7838_v28 = vpop.f32.mrb[142].mxu0 }
 0x1f4   :  { %v1926_v4 = vadd.f32 %v10054_v16, %v7838_v28  ;;  %v10229_v6 = vpop.f32.mrb[142].mxu1  ;;  %v1917_v38 = vpop.f32.mrb[143].mxu0  ;;  %v2519_v9 = vmax.f32 %v1923_v37, 0.0 }
 0x1f5   :  { %v1918_v13 = vadd.f32 %v10054_v16, %v1917_v38  ;;  %v10232_v39 = vpop.f32.mrb[143].mxu1  ;;  %v2517_v59 = vmax.f32 %v1915_v15, 0.0 }
 0x1f6   :  { %v2520_v44 = vmax.f32 %v1926_v4, 0.0  ;;  %7944 = vmatmul.mubr.msk.bf16.gmra.mrb[248].mxu0 %vm931_vm1, %v8936_v57 }
 0x1f7   :  { %v2518_v14 = vmax.f32 %v1918_v13, 0.0  ;;  %8346 = vmatmul.mubr.bf16.gmra.mrb[248].mxu1 %v10122_v40  ;;  %7947 = vmatprep.mubr.msk.bf16.mxu0 %vm931_vm1, %v8937_v32 }
 0x1f8   :  { %v10243_v1 = vpack.c.bf16 %v2520_v44, %v2519_v9  ;;  %8349 = vmatprep.mubr.bf16.mxu1 %v10142_v56  ;;  %v8940_v9 = vld [vmem:[%s12673_s0 + $0x8] sm:$0xff]  }
 0x1f9   :  { %v10246_v2 = vpack.c.bf16 %v2518_v14, %v2517_v59  ;;  %v7841_v11 = vpop.f32.mrb[144].mxu0  ;;  %v8941_v59 = vld [vmem:[%s12673_s0 + $0x10] sm:$0xff]  }
 0x1fa   :  { %v1939_v5 = vadd.f32 %v10054_v16, %v7841_v11  ;;  %v10249_v17 = vpop.f32.mrb[144].mxu1  ;;  %v1930_v61 = vpop.f32.mrb[145].mxu0 }
 0x1fb   :  { %v1931_v40 = vadd.f32 %v10054_v16, %v1930_v61  ;;  %v10252_v12 = vpop.f32.mrb[145].mxu1  ;;  %v7842_v46 = vpop.f32.mrb[146].mxu0 }
 0x1fc   :  { %v1942_v55 = vadd.f32 %v10054_v16, %v7842_v46  ;;  %v10255_v8 = vpop.f32.mrb[146].mxu1  ;;  %v1933_v62 = vpop.f32.mrb[147].mxu0  ;;  %v2523_v21 = vmax.f32 %v1939_v5, 0.0 }
 0x1fd   :  { %v1934_v56 = vadd.f32 %v10054_v16, %v1933_v62  ;;  %v10258_v63 = vpop.f32.mrb[147].mxu1  ;;  %v2521_v23 = vmax.f32 %v1931_v40, 0.0 }
 0x1fe   :  { %v2524_v49 = vmax.f32 %v1942_v55, 0.0  ;;  %7948 = vmatmul.mubr.msk.bf16.gmra.mrb[252].mxu0 %vm931_vm1, %v8938_v10 }
 0x1ff   :  { %v2522_v24 = vmax.f32 %v1934_v56, 0.0  ;;  %8350 = vmatmul.mubr.bf16.gmra.mrb[252].mxu1 %v10140_v18  ;;  %7953 = vmatprep.mubr.msk.bf16.mxu0 %vm931_vm1, %v8939_v26 }
 0x200   :  { %v10269_v58 = vpack.c.bf16 %v2524_v49, %v2523_v21  ;;  %8353 = vmatprep.mubr.bf16.mxu1 %v10168_v3 }
 0x201   :  { %v10272_v7 = vpack.c.bf16 %v2522_v24, %v2521_v23  ;;  %v7845_v19 = vpop.f32.mrb[148].mxu0  ;;  %v8942_v24 = vld [vmem:[%s12673_s0 + $0x18] sm:$0xff]  }
 0x202   :  { %v1955_v31 = vadd.f32 %v10054_v16, %v7845_v19  ;;  %v10275_v52 = vpop.f32.mrb[148].mxu1  ;;  %v1946_v51 = vpop.f32.mrb[149].mxu0 }
 0x203   :  { %v1947_v18 = vadd.f32 %v10054_v16, %v1946_v51  ;;  %v10278_v50 = vpop.f32.mrb[149].mxu1  ;;  %v7846_v37 = vpop.f32.mrb[150].mxu0 }
 0x204   :  { %v1958_v47 = vadd.f32 %v10054_v16, %v7846_v37  ;;  %v10281_v15 = vpop.f32.mrb[150].mxu1  ;;  %v1949_v28 = vpop.f32.mrb[151].mxu0  ;;  %v2527_v38 = vmax.f32 %v1955_v31, 0.0  ;;  %v8943_v31 = vld [vmem:[%s12673_s0 + $0x20] sm:$0xff]  }
 0x205   :  { %v1950_v3 = vadd.f32 %v10054_v16, %v1949_v28  ;;  %v10284_v4 = vpop.f32.mrb[151].mxu1  ;;  %v2525_v44 = vmax.f32 %v1947_v18, 0.0 }
 0x206   :  { %v2528_v13 = vmax.f32 %v1958_v47, 0.0  ;;  %7954 = vmatmul.mubr.msk.bf16.vlgmr.msra.gmra.mrb[0].mxu0 %vm931_vm1, %v8940_v9 }
 0x207   :  { %v2526_v57 = vmax.f32 %v1950_v3, 0.0  ;;  %8354 = vmatmul.mubr.bf16.gmra.mrb[0].mxu1 %v10165_v53  ;;  %7957 = vmatprep.mubr.msk.bf16.mxu0 %vm931_vm1, %v8941_v59 }
 0x208   :  { %v10295_v14 = vpack.c.bf16 %v2528_v13, %v2527_v38  ;;  %8357 = vmatprep.mubr.bf16.mxu1 %v10194_v36 }
 0x209   :  { %v10298_v32 = vpack.c.bf16 %v2526_v57, %v2525_v44  ;;  %v7849_v11 = vpop.f32.mrb[152].mxu0 }
 0x20a   :  { %v1971_v5 = vadd.f32 %v10054_v16, %v7849_v11  ;;  %v10301_v61 = vpop.f32.mrb[152].mxu1  ;;  %v1962_v40 = vpop.f32.mrb[153].mxu0 }
 0x20b   :  { %v1963_v53 = vadd.f32 %v10054_v16, %v1962_v40  ;;  %v10304_v46 = vpop.f32.mrb[153].mxu1  ;;  %v7850_v55 = vpop.f32.mrb[154].mxu0  ;;  %v8944_v40 = vld [vmem:[%s12673_s0 + $0x28] sm:$0xff]  }
 0x20c   :  { %v1974_v62 = vadd.f32 %v10054_v16, %v7850_v55  ;;  %v10307_v56 = vpop.f32.mrb[154].mxu1  ;;  %v1965_v21 = vpop.f32.mrb[155].mxu0  ;;  %v2531_v10 = vmax.f32 %v1971_v5, 0.0 }
 0x20d   :  { %v1966_v36 = vadd.f32 %v10054_v16, %v1965_v21  ;;  %v10310_v49 = vpop.f32.mrb[155].mxu1  ;;  %v2529_v26 = vmax.f32 %v1963_v53, 0.0 }
 0x20e   :  { %12679 = vst [vmem:[#allocation2_spill] sm:$0xff] %v10310_v49  ;;  %v2532_v23 = vmax.f32 %v1974_v62, 0.0  ;;  %7958 = vmatmul.mubr.msk.bf16.gmra.mrb[4].mxu0 %vm931_vm1, %v8942_v24  ;;  %v8945_v62 = vld [vmem:[%s12673_s0 + $0x30] sm:$0xff]  }
 0x20f   :  { %v2530_v19 = vmax.f32 %v1966_v36, 0.0  ;;  %8358 = vmatmul.mubr.bf16.gmra.mrb[4].mxu1 %v10191_v25  ;;  %7961 = vmatprep.mubr.msk.bf16.mxu0 %vm931_vm1, %v8943_v31 }
 0x210   :  { %v10321_v51 = vpack.c.bf16 %v2532_v23, %v2531_v10  ;;  %8361 = vmatprep.mubr.bf16.mxu1 %v10220_v30 }
 0x211   :  { %v10324_v18 = vpack.c.bf16 %v2530_v19, %v2529_v26  ;;  %v7853_v37 = vpop.f32.mrb[156].mxu0 }
 0x212   :  { %v1987_v47 = vadd.f32 %v10054_v16, %v7853_v37  ;;  %v10327_v28 = vpop.f32.mrb[156].mxu1  ;;  %v1978_v3 = vpop.f32.mrb[157].mxu0 }
 0x213   :  { %12680 = vst [vmem:[#allocation3_spill] sm:$0xff] %v10327_v28  ;;  %v1979_v25 = vadd.f32 %v10054_v16, %v1978_v3  ;;  %v10330_v38 = vpop.f32.mrb[157].mxu1  ;;  %v7854_v13 = vpop.f32.mrb[158].mxu0 }
 0x214   :  { %12681 = vst [vmem:[#allocation4_spill] sm:$0xff] %v10330_v38  ;;  %v1990_v9 = vadd.f32 %v10054_v16, %v7854_v13  ;;  %v10333_v44 = vpop.f32.mrb[158].mxu1  ;;  %v1981_v57 = vpop.f32.mrb[159].mxu0  ;;  %v2535_v11 = vmax.f32 %v1987_v47, 0.0 }
 0x215   :  { %12682 = vst [vmem:[#allocation5_spill] sm:$0xff] %v10333_v44  ;;  %v1982_v30 = vadd.f32 %v10054_v16, %v1981_v57  ;;  %v10336_v59 = vpop.f32.mrb[159].mxu1  ;;  %v2533_v53 = vmax.f32 %v1979_v25, 0.0  ;;  %v8946_v57 = vld [vmem:[%s12673_s0 + $0x38] sm:$0xff]  }
 0x216   :  { %12683 = vst [vmem:[#allocation6_spill] sm:$0xff] %v10336_v59  ;;  %v2536_v5 = vmax.f32 %v1990_v9, 0.0  ;;  %7962 = vmatmul.mubr.msk.bf16.gmra.mrb[8].mxu0 %vm931_vm1, %v8944_v40 }
 0x217   :  { %v2534_v55 = vmax.f32 %v1982_v30, 0.0  ;;  %8362 = vmatmul.mubr.bf16.gmra.mrb[8].mxu1 %v10217_v20  ;;  %7965 = vmatprep.mubr.msk.bf16.mxu0 %vm931_vm1, %v8945_v62 }
 0x218   :  { %v10347_v21 = vpack.c.bf16 %v2536_v5, %v2535_v11  ;;  %8365 = vmatprep.mubr.bf16.mxu1 %v10246_v2  ;;  %v8947_v5 = vld [vmem:[%s12673_s0 + $0x40] sm:$0xff]  }
 0x219   :  { %v10350_v36 = vpack.c.bf16 %v2534_v55, %v2533_v53  ;;  %v7857_v10 = vpop.f32.mrb[160].mxu0 }
 0x21a   :  { %v2003_v23 = vadd.f32 %v10054_v16, %v7857_v10  ;;  %v10353_v24 = vpop.f32.mrb[160].mxu1  ;;  %v1994_v26 = vpop.f32.mrb[161].mxu0 }
 0x21b   :  { %12684 = vst [vmem:[#allocation7_spill] sm:$0xff] %v10353_v24  ;;  %v1995_v20 = vadd.f32 %v10054_v16, %v1994_v26  ;;  %v10356_v19 = vpop.f32.mrb[161].mxu1  ;;  %v7858_v31 = vpop.f32.mrb[162].mxu0 }
 0x21c   :  { %12685 = vst [vmem:[#allocation8_spill] sm:$0xff] %v10356_v19  ;;  %v2006_v37 = vadd.f32 %v10054_v16, %v7858_v31  ;;  %v10359_v47 = vpop.f32.mrb[162].mxu1  ;;  %v1997_v3 = vpop.f32.mrb[163].mxu0  ;;  %v2539_v13 = vmax.f32 %v2003_v23, 0.0 }
 0x21d   :  { %12686 = vst [vmem:[#allocation9_spill] sm:$0xff] %v10359_v47  ;;  %v1998_v2 = vadd.f32 %v10054_v16, %v1997_v3  ;;  %v10362_v25 = vpop.f32.mrb[163].mxu1  ;;  %v2537_v30 = vmax.f32 %v1995_v20, 0.0 }
 0x21e   :  { %12687 = vst [vmem:[#allocation10_spill] sm:$0xff] %v10362_v25  ;;  %v2540_v9 = vmax.f32 %v2006_v37, 0.0  ;;  %7966 = vmatmul.mubr.msk.bf16.gmra.mrb[12].mxu0 %vm931_vm1, %v8946_v57  ;;  %v8948_v57 = vld [vmem:[%s12673_s0 + $0x48] sm:$0xff]  }
 0x21f   :  { %v2538_v11 = vmax.f32 %v1998_v2, 0.0  ;;  %8366 = vmatmul.mubr.bf16.gmra.mrb[12].mxu1 %v10243_v1  ;;  %7969 = vmatprep.mubr.msk.bf16.mxu0 %vm931_vm1, %v8947_v5  ;;  %v8949_v5 = vld [vmem:[%s12673_s0 + $0x50] sm:$0xff]  }
 0x220   :  { %v10373_v40 = vpack.c.bf16 %v2540_v9, %v2539_v13  ;;  %8369 = vmatprep.mubr.bf16.mxu1 %v10272_v7 }
 0x221   :  { %v10376_v53 = vpack.c.bf16 %v2538_v11, %v2537_v30  ;;  %v7861_v55 = vpop.f32.mrb[164].mxu0 }
 0x222   :  { %v2019_v62 = vadd.f32 %v10054_v16, %v7861_v55  ;;  %v10379_v10 = vpop.f32.mrb[164].mxu1  ;;  %v2010_v23 = vpop.f32.mrb[165].mxu0 }
 0x223   :  { %12688 = vst [vmem:[#allocation11_spill] sm:$0xff] %v10379_v10  ;;  %v2011_v1 = vadd.f32 %v10054_v16, %v2010_v23  ;;  %v10382_v26 = vpop.f32.mrb[165].mxu1  ;;  %v7862_v20 = vpop.f32.mrb[166].mxu0 }
 0x224   :  { %12689 = vst [vmem:[#allocation12_spill] sm:$0xff] %v10382_v26  ;;  %v2022_v31 = vadd.f32 %v10054_v16, %v7862_v20  ;;  %v10385_v37 = vpop.f32.mrb[166].mxu1  ;;  %v2013_v3 = vpop.f32.mrb[167].mxu0  ;;  %v2543_v13 = vmax.f32 %v2019_v62, 0.0 }
 0x225   :  { %12690 = vst [vmem:[#allocation13_spill] sm:$0xff] %v10385_v37  ;;  %v2014_v7 = vadd.f32 %v10054_v16, %v2013_v3  ;;  %v10388_v2 = vpop.f32.mrb[167].mxu1  ;;  %v2541_v30 = vmax.f32 %v2011_v1, 0.0 }
 0x226   :  { %12691 = vst [vmem:[#allocation14_spill] sm:$0xff] %v10388_v2  ;;  %v2544_v9 = vmax.f32 %v2022_v31, 0.0  ;;  %7970 = vmatmul.mubr.msk.bf16.gmra.mrb[16].mxu0 %vm931_vm1, %v8948_v57 }
 0x227   :  { %v2542_v11 = vmax.f32 %v2014_v7, 0.0  ;;  %8370 = vmatmul.mubr.bf16.gmra.mrb[16].mxu1 %v10269_v58  ;;  %7973 = vmatprep.mubr.msk.bf16.mxu0 %vm931_vm1, %v8949_v5 }
 0x228   :  { %v10399_v55 = vpack.c.bf16 %v2544_v9, %v2543_v13  ;;  %8373 = vmatprep.mubr.bf16.mxu1 %v10298_v32 }
 0x229   :  { %v10402_v62 = vpack.c.bf16 %v2542_v11, %v2541_v30  ;;  %v7865_v23 = vpop.f32.mrb[168].mxu0 }
 0x22a   :  { %v2035_v20 = vadd.f32 %v10054_v16, %v7865_v23  ;;  %v10405_v31 = vpop.f32.mrb[168].mxu1  ;;  %v2026_v1 = vpop.f32.mrb[169].mxu0  ;;  %v8950_v23 = vld [vmem:[%s12673_s0 + $0x58] sm:$0xff]  }
 0x22b   :  { %12692 = vst [vmem:[#allocation15_spill] sm:$0xff] %v10405_v31  ;;  %v2027_v58 = vadd.f32 %v10054_v16, %v2026_v1  ;;  %v10408_v3 = vpop.f32.mrb[169].mxu1  ;;  %v7866_v7 = vpop.f32.mrb[170].mxu0 }
 0x22c   :  { %12693 = vst [vmem:[#allocation16_spill] sm:$0xff] %v10408_v3  ;;  %v2038_v57 = vadd.f32 %v10054_v16, %v7866_v7  ;;  %v10411_v5 = vpop.f32.mrb[170].mxu1  ;;  %v2029_v13 = vpop.f32.mrb[171].mxu0  ;;  %v2547_v30 = vmax.f32 %v2035_v20, 0.0  ;;  %v8951_v7 = vld [vmem:[%s12673_s0 + $0x60] sm:$0xff]  }
 0x22d   :  { %12694 = vst [vmem:[#allocation17_spill] sm:$0xff] %v10411_v5  ;;  %v2030_v32 = vadd.f32 %v10054_v16, %v2029_v13  ;;  %v10414_v9 = vpop.f32.mrb[171].mxu1  ;;  %v2545_v1 = vmax.f32 %v2027_v58, 0.0 }
 0x22e   :  { %12695 = vst [vmem:[#allocation18_spill] sm:$0xff] %v10414_v9  ;;  %v2548_v11 = vmax.f32 %v2038_v57, 0.0  ;;  %7974 = vmatmul.mubr.msk.bf16.gmra.mrb[20].mxu0 %vm931_vm1, %v8950_v23 }
 0x22f   :  { %v2546_v3 = vmax.f32 %v2030_v32, 0.0  ;;  %8374 = vmatmul.mubr.bf16.gmra.mrb[20].mxu1 %v10295_v14  ;;  %7977 = vmatprep.mubr.msk.bf16.mxu0 %vm931_vm1, %v8951_v7 }
 0x230   :  { %v10425_v13 = vpack.c.bf16 %v2548_v11, %v2547_v30  ;;  %8377 = vmatprep.mubr.bf16.mxu1 %v10324_v18 }
 0x231   :  { %v10428_v20 = vpack.c.bf16 %v2546_v3, %v2545_v1  ;;  %v7869_v57 = vpop.f32.mrb[172].mxu0 }
 0x232   :  { %v2051_v9 = vadd.f32 %v10054_v16, %v7869_v57  ;;  %v10431_v23 = vpop.f32.mrb[172].mxu1  ;;  %v2042_v58 = vpop.f32.mrb[173].mxu0  ;;  %v8952_v57 = vld [vmem:[%s12673_s0 + $0x68] sm:$0xff]  }
 0x233   :  { %12696 = vst [vmem:[#allocation19_spill] sm:$0xff] %v10431_v23  ;;  %v2043_v14 = vadd.f32 %v10054_v16, %v2042_v58  ;;  %v10434_v32 = vpop.f32.mrb[173].mxu1  ;;  %v7870_v5 = vpop.f32.mrb[174].mxu0 }
 0x234   :  { %12697 = vst [vmem:[#allocation20_spill] sm:$0xff] %v10434_v32  ;;  %v2054_v31 = vadd.f32 %v10054_v16, %v7870_v5  ;;  %v10437_v7 = vpop.f32.mrb[174].mxu1  ;;  %v2045_v30 = vpop.f32.mrb[175].mxu0  ;;  %v2551_v11 = vmax.f32 %v2051_v9, 0.0  ;;  %v8953_v5 = vld [vmem:[%s12673_s0 + $0x70] sm:$0xff]  }
 0x235   :  { %12698 = vst [vmem:[#allocation21_spill] sm:$0xff] %v10437_v7  ;;  %v2046_v18 = vadd.f32 %v10054_v16, %v2045_v30  ;;  %v10440_v3 = vpop.f32.mrb[175].mxu1  ;;  %v2549_v58 = vmax.f32 %v2043_v14, 0.0 }
 0x236   :  { %12699 = vst [vmem:[#allocation22_spill] sm:$0xff] %v10440_v3  ;;  %v2552_v1 = vmax.f32 %v2054_v31, 0.0  ;;  %7978 = vmatmul.mubr.msk.bf16.gmra.mrb[24].mxu0 %vm931_vm1, %v8952_v57 }
 0x237   :  { %v2550_v32 = vmax.f32 %v2046_v18, 0.0  ;;  %8378 = vmatmul.mubr.bf16.gmra.mrb[24].mxu1 %v10321_v51  ;;  %7981 = vmatprep.mubr.msk.bf16.mxu0 %vm931_vm1, %v8953_v5 }
 0x238   :  { %v10451_v30 = vpack.c.bf16 %v2552_v1, %v2551_v11  ;;  %8381 = vmatprep.mubr.bf16.mxu1 %v10350_v36 }
 0x239   :  { %v10454_v31 = vpack.c.bf16 %v2550_v32, %v2549_v58  ;;  %v7873_v9 = vpop.f32.mrb[176].mxu0 }
 0x23a   :  { %v2067_v3 = vadd.f32 %v10054_v16, %v7873_v9  ;;  %v10457_v57 = vpop.f32.mrb[176].mxu1  ;;  %v2058_v14 = vpop.f32.mrb[177].mxu0  ;;  %v8954_v9 = vld [vmem:[%s12673_s0 + $0x78] sm:$0xff]  }
 0x23b   :  { %12700 = vst [vmem:[#allocation23_spill] sm:$0xff] %v10457_v57  ;;  %v2059_v51 = vadd.f32 %v10054_v16, %v2058_v14  ;;  %v10460_v18 = vpop.f32.mrb[177].mxu1  ;;  %v7874_v7 = vpop.f32.mrb[178].mxu0 }
 0x23c   :  { %12701 = vst [vmem:[#allocation24_spill] sm:$0xff] %v10460_v18  ;;  %v2070_v23 = vadd.f32 %v10054_v16, %v7874_v7  ;;  %v10463_v5 = vpop.f32.mrb[178].mxu1  ;;  %v2061_v11 = vpop.f32.mrb[179].mxu0  ;;  %v2555_v1 = vmax.f32 %v2067_v3, 0.0  ;;  %v8955_v7 = vld [vmem:[%s12673_s0 + $0x80] sm:$0xff]  }
 0x23d   :  { %12702 = vst [vmem:[#allocation25_spill] sm:$0xff] %v10463_v5  ;;  %v2062_v36 = vadd.f32 %v10054_v16, %v2061_v11  ;;  %v10466_v32 = vpop.f32.mrb[179].mxu1  ;;  %v2553_v14 = vmax.f32 %v2059_v51, 0.0 }
 0x23e   :  { %12703 = vst [vmem:[#allocation26_spill] sm:$0xff] %v10466_v32  ;;  %v2556_v58 = vmax.f32 %v2070_v23, 0.0  ;;  %7982 = vmatmul.mubr.msk.bf16.gmra.mrb[28].mxu0 %vm931_vm1, %v8954_v9 }
 0x23f   :  { %v2554_v18 = vmax.f32 %v2062_v36, 0.0  ;;  %8382 = vmatmul.mubr.bf16.gmra.mrb[28].mxu1 %v10347_v21  ;;  %7985 = vmatprep.mubr.msk.bf16.mxu0 %vm931_vm1, %v8955_v7 }
 0x240   :  { %v10477_v11 = vpack.c.bf16 %v2556_v58, %v2555_v1  ;;  %8385 = vmatprep.mubr.bf16.mxu1 %v10376_v53 }
 0x241   :  { %v10480_v23 = vpack.c.bf16 %v2554_v18, %v2553_v14  ;;  %v7877_v3 = vpop.f32.mrb[180].mxu0 }
 0x242   :  { %v2083_v32 = vadd.f32 %v10054_v16, %v7877_v3  ;;  %v10483_v9 = vpop.f32.mrb[180].mxu1  ;;  %v2074_v51 = vpop.f32.mrb[181].mxu0  ;;  %v8956_v3 = vld [vmem:[%s12673_s0 + $0x88] sm:$0xff]  }
 0x243   :  { %12704 = vst [vmem:[#allocation27_spill] sm:$0xff] %v10483_v9  ;;  %v2075_v21 = vadd.f32 %v10054_v16, %v2074_v51  ;;  %v10486_v36 = vpop.f32.mrb[181].mxu1  ;;  %v7878_v5 = vpop.f32.mrb[182].mxu0 }
 0x244   :  { %12705 = vst [vmem:[#allocation28_spill] sm:$0xff] %v10486_v36  ;;  %v2086_v57 = vadd.f32 %v10054_v16, %v7878_v5  ;;  %v10489_v7 = vpop.f32.mrb[182].mxu1  ;;  %v2077_v1 = vpop.f32.mrb[183].mxu0  ;;  %v2559_v58 = vmax.f32 %v2083_v32, 0.0  ;;  %v8957_v5 = vld [vmem:[%s12673_s0 + $0x90] sm:$0xff]  }
 0x245   :  { %12706 = vst [vmem:[#allocation29_spill] sm:$0xff] %v10489_v7  ;;  %v2078_v53 = vadd.f32 %v10054_v16, %v2077_v1  ;;  %v10492_v18 = vpop.f32.mrb[183].mxu1  ;;  %v2557_v51 = vmax.f32 %v2075_v21, 0.0 }
 0x246   :  { %12707 = vst [vmem:[#allocation30_spill] sm:$0xff] %v10492_v18  ;;  %v2560_v14 = vmax.f32 %v2086_v57, 0.0  ;;  %7986 = vmatmul.mubr.msk.bf16.gmra.mrb[32].mxu0 %vm931_vm1, %v8956_v3 }
 0x247   :  { %v2558_v36 = vmax.f32 %v2078_v53, 0.0  ;;  %8386 = vmatmul.mubr.bf16.gmra.mrb[32].mxu1 %v10373_v40  ;;  %7989 = vmatprep.mubr.msk.bf16.mxu0 %vm931_vm1, %v8957_v5 }
 0x248   :  { %v10503_v1 = vpack.c.bf16 %v2560_v14, %v2559_v58  ;;  %8389 = vmatprep.mubr.bf16.mxu1 %v10402_v62 }
 0x249   :  { %v10506_v57 = vpack.c.bf16 %v2558_v36, %v2557_v51  ;;  %v7881_v32 = vpop.f32.mrb[184].mxu0 }
 0x24a   :  { %v2099_v18 = vadd.f32 %v10054_v16, %v7881_v32  ;;  %v10509_v3 = vpop.f32.mrb[184].mxu1  ;;  %v2090_v21 = vpop.f32.mrb[185].mxu0  ;;  %v8958_v32 = vld [vmem:[%s12673_s0 + $0x98] sm:$0xff]  }
 0x24b   :  { %12708 = vst [vmem:[#allocation31_spill] sm:$0xff] %v10509_v3  ;;  %v2091_v40 = vadd.f32 %v10054_v16, %v2090_v21  ;;  %v10512_v53 = vpop.f32.mrb[185].mxu1  ;;  %v7882_v7 = vpop.f32.mrb[186].mxu0 }
 0x24c   :  { %12709 = vst [vmem:[#allocation32_spill] sm:$0xff] %v10512_v53  ;;  %v2102_v9 = vadd.f32 %v10054_v16, %v7882_v7  ;;  %v10515_v5 = vpop.f32.mrb[186].mxu1  ;;  %v2093_v58 = vpop.f32.mrb[187].mxu0  ;;  %v2563_v14 = vmax.f32 %v2099_v18, 0.0  ;;  %v8959_v7 = vld [vmem:[%s12673_s0 + $0xa0] sm:$0xff]  }
 0x24d   :  { %12710 = vst [vmem:[#allocation33_spill] sm:$0xff] %v10515_v5  ;;  %v2094_v62 = vadd.f32 %v10054_v16, %v2093_v58  ;;  %v10518_v36 = vpop.f32.mrb[187].mxu1  ;;  %v2561_v21 = vmax.f32 %v2091_v40, 0.0 }
 0x24e   :  { %12711 = vst [vmem:[#allocation34_spill] sm:$0xff] %v10518_v36  ;;  %v2564_v51 = vmax.f32 %v2102_v9, 0.0  ;;  %7990 = vmatmul.mubr.msk.bf16.gmra.mrb[36].mxu0 %vm931_vm1, %v8958_v32 }
 0x24f   :  { %v2562_v53 = vmax.f32 %v2094_v62, 0.0  ;;  %8390 = vmatmul.mubr.bf16.gmra.mrb[36].mxu1 %v10399_v55  ;;  %7993 = vmatprep.mubr.msk.bf16.mxu0 %vm931_vm1, %v8959_v7 }
 0x250   :  { %v10529_v58 = vpack.c.bf16 %v2564_v51, %v2563_v14  ;;  %8393 = vmatprep.mubr.bf16.mxu1 %v10428_v20 }
 0x251   :  { %v10532_v9 = vpack.c.bf16 %v2562_v53, %v2561_v21  ;;  %v7885_v18 = vpop.f32.mrb[188].mxu0 }
 0x252   :  { %v2115_v36 = vadd.f32 %v10054_v16, %v7885_v18  ;;  %v10535_v32 = vpop.f32.mrb[188].mxu1  ;;  %v2106_v40 = vpop.f32.mrb[189].mxu0  ;;  %v8960_v18 = vld [vmem:[%s12673_s0 + $0xa8] sm:$0xff]  }
 0x253   :  { %12712 = vst [vmem:[#allocation35_spill] sm:$0xff] %v10535_v32  ;;  %v2107_v55 = vadd.f32 %v10054_v16, %v2106_v40  ;;  %v10538_v62 = vpop.f32.mrb[189].mxu1  ;;  %v7886_v5 = vpop.f32.mrb[190].mxu0 }
 0x254   :  { %12713 = vst [vmem:[#allocation36_spill] sm:$0xff] %v10538_v62  ;;  %v2118_v3 = vadd.f32 %v10054_v16, %v7886_v5  ;;  %v10541_v7 = vpop.f32.mrb[190].mxu1  ;;  %v2109_v14 = vpop.f32.mrb[191].mxu0  ;;  %v2567_v51 = vmax.f32 %v2115_v36, 0.0  ;;  %v8961_v5 = vld [vmem:[%s12673_s0 + $0xb0] sm:$0xff]  }
 0x255   :  { %12714 = vst [vmem:[#allocation37_spill] sm:$0xff] %v10541_v7  ;;  %v2110_v20 = vadd.f32 %v10054_v16, %v2109_v14  ;;  %v10544_v53 = vpop.f32.mrb[191].mxu1  ;;  %v2565_v40 = vmax.f32 %v2107_v55, 0.0 }
 0x256   :  { %12715 = vst [vmem:[#allocation38_spill] sm:$0xff] %v10544_v53  ;;  %v2568_v21 = vmax.f32 %v2118_v3, 0.0  ;;  %7994 = vmatmul.mubr.msk.bf16.gmra.mrb[40].mxu0 %vm931_vm1, %v8960_v18 }
 0x257   :  { %v2566_v62 = vmax.f32 %v2110_v20, 0.0  ;;  %8394 = vmatmul.mubr.bf16.gmra.mrb[40].mxu1 %v10425_v13  ;;  %7997 = vmatprep.mubr.msk.bf16.mxu0 %vm931_vm1, %v8961_v5 }
 0x258   :  { %v10555_v14 = vpack.c.bf16 %v2568_v21, %v2567_v51  ;;  %8397 = vmatprep.mubr.bf16.mxu1 %v10454_v31 }
 0x259   :  { %v10558_v3 = vpack.c.bf16 %v2566_v62, %v2565_v40  ;;  %v7889_v36 = vpop.f32.mrb[192].mxu0 }
 0x25a   :  { %v2131_v53 = vadd.f32 %v10054_v16, %v7889_v36  ;;  %v10561_v18 = vpop.f32.mrb[192].mxu1  ;;  %v2122_v55 = vpop.f32.mrb[193].mxu0  ;;  %v8962_v36 = vld [vmem:[%s12673_s0 + $0xb8] sm:$0xff]  }
 0x25b   :  { %12716 = vst [vmem:[#allocation39_spill] sm:$0xff] %v10561_v18  ;;  %v2123_v13 = vadd.f32 %v10054_v16, %v2122_v55  ;;  %v10564_v20 = vpop.f32.mrb[193].mxu1  ;;  %v7890_v7 = vpop.f32.mrb[194].mxu0 }
 0x25c   :  { %12717 = vst [vmem:[#allocation40_spill] sm:$0xff] %v10564_v20  ;;  %v2134_v32 = vadd.f32 %v10054_v16, %v7890_v7  ;;  %v10567_v5 = vpop.f32.mrb[194].mxu1  ;;  %v2125_v51 = vpop.f32.mrb[195].mxu0  ;;  %v2571_v21 = vmax.f32 %v2131_v53, 0.0  ;;  %v8963_v7 = vld [vmem:[%s12673_s0 + $0xc0] sm:$0xff]  }
 0x25d   :  { %12718 = vst [vmem:[#allocation41_spill] sm:$0xff] %v10567_v5  ;;  %v2126_v31 = vadd.f32 %v10054_v16, %v2125_v51  ;;  %v10570_v62 = vpop.f32.mrb[195].mxu1  ;;  %v2569_v55 = vmax.f32 %v2123_v13, 0.0 }
 0x25e   :  { %12719 = vst [vmem:[#allocation42_spill] sm:$0xff] %v10570_v62  ;;  %v2572_v40 = vmax.f32 %v2134_v32, 0.0  ;;  %7998 = vmatmul.mubr.msk.bf16.gmra.mrb[44].mxu0 %vm931_vm1, %v8962_v36 }
 0x25f   :  { %v2570_v20 = vmax.f32 %v2126_v31, 0.0  ;;  %8398 = vmatmul.mubr.bf16.gmra.mrb[44].mxu1 %v10451_v30  ;;  %8001 = vmatprep.mubr.msk.bf16.mxu0 %vm931_vm1, %v8963_v7 }
 0x260   :  { %v10581_v51 = vpack.c.bf16 %v2572_v40, %v2571_v21  ;;  %8401 = vmatprep.mubr.bf16.mxu1 %v10480_v23 }
 0x261   :  { %v10584_v32 = vpack.c.bf16 %v2570_v20, %v2569_v55  ;;  %v7893_v53 = vpop.f32.mrb[196].mxu0 }
 0x262   :  { %v2147_v62 = vadd.f32 %v10054_v16, %v7893_v53  ;;  %v10587_v36 = vpop.f32.mrb[196].mxu1  ;;  %v2138_v13 = vpop.f32.mrb[197].mxu0  ;;  %v8964_v53 = vld [vmem:[%s12673_s0 + $0xc8] sm:$0xff]  }
 0x263   :  { %12720 = vst [vmem:[#allocation43_spill] sm:$0xff] %v10587_v36  ;;  %v2139_v30 = vadd.f32 %v10054_v16, %v2138_v13  ;;  %v10590_v31 = vpop.f32.mrb[197].mxu1  ;;  %v7894_v5 = vpop.f32.mrb[198].mxu0 }
 0x264   :  { %12721 = vst [vmem:[#allocation44_spill] sm:$0xff] %v10590_v31  ;;  %v2150_v18 = vadd.f32 %v10054_v16, %v7894_v5  ;;  %v10593_v7 = vpop.f32.mrb[198].mxu1  ;;  %v2141_v21 = vpop.f32.mrb[199].mxu0  ;;  %v2575_v40 = vmax.f32 %v2147_v62, 0.0  ;;  %v8965_v5 = vld [vmem:[%s12673_s0 + $0xd0] sm:$0xff]  }
 0x265   :  { %12722 = vst [vmem:[#allocation45_spill] sm:$0xff] %v10593_v7  ;;  %v2142_v23 = vadd.f32 %v10054_v16, %v2141_v21  ;;  %v10596_v20 = vpop.f32.mrb[199].mxu1  ;;  %v2573_v13 = vmax.f32 %v2139_v30, 0.0 }
 0x266   :  { %12723 = vst [vmem:[#allocation46_spill] sm:$0xff] %v10596_v20  ;;  %v2576_v55 = vmax.f32 %v2150_v18, 0.0  ;;  %8002 = vmatmul.mubr.msk.bf16.gmra.mrb[48].mxu0 %vm931_vm1, %v8964_v53 }
 0x267   :  { %v2574_v31 = vmax.f32 %v2142_v23, 0.0  ;;  %8402 = vmatmul.mubr.bf16.gmra.mrb[48].mxu1 %v10477_v11  ;;  %8005 = vmatprep.mubr.msk.bf16.mxu0 %vm931_vm1, %v8965_v5 }
 0x268   :  { %v10607_v21 = vpack.c.bf16 %v2576_v55, %v2575_v40  ;;  %8405 = vmatprep.mubr.bf16.mxu1 %v10506_v57 }
 0x269   :  { %v10610_v18 = vpack.c.bf16 %v2574_v31, %v2573_v13  ;;  %v7897_v62 = vpop.f32.mrb[200].mxu0 }
 0x26a   :  { %v2163_v20 = vadd.f32 %v10054_v16, %v7897_v62  ;;  %v10613_v53 = vpop.f32.mrb[200].mxu1  ;;  %v2154_v30 = vpop.f32.mrb[201].mxu0  ;;  %v8966_v62 = vld [vmem:[%s12673_s0 + $0xd8] sm:$0xff]  }
 0x26b   :  { %12724 = vst [vmem:[#allocation47_spill] sm:$0xff] %v10613_v53  ;;  %v2155_v11 = vadd.f32 %v10054_v16, %v2154_v30  ;;  %v10616_v23 = vpop.f32.mrb[201].mxu1  ;;  %v7898_v7 = vpop.f32.mrb[202].mxu0 }
 0x26c   :  { %12725 = vst [vmem:[#allocation48_spill] sm:$0xff] %v10616_v23  ;;  %v2166_v36 = vadd.f32 %v10054_v16, %v7898_v7  ;;  %v10619_v5 = vpop.f32.mrb[202].mxu1  ;;  %v2157_v40 = vpop.f32.mrb[203].mxu0  ;;  %v2579_v55 = vmax.f32 %v2163_v20, 0.0  ;;  %v8967_v7 = vld [vmem:[%s12673_s0 + $0xe0] sm:$0xff]  }
 0x26d   :  { %12726 = vst [vmem:[#allocation49_spill] sm:$0xff] %v10619_v5  ;;  %v2158_v57 = vadd.f32 %v10054_v16, %v2157_v40  ;;  %v10622_v31 = vpop.f32.mrb[203].mxu1  ;;  %v2577_v30 = vmax.f32 %v2155_v11, 0.0 }
 0x26e   :  { %12727 = vst [vmem:[#allocation50_spill] sm:$0xff] %v10622_v31  ;;  %v2580_v13 = vmax.f32 %v2166_v36, 0.0  ;;  %8006 = vmatmul.mubr.msk.bf16.gmra.mrb[52].mxu0 %vm931_vm1, %v8966_v62 }
 0x26f   :  { %v2578_v23 = vmax.f32 %v2158_v57, 0.0  ;;  %8406 = vmatmul.mubr.bf16.gmra.mrb[52].mxu1 %v10503_v1  ;;  %8009 = vmatprep.mubr.msk.bf16.mxu0 %vm931_vm1, %v8967_v7 }
 0x270   :  { %v10633_v40 = vpack.c.bf16 %v2580_v13, %v2579_v55  ;;  %8409 = vmatprep.mubr.bf16.mxu1 %v10532_v9  ;;  %v10650_v9 = vld [vmem:[%s12675_s2] ss:$0 sm:$0xff] }
 0x271   :  { %v10636_v36 = vpack.c.bf16 %v2578_v23, %v2577_v30  ;;  %v7901_v20 = vpop.f32.mrb[204].mxu0 }
 0x272   :  { %v2179_v31 = vadd.f32 %v10054_v16, %v7901_v20  ;;  %v10639_v62 = vpop.f32.mrb[204].mxu1  ;;  %v2170_v11 = vpop.f32.mrb[205].mxu0 }
 0x273   :  { %12728 = vst [vmem:[#allocation51_spill] sm:$0xff] %v10639_v62  ;;  %v2171_v1 = vadd.f32 %v10054_v16, %v2170_v11  ;;  %v10642_v57 = vpop.f32.mrb[205].mxu1  ;;  %v7902_v5 = vpop.f32.mrb[206].mxu0  ;;  %v8969_v11 = vld [vmem:[%s12673_s0 + $0xe8] sm:$0xff]  }
 0x274   :  { %12729 = vst [vmem:[#allocation52_spill] sm:$0xff] %v10642_v57  ;;  %v2182_v53 = vadd.f32 %v10054_v16, %v7902_v5  ;;  %v10645_v7 = vpop.f32.mrb[206].mxu1  ;;  %v2173_v55 = vpop.f32.mrb[207].mxu0  ;;  %v2583_v30 = vmax.f32 %v2179_v31, 0.0 }
 0x275   :  { %12730 = vst [vmem:[#allocation53_spill] sm:$0xff] %v10645_v7  ;;  %v2174_v23 = vadd.f32 %v10650_v9, %v2173_v55  ;;  %v10653_v13 = vpop.f32.mrb[207].mxu1  ;;  %v2581_v16 = vmax.f32 %v2171_v1, 0.0  ;;  %v8970_v7 = vld [vmem:[%s12673_s0 + $0xf0] sm:$0xff]  }
 0x276   :  { %12731 = vst [vmem:[#allocation54_spill] sm:$0xff] %v10653_v13  ;;  %v2584_v20 = vmax.f32 %v2182_v53, 0.0  ;;  %8010 = vmatmul.mubr.msk.bf16.gmra.mrb[56].mxu0 %vm931_vm1, %v8969_v11 }
 0x277   :  { %v2582_v5 = vmax.f32 %v2174_v23, 0.0  ;;  %8410 = vmatmul.mubr.bf16.gmra.mrb[56].mxu1 %v10529_v58  ;;  %8013 = vmatprep.mubr.msk.bf16.mxu0 %vm931_vm1, %v8970_v7 }
 0x278   :  { %v10664_v55 = vpack.c.bf16 %v2584_v20, %v2583_v30  ;;  %8413 = vmatprep.mubr.bf16.mxu1 %v10558_v3 }
 0x279   :  { %v10667_v53 = vpack.c.bf16 %v2582_v5, %v2581_v16  ;;  %v7905_v31 = vpop.f32.mrb[208].mxu0 }
 0x27a   :  { %v2195_v13 = vadd.f32 %v10650_v9, %v7905_v31  ;;  %v10670_v11 = vpop.f32.mrb[208].mxu1  ;;  %v2186_v1 = vpop.f32.mrb[209].mxu0  ;;  %v8971_v31 = vld [vmem:[%s12673_s0 + $0xf8] sm:$0xff]  }
 0x27b   :  { %12732 = vst [vmem:[#allocation55_spill] sm:$0xff] %v10670_v11  ;;  %v2187_v58 = vadd.f32 %v10650_v9, %v2186_v1  ;;  %v10673_v23 = vpop.f32.mrb[209].mxu1  ;;  %v7906_v57 = vpop.f32.mrb[210].mxu0 }
 0x27c   :  { %12733 = vst [vmem:[#allocation56_spill] sm:$0xff] %v10673_v23  ;;  %v2198_v62 = vadd.f32 %v10650_v9, %v7906_v57  ;;  %v10676_v7 = vpop.f32.mrb[210].mxu1  ;;  %v2189_v30 = vpop.f32.mrb[211].mxu0  ;;  %v2587_v16 = vmax.f32 %v2195_v13, 0.0  ;;  %v8972_v57 = vld [vmem:[%s12673_s0 + $0x100] sm:$0xff]  }
 0x27d   :  { %12734 = vst [vmem:[#allocation57_spill] sm:$0xff] %v10676_v7  ;;  %v2190_v3 = vadd.f32 %v10650_v9, %v2189_v30  ;;  %v10679_v20 = vpop.f32.mrb[211].mxu1  ;;  %v2585_v1 = vmax.f32 %v2187_v58, 0.0 }
 0x27e   :  { %12735 = vst [vmem:[#allocation58_spill] sm:$0xff] %v10679_v20  ;;  %v2588_v5 = vmax.f32 %v2198_v62, 0.0  ;;  %8014 = vmatmul.mubr.msk.bf16.gmra.mrb[60].mxu0 %vm931_vm1, %v8971_v31 }
 0x27f   :  { %v2586_v23 = vmax.f32 %v2190_v3, 0.0  ;;  %8414 = vmatmul.mubr.bf16.gmra.mrb[60].mxu1 %v10555_v14  ;;  %8017 = vmatprep.mubr.msk.bf16.mxu0 %vm931_vm1, %v8972_v57 }
 0x280   :  { %v10690_v30 = vpack.c.bf16 %v2588_v5, %v2587_v16  ;;  %8417 = vmatprep.mubr.bf16.mxu1 %v10584_v32 }
 0x281   :  { %v10693_v62 = vpack.c.bf16 %v2586_v23, %v2585_v1  ;;  %v7909_v13 = vpop.f32.mrb[212].mxu0 }
 0x282   :  { %v2211_v20 = vadd.f32 %v10650_v9, %v7909_v13  ;;  %v10696_v31 = vpop.f32.mrb[212].mxu1  ;;  %v2202_v58 = vpop.f32.mrb[213].mxu0  ;;  %v8973_v13 = vld [vmem:[%s12673_s0 + $0x108] sm:$0xff]  }
 0x283   :  { %12736 = vst [vmem:[#allocation59_spill] sm:$0xff] %v10696_v31  ;;  %v2203_v14 = vadd.f32 %v10650_v9, %v2202_v58  ;;  %v10699_v3 = vpop.f32.mrb[213].mxu1  ;;  %v7910_v7 = vpop.f32.mrb[214].mxu0 }
 0x284   :  { %12737 = vst [vmem:[#allocation60_spill] sm:$0xff] %v10699_v3  ;;  %v2214_v11 = vadd.f32 %v10650_v9, %v7910_v7  ;;  %v10702_v57 = vpop.f32.mrb[214].mxu1  ;;  %v2205_v16 = vpop.f32.mrb[215].mxu0  ;;  %v2591_v5 = vmax.f32 %v2211_v20, 0.0  ;;  %v8974_v7 = vld [vmem:[%s12673_s0 + $0x110] sm:$0xff]  }
 0x285   :  { %12738 = vst [vmem:[#allocation61_spill] sm:$0xff] %v10702_v57  ;;  %v2206_v32 = vadd.f32 %v10650_v9, %v2205_v16  ;;  %v10705_v23 = vpop.f32.mrb[215].mxu1  ;;  %v2589_v58 = vmax.f32 %v2203_v14, 0.0 }
 0x286   :  { %12739 = vst [vmem:[#allocation62_spill] sm:$0xff] %v10705_v23  ;;  %v2592_v1 = vmax.f32 %v2214_v11, 0.0  ;;  %8018 = vmatmul.mubr.msk.bf16.gmra.mrb[64].mxu0 %vm931_vm1, %v8973_v13 }
 0x287   :  { %v2590_v3 = vmax.f32 %v2206_v32, 0.0  ;;  %8418 = vmatmul.mubr.bf16.gmra.mrb[64].mxu1 %v10581_v51  ;;  %8021 = vmatprep.mubr.msk.bf16.mxu0 %vm931_vm1, %v8974_v7 }
 0x288   :  { %v10716_v16 = vpack.c.bf16 %v2592_v1, %v2591_v5  ;;  %8421 = vmatprep.mubr.bf16.mxu1 %v10610_v18 }
 0x289   :  { %v10719_v11 = vpack.c.bf16 %v2590_v3, %v2589_v58  ;;  %v7913_v20 = vpop.f32.mrb[216].mxu0 }
 0x28a   :  { %v2227_v23 = vadd.f32 %v10650_v9, %v7913_v20  ;;  %v10722_v13 = vpop.f32.mrb[216].mxu1  ;;  %v2218_v14 = vpop.f32.mrb[217].mxu0  ;;  %v8975_v20 = vld [vmem:[%s12673_s0 + $0x118] sm:$0xff]  }
 0x28b   :  { %12740 = vst [vmem:[#allocation63_spill] sm:$0xff] %v10722_v13  ;;  %v2219_v51 = vadd.f32 %v10650_v9, %v2218_v14  ;;  %v10725_v32 = vpop.f32.mrb[217].mxu1  ;;  %v7914_v57 = vpop.f32.mrb[218].mxu0 }
 0x28c   :  { %12741 = vst [vmem:[#allocation64_spill] sm:$0xff] %v10725_v32  ;;  %v2230_v31 = vadd.f32 %v10650_v9, %v7914_v57  ;;  %v10728_v7 = vpop.f32.mrb[218].mxu1  ;;  %v2221_v5 = vpop.f32.mrb[219].mxu0  ;;  %v2595_v1 = vmax.f32 %v2227_v23, 0.0  ;;  %v8976_v57 = vld [vmem:[%s12673_s0 + $0x120] sm:$0xff]  }
 0x28d   :  { %12742 = vst [vmem:[#allocation65_spill] sm:$0xff] %v10728_v7  ;;  %v2222_v18 = vadd.f32 %v10650_v9, %v2221_v5  ;;  %v10731_v3 = vpop.f32.mrb[219].mxu1  ;;  %v2593_v14 = vmax.f32 %v2219_v51, 0.0 }
 0x28e   :  { %12743 = vst [vmem:[#allocation66_spill] sm:$0xff] %v10731_v3  ;;  %v2596_v58 = vmax.f32 %v2230_v31, 0.0  ;;  %8022 = vmatmul.mubr.msk.bf16.gmra.mrb[68].mxu0 %vm931_vm1, %v8975_v20 }
 0x28f   :  { %v2594_v32 = vmax.f32 %v2222_v18, 0.0  ;;  %8422 = vmatmul.mubr.bf16.gmra.mrb[68].mxu1 %v10607_v21  ;;  %8025 = vmatprep.mubr.msk.bf16.mxu0 %vm931_vm1, %v8976_v57 }
 0x290   :  { %v10742_v5 = vpack.c.bf16 %v2596_v58, %v2595_v1  ;;  %8425 = vmatprep.mubr.bf16.mxu1 %v10636_v36 }
 0x291   :  { %v10745_v31 = vpack.c.bf16 %v2594_v32, %v2593_v14  ;;  %v7917_v23 = vpop.f32.mrb[220].mxu0 }
 0x292   :  { %v2243_v3 = vadd.f32 %v10650_v9, %v7917_v23  ;;  %v10748_v20 = vpop.f32.mrb[220].mxu1  ;;  %v2234_v51 = vpop.f32.mrb[221].mxu0  ;;  %v8977_v23 = vld [vmem:[%s12673_s0 + $0x128] sm:$0xff]  }
 0x293   :  { %12744 = vst [vmem:[#allocation67_spill] sm:$0xff] %v10748_v20  ;;  %v2235_v21 = vadd.f32 %v10650_v9, %v2234_v51  ;;  %v10751_v18 = vpop.f32.mrb[221].mxu1  ;;  %v7918_v7 = vpop.f32.mrb[222].mxu0 }
 0x294   :  { %12745 = vst [vmem:[#allocation68_spill] sm:$0xff] %v10751_v18  ;;  %v2246_v13 = vadd.f32 %v10650_v9, %v7918_v7  ;;  %v10754_v57 = vpop.f32.mrb[222].mxu1  ;;  %v2237_v1 = vpop.f32.mrb[223].mxu0  ;;  %v2599_v58 = vmax.f32 %v2243_v3, 0.0  ;;  %v8978_v7 = vld [vmem:[%s12673_s0 + $0x130] sm:$0xff]  }
 0x295   :  { %12746 = vst [vmem:[#allocation69_spill] sm:$0xff] %v10754_v57  ;;  %v2238_v36 = vadd.f32 %v10650_v9, %v2237_v1  ;;  %v10757_v32 = vpop.f32.mrb[223].mxu1  ;;  %v2597_v51 = vmax.f32 %v2235_v21, 0.0 }
 0x296   :  { %12747 = vst [vmem:[#allocation70_spill] sm:$0xff] %v10757_v32  ;;  %v2600_v14 = vmax.f32 %v2246_v13, 0.0  ;;  %8026 = vmatmul.mubr.msk.bf16.gmra.mrb[72].mxu0 %vm931_vm1, %v8977_v23 }
 0x297   :  { %v2598_v18 = vmax.f32 %v2238_v36, 0.0  ;;  %8426 = vmatmul.mubr.bf16.gmra.mrb[72].mxu1 %v10633_v40  ;;  %8029 = vmatprep.mubr.msk.bf16.mxu0 %vm931_vm1, %v8978_v7 }
 0x298   :  { %v10768_v1 = vpack.c.bf16 %v2600_v14, %v2599_v58  ;;  %8429 = vmatprep.mubr.bf16.mxu1 %v10667_v53 }
 0x299   :  { %v10771_v13 = vpack.c.bf16 %v2598_v18, %v2597_v51  ;;  %v7921_v3 = vpop.f32.mrb[224].mxu0 }
 0x29a   :  { %v2259_v32 = vadd.f32 %v10650_v9, %v7921_v3  ;;  %v10774_v23 = vpop.f32.mrb[224].mxu1  ;;  %v2250_v21 = vpop.f32.mrb[225].mxu0  ;;  %v8979_v3 = vld [vmem:[%s12673_s0 + $0x138] sm:$0xff]  }
 0x29b   :  { %12748 = vst [vmem:[#allocation71_spill] sm:$0xff] %v10774_v23  ;;  %v2251_v40 = vadd.f32 %v10650_v9, %v2250_v21  ;;  %v10777_v36 = vpop.f32.mrb[225].mxu1  ;;  %v7922_v57 = vpop.f32.mrb[226].mxu0 }
 0x29c   :  { %12749 = vst [vmem:[#allocation72_spill] sm:$0xff] %v10777_v36  ;;  %v2262_v20 = vadd.f32 %v10650_v9, %v7922_v57  ;;  %v10780_v7 = vpop.f32.mrb[226].mxu1  ;;  %v2253_v58 = vpop.f32.mrb[227].mxu0  ;;  %v2603_v14 = vmax.f32 %v2259_v32, 0.0  ;;  %v8980_v57 = vld [vmem:[%s12673_s0 + $0x140] sm:$0xff]  }
 0x29d   :  { %12750 = vst [vmem:[#allocation73_spill] sm:$0xff] %v10780_v7  ;;  %v2254_v53 = vadd.f32 %v10650_v9, %v2253_v58  ;;  %v10783_v18 = vpop.f32.mrb[227].mxu1  ;;  %v2601_v21 = vmax.f32 %v2251_v40, 0.0 }
 0x29e   :  { %12751 = vst [vmem:[#allocation74_spill] sm:$0xff] %v10783_v18  ;;  %v2604_v51 = vmax.f32 %v2262_v20, 0.0  ;;  %8030 = vmatmul.mubr.msk.bf16.gmra.mrb[76].mxu0 %vm931_vm1, %v8979_v3 }
 0x29f   :  { %v2602_v36 = vmax.f32 %v2254_v53, 0.0  ;;  %8430 = vmatmul.mubr.bf16.gmra.mrb[76].mxu1 %v10664_v55  ;;  %8033 = vmatprep.mubr.msk.bf16.mxu0 %vm931_vm1, %v8980_v57 }
 0x2a0   :  { %v10794_v58 = vpack.c.bf16 %v2604_v51, %v2603_v14  ;;  %8433 = vmatprep.mubr.bf16.mxu1 %v10693_v62 }
 0x2a1   :  { %v10797_v20 = vpack.c.bf16 %v2602_v36, %v2601_v21  ;;  %v7925_v32 = vpop.f32.mrb[228].mxu0 }
 0x2a2   :  { %v2275_v18 = vadd.f32 %v10650_v9, %v7925_v32  ;;  %v10800_v3 = vpop.f32.mrb[228].mxu1  ;;  %v2266_v40 = vpop.f32.mrb[229].mxu0  ;;  %v8981_v32 = vld [vmem:[%s12673_s0 + $0x148] sm:$0xff]  }
 0x2a3   :  { %12752 = vst [vmem:[#allocation75_spill] sm:$0xff] %v10800_v3  ;;  %v2267_v55 = vadd.f32 %v10650_v9, %v2266_v40  ;;  %v10803_v53 = vpop.f32.mrb[229].mxu1  ;;  %v7926_v7 = vpop.f32.mrb[230].mxu0 }
 0x2a4   :  { %12753 = vst [vmem:[#allocation76_spill] sm:$0xff] %v10803_v53  ;;  %v2278_v23 = vadd.f32 %v10650_v9, %v7926_v7  ;;  %v10806_v57 = vpop.f32.mrb[230].mxu1  ;;  %v2269_v14 = vpop.f32.mrb[231].mxu0  ;;  %v2607_v51 = vmax.f32 %v2275_v18, 0.0  ;;  %v8982_v7 = vld [vmem:[%s12673_s0 + $0x150] sm:$0xff]  }
 0x2a5   :  { %12754 = vst [vmem:[#allocation77_spill] sm:$0xff] %v10806_v57  ;;  %v2270_v62 = vadd.f32 %v10650_v9, %v2269_v14  ;;  %v10809_v36 = vpop.f32.mrb[231].mxu1  ;;  %v2605_v40 = vmax.f32 %v2267_v55, 0.0 }
 0x2a6   :  { %12755 = vst [vmem:[#allocation78_spill] sm:$0xff] %v10809_v36  ;;  %v2608_v21 = vmax.f32 %v2278_v23, 0.0  ;;  %8034 = vmatmul.mubr.msk.bf16.gmra.mrb[80].mxu0 %vm931_vm1, %v8981_v32 }
 0x2a7   :  { %v2606_v53 = vmax.f32 %v2270_v62, 0.0  ;;  %8434 = vmatmul.mubr.bf16.gmra.mrb[80].mxu1 %v10690_v30  ;;  %8037 = vmatprep.mubr.msk.bf16.mxu0 %vm931_vm1, %v8982_v7 }
 0x2a8   :  { %v10820_v14 = vpack.c.bf16 %v2608_v21, %v2607_v51  ;;  %8437 = vmatprep.mubr.bf16.mxu1 %v10719_v11 }
 0x2a9   :  { %v10823_v23 = vpack.c.bf16 %v2606_v53, %v2605_v40  ;;  %v7929_v18 = vpop.f32.mrb[232].mxu0 }
 0x2aa   :  { %v2291_v36 = vadd.f32 %v10650_v9, %v7929_v18  ;;  %v10826_v32 = vpop.f32.mrb[232].mxu1  ;;  %v2282_v55 = vpop.f32.mrb[233].mxu0  ;;  %v8983_v18 = vld [vmem:[%s12673_s0 + $0x158] sm:$0xff]  }
 0x2ab   :  { %12756 = vst [vmem:[#allocation79_spill] sm:$0xff] %v10826_v32  ;;  %v2283_v30 = vadd.f32 %v10650_v9, %v2282_v55  ;;  %v10829_v62 = vpop.f32.mrb[233].mxu1  ;;  %v7930_v57 = vpop.f32.mrb[234].mxu0 }
 0x2ac   :  { %12757 = vst [vmem:[#allocation80_spill] sm:$0xff] %v10829_v62  ;;  %v2294_v3 = vadd.f32 %v10650_v9, %v7930_v57  ;;  %v10832_v7 = vpop.f32.mrb[234].mxu1  ;;  %v2285_v51 = vpop.f32.mrb[235].mxu0  ;;  %v2611_v21 = vmax.f32 %v2291_v36, 0.0  ;;  %v8984_v57 = vld [vmem:[%s12673_s0 + $0x160] sm:$0xff]  }
 0x2ad   :  { %12758 = vst [vmem:[#allocation81_spill] sm:$0xff] %v10832_v7  ;;  %v2286_v11 = vadd.f32 %v10650_v9, %v2285_v51  ;;  %v10835_v53 = vpop.f32.mrb[235].mxu1  ;;  %v2609_v55 = vmax.f32 %v2283_v30, 0.0 }
 0x2ae   :  { %12759 = vst [vmem:[#allocation82_spill] sm:$0xff] %v10835_v53  ;;  %v2612_v40 = vmax.f32 %v2294_v3, 0.0  ;;  %8038 = vmatmul.mubr.msk.bf16.gmra.mrb[84].mxu0 %vm931_vm1, %v8983_v18 }
 0x2af   :  { %v2610_v62 = vmax.f32 %v2286_v11, 0.0  ;;  %8438 = vmatmul.mubr.bf16.gmra.mrb[84].mxu1 %v10716_v16  ;;  %8041 = vmatprep.mubr.msk.bf16.mxu0 %vm931_vm1, %v8984_v57 }
 0x2b0   :  { %v10846_v51 = vpack.c.bf16 %v2612_v40, %v2611_v21  ;;  %8441 = vmatprep.mubr.bf16.mxu1 %v10745_v31 }
 0x2b1   :  { %v10849_v3 = vpack.c.bf16 %v2610_v62, %v2609_v55  ;;  %v7933_v36 = vpop.f32.mrb[236].mxu0 }
 0x2b2   :  { %v2307_v53 = vadd.f32 %v10650_v9, %v7933_v36  ;;  %v10852_v18 = vpop.f32.mrb[236].mxu1  ;;  %v2298_v30 = vpop.f32.mrb[237].mxu0  ;;  %v8985_v36 = vld [vmem:[%s12673_s0 + $0x168] sm:$0xff]  }
 0x2b3   :  { %12760 = vst [vmem:[#allocation83_spill] sm:$0xff] %v10852_v18  ;;  %v2299_v16 = vadd.f32 %v10650_v9, %v2298_v30  ;;  %v10855_v11 = vpop.f32.mrb[237].mxu1  ;;  %v7934_v7 = vpop.f32.mrb[238].mxu0 }
 0x2b4   :  { %12761 = vst [vmem:[#allocation84_spill] sm:$0xff] %v10855_v11  ;;  %v2310_v32 = vadd.f32 %v10650_v9, %v7934_v7  ;;  %v10858_v57 = vpop.f32.mrb[238].mxu1  ;;  %v2301_v21 = vpop.f32.mrb[239].mxu0  ;;  %v2615_v40 = vmax.f32 %v2307_v53, 0.0  ;;  %v8986_v7 = vld [vmem:[%s12673_s0 + $0x170] sm:$0xff]  }
 0x2b5   :  { %12762 = vst [vmem:[#allocation85_spill] sm:$0xff] %v10858_v57  ;;  %v2302_v31 = vadd.f32 %v10650_v9, %v2301_v21  ;;  %v10861_v62 = vpop.f32.mrb[239].mxu1  ;;  %v2613_v30 = vmax.f32 %v2299_v16, 0.0 }
 0x2b6   :  { %12763 = vst [vmem:[#allocation86_spill] sm:$0xff] %v10861_v62  ;;  %v2616_v55 = vmax.f32 %v2310_v32, 0.0  ;;  %8042 = vmatmul.mubr.msk.bf16.gmra.mrb[88].mxu0 %vm931_vm1, %v8985_v36 }
 0x2b7   :  { %v2614_v11 = vmax.f32 %v2302_v31, 0.0  ;;  %8442 = vmatmul.mubr.bf16.gmra.mrb[88].mxu1 %v10742_v5  ;;  %8045 = vmatprep.mubr.msk.bf16.mxu0 %vm931_vm1, %v8986_v7 }
 0x2b8   :  { %v10872_v21 = vpack.c.bf16 %v2616_v55, %v2615_v40  ;;  %8445 = vmatprep.mubr.bf16.mxu1 %v10771_v13 }
 0x2b9   :  { %v10875_v32 = vpack.c.bf16 %v2614_v11, %v2613_v30  ;;  %v7937_v53 = vpop.f32.mrb[240].mxu0 }
 0x2ba   :  { %v2323_v62 = vadd.f32 %v10650_v9, %v7937_v53  ;;  %v10878_v36 = vpop.f32.mrb[240].mxu1  ;;  %v2314_v16 = vpop.f32.mrb[241].mxu0  ;;  %v8987_v53 = vld [vmem:[%s12673_s0 + $0x178] sm:$0xff]  }
 0x2bb   :  { %12764 = vst [vmem:[#allocation87_spill] sm:$0xff] %v10878_v36  ;;  %v2315_v5 = vadd.f32 %v10650_v9, %v2314_v16  ;;  %v10881_v31 = vpop.f32.mrb[241].mxu1  ;;  %v7938_v57 = vpop.f32.mrb[242].mxu0 }
 0x2bc   :  { %12765 = vst [vmem:[#allocation88_spill] sm:$0xff] %v10881_v31  ;;  %v2326_v18 = vadd.f32 %v10650_v9, %v7938_v57  ;;  %v10884_v7 = vpop.f32.mrb[242].mxu1  ;;  %v2317_v40 = vpop.f32.mrb[243].mxu0  ;;  %v2619_v55 = vmax.f32 %v2323_v62, 0.0  ;;  %v8988_v57 = vld [vmem:[%s12673_s0 + $0x180] sm:$0xff]  }
 0x2bd   :  { %12766 = vst [vmem:[#allocation89_spill] sm:$0xff] %v10884_v7  ;;  %v2318_v13 = vadd.f32 %v10650_v9, %v2317_v40  ;;  %v10887_v11 = vpop.f32.mrb[243].mxu1  ;;  %v2617_v16 = vmax.f32 %v2315_v5, 0.0 }
 0x2be   :  { %12767 = vst [vmem:[#allocation90_spill] sm:$0xff] %v10887_v11  ;;  %v2620_v30 = vmax.f32 %v2326_v18, 0.0  ;;  %8046 = vmatmul.mubr.msk.bf16.gmra.mrb[92].mxu0 %vm931_vm1, %v8987_v53 }
 0x2bf   :  { %v2618_v31 = vmax.f32 %v2318_v13, 0.0  ;;  %8446 = vmatmul.mubr.bf16.gmra.mrb[92].mxu1 %v10768_v1  ;;  %8049 = vmatprep.mubr.msk.bf16.mxu0 %vm931_vm1, %v8988_v57 }
 0x2c0   :  { %v10898_v40 = vpack.c.bf16 %v2620_v30, %v2619_v55  ;;  %8449 = vmatprep.mubr.bf16.mxu1 %v10797_v20 }
 0x2c1   :  { %v10901_v18 = vpack.c.bf16 %v2618_v31, %v2617_v16  ;;  %v7941_v62 = vpop.f32.mrb[244].mxu0 }
 0x2c2   :  { %v2339_v11 = vadd.f32 %v10650_v9, %v7941_v62  ;;  %v10904_v53 = vpop.f32.mrb[244].mxu1  ;;  %v2330_v5 = vpop.f32.mrb[245].mxu0  ;;  %v8989_v62 = vld [vmem:[%s12673_s0 + $0x188] sm:$0xff]  }
 0x2c3   :  { %12768 = vst [vmem:[#allocation91_spill] sm:$0xff] %v10904_v53  ;;  %v2331_v1 = vadd.f32 %v10650_v9, %v2330_v5  ;;  %v10907_v13 = vpop.f32.mrb[245].mxu1  ;;  %v7942_v7 = vpop.f32.mrb[246].mxu0 }
 0x2c4   :  { %12769 = vst [vmem:[#allocation92_spill] sm:$0xff] %v10907_v13  ;;  %v2342_v36 = vadd.f32 %v10650_v9, %v7942_v7  ;;  %v10910_v57 = vpop.f32.mrb[246].mxu1  ;;  %v2333_v55 = vpop.f32.mrb[247].mxu0  ;;  %v2623_v30 = vmax.f32 %v2339_v11, 0.0  ;;  %v8990_v7 = vld [vmem:[%s12673_s0 + $0x190] sm:$0xff]  }
 0x2c5   :  { %12770 = vst [vmem:[#allocation93_spill] sm:$0xff] %v10910_v57  ;;  %v2334_v20 = vadd.f32 %v10650_v9, %v2333_v55  ;;  %v10913_v31 = vpop.f32.mrb[247].mxu1  ;;  %v2621_v5 = vmax.f32 %v2331_v1, 0.0 }
 0x2c6   :  { %12771 = vst [vmem:[#allocation94_spill] sm:$0xff] %v10913_v31  ;;  %v2624_v16 = vmax.f32 %v2342_v36, 0.0  ;;  %8050 = vmatmul.mubr.msk.bf16.gmra.mrb[96].mxu0 %vm931_vm1, %v8989_v62 }
 0x2c7   :  { %v2622_v13 = vmax.f32 %v2334_v20, 0.0  ;;  %8450 = vmatmul.mubr.bf16.gmra.mrb[96].mxu1 %v10794_v58  ;;  %8053 = vmatprep.mubr.msk.bf16.mxu0 %vm931_vm1, %v8990_v7 }
 0x2c8   :  { %v10924_v55 = vpack.c.bf16 %v2624_v16, %v2623_v30  ;;  %8453 = vmatprep.mubr.bf16.mxu1 %v10823_v23 }
 0x2c9   :  { %v10927_v36 = vpack.c.bf16 %v2622_v13, %v2621_v5  ;;  %v7945_v11 = vpop.f32.mrb[248].mxu0 }
 0x2ca   :  { %v2355_v31 = vadd.f32 %v10650_v9, %v7945_v11  ;;  %v10930_v62 = vpop.f32.mrb[248].mxu1  ;;  %v2346_v1 = vpop.f32.mrb[249].mxu0  ;;  %v8991_v11 = vld [vmem:[%s12673_s0 + $0x198] sm:$0xff]  }
 0x2cb   :  { %12772 = vst [vmem:[#allocation95_spill] sm:$0xff] %v10930_v62  ;;  %v2347_v58 = vadd.f32 %v10650_v9, %v2346_v1  ;;  %v10933_v20 = vpop.f32.mrb[249].mxu1  ;;  %v7946_v57 = vpop.f32.mrb[250].mxu0 }
 0x2cc   :  { %12773 = vst [vmem:[#allocation96_spill] sm:$0xff] %v10933_v20  ;;  %v2358_v53 = vadd.f32 %v10650_v9, %v7946_v57  ;;  %v10936_v7 = vpop.f32.mrb[250].mxu1  ;;  %v2349_v30 = vpop.f32.mrb[251].mxu0  ;;  %v2627_v16 = vmax.f32 %v2355_v31, 0.0  ;;  %v8992_v57 = vld [vmem:[%s12673_s0 + $0x1a0] sm:$0xff]  }
 0x2cd   :  { %12774 = vst [vmem:[#allocation97_spill] sm:$0xff] %v10936_v7  ;;  %v2350_v23 = vadd.f32 %v10650_v9, %v2349_v30  ;;  %v10939_v13 = vpop.f32.mrb[251].mxu1  ;;  %v2625_v1 = vmax.f32 %v2347_v58, 0.0 }
 0x2ce   :  { %12775 = vst [vmem:[#allocation98_spill] sm:$0xff] %v10939_v13  ;;  %v2628_v5 = vmax.f32 %v2358_v53, 0.0  ;;  %8054 = vmatmul.mubr.msk.bf16.gmra.mrb[100].mxu0 %vm931_vm1, %v8991_v11 }
 0x2cf   :  { %v2626_v20 = vmax.f32 %v2350_v23, 0.0  ;;  %8454 = vmatmul.mubr.bf16.gmra.mrb[100].mxu1 %v10820_v14  ;;  %8057 = vmatprep.mubr.msk.bf16.mxu0 %vm931_vm1, %v8992_v57 }
 0x2d0   :  { %v10950_v30 = vpack.c.bf16 %v2628_v5, %v2627_v16  ;;  %8457 = vmatprep.mubr.bf16.mxu1 %v10849_v3 }
 0x2d1   :  { %v10953_v53 = vpack.c.bf16 %v2626_v20, %v2625_v1  ;;  %v7949_v31 = vpop.f32.mrb[252].mxu0 }
 0x2d2   :  { %v2371_v13 = vadd.f32 %v10650_v9, %v7949_v31  ;;  %v10956_v11 = vpop.f32.mrb[252].mxu1  ;;  %v2362_v58 = vpop.f32.mrb[253].mxu0  ;;  %v8993_v31 = vld [vmem:[%s12673_s0 + $0x1a8] sm:$0xff]  }
 0x2d3   :  { %12776 = vst [vmem:[#allocation99_spill] sm:$0xff] %v10956_v11  ;;  %v2363_v14 = vadd.f32 %v10650_v9, %v2362_v58  ;;  %v10959_v23 = vpop.f32.mrb[253].mxu1  ;;  %v7950_v7 = vpop.f32.mrb[254].mxu0 }
 0x2d4   :  { %12777 = vst [vmem:[#allocation100_spill] sm:$0xff] %v10959_v23  ;;  %v2374_v62 = vadd.f32 %v10650_v9, %v7950_v7  ;;  %v10962_v57 = vpop.f32.mrb[254].mxu1  ;;  %v2365_v16 = vpop.f32.mrb[255].mxu0  ;;  %v2631_v5 = vmax.f32 %v2371_v13, 0.0  ;;  %v8994_v7 = vld [vmem:[%s12673_s0 + $0x1b0] sm:$0xff]  }
 0x2d5   :  { %12778 = vst [vmem:[#allocation101_spill] sm:$0xff] %v10962_v57  ;;  %v2366_v3 = vadd.f32 %v10650_v9, %v2365_v16  ;;  %v10965_v20 = vpop.f32.mrb[255].mxu1  ;;  %v2629_v58 = vmax.f32 %v2363_v14, 0.0  ;;  %v10990_v16 = vld [vmem:[%s12677_s6] ss:$0 sm:$0xff] }
 0x2d6   :  { %12779 = vst [vmem:[#allocation102_spill] sm:$0xff] %v10965_v20  ;;  %v2632_v1 = vmax.f32 %v2374_v62, 0.0  ;;  %8058 = vmatmul.mubr.msk.bf16.gmra.mrb[104].mxu0 %vm931_vm1, %v8993_v31  ;;  %v10982_v62 = vld [vmem:[%s12676_s4] ss:$0 sm:$0xff] }
 0x2d7   :  { %v2630_v23 = vmax.f32 %v2366_v3, 0.0  ;;  %8458 = vmatmul.mubr.bf16.gmra.mrb[104].mxu1 %v10846_v51  ;;  %8061 = vmatprep.mubr.msk.bf16.mxu0 %vm931_vm1, %v8994_v7 }
 0x2d8   :  { %v10976_v9 = vpack.c.bf16 %v2632_v1, %v2631_v5  ;;  %8461 = vmatprep.mubr.bf16.mxu1 %v10875_v32 }
 0x2d9   :  { %v10984_v13 = vpack.c.bf16 %v2630_v23, %v2629_v58  ;;  %v7955_v14 = vpop.f32.mrb[0].mxu0 }
 0x2da   :  { %v3929_v51 = vadd.f32 %v10145_v35, %v7955_v14  ;;  %v8355_v3 = vpop.f32.mrb[0].mxu1  ;;  %v2815_v5 = vpop.f32.mrb[1].mxu0 }
 0x2db   :  { %v5080_v1 = vadd.f32 %v8355_v3, %v10982_v62  ;;  %v3921_v32 = vadd.f32 %v10148_v41, %v2815_v5  ;;  %v4432_v31 = vpop.f32.mrb[1].mxu1  ;;  %v7956_v7 = vpop.f32.mrb[2].mxu0 }
 0x2dc   :  { %v4952_v20 = vadd.f32 %v10982_v62, %v3929_v51  ;;  %v5078_v23 = vadd.f32 %v10982_v62, %v4432_v31  ;;  %v3932_v58 = vadd.f32 %v10151_v60, %v7956_v7  ;;  %v8356_v35 = vpop.f32.mrb[2].mxu1  ;;  %v2818_v14 = vpop.f32.mrb[3].mxu0  ;;  %v8995_v60 = vld [vmem:[%s12673_s0 + $0x1b8] sm:$0xff]  }
 0x2dd   :  { %v5343_v57 = vadd.f32 %v10990_v16, %v5080_v1  ;;  %v4950_v11 = vadd.f32 %v10982_v62, %v3921_v32  ;;  %v5081_v2 = vadd.f32 %v8356_v35, %v10982_v62  ;;  %v3924_v3 = vadd.f32 %v10154_v48, %v2818_v14  ;;  %v4435_v37 = vpop.f32.mrb[3].mxu1 }
 0x2de   :  { %v5215_v41 = vadd.f32 %v10990_v16, %v4952_v20  ;;  %v5341_v5 = vadd.f32 %v10990_v16, %v5078_v23  ;;  %v4953_v51 = vadd.f32 %v10982_v62, %v3932_v58  ;;  %v5079_v31 = vadd.f32 %v10982_v62, %v4435_v37  ;;  %8062 = vmatmul.mubr.msk.bf16.gmra.mrb[108].mxu0 %vm931_vm1, %v8995_v60  ;;  %v8996_v20 = vld [vmem:[%s12673_s0 + $0x1c0] sm:$0xff]  }
 0x2df   :  { %v5213_v1 = vadd.f32 %v10990_v16, %v4950_v11  ;;  %v5344_v32 = vadd.f32 %v10990_v16, %v5081_v2  ;;  %v4951_v48 = vadd.f32 %v10982_v62, %v3924_v3  ;;  %8462 = vmatmul.mubr.bf16.gmra.mrb[108].mxu1 %v10872_v21  ;;  %8065 = vmatprep.mubr.msk.bf16.mxu0 %vm931_vm1, %v8996_v20  ;;  %v5599_v37 = vmax.f32 %v5343_v57, 0.0 }
 0x2e0   :  { %v5216_v7 = vadd.f32 %v10990_v16, %v4953_v51  ;;  %v5342_v23 = vadd.f32 %v10990_v16, %v5079_v31  ;;  %8465 = vmatprep.mubr.bf16.mxu1 %v10901_v18  ;;  %v5471_v11 = vmax.f32 %v5215_v41, 0.0  ;;  %v5597_v58 = vmax.f32 %v5341_v5, 0.0 }
 0x2e1   :  { %v5600_v2 = vmax.f32 %v5344_v32, 0.0  ;;  %v5214_v35 = vadd.f32 %v10990_v16, %v4951_v48  ;;  %v7959_v14 = vpop.f32.mrb[4].mxu0  ;;  %v5469_v21 = vmax.f32 %v5213_v1, 0.0 }
 0x2e2   :  { %v5472_v3 = vmax.f32 %v5216_v7, 0.0  ;;  %v5598_v60 = vmax.f32 %v5342_v23, 0.0  ;;  %v3945_v26 = vadd.f32 %v10171_v0, %v7959_v14  ;;  %v8359_v10 = vpop.f32.mrb[4].mxu1  ;;  %v2831_v20 = vpop.f32.mrb[5].mxu0 }
 0x2e3   :  { %v6180_v57 = vmax.f32 %v5599_v37, %v5600_v2  ;;  %v5470_v25 = vmax.f32 %v5214_v35, 0.0  ;;  %v5084_v51 = vadd.f32 %v8359_v10, %v10982_v62  ;;  %v3937_v31 = vadd.f32 %v10174_v22, %v2831_v20  ;;  %v4448_v18 = vpop.f32.mrb[5].mxu1  ;;  %v7960_v41 = vpop.f32.mrb[6].mxu0 }
 0x2e4   :  { %v5732_v5 = vmax.f32 %v5471_v11, %v5472_v3  ;;  %v6173_v32 = vmax.f32 %v5597_v58, %v5598_v60  ;;  %v4956_v48 = vadd.f32 %v10982_v62, %v3945_v26  ;;  %v5082_v1 = vadd.f32 %v10982_v62, %v4448_v18  ;;  %v8360_v7 = vpop.f32.mrb[6].mxu1  ;;  %v2834_v23 = vpop.f32.mrb[7].mxu0  ;;  %v8997_v26 = vld [vmem:[%s12673_s0 + $0x1c8] sm:$0xff]   ;;  %v8998_v60 = vld [vmem:[%s12673_s0 + $0x1d0] sm:$0xff]  }
 0x2e5   :  { %v6181_v47 = vrot.slane %v6180_v57, 4  ;;  %v5725_v0 = vmax.f32 %v5469_v21, %v5470_v25  ;;  %v11027_v14 = vadd.f32 %v10990_v16, %v5084_v51  ;;  %v4954_v37 = vadd.f32 %v10982_v62, %v3937_v31  ;;  %v4451_v10 = vpop.f32.mrb[7].mxu1 }
 0x2e6   :  { %v5733_v2 = vrot.slane %v5732_v5, 4  ;;  %v6174_v22 = vrot.slane %v6173_v32, 4  ;;  %v11031_v35 = vadd.f32 %v10990_v16, %v4956_v48  ;;  %v11034_v11 = vadd.f32 %v10990_v16, %v5082_v1  ;;  %8066 = vmatmul.mubr.msk.bf16.gmra.mrb[112].mxu0 %vm931_vm1, %v8997_v26 }
 0x2e7   :  { %v6182_v25 = vmax.f32 %v6180_v57, %v6181_v47  ;;  %v5726_v58 = vrot.slane %v5725_v0, 4  ;;  %v5603_v21 = vmax.f32 %v11027_v14, 0.0  ;;  %v11042_v3 = vadd.f32 %v10990_v16, %v4954_v37  ;;  %8466 = vmatmul.mubr.bf16.gmra.mrb[112].mxu1 %v10898_v40  ;;  %8069 = vmatprep.mubr.msk.bf16.mxu0 %vm931_vm1, %v8998_v60 }
 0x2e8   :  { %v5734_v20 = vmax.f32 %v5732_v5, %v5733_v2  ;;  %v6175_v51 = vmax.f32 %v6173_v32, %v6174_v22  ;;  %v5475_v31 = vmax.f32 %v11031_v35, 0.0  ;;  %v5601_v47 = vmax.f32 %v11034_v11, 0.0  ;;  %8469 = vmatprep.mubr.bf16.mxu1 %v10927_v36 }
 0x2e9   :  { %v6183_v57 = vrot.slane %v6182_v25, 2  ;;  %v5727_v18 = vmax.f32 %v5725_v0, %v5726_v58  ;;  %v5473_v48 = vmax.f32 %v11042_v3, 0.0  ;;  %v3948_v40 = vadd.f32 %v10177_v29, %v7960_v41  ;;  %v7963_v1 = vpop.f32.mrb[8].mxu0 }
 0x2ea   :  { %v5735_v14 = vrot.slane %v5734_v20, 2  ;;  %v6176_v37 = vrot.slane %v6175_v51, 2  ;;  %v5085_v26 = vadd.f32 %v8360_v7, %v10982_v62  ;;  %v3940_v5 = vadd.f32 %v10180_v27, %v2834_v23  ;;  %v8363_v32 = vpop.f32.mrb[8].mxu1  ;;  %v2847_v2 = vpop.f32.mrb[9].mxu0 }
 0x2eb   :  { %v6184_v22 = vmax.f32 %v6182_v25, %v6183_v57  ;;  %v5728_v35 = vrot.slane %v5727_v18, 2  ;;  %v4957_v11 = vadd.f32 %v10982_v62, %v3948_v40  ;;  %v5083_v36 = vadd.f32 %v10982_v62, %v4451_v10  ;;  %v4464_v0 = vpop.f32.mrb[9].mxu1  ;;  %v11058_v58 = vpop.f32.mrb[10].mxu0 }
 0x2ec   :  { %v5736_v3 = vmax.f32 %v5734_v20, %v5735_v14  ;;  %v6177_v29 = vmax.f32 %v6175_v51, %v6176_v37  ;;  %v5348_v41 = vadd.f32 %v10990_v16, %v5085_v26  ;;  %v4955_v60 = vadd.f32 %v10982_v62, %v3940_v5  ;;  %v11062_v7 = vpop.f32.mrb[10].mxu1  ;;  %v11064_v27 = vpop.f32.mrb[11].mxu0  ;;  %v8999_v14 = vld [vmem:[%s12673_s0 + $0x1d8] sm:$0xff]  }
 0x2ed   :  { %v6185_v23 = vrot.slane %v6184_v22, 1  ;;  %v5729_v25 = vmax.f32 %v5727_v18, %v5728_v35  ;;  %v5220_v57 = vadd.f32 %v10990_v16, %v4957_v11  ;;  %v5346_v40 = vadd.f32 %v10990_v16, %v5083_v36  ;;  %v11068_v10 = vpop.f32.mrb[11].mxu1  ;;  %v9000_v35 = vld [vmem:[%s12673_s0 + $0x1e0] sm:$0xff]  }
 0x2ee   :  { %v5737_v19 = vrot.slane %v5736_v3, 1  ;;  %v6178_v24 = vrot.slane %v6177_v29, 1  ;;  %v5604_v20 = vmax.f32 %v5348_v41, 0.0  ;;  %v5218_v51 = vadd.f32 %v10990_v16, %v4955_v60  ;;  %8070 = vmatmul.mubr.msk.bf16.gmra.mrb[116].mxu0 %vm931_vm1, %v8999_v14 }
 0x2ef   :  { %v6186_v37 = vmax.f32 %v6184_v22, %v6185_v23  ;;  %v5730_v26 = vrot.slane %v5729_v25, 1  ;;  %v5476_v18 = vmax.f32 %v5220_v57, 0.0  ;;  %v5602_v5 = vmax.f32 %v5346_v40, 0.0  ;;  %8470 = vmatmul.mubr.bf16.gmra.mrb[116].mxu1 %v10924_v55  ;;  %8073 = vmatprep.mubr.msk.bf16.mxu0 %vm931_vm1, %v9000_v35 }
 0x2f0   :  { %v5738_v11 = vmax.f32 %v5736_v3, %v5737_v19  ;;  %v6179_v36 = vmax.f32 %v6177_v29, %v6178_v24  ;;  %v6194_v41 = vmax.f32 %v5603_v21, %v5604_v20  ;;  %v5474_v60 = vmax.f32 %v5218_v51, 0.0  ;;  %8473 = vmatprep.mubr.bf16.mxu1 %v10953_v53 }
 0x2f1   :  { %v5731_v59 = vmax.f32 %v5729_v25, %v5730_v26  ;;  %v5746_v14 = vmax.f32 %v5475_v31, %v5476_v18  ;;  %v6187_v22 = vmax.f32 %v5601_v47, %v5602_v5  ;;  %v3961_v23 = vadd.f32 %v10197_v33, %v7963_v1  ;;  %v11082_v57 = vpop.f32.mrb[12].mxu0 }
 0x2f2   :  { %v11085_v55 = vsel %vm6749_vm2, %v6186_v37, %v6179_v36  ;;  %v6195_v40 = vrot.slane %v6194_v41, 4  ;;  %v5739_v44 = vmax.f32 %v5473_v48, %v5474_v60  ;;  %v5088_v35 = vadd.f32 %v8363_v32, %v10982_v62  ;;  %v11088_v19 = vpop.f32.mrb[12].mxu1  ;;  %v11090_v24 = vpop.f32.mrb[13].mxu0 }
 0x2f3   :  { %v11093_v53 = vsel %vm6749_vm2, %v5738_v11, %v5731_v59  ;;  %v5747_v21 = vrot.slane %v5746_v14, 4  ;;  %v6188_v31 = vrot.slane %v6187_v22, 4  ;;  %v4960_v33 = vadd.f32 %v10982_v62, %v3961_v23  ;;  %v11096_v47 = vpop.f32.mrb[13].mxu1  ;;  %v11098_v1 = vpop.f32.mrb[14].mxu0 }
 0x2f4   :  { %v6196_v3 = vmax.f32 %v6194_v41, %v6195_v40  ;;  %v5740_v29 = vrot.slane %v5739_v44, 4  ;;  %v11101_v48 = vadd.f32 %v10990_v16, %v5088_v35  ;;  %v3953_v32 = vadd.f32 %v10200_v34, %v2847_v2  ;;  %v11104_v25 = vpop.f32.mrb[14].mxu1  ;;  %v11106_v59 = vpop.f32.mrb[15].mxu0  ;;  %v9001_v2 = vld [vmem:[%s12673_s0 + $0x1e8] sm:$0xff]  }
 0x2f5   :  { %v5748_v20 = vmax.f32 %v5746_v14, %v5747_v21  ;;  %v6189_v51 = vmax.f32 %v6187_v22, %v6188_v31  ;;  %v11109_v37 = vadd.f32 %v10990_v16, %v4960_v33  ;;  %v5086_v26 = vadd.f32 %v10982_v62, %v4464_v0  ;;  %v11112_v18 = vpop.f32.mrb[15].mxu1 }
 0x2f6   :  { %v6197_v5 = vrot.slane %v6196_v3, 2  ;;  %v5741_v11 = vmax.f32 %v5739_v44, %v5740_v29  ;;  %v5607_v36 = vmax.f32 %v11101_v48, 0.0  ;;  %v4958_v34 = vadd.f32 %v10982_v62, %v3953_v32  ;;  %8074 = vmatmul.mubr.msk.bf16.gmra.mrb[120].mxu0 %vm931_vm1, %v9001_v2  ;;  %v9002_v44 = vld [vmem:[%s12673_s0 + $0x1f0] sm:$0xff]  }
 0x2f7   :  { %v5749_v41 = vrot.slane %v5748_v20, 2  ;;  %v6190_v60 = vrot.slane %v6189_v51, 2  ;;  %v5479_v14 = vmax.f32 %v11109_v37, 0.0  ;;  %v5349_v0 = vadd.f32 %v10990_v16, %v5086_v26  ;;  %8474 = vmatmul.mubr.bf16.gmra.mrb[120].mxu1 %v10950_v30  ;;  %8077 = vmatprep.mubr.msk.bf16.mxu0 %vm931_vm1, %v9002_v44 }
 0x2f8   :  { %v6198_v22 = vmax.f32 %v6196_v3, %v6197_v5  ;;  %v5742_v23 = vrot.slane %v5741_v11, 2  ;;  %v5221_v40 = vadd.f32 %v10990_v16, %v4958_v34  ;;  %v3964_v35 = vadd.f32 %v10203_v45, %v11058_v58  ;;  %8477 = vmatprep.mubr.bf16.mxu1 %v10984_v13 }
 0x2f9   :  { %v5750_v21 = vmax.f32 %v5748_v20, %v5749_v41  ;;  %v6191_v31 = vmax.f32 %v6189_v51, %v6190_v60  ;;  %v5605_v33 = vmax.f32 %v5349_v0, 0.0  ;;  %v5089_v30 = vadd.f32 %v11062_v7, %v10982_v62  ;;  %v11133_v29 = vpop.f32.mrb[16].mxu0 }
 0x2fa   :  { %v6199_v48 = vrot.slane %v6198_v22, 1  ;;  %v5743_v32 = vmax.f32 %v5741_v11, %v5742_v23  ;;  %v5477_v37 = vmax.f32 %v5221_v40, 0.0  ;;  %v4961_v3 = vadd.f32 %v10982_v62, %v3964_v35  ;;  %v11136_v26 = vpop.f32.mrb[16].mxu1  ;;  %v11138_v5 = vpop.f32.mrb[17].mxu0 }
 0x2fb   :  { %v5751_v45 = vrot.slane %v5750_v21, 1  ;;  %v6192_v58 = vrot.slane %v6191_v31, 1  ;;  %v5352_v13 = vadd.f32 %v10990_v16, %v5089_v30  ;;  %v3956_v20 = vadd.f32 %v10206_v43, %v11064_v27  ;;  %v11143_v51 = vpop.f32.mrb[17].mxu1  ;;  %v11145_v7 = vpop.f32.mrb[18].mxu0 }
 0x2fc   :  { %v6200_v34 = vmax.f32 %v6198_v22, %v6199_v48  ;;  %v5744_v11 = vrot.slane %v5743_v32, 1  ;;  %v5224_v2 = vadd.f32 %v10990_v16, %v4961_v3  ;;  %v5087_v41 = vadd.f32 %v10982_v62, %v11068_v10  ;;  %v11150_v60 = vpop.f32.mrb[18].mxu1  ;;  %v11152_v0 = vpop.f32.mrb[19].mxu0  ;;  %v9003_v10 = vld [vmem:[%s12673_s0 + $0x1f8] sm:$0xff]  }
 0x2fd   :  { %v5752_v44 = vmax.f32 %v5750_v21, %v5751_v45  ;;  %v6193_v23 = vmax.f32 %v6191_v31, %v6192_v58  ;;  %v5608_v40 = vmax.f32 %v5352_v13, 0.0  ;;  %v4959_v43 = vadd.f32 %v10982_v62, %v3956_v20  ;;  %v11155_v27 = vpop.f32.mrb[19].mxu1 }
 0x2fe   :  { %v5745_v35 = vmax.f32 %v5743_v32, %v5744_v11  ;;  %v5480_v30 = vmax.f32 %v5224_v2, 0.0  ;;  %v5350_v22 = vadd.f32 %v10990_v16, %v5087_v41  ;;  %v3977_v48 = vadd.f32 %v10223_v42, %v11082_v57  ;;  %8078 = vmatmul.mubr.msk.bf16.gmra.mrb[124].mxu0 %vm931_vm1, %v9003_v10 }
 0x2ff   :  { %v6813_v21 = vsel %vm6751_vm3, %v6193_v23, %v11085_v55  ;;  %v6208_v31 = vmax.f32 %v5607_v36, %v5608_v40  ;;  %v5222_v3 = vadd.f32 %v10990_v16, %v4959_v43  ;;  %v5092_v32 = vadd.f32 %v11088_v19, %v10982_v62  ;;  %8478 = vmatmul.mubr.bf16.gmra.mrb[124].mxu1 %v10976_v9 }
 0x300   :  { %v6752_v42 = vsel %vm6751_vm3, %v5745_v35, %v11093_v53  ;;  %v5760_v57 = vmax.f32 %v5479_v14, %v5480_v30  ;;  %v5606_v45 = vmax.f32 %v5350_v22, 0.0  ;;  %v11173_v58 = vsel %vm6753_vm4, %v6200_v34, %v6813_v21 }
 0x301   :  { %v6209_v13 = vrot.slane %v6208_v31, 4  ;;  %v5478_v20 = vmax.f32 %v5222_v3, 0.0  ;;  %v11176_v55 = vsel %vm6753_vm4, %v5752_v44, %v6752_v42  ;;  %v4964_v36 = vadd.f32 %v10982_v62, %v3977_v48  ;;  %v11179_v11 = vpop.f32.mrb[20].mxu0 }
 0x302   :  { %v5761_v19 = vrot.slane %v5760_v57, 4  ;;  %v6201_v2 = vmax.f32 %v5605_v33, %v5606_v45  ;;  %v5355_v9 = vadd.f32 %v10990_v16, %v5092_v32  ;;  %v3969_v53 = vadd.f32 %v10226_v54, %v11090_v24  ;;  %v11184_v14 = vpop.f32.mrb[20].mxu1  ;;  %v11186_v34 = vpop.f32.mrb[21].mxu0 }
 0x303   :  { %v6210_v41 = vmax.f32 %v6208_v31, %v6209_v13  ;;  %v5753_v23 = vmax.f32 %v5477_v37, %v5478_v20  ;;  %v5227_v44 = vadd.f32 %v10990_v16, %v4964_v36  ;;  %v5090_v40 = vadd.f32 %v10982_v62, %v11096_v47  ;;  %v11191_v43 = vpop.f32.mrb[21].mxu1  ;;  %v11193_v35 = vpop.f32.mrb[22].mxu0 }
 0x304   :  { %v5762_v33 = vmax.f32 %v5760_v57, %v5761_v19  ;;  %v6202_v30 = vrot.slane %v6201_v2, 4  ;;  %v5611_v22 = vmax.f32 %v5355_v9, 0.0  ;;  %v4962_v54 = vadd.f32 %v10982_v62, %v3969_v53  ;;  %v11196_v24 = vpop.f32.mrb[22].mxu1  ;;  %v11198_v48 = vpop.f32.mrb[23].mxu0 }
 0x305   :  { %v6211_v10 = vrot.slane %v6210_v41, 2  ;;  %v5754_v37 = vrot.slane %v5753_v23, 4  ;;  %v5483_v21 = vmax.f32 %v5227_v44, 0.0  ;;  %v5353_v31 = vadd.f32 %v10990_v16, %v5090_v40  ;;  %v11201_v47 = vpop.f32.mrb[23].mxu1 }
 0x306   :  { %v5763_v3 = vrot.slane %v5762_v33, 2  ;;  %v6203_v32 = vmax.f32 %v6201_v2, %v6202_v30  ;;  %v5225_v42 = vadd.f32 %v10990_v16, %v4962_v54  ;;  %v3980_v57 = vadd.f32 %v10229_v6, %v11098_v1 }
 0x307   :  { %v6212_v45 = vmax.f32 %v6210_v41, %v6211_v10  ;;  %v5755_v13 = vmax.f32 %v5753_v23, %v5754_v37  ;;  %v5609_v20 = vmax.f32 %v5353_v31, 0.0  ;;  %v5093_v36 = vadd.f32 %v11104_v25, %v10982_v62 }
 0x308   :  { %v5764_v19 = vmax.f32 %v5762_v33, %v5763_v3  ;;  %v6204_v9 = vrot.slane %v6203_v32, 2  ;;  %v5481_v53 = vmax.f32 %v5225_v42, 0.0  ;;  %v4965_v44 = vadd.f32 %v10982_v62, %v3980_v57 }
 0x309   :  { %v6213_v40 = vrot.slane %v6212_v45, 1  ;;  %v5756_v38 = vrot.slane %v5755_v13, 2  ;;  %v5356_v2 = vadd.f32 %v10990_v16, %v5093_v36  ;;  %v3972_v30 = vadd.f32 %v10232_v39, %v11106_v59  ;;  %v11212_v6 = vpop.f32.mrb[24].mxu0 }
 0x30a   :  { %v5765_v1 = vrot.slane %v5764_v19, 1  ;;  %v6205_v41 = vmax.f32 %v6203_v32, %v6204_v9  ;;  %v5228_v23 = vadd.f32 %v10990_v16, %v4965_v44  ;;  %v5091_v25 = vadd.f32 %v10982_v62, %v11112_v18  ;;  %v11217_v33 = vpop.f32.mrb[24].mxu1  ;;  %v11219_v54 = vpop.f32.mrb[25].mxu0 }
 0x30b   :  { %v6214_v10 = vmax.f32 %v6212_v45, %v6213_v40  ;;  %v5757_v37 = vmax.f32 %v5755_v13, %v5756_v38  ;;  %v5612_v31 = vmax.f32 %v5356_v2, 0.0  ;;  %v4963_v3 = vadd.f32 %v10982_v62, %v3972_v30  ;;  %v11222_v42 = vpop.f32.mrb[25].mxu1  ;;  %v11224_v39 = vpop.f32.mrb[26].mxu0 }
 0x30c   :  { %v5766_v59 = vmax.f32 %v5764_v19, %v5765_v1  ;;  %v6206_v32 = vrot.slane %v6205_v41, 1  ;;  %v5484_v57 = vmax.f32 %v5228_v23, 0.0  ;;  %v5354_v36 = vadd.f32 %v10990_v16, %v5091_v25  ;;  %v11227_v9 = vpop.f32.mrb[26].mxu1  ;;  %v11229_v18 = vpop.f32.mrb[27].mxu0 }
 0x30d   :  { %v5758_v44 = vrot.slane %v5757_v37, 1  ;;  %v6222_v28 = vmax.f32 %v5611_v22, %v5612_v31  ;;  %v5226_v38 = vadd.f32 %v10990_v16, %v4963_v3  ;;  %v3993_v45 = vadd.f32 %v10249_v17, %v11133_v29  ;;  %v11234_v13 = vpop.f32.mrb[27].mxu1 }
 0x30e   :  { %v6207_v40 = vmax.f32 %v6205_v41, %v6206_v32  ;;  %v5774_v2 = vmax.f32 %v5483_v21, %v5484_v57  ;;  %v5610_v19 = vmax.f32 %v5354_v36, 0.0  ;;  %v5096_v30 = vadd.f32 %v11136_v26, %v10982_v62 }
 0x30f   :  { %v5759_v1 = vmax.f32 %v5757_v37, %v5758_v44  ;;  %v6223_v23 = vrot.slane %v6222_v28, 4  ;;  %v5482_v25 = vmax.f32 %v5226_v38, 0.0  ;;  %v4968_v49 = vadd.f32 %v10982_v62, %v3993_v45 }
 0x310   :  { %v6815_v22 = vsel %vm6755_vm5, %v6207_v40, %v11173_v58  ;;  %v5775_v31 = vrot.slane %v5774_v2, 4  ;;  %v6215_v3 = vmax.f32 %v5609_v20, %v5610_v19  ;;  %v5359_v17 = vadd.f32 %v10990_v16, %v5096_v30 }
 0x311   :  { %v6756_v29 = vsel %vm6755_vm5, %v5759_v1, %v11176_v55  ;;  %v6224_v21 = vmax.f32 %v6222_v28, %v6223_v23  ;;  %v5767_v41 = vmax.f32 %v5481_v53, %v5482_v25  ;;  %v11245_v32 = vsel %vm6757_vm6, %v6214_v10, %v6815_v22  ;;  %v11247_v26 = vpop.f32.mrb[28].mxu0 }
 0x312   :  { %v5776_v37 = vmax.f32 %v5774_v2, %v5775_v31  ;;  %v11250_v57 = vsel %vm6757_vm6, %v5766_v59, %v6756_v29  ;;  %v6216_v36 = vrot.slane %v6215_v3, 4  ;;  %v11252_v58 = vpop.f32.mrb[28].mxu1  ;;  %v11254_v20 = vpop.f32.mrb[29].mxu0  ;;  %v5231_v28 = vadd.f32 %v10990_v16, %v4968_v49 }
 0x313   :  { %v6225_v44 = vrot.slane %v6224_v21, 2  ;;  %v5768_v38 = vrot.slane %v5767_v41, 4  ;;  %v3985_v55 = vadd.f32 %v10252_v12, %v11138_v5  ;;  %v11259_v53 = vpop.f32.mrb[29].mxu1  ;;  %v11261_v10 = vpop.f32.mrb[30].mxu0  ;;  %v5615_v40 = vmax.f32 %v5359_v17, 0.0 }
 0x314   :  { %v5777_v45 = vrot.slane %v5776_v37, 2  ;;  %v6217_v59 = vmax.f32 %v6215_v3, %v6216_v36  ;;  %v5094_v2 = vadd.f32 %v10982_v62, %v11143_v51  ;;  %v11265_v19 = vpop.f32.mrb[30].mxu1  ;;  %v11267_v30 = vpop.f32.mrb[31].mxu0  ;;  %v3996_v12 = vadd.f32 %v10255_v8, %v11145_v7 }
 0x315   :  { %12780 = vst [vmem:[#allocation103_spill] sm:$0xff] %v11267_v30  ;;  %v6226_v1 = vmax.f32 %v6224_v21, %v6225_v44  ;;  %v5769_v49 = vmax.f32 %v5767_v41, %v5768_v38  ;;  %v4966_v23 = vadd.f32 %v10982_v62, %v3985_v55  ;;  %v11272_v5 = vpop.f32.mrb[31].mxu1  ;;  %v5097_v51 = vadd.f32 %v11150_v60, %v10982_v62 }
 0x316   :  { %12781 = vst [vmem:[#allocation104_spill] sm:$0xff] %v11272_v5  ;;  %v5778_v25 = vmax.f32 %v5776_v37, %v5777_v45  ;;  %v6218_v22 = vrot.slane %v6217_v59, 2  ;;  %v5357_v31 = vadd.f32 %v10990_v16, %v5094_v2  ;;  %v4969_v21 = vadd.f32 %v10982_v62, %v3996_v12 }
 0x317   :  { %v6227_v3 = vrot.slane %v6226_v1, 1  ;;  %v5770_v17 = vrot.slane %v5769_v49, 2  ;;  %v5229_v29 = vadd.f32 %v10990_v16, %v4966_v23  ;;  %v5487_v44 = vmax.f32 %v5231_v28, 0.0 }
 0x318   :  { %v5779_v41 = vrot.slane %v5778_v25, 1  ;;  %v6219_v36 = vmax.f32 %v6217_v59, %v6218_v22  ;;  %v5360_v8 = vadd.f32 %v10990_v16, %v5097_v51  ;;  %v5613_v37 = vmax.f32 %v5357_v31, 0.0 }
 0x319   :  { %v6228_v7 = vmax.f32 %v6226_v1, %v6227_v3  ;;  %v5771_v38 = vmax.f32 %v5769_v49, %v5770_v17  ;;  %v5232_v55 = vadd.f32 %v10990_v16, %v4969_v21  ;;  %v11281_v45 = vpop.f32.mrb[32].mxu0  ;;  %v5485_v60 = vmax.f32 %v5229_v29, 0.0 }
 0x31a   :  { %v6220_v2 = vrot.slane %v6219_v36, 1  ;;  %v5616_v5 = vmax.f32 %v5360_v8, 0.0  ;;  %v3988_v23 = vadd.f32 %v10258_v63, %v11152_v0  ;;  %v11285_v30 = vpop.f32.mrb[32].mxu1  ;;  %v11287_v12 = vpop.f32.mrb[33].mxu0  ;;  %v5095_v1 = vadd.f32 %v10982_v62, %v11155_v27 }
 0x31b   :  { %v5772_v28 = vrot.slane %v5771_v38, 1  ;;  %v5488_v59 = vmax.f32 %v5232_v55, 0.0  ;;  %v4009_v49 = vadd.f32 %v10275_v52, %v11179_v11  ;;  %v11293_v22 = vpop.f32.mrb[33].mxu1  ;;  %v11295_v31 = vpop.f32.mrb[34].mxu0  ;;  %v5100_v0 = vadd.f32 %v11184_v14, %v10982_v62 }
 0x31c   :  { %v6221_v51 = vmax.f32 %v6219_v36, %v6220_v2  ;;  %v6236_v3 = vmax.f32 %v5615_v40, %v5616_v5  ;;  %v4967_v63 = vadd.f32 %v10982_v62, %v3988_v23  ;;  %v11300_v17 = vpop.f32.mrb[34].mxu1  ;;  %v11302_v29 = vpop.f32.mrb[35].mxu0  ;;  %v5358_v8 = vadd.f32 %v10990_v16, %v5095_v1 }
 0x31d   :  { %v5773_v21 = vmax.f32 %v5771_v38, %v5772_v28  ;;  %v5788_v27 = vmax.f32 %v5487_v44, %v5488_v59  ;;  %v4972_v52 = vadd.f32 %v10982_v62, %v4009_v49  ;;  %v11306_v11 = vpop.f32.mrb[35].mxu1  ;;  %v5780_v55 = vmax.f32 %v5778_v25, %v5779_v41 }
 0x31e   :  { %v6817_v40 = vsel %vm6759_vm7, %v6221_v51, %v11245_v32  ;;  %v6237_v5 = vrot.slane %v6236_v3, 4  ;;  %v5230_v36 = vadd.f32 %v10990_v16, %v4967_v63  ;;  %v5614_v44 = vmax.f32 %v5358_v8, 0.0 }
 0x31f   :  { %v6760_v14 = vsel %vm6759_vm7, %v5773_v21, %v11250_v57  ;;  %v6818_v2 = vsel %vm6761_vm8, %v6228_v7, %v6817_v40  ;;  %v5789_v38 = vrot.slane %v5788_v27, 4  ;;  %v5363_v32 = vadd.f32 %v10990_v16, %v5100_v0 }
 0x320   :  { %v6762_v23 = vsel %vm6761_vm8, %v5780_v55, %v6760_v14  ;;  %6892 = vst [vmem:[%s12678_s7 + $0x40] sm:$0xff] %v6818_v2  ;;  %v6238_v25 = vmax.f32 %v6236_v3, %v6237_v5  ;;  %v5486_v41 = vmax.f32 %v5230_v36, 0.0  ;;  %v6229_v57 = vmax.f32 %v5613_v37, %v5614_v44 }
 0x321   :  { %6884 = vst [vmem:[%s12678_s7] sm:$0xff] %v6762_v23  ;;  %v5790_v28 = vmax.f32 %v5788_v27, %v5789_v38  ;;  %v5235_v7 = vadd.f32 %v10990_v16, %v4972_v52  ;;  %v4001_v59 = vadd.f32 %v10278_v50, %v11186_v34  ;;  %v11325_v1 = vpop.f32.mrb[36].mxu0  ;;  %v5098_v3 = vadd.f32 %v10982_v62, %v11191_v43 }
 0x322   :  { %v6239_v49 = vrot.slane %v6238_v25, 2  ;;  %v5781_v51 = vmax.f32 %v5485_v60, %v5486_v41  ;;  %v11329_v63 = vpop.f32.mrb[36].mxu1  ;;  %v11331_v0 = vpop.f32.mrb[37].mxu0  ;;  %v6230_v8 = vrot.slane %v6229_v57, 4  ;;  %v4012_v27 = vadd.f32 %v10281_v15, %v11193_v35 }
 0x323   :  { %v5791_v21 = vrot.slane %v5790_v28, 2  ;;  %v4970_v37 = vadd.f32 %v10982_v62, %v4001_v59  ;;  %v11336_v52 = vpop.f32.mrb[37].mxu1  ;;  %v11338_v50 = vpop.f32.mrb[38].mxu0  ;;  %v5619_v55 = vmax.f32 %v5363_v32, 0.0  ;;  %v5101_v43 = vadd.f32 %v11196_v24, %v10982_v62 }
 0x324   :  { %v6240_v34 = vmax.f32 %v6238_v25, %v6239_v49  ;;  %v5782_v60 = vrot.slane %v5781_v51, 4  ;;  %v11342_v40 = vpop.f32.mrb[38].mxu1  ;;  %v11344_v5 = vpop.f32.mrb[39].mxu0  ;;  %v6231_v14 = vmax.f32 %v6229_v57, %v6230_v8  ;;  %v5491_v2 = vmax.f32 %v5235_v7, 0.0 }
 0x325   :  { %v5792_v36 = vmax.f32 %v5790_v28, %v5791_v21  ;;  %v4973_v38 = vadd.f32 %v10982_v62, %v4012_v27  ;;  %v11347_v15 = vpop.f32.mrb[39].mxu1  ;;  %v5361_v23 = vadd.f32 %v10990_v16, %v5098_v3  ;;  %v5364_v25 = vadd.f32 %v10990_v16, %v5101_v43 }
 0x326   :  { %v6241_v35 = vrot.slane %v6240_v34, 1  ;;  %v5783_v44 = vmax.f32 %v5781_v51, %v5782_v60  ;;  %v6232_v32 = vrot.slane %v6231_v14, 2  ;;  %v5233_v24 = vadd.f32 %v10990_v16, %v4970_v37 }
 0x327   :  { %v5793_v41 = vrot.slane %v5792_v36, 1  ;;  %v5236_v59 = vadd.f32 %v10990_v16, %v4973_v38  ;;  %v5620_v57 = vmax.f32 %v5364_v25, 0.0  ;;  %v4004_v7 = vadd.f32 %v10284_v4, %v11198_v48 }
 0x328   :  { %v6242_v49 = vmax.f32 %v6240_v34, %v6241_v35  ;;  %v5784_v28 = vrot.slane %v5783_v44, 2  ;;  %v6233_v8 = vmax.f32 %v6231_v14, %v6232_v32  ;;  %v5099_v51 = vadd.f32 %v10982_v62, %v11201_v47 }
 0x329   :  { %v5794_v21 = vmax.f32 %v5792_v36, %v5793_v41  ;;  %v5492_v27 = vmax.f32 %v5236_v59, 0.0  ;;  %v11357_v3 = vpop.f32.mrb[40].mxu0  ;;  %v6250_v43 = vmax.f32 %v5619_v55, %v5620_v57  ;;  %v4971_v37 = vadd.f32 %v10982_v62, %v4004_v7 }
 0x32a   :  { %v5785_v60 = vmax.f32 %v5783_v44, %v5784_v28  ;;  %v4025_v34 = vadd.f32 %v10301_v61, %v11212_v6  ;;  %v11362_v38 = vpop.f32.mrb[40].mxu1  ;;  %v11364_v35 = vpop.f32.mrb[41].mxu0  ;;  %v6234_v4 = vrot.slane %v6233_v8, 1  ;;  %v5362_v36 = vadd.f32 %v10990_v16, %v5099_v51 }
 0x32b   :  { %12782 = vst [vmem:[#allocation105_spill] sm:$0xff] %v11364_v35  ;;  %v5802_v48 = vmax.f32 %v5491_v2, %v5492_v27  ;;  %v5104_v47 = vadd.f32 %v11217_v33, %v10982_v62  ;;  %v11369_v14 = vpop.f32.mrb[41].mxu1  ;;  %v11371_v44 = vpop.f32.mrb[42].mxu0  ;;  %v6251_v25 = vrot.slane %v6250_v43, 4  ;;  %v5234_v41 = vadd.f32 %v10990_v16, %v4971_v37 }
 0x32c   :  { %12783 = vst [vmem:[#allocation106_spill] sm:$0xff] %v11369_v14  ;;  %12784 = vst [vmem:[#allocation107_spill] sm:$0xff] %v11371_v44  ;;  %v5786_v55 = vrot.slane %v5785_v60, 1  ;;  %v4976_v61 = vadd.f32 %v10982_v62, %v4025_v34  ;;  %v11375_v6 = vpop.f32.mrb[42].mxu1  ;;  %v11377_v32 = vpop.f32.mrb[43].mxu0  ;;  %v6235_v2 = vmax.f32 %v6233_v8, %v6234_v4  ;;  %v5617_v59 = vmax.f32 %v5361_v23, 0.0 }
 0x32d   :  { %12785 = vst [vmem:[#allocation108_spill] sm:$0xff] %v11375_v6  ;;  %v5803_v28 = vrot.slane %v5802_v48, 4  ;;  %v5618_v57 = vmax.f32 %v5362_v36, 0.0  ;;  %v11379_v7 = vpop.f32.mrb[43].mxu1  ;;  %v5489_v27 = vmax.f32 %v5233_v24, 0.0  ;;  %v6252_v51 = vmax.f32 %v6250_v43, %v6251_v25 }
 0x32e   :  { %12786 = vst [vmem:[#allocation109_spill] sm:$0xff] %v11379_v7  ;;  %v5787_v33 = vmax.f32 %v5785_v60, %v5786_v55  ;;  %v5490_v44 = vmax.f32 %v5234_v41, 0.0  ;;  %v11382_v14 = vsel %vm6749_vm2, %v6242_v49, %v6235_v2  ;;  %v5367_v34 = vadd.f32 %v10990_v16, %v5104_v47 }
 0x32f   :  { %v5804_v37 = vmax.f32 %v5802_v48, %v5803_v28  ;;  %v6243_v35 = vmax.f32 %v5617_v59, %v5618_v57  ;;  %v6253_v8 = vrot.slane %v6252_v51, 2  ;;  %v5239_v4 = vadd.f32 %v10990_v16, %v4976_v61 }
 0x330   :  { %v11386_v6 = vsel %vm6749_vm2, %v5794_v21, %v5787_v33  ;;  %v5795_v23 = vmax.f32 %v5489_v27, %v5490_v44  ;;  %v4017_v24 = vadd.f32 %v10304_v46, %v11219_v54  ;;  %v5102_v49 = vadd.f32 %v10982_v62, %v11222_v42 }
 0x331   :  { %v5805_v36 = vrot.slane %v5804_v37, 2  ;;  %v6244_v7 = vrot.slane %v6243_v35, 4  ;;  %v11393_v60 = vpop.f32.mrb[44].mxu0  ;;  %v6254_v43 = vmax.f32 %v6252_v51, %v6253_v8  ;;  %v4028_v21 = vadd.f32 %v10307_v56, %v11224_v39 }
 0x332   :  { %v5796_v48 = vrot.slane %v5795_v23, 4  ;;  %v5105_v47 = vadd.f32 %v11227_v9, %v10982_v62  ;;  %v11399_v44 = vpop.f32.mrb[44].mxu1  ;;  %v11401_v55 = vpop.f32.mrb[45].mxu0  ;;  %v4974_v46 = vadd.f32 %v10982_v62, %v4017_v24  ;;  %v5365_v54 = vadd.f32 %v10990_v16, %v5102_v49 }
 0x333   :  { %v5806_v25 = vmax.f32 %v5804_v37, %v5805_v36  ;;  %v6245_v41 = vmax.f32 %v6243_v35, %v6244_v7  ;;  %v11405_v42 = vpop.f32.mrb[45].mxu1  ;;  %v11407_v61 = vpop.f32.mrb[46].mxu0  ;;  %v6255_v2 = vrot.slane %v6254_v43, 1  ;;  %v4977_v56 = vadd.f32 %v10982_v62, %v4028_v21 }
 0x334   :  { %12787 = vst [vmem:[#allocation110_spill] sm:$0xff] %v11407_v61  ;;  %v5797_v59 = vmax.f32 %v5795_v23, %v5796_v48  ;;  %v5368_v39 = vadd.f32 %v10990_v16, %v5105_v47  ;;  %v11411_v9 = vpop.f32.mrb[46].mxu1  ;;  %v11413_v28 = vpop.f32.mrb[47].mxu0  ;;  %v5495_v7 = vmax.f32 %v5239_v4, 0.0  ;;  %v5623_v33 = vmax.f32 %v5367_v34, 0.0  ;;  %v12791_v48 = vld [vmem:[#allocation2_spill] sm:$0xff] }
 0x335   :  { %12788 = vst [vmem:[#allocation111_spill] sm:$0xff] %v11411_v9  ;;  %12789 = vst [vmem:[#allocation112_spill] sm:$0xff] %v11413_v28  ;;  %v5807_v57 = vrot.slane %v5806_v25, 1  ;;  %v6246_v35 = vrot.slane %v6245_v41, 2  ;;  %v11415_v27 = vpop.f32.mrb[47].mxu1  ;;  %v5237_v37 = vadd.f32 %v10990_v16, %v4974_v46  ;;  %v5240_v8 = vadd.f32 %v10990_v16, %v4977_v56  ;;  %v12792_v46 = vld [vmem:[#allocation3_spill] sm:$0xff] }
 0x336   :  { %12790 = vst [vmem:[#allocation113_spill] sm:$0xff] %v11415_v27  ;;  %v5798_v51 = vrot.slane %v5797_v59, 2  ;;  %v5624_v23 = vmax.f32 %v5368_v39, 0.0  ;;  %v6256_v36 = vmax.f32 %v6254_v43, %v6255_v2  ;;  %v5621_v49 = vmax.f32 %v5365_v54, 0.0 }
 0x337   :  { %v6247_v24 = vmax.f32 %v6245_v41, %v6246_v35  ;;  %v4020_v21 = vadd.f32 %v12791_v48, %v11229_v18  ;;  %v5496_v28 = vmax.f32 %v5240_v8, 0.0  ;;  %v5103_v34 = vadd.f32 %v10982_v62, %v11234_v13 }
 0x338   :  { %v5799_v47 = vmax.f32 %v5797_v59, %v5798_v51  ;;  %v6264_v9 = vmax.f32 %v5623_v33, %v5624_v23  ;;  %v4041_v61 = vadd.f32 %v12792_v46, %v11247_v26  ;;  %v5108_v43 = vadd.f32 %v11252_v58, %v10982_v62 }
 0x339   :  { %v6248_v4 = vrot.slane %v6247_v24, 1  ;;  %v4975_v27 = vadd.f32 %v10982_v62, %v4020_v21  ;;  %v11428_v41 = vpop.f32.mrb[48].mxu0  ;;  %v5816_v2 = vmax.f32 %v5495_v7, %v5496_v28  ;;  %v5366_v59 = vadd.f32 %v10990_v16, %v5103_v34 }
 0x33a   :  { %v5800_v54 = vrot.slane %v5799_v47, 1  ;;  %v6265_v18 = vrot.slane %v6264_v9, 4  ;;  %v11431_v56 = vpop.f32.mrb[48].mxu1  ;;  %v11433_v39 = vpop.f32.mrb[49].mxu0  ;;  %v5808_v13 = vmax.f32 %v5806_v25, %v5807_v57  ;;  %v4980_v26 = vadd.f32 %v10982_v62, %v4041_v61  ;;  %v11450_v62 = vld [vmem:[%s12677_s6] ss:$0 sm:$0xff] }
 0x33b   :  { %v6249_v35 = vmax.f32 %v6247_v24, %v6248_v4  ;;  %v5238_v33 = vadd.f32 %v10990_v16, %v4975_v27  ;;  %v11437_v51 = vpop.f32.mrb[49].mxu1  ;;  %v11439_v58 = vpop.f32.mrb[50].mxu0  ;;  %v5817_v23 = vrot.slane %v5816_v2, 4  ;;  %v5622_v7 = vmax.f32 %v5366_v59, 0.0  ;;  %v12793_v59 = vld [vmem:[#allocation4_spill] sm:$0xff] }
 0x33c   :  { %v5801_v8 = vmax.f32 %v5799_v47, %v5800_v54  ;;  %v6266_v28 = vmax.f32 %v6264_v9, %v6265_v18  ;;  %v11441_v48 = vpop.f32.mrb[50].mxu1  ;;  %v11443_v21 = vpop.f32.mrb[51].mxu0  ;;  %v5493_v57 = vmax.f32 %v5237_v37, 0.0  ;;  %v5371_v16 = vadd.f32 %v11450_v62, %v5108_v43 }
 0x33d   :  { %v6820_v25 = vsel %vm6751_vm3, %v6249_v35, %v11382_v14  ;;  %v5494_v24 = vmax.f32 %v5238_v33, 0.0  ;;  %v11453_v61 = vpop.f32.mrb[51].mxu1  ;;  %v5818_v27 = vmax.f32 %v5816_v2, %v5817_v23  ;;  %v6257_v34 = vmax.f32 %v5621_v49, %v5622_v7 }
 0x33e   :  { %v6764_v9 = vsel %vm6751_vm3, %v5801_v8, %v11386_v6  ;;  %v6267_v47 = vrot.slane %v6266_v28, 2  ;;  %v11461_v37 = vsel %vm6753_vm4, %v6256_v36, %v6820_v25  ;;  %v5243_v46 = vadd.f32 %v11450_v62, %v4980_v26  ;;  %v11469_v6 = vld [vmem:[%s12676_s4] ss:$0 sm:$0xff]  ;;  %v12794_v36 = vld [vmem:[#allocation5_spill] sm:$0xff] }
 0x33f   :  { %v5809_v4 = vmax.f32 %v5493_v57, %v5494_v24  ;;  %v11458_v14 = vsel %vm6753_vm4, %v5808_v13, %v6764_v9  ;;  %v5819_v54 = vrot.slane %v5818_v27, 2  ;;  %v6258_v43 = vrot.slane %v6257_v34, 4 }
 0x340   :  { %v6268_v18 = vmax.f32 %v6266_v28, %v6267_v47  ;;  %v4033_v35 = vadd.f32 %v12793_v59, %v11254_v20  ;;  %v5106_v49 = vadd.f32 %v11469_v6, %v11259_v53  ;;  %v4044_v2 = vadd.f32 %v12794_v36, %v11261_v10 }
 0x341   :  { %v5810_v33 = vrot.slane %v5809_v4, 4  ;;  %v5109_v13 = vadd.f32 %v11469_v6, %v11265_v19  ;;  %v11477_v26 = vpop.f32.mrb[52].mxu0  ;;  %v5820_v8 = vmax.f32 %v5818_v27, %v5819_v54  ;;  %v6259_v20 = vmax.f32 %v6257_v34, %v6258_v43 }
 0x342   :  { %12795 = vst [vmem:[#allocation2_spill] sm:$0xff] %v11477_v26  ;;  %v6269_v23 = vrot.slane %v6268_v18, 1  ;;  %v4978_v28 = vadd.f32 %v11469_v6, %v4033_v35  ;;  %v11480_v7 = vpop.f32.mrb[52].mxu1  ;;  %v11482_v25 = vpop.f32.mrb[53].mxu0  ;;  %v5369_v53 = vadd.f32 %v11450_v62, %v5106_v49  ;;  %v4981_v24 = vadd.f32 %v11469_v6, %v4044_v2 }
 0x343   :  { %12796 = vst [vmem:[#allocation3_spill] sm:$0xff] %v11480_v7  ;;  %12797 = vst [vmem:[#allocation4_spill] sm:$0xff] %v11482_v25  ;;  %v5811_v57 = vmax.f32 %v5809_v4, %v5810_v33  ;;  %v5372_v10 = vadd.f32 %v11450_v62, %v5109_v13  ;;  %v11487_v9 = vpop.f32.mrb[53].mxu1  ;;  %v11489_v19 = vpop.f32.mrb[54].mxu0  ;;  %v5821_v27 = vrot.slane %v5820_v8, 1  ;;  %v6260_v47 = vrot.slane %v6259_v20, 2 }
 0x344   :  { %12798 = vst [vmem:[#allocation5_spill] sm:$0xff] %v11487_v9  ;;  %12799 = vst [vmem:[#allocation114_spill] sm:$0xff] %v11489_v19  ;;  %v5499_v34 = vmax.f32 %v5243_v46, 0.0  ;;  %v5627_v54 = vmax.f32 %v5371_v16, 0.0  ;;  %v11491_v43 = vpop.f32.mrb[54].mxu1  ;;  %v11493_v59 = vpop.f32.mrb[55].mxu0  ;;  %v6270_v35 = vmax.f32 %v6268_v18, %v6269_v23  ;;  %v5244_v33 = vadd.f32 %v11450_v62, %v4981_v24 }
 0x345   :  { %12800 = vst [vmem:[#allocation115_spill] sm:$0xff] %v11491_v43  ;;  %12801 = vst [vmem:[#allocation116_spill] sm:$0xff] %v11493_v59  ;;  %v5812_v4 = vrot.slane %v5811_v57, 2  ;;  %v5628_v49 = vmax.f32 %v5372_v10, 0.0  ;;  %v11496_v36 = vpop.f32.mrb[55].mxu1  ;;  %v6261_v2 = vmax.f32 %v6259_v20, %v6260_v47  ;;  %v5241_v13 = vadd.f32 %v11450_v62, %v4978_v28  ;;  %v12802_v19 = vld [vmem:[#allocation103_spill] sm:$0xff] }
 0x346   :  { %v5625_v9 = vmax.f32 %v5369_v53, 0.0  ;;  %v12803_v25 = vld [vmem:[#allocation6_spill] sm:$0xff]  ;;  %v5500_v16 = vmax.f32 %v5244_v33, 0.0  ;;  %v12804_v43 = vld [vmem:[#allocation104_spill] sm:$0xff]  ;;  %v12805_v24 = vld [vmem:[#allocation7_spill] sm:$0xff]  ;;  %v5112_v20 = vadd.f32 %v11469_v6, %v11285_v30 }
 0x347   :  { %v4036_v7 = vadd.f32 %v12803_v25, %v12802_v19  ;;  %v5813_v46 = vmax.f32 %v5811_v57, %v5812_v4  ;;  %v6278_v26 = vmax.f32 %v5627_v54, %v5628_v49  ;;  %v5107_v59 = vadd.f32 %v11469_v6, %v12804_v43 }
 0x348   :  { %v6262_v18 = vrot.slane %v6261_v2, 1  ;;  %v4057_v10 = vadd.f32 %v12805_v24, %v11281_v45  ;;  %v5830_v53 = vmax.f32 %v5499_v34, %v5500_v16  ;;  %v5822_v19 = vmax.f32 %v5820_v8, %v5821_v27 }
 0x349   :  { %v4979_v23 = vadd.f32 %v11469_v6, %v4036_v7  ;;  %v5814_v28 = vrot.slane %v5813_v46, 1  ;;  %v6279_v47 = vrot.slane %v6278_v26, 4  ;;  %v5370_v25 = vadd.f32 %v11450_v62, %v5107_v59  ;;  %v11509_v57 = vpop.f32.mrb[56].mxu0 }
 0x34a   :  { %v6263_v54 = vmax.f32 %v6261_v2, %v6262_v18  ;;  %v4984_v4 = vadd.f32 %v11469_v6, %v4057_v10  ;;  %v11513_v7 = vpop.f32.mrb[56].mxu1  ;;  %v11515_v33 = vpop.f32.mrb[57].mxu0  ;;  %v5831_v49 = vrot.slane %v5830_v53, 4  ;;  %v5497_v27 = vmax.f32 %v5241_v13, 0.0 }
 0x34b   :  { %v5242_v43 = vadd.f32 %v11450_v62, %v4979_v23  ;;  %v5815_v45 = vmax.f32 %v5813_v46, %v5814_v28  ;;  %v6280_v30 = vmax.f32 %v6278_v26, %v6279_v47  ;;  %v5626_v24 = vmax.f32 %v5370_v25, 0.0  ;;  %v11517_v34 = vpop.f32.mrb[57].mxu1  ;;  %v11519_v16 = vpop.f32.mrb[58].mxu0 }
 0x34c   :  { %12806 = vst [vmem:[#allocation103_spill] sm:$0xff] %v11519_v16  ;;  %v6822_v8 = vsel %vm6755_vm5, %v6263_v54, %v11461_v37  ;;  %v5375_v2 = vadd.f32 %v11450_v62, %v5112_v20  ;;  %v11524_v18 = vpop.f32.mrb[58].mxu1  ;;  %v11526_v23 = vpop.f32.mrb[59].mxu0  ;;  %v5832_v26 = vmax.f32 %v5830_v53, %v5831_v49  ;;  %v5247_v13 = vadd.f32 %v11450_v62, %v4984_v4  ;;  %v12810_v53 = vld [vmem:[#allocation9_spill] sm:$0xff] }
 0x34d   :  { %v5498_v59 = vmax.f32 %v5242_v43, 0.0  ;;  %12807 = vst [vmem:[#allocation6_spill] sm:$0xff] %v11524_v18  ;;  %12808 = vst [vmem:[#allocation104_spill] sm:$0xff] %v11526_v23  ;;  %v6766_v46 = vsel %vm6755_vm5, %v5815_v45, %v11458_v14  ;;  %v6281_v10 = vrot.slane %v6280_v30, 2  ;;  %v6271_v28 = vmax.f32 %v5625_v9, %v5626_v24  ;;  %v11530_v47 = vpop.f32.mrb[59].mxu1  ;;  %v12809_v23 = vld [vmem:[#allocation8_spill] sm:$0xff] }
 0x34e   :  { %v11533_v16 = vsel %vm6757_vm6, %v5822_v19, %v6766_v46  ;;  %v6823_v37 = vsel %vm6757_vm6, %v6270_v35, %v6822_v8  ;;  %v5833_v20 = vrot.slane %v5832_v26, 2  ;;  %v4049_v18 = vadd.f32 %v12809_v23, %v11287_v12 }
 0x34f   :  { %v5823_v25 = vmax.f32 %v5497_v27, %v5498_v59  ;;  %v6282_v54 = vmax.f32 %v6280_v30, %v6281_v10  ;;  %v6272_v43 = vrot.slane %v6271_v28, 4  ;;  %v5110_v9 = vadd.f32 %v11469_v6, %v11293_v22 }
 0x350   :  { %v4060_v45 = vadd.f32 %v12810_v53, %v11295_v31  ;;  %v5113_v19 = vadd.f32 %v11469_v6, %v11300_v17  ;;  %v5834_v49 = vmax.f32 %v5832_v26, %v5833_v20  ;;  %v4982_v4 = vadd.f32 %v11469_v6, %v4049_v18 }
 0x351   :  { %v5824_v14 = vrot.slane %v5823_v25, 4  ;;  %v6283_v35 = vrot.slane %v6282_v54, 1  ;;  %v6273_v24 = vmax.f32 %v6271_v28, %v6272_v43  ;;  %v11546_v30 = vpop.f32.mrb[60].mxu0  ;;  %v5373_v12 = vadd.f32 %v11450_v62, %v5110_v9 }
 0x352   :  { %v4985_v27 = vadd.f32 %v11469_v6, %v4060_v45  ;;  %v5376_v22 = vadd.f32 %v11450_v62, %v5113_v19  ;;  %v11551_v59 = vpop.f32.mrb[60].mxu1  ;;  %v11553_v31 = vpop.f32.mrb[61].mxu0  ;;  %v5835_v23 = vrot.slane %v5834_v49, 1  ;;  %v5503_v46 = vmax.f32 %v5247_v13, 0.0  ;;  %v12815_v13 = vld [vmem:[#allocation10_spill] sm:$0xff] }
 0x353   :  { %v5825_v8 = vmax.f32 %v5823_v25, %v5824_v14  ;;  %12811 = vst [vmem:[#allocation7_spill] sm:$0xff] %v11553_v31  ;;  %v6274_v17 = vrot.slane %v6273_v24, 2  ;;  %v5631_v26 = vmax.f32 %v5375_v2, 0.0  ;;  %v11555_v10 = vpop.f32.mrb[61].mxu1  ;;  %v11557_v18 = vpop.f32.mrb[62].mxu0  ;;  %v6284_v28 = vmax.f32 %v6282_v54, %v6283_v35 }
 0x354   :  { %12812 = vst [vmem:[#allocation8_spill] sm:$0xff] %v11555_v10  ;;  %12813 = vst [vmem:[#allocation9_spill] sm:$0xff] %v11557_v18  ;;  %v5248_v20 = vadd.f32 %v11450_v62, %v4985_v27  ;;  %v5632_v43 = vmax.f32 %v5376_v22, 0.0  ;;  %v11560_v14 = vpop.f32.mrb[62].mxu1  ;;  %v11562_v9 = vpop.f32.mrb[63].mxu0  ;;  %v5245_v45 = vadd.f32 %v11450_v62, %v4982_v4  ;;  %v5629_v19 = vmax.f32 %v5373_v12, 0.0 }
 0x355   :  { %v5826_v25 = vrot.slane %v5825_v8, 2  ;;  %12814 = vst [vmem:[#allocation117_spill] sm:$0xff] %v11562_v9  ;;  %v6275_v53 = vmax.f32 %v6273_v24, %v6274_v17  ;;  %v4052_v2 = vadd.f32 %v12815_v13, %v11302_v29  ;;  %v11567_v31 = vpop.f32.mrb[63].mxu1  ;;  %v5111_v35 = vadd.f32 %v11469_v6, %v11306_v11  ;;  %v12817_v9 = vld [vmem:[#allocation11_spill] sm:$0xff] }
 0x356   :  { %12816 = vst [vmem:[#allocation10_spill] sm:$0xff] %v11567_v31  ;;  %v5504_v18 = vmax.f32 %v5248_v20, 0.0  ;;  %v6292_v54 = vmax.f32 %v5631_v26, %v5632_v43  ;;  %v4073_v24 = vadd.f32 %v12817_v9, %v11325_v1  ;;  %v5116_v4 = vadd.f32 %v11469_v6, %v11329_v63 }
 0x357   :  { %v5827_v10 = vmax.f32 %v5825_v8, %v5826_v25  ;;  %v6276_v27 = vrot.slane %v6275_v53, 1  ;;  %v4983_v22 = vadd.f32 %v11469_v6, %v4052_v2  ;;  %v5374_v13 = vadd.f32 %v11450_v62, %v5111_v35 }
 0x358   :  { %v5844_v17 = vmax.f32 %v5503_v46, %v5504_v18  ;;  %v6293_v29 = vrot.slane %v6292_v54, 4  ;;  %v5836_v8 = vmax.f32 %v5834_v49, %v5835_v23  ;;  %v4988_v11 = vadd.f32 %v11469_v6, %v4073_v24 }
 0x359   :  { %v5828_v12 = vrot.slane %v5827_v10, 1  ;;  %v6277_v25 = vmax.f32 %v6275_v53, %v6276_v27  ;;  %v5246_v26 = vadd.f32 %v11450_v62, %v4983_v22  ;;  %v11579_v20 = vpop.f32.mrb[64].mxu0  ;;  %v5630_v1 = vmax.f32 %v5374_v13, 0.0 }
 0x35a   :  { %v5845_v2 = vrot.slane %v5844_v17, 4  ;;  %v6294_v31 = vmax.f32 %v6292_v54, %v6293_v29  ;;  %v11581_v9 = vpop.f32.mrb[64].mxu1  ;;  %v11583_v63 = vpop.f32.mrb[65].mxu0  ;;  %v5501_v18 = vmax.f32 %v5245_v45, 0.0  ;;  %v5379_v49 = vadd.f32 %v11450_v62, %v5116_v4 }
 0x35b   :  { %v5829_v43 = vmax.f32 %v5827_v10, %v5828_v12  ;;  %v6824_v46 = vsel %vm6759_vm7, %v6277_v25, %v6823_v37  ;;  %v5502_v35 = vmax.f32 %v5246_v26, 0.0  ;;  %v11587_v23 = vpop.f32.mrb[65].mxu1  ;;  %v11589_v53 = vpop.f32.mrb[66].mxu0  ;;  %v6285_v4 = vmax.f32 %v5629_v19, %v5630_v1  ;;  %v12819_v19 = vld [vmem:[#allocation13_spill] sm:$0xff] }
 0x35c   :  { %v6825_v54 = vsel %vm6761_vm8, %v6284_v28, %v6824_v46  ;;  %v5846_v27 = vmax.f32 %v5844_v17, %v5845_v2  ;;  %v6295_v22 = vrot.slane %v6294_v31, 2  ;;  %v11594_v24 = vpop.f32.mrb[66].mxu1  ;;  %v11596_v12 = vpop.f32.mrb[67].mxu0  ;;  %v5251_v29 = vadd.f32 %v11450_v62, %v4988_v11  ;;  %v12818_v17 = vld [vmem:[#allocation12_spill] sm:$0xff] }
 0x35d   :  { %v6768_v10 = vsel %vm6759_vm7, %v5829_v43, %v11533_v16  ;;  %6893 = vst [vmem:[%s12678_s7 + $0x48] sm:$0xff] %v6825_v54  ;;  %v5837_v45 = vmax.f32 %v5501_v18, %v5502_v35  ;;  %v11603_v13 = vpop.f32.mrb[67].mxu1  ;;  %v4065_v25 = vadd.f32 %v12818_v17, %v11331_v0  ;;  %v6286_v43 = vrot.slane %v6285_v4, 4 }
 0x35e   :  { %v6769_v37 = vsel %vm6761_vm8, %v5836_v8, %v6768_v10  ;;  %v5847_v16 = vrot.slane %v5846_v27, 2  ;;  %v6296_v28 = vmax.f32 %v6294_v31, %v6295_v22  ;;  %v5114_v8 = vadd.f32 %v11469_v6, %v11336_v52 }
 0x35f   :  { %6885 = vst [vmem:[%s12678_s7 + $0x8] sm:$0xff] %v6769_v37  ;;  %v5838_v26 = vrot.slane %v5837_v45, 4  ;;  %v4076_v2 = vadd.f32 %v12819_v19, %v11338_v50  ;;  %v5117_v11 = vadd.f32 %v11469_v6, %v11342_v40  ;;  %v5635_v18 = vmax.f32 %v5379_v49, 0.0 }
 0x360   :  { %v5848_v1 = vmax.f32 %v5846_v27, %v5847_v16  ;;  %v6297_v46 = vrot.slane %v6296_v28, 1  ;;  %v4986_v35 = vadd.f32 %v11469_v6, %v4065_v25  ;;  %v6287_v10 = vmax.f32 %v6285_v4, %v6286_v43 }
 0x361   :  { %v5839_v31 = vmax.f32 %v5837_v45, %v5838_v26  ;;  %v4989_v0 = vadd.f32 %v11469_v6, %v4076_v2  ;;  %v5380_v54 = vadd.f32 %v11450_v62, %v5117_v11  ;;  %v11619_v52 = vpop.f32.mrb[68].mxu0  ;;  %v5507_v17 = vmax.f32 %v5251_v29, 0.0  ;;  %v12824_v29 = vld [vmem:[#allocation14_spill] sm:$0xff] }
 0x362   :  { %v5849_v22 = vrot.slane %v5848_v1, 1  ;;  %v6298_v37 = vmax.f32 %v6296_v28, %v6297_v46  ;;  %v5377_v50 = vadd.f32 %v11450_v62, %v5114_v8  ;;  %v11622_v19 = vpop.f32.mrb[68].mxu1  ;;  %v11624_v40 = vpop.f32.mrb[69].mxu0  ;;  %v6288_v27 = vrot.slane %v6287_v10, 2 }
 0x363   :  { %12820 = vst [vmem:[#allocation11_spill] sm:$0xff] %v11622_v19  ;;  %12821 = vst [vmem:[#allocation12_spill] sm:$0xff] %v11624_v40  ;;  %v5840_v49 = vrot.slane %v5839_v31, 2  ;;  %v5252_v45 = vadd.f32 %v11450_v62, %v4989_v0  ;;  %v5636_v4 = vmax.f32 %v5380_v54, 0.0  ;;  %v11627_v16 = vpop.f32.mrb[69].mxu1  ;;  %v11629_v25 = vpop.f32.mrb[70].mxu0  ;;  %v5249_v43 = vadd.f32 %v11450_v62, %v4986_v35 }
 0x364   :  { %12822 = vst [vmem:[#allocation13_spill] sm:$0xff] %v11627_v16  ;;  %12823 = vst [vmem:[#allocation118_spill] sm:$0xff] %v11629_v25  ;;  %v5850_v26 = vmax.f32 %v5848_v1, %v5849_v22  ;;  %v4068_v28 = vadd.f32 %v12824_v29, %v11344_v5  ;;  %v5115_v8 = vadd.f32 %v11469_v6, %v11347_v15  ;;  %v11636_v2 = vpop.f32.mrb[70].mxu1  ;;  %v11638_v11 = vpop.f32.mrb[71].mxu0  ;;  %v12828_v22 = vld [vmem:[#allocation15_spill] sm:$0xff] }
 0x365   :  { %12825 = vst [vmem:[#allocation14_spill] sm:$0xff] %v11636_v2  ;;  %12826 = vst [vmem:[#allocation119_spill] sm:$0xff] %v11638_v11  ;;  %v5841_v46 = vmax.f32 %v5839_v31, %v5840_v49  ;;  %v6289_v0 = vmax.f32 %v6287_v10, %v6288_v27  ;;  %v5508_v54 = vmax.f32 %v5252_v45, 0.0  ;;  %v6306_v40 = vmax.f32 %v5635_v18, %v5636_v4  ;;  %v11640_v16 = vpop.f32.mrb[71].mxu1 }
 0x366   :  { %12827 = vst [vmem:[#allocation120_spill] sm:$0xff] %v11640_v16  ;;  %v4987_v1 = vadd.f32 %v11469_v6, %v4068_v28  ;;  %v5378_v35 = vadd.f32 %v11450_v62, %v5115_v8  ;;  %v4089_v5 = vadd.f32 %v12828_v22, %v11357_v3  ;;  %v5120_v15 = vadd.f32 %v11469_v6, %v11362_v38 }
 0x367   :  { %v5842_v29 = vrot.slane %v5841_v46, 1  ;;  %v6290_v2 = vrot.slane %v6289_v0, 1  ;;  %v5858_v25 = vmax.f32 %v5507_v17, %v5508_v54  ;;  %v6307_v11 = vrot.slane %v6306_v40, 4 }
 0x368   :  { %v5633_v31 = vmax.f32 %v5377_v50, 0.0  ;;  %v5250_v10 = vadd.f32 %v11450_v62, %v4987_v1  ;;  %v5634_v18 = vmax.f32 %v5378_v35, 0.0  ;;  %v4992_v49 = vadd.f32 %v11469_v6, %v4089_v5  ;;  %v12833_v35 = vld [vmem:[#allocation105_spill] sm:$0xff]  ;;  %v12834_v5 = vld [vmem:[#allocation16_spill] sm:$0xff] }
 0x369   :  { %v5843_v27 = vmax.f32 %v5841_v46, %v5842_v29  ;;  %v6291_v45 = vmax.f32 %v6289_v0, %v6290_v2  ;;  %v5859_v4 = vrot.slane %v5858_v25, 4  ;;  %v6308_v28 = vmax.f32 %v6306_v40, %v6307_v11  ;;  %v11650_v8 = vpop.f32.mrb[72].mxu0 }
 0x36a   :  { %v5505_v3 = vmax.f32 %v5249_v43, 0.0  ;;  %v5506_v22 = vmax.f32 %v5250_v10, 0.0  ;;  %v6299_v16 = vmax.f32 %v5633_v31, %v5634_v18  ;;  %v5383_v38 = vadd.f32 %v11450_v62, %v5120_v15  ;;  %v11653_v19 = vpop.f32.mrb[72].mxu1  ;;  %v11655_v17 = vpop.f32.mrb[73].mxu0  ;;  %v12837_v10 = vld [vmem:[#allocation106_spill] sm:$0xff]  ;;  %v12838_v18 = vld [vmem:[#allocation107_spill] sm:$0xff] }
 0x36b   :  { %12829 = vst [vmem:[#allocation15_spill] sm:$0xff] %v11653_v19  ;;  %12830 = vst [vmem:[#allocation121_spill] sm:$0xff] %v11655_v17  ;;  %v11658_v50 = vsel %vm6749_vm2, %v5850_v26, %v5843_v27  ;;  %v11661_v54 = vsel %vm6749_vm2, %v6298_v37, %v6291_v45  ;;  %v5860_v2 = vmax.f32 %v5858_v25, %v5859_v4  ;;  %v6309_v46 = vrot.slane %v6308_v28, 2  ;;  %v11663_v40 = vpop.f32.mrb[73].mxu1  ;;  %v11665_v11 = vpop.f32.mrb[74].mxu0  ;;  %v12839_v27 = vld [vmem:[#allocation17_spill] sm:$0xff] }
 0x36c   :  { %12831 = vst [vmem:[#allocation122_spill] sm:$0xff] %v11663_v40  ;;  %12832 = vst [vmem:[#allocation123_spill] sm:$0xff] %v11665_v11  ;;  %v5851_v43 = vmax.f32 %v5505_v3, %v5506_v22  ;;  %v6300_v0 = vrot.slane %v6299_v16, 4  ;;  %v5255_v1 = vadd.f32 %v11450_v62, %v4992_v49  ;;  %v4081_v15 = vadd.f32 %v12834_v5, %v12833_v35  ;;  %v11670_v29 = vpop.f32.mrb[74].mxu1  ;;  %v11672_v26 = vpop.f32.mrb[75].mxu0  ;;  %v12841_v11 = vld [vmem:[#allocation108_spill] sm:$0xff] }
 0x36d   :  { %12835 = vst [vmem:[#allocation105_spill] sm:$0xff] %v11670_v29  ;;  %12836 = vst [vmem:[#allocation16_spill] sm:$0xff] %v11672_v26  ;;  %v5861_v31 = vrot.slane %v5860_v2, 2  ;;  %v6310_v37 = vmax.f32 %v6308_v28, %v6309_v46  ;;  %v5118_v25 = vadd.f32 %v11469_v6, %v12837_v10  ;;  %v4092_v45 = vadd.f32 %v12839_v27, %v12838_v18  ;;  %v11678_v4 = vpop.f32.mrb[75].mxu1 }
 0x36e   :  { %12840 = vst [vmem:[#allocation106_spill] sm:$0xff] %v11678_v4  ;;  %v5852_v3 = vrot.slane %v5851_v43, 4  ;;  %v6301_v22 = vmax.f32 %v6299_v16, %v6300_v0  ;;  %v4990_v49 = vadd.f32 %v11469_v6, %v4081_v15  ;;  %v5121_v35 = vadd.f32 %v11469_v6, %v12841_v11 }
 0x36f   :  { %v5862_v5 = vmax.f32 %v5860_v2, %v5861_v31  ;;  %v6311_v29 = vrot.slane %v6310_v37, 1  ;;  %v5381_v26 = vadd.f32 %v11450_v62, %v5118_v25  ;;  %v4993_v28 = vadd.f32 %v11469_v6, %v4092_v45 }
 0x370   :  { %v5853_v46 = vmax.f32 %v5851_v43, %v5852_v3  ;;  %v6302_v10 = vrot.slane %v6301_v22, 2  ;;  %v5639_v40 = vmax.f32 %v5383_v38, 0.0  ;;  %v5384_v18 = vadd.f32 %v11450_v62, %v5121_v35  ;;  %v12844_v3 = vld [vmem:[#allocation18_spill] sm:$0xff] }
 0x371   :  { %v5863_v27 = vrot.slane %v5862_v5, 1  ;;  %v5511_v4 = vmax.f32 %v5255_v1, 0.0  ;;  %v5253_v16 = vadd.f32 %v11450_v62, %v4990_v49  ;;  %v5256_v0 = vadd.f32 %v11450_v62, %v4993_v28  ;;  %v11688_v15 = vpop.f32.mrb[76].mxu0  ;;  %v12845_v1 = vld [vmem:[#allocation109_spill] sm:$0xff] }
 0x372   :  { %v6312_v11 = vmax.f32 %v6310_v37, %v6311_v29  ;;  %v5854_v2 = vrot.slane %v5853_v46, 2  ;;  %v6303_v31 = vmax.f32 %v6301_v22, %v6302_v10  ;;  %v5640_v17 = vmax.f32 %v5384_v18, 0.0  ;;  %v11690_v25 = vpop.f32.mrb[76].mxu1  ;;  %v11692_v45 = vpop.f32.mrb[77].mxu0  ;;  %v12848_v10 = vld [vmem:[#allocation19_spill] sm:$0xff] }
 0x373   :  { %12842 = vst [vmem:[#allocation107_spill] sm:$0xff] %v11690_v25  ;;  %12843 = vst [vmem:[#allocation17_spill] sm:$0xff] %v11692_v45  ;;  %v5637_v43 = vmax.f32 %v5381_v26, 0.0  ;;  %v5512_v38 = vmax.f32 %v5256_v0, 0.0  ;;  %v4084_v35 = vadd.f32 %v12844_v3, %v11377_v32  ;;  %v5119_v49 = vadd.f32 %v11469_v6, %v12845_v1  ;;  %v11698_v19 = vpop.f32.mrb[77].mxu1  ;;  %v11700_v28 = vpop.f32.mrb[78].mxu0 }
 0x374   :  { %12846 = vst [vmem:[#allocation108_spill] sm:$0xff] %v11698_v19  ;;  %12847 = vst [vmem:[#allocation18_spill] sm:$0xff] %v11700_v28  ;;  %v5855_v29 = vmax.f32 %v5853_v46, %v5854_v2  ;;  %v6304_v37 = vrot.slane %v6303_v31, 1  ;;  %v6320_v22 = vmax.f32 %v5639_v40, %v5640_v17  ;;  %v4105_v18 = vadd.f32 %v12848_v10, %v11393_v60  ;;  %v11704_v25 = vpop.f32.mrb[78].mxu1  ;;  %v11706_v26 = vpop.f32.mrb[79].mxu0 }
 0x375   :  { %12849 = vst [vmem:[#allocation109_spill] sm:$0xff] %v11704_v25  ;;  %12850 = vst [vmem:[#allocation19_spill] sm:$0xff] %v11706_v26  ;;  %v5872_v0 = vmax.f32 %v5511_v4, %v5512_v38  ;;  %v4991_v32 = vadd.f32 %v11469_v6, %v4084_v35  ;;  %v5382_v3 = vadd.f32 %v11450_v62, %v5119_v49  ;;  %v5509_v40 = vmax.f32 %v5253_v16, 0.0  ;;  %v11716_v35 = vpop.f32.mrb[79].mxu1 }
 0x376   :  { %v5124_v1 = vadd.f32 %v11469_v6, %v11399_v44  ;;  %v5856_v19 = vrot.slane %v5855_v29, 1  ;;  %v6305_v28 = vmax.f32 %v6303_v31, %v6304_v37  ;;  %v6321_v46 = vrot.slane %v6320_v22, 4 }
 0x377   :  { %v4996_v17 = vadd.f32 %v11469_v6, %v4105_v18  ;;  %v5873_v2 = vrot.slane %v5872_v0, 4  ;;  %v5254_v60 = vadd.f32 %v11450_v62, %v4991_v32  ;;  %v5638_v10 = vmax.f32 %v5382_v3, 0.0 }
 0x378   :  { %v5864_v25 = vmax.f32 %v5862_v5, %v5863_v27  ;;  %v5857_v26 = vmax.f32 %v5855_v29, %v5856_v19  ;;  %v6827_v4 = vsel %vm6751_vm3, %v6305_v28, %v11661_v54  ;;  %v6322_v38 = vmax.f32 %v6320_v22, %v6321_v46  ;;  %v12851_v22 = vld [vmem:[#allocation20_spill] sm:$0xff] }
 0x379   :  { %v5874_v49 = vmax.f32 %v5872_v0, %v5873_v2  ;;  %v5510_v44 = vmax.f32 %v5254_v60, 0.0  ;;  %v6313_v45 = vmax.f32 %v5637_v43, %v5638_v10  ;;  %v6828_v31 = vsel %vm6753_vm4, %v6312_v11, %v6827_v4  ;;  %v12852_v0 = vld [vmem:[#allocation110_spill] sm:$0xff] }
 0x37a   :  { %v6771_v16 = vsel %vm6751_vm3, %v5857_v26, %v11658_v50  ;;  %v6323_v37 = vrot.slane %v6322_v38, 2  ;;  %v5259_v18 = vadd.f32 %v11450_v62, %v4996_v17  ;;  %v5387_v5 = vadd.f32 %v11450_v62, %v5124_v1  ;;  %v12853_v50 = vld [vmem:[#allocation21_spill] sm:$0xff]  ;;  %v12854_v1 = vld [vmem:[#allocation111_spill] sm:$0xff] }
 0x37b   :  { %v5875_v19 = vrot.slane %v5874_v49, 2  ;;  %v5865_v27 = vmax.f32 %v5509_v40, %v5510_v44  ;;  %v11724_v54 = vsel %vm6753_vm4, %v5864_v25, %v6771_v16  ;;  %v6314_v28 = vrot.slane %v6313_v45, 4  ;;  %v11734_v40 = vpop.f32.mrb[80].mxu0  ;;  %v11736_v25 = vpop.f32.mrb[80].mxu1 }
 0x37c   :  { %v6324_v29 = vmax.f32 %v6322_v38, %v6323_v37  ;;  %v4097_v43 = vadd.f32 %v12851_v22, %v11401_v55  ;;  %v5122_v11 = vadd.f32 %v11469_v6, %v11405_v42  ;;  %v4108_v26 = vadd.f32 %v12853_v50, %v12852_v0  ;;  %v11741_v10 = vpop.f32.mrb[81].mxu0 }
 0x37d   :  { %v5876_v32 = vmax.f32 %v5874_v49, %v5875_v19  ;;  %v5866_v3 = vrot.slane %v5865_v27, 4  ;;  %v6315_v46 = vmax.f32 %v6313_v45, %v6314_v28  ;;  %v5125_v17 = vadd.f32 %v11469_v6, %v12854_v1  ;;  %12855 = vst [vmem:[#allocation20_spill] sm:$0xff] %v11741_v10  ;;  %v12856_v1 = vld [vmem:[#allocation112_spill] sm:$0xff]  ;;  %v11752_v10 = vpop.f32.mrb[82].mxu0 }
 0x37e   :  { %v6325_v2 = vrot.slane %v6324_v29, 1  ;;  %v4994_v60 = vadd.f32 %v11469_v6, %v4097_v43  ;;  %v5385_v55 = vadd.f32 %v11450_v62, %v5122_v11  ;;  %v4997_v42 = vadd.f32 %v11469_v6, %v4108_v26  ;;  %v11746_v11 = vpop.f32.mrb[81].mxu1  ;;  %12859 = vst [vmem:[#allocation110_spill] sm:$0xff] %v11752_v10 }
 0x37f   :  { %v5867_v4 = vmax.f32 %v5865_v27, %v5866_v3  ;;  %v6316_v38 = vrot.slane %v6315_v46, 2  ;;  %v5515_v49 = vmax.f32 %v5259_v18, 0.0  ;;  %v5388_v45 = vadd.f32 %v11450_v62, %v5125_v17  ;;  %v12857_v27 = vld [vmem:[#allocation22_spill] sm:$0xff]  ;;  %v12858_v18 = vld [vmem:[#allocation113_spill] sm:$0xff] }
 0x380   :  { %v5877_v44 = vrot.slane %v5876_v32, 1  ;;  %v6326_v16 = vmax.f32 %v6324_v29, %v6325_v2  ;;  %v5643_v37 = vmax.f32 %v5387_v5, 0.0  ;;  %v5260_v19 = vadd.f32 %v11450_v62, %v4997_v42  ;;  %v11754_v5 = vpop.f32.mrb[82].mxu1 }
 0x381   :  { %v5868_v28 = vrot.slane %v5867_v4, 2  ;;  %v6317_v22 = vmax.f32 %v6315_v46, %v6316_v38  ;;  %v5257_v43 = vadd.f32 %v11450_v62, %v4994_v60  ;;  %v5644_v0 = vmax.f32 %v5388_v45, 0.0  ;;  %12860 = vst [vmem:[#allocation21_spill] sm:$0xff] %v11754_v5  ;;  %v12861_v60 = vld [vmem:[#allocation23_spill] sm:$0xff]  ;;  %v11758_v38 = vpop.f32.mrb[83].mxu0 }
 0x382   :  { %v5641_v50 = vmax.f32 %v5385_v55, 0.0  ;;  %v5516_v26 = vmax.f32 %v5260_v19, 0.0  ;;  %v4100_v3 = vadd.f32 %v12857_v27, %v12856_v1  ;;  %v5123_v17 = vadd.f32 %v11469_v6, %v12858_v18  ;;  %12862 = vst [vmem:[#allocation111_spill] sm:$0xff] %v11758_v38  ;;  %v11767_v38 = vpop.f32.mrb[83].mxu1 }
 0x383   :  { %v5869_v29 = vmax.f32 %v5867_v4, %v5868_v28  ;;  %v6318_v2 = vrot.slane %v6317_v22, 1  ;;  %v6334_v46 = vmax.f32 %v5643_v37, %v5644_v0  ;;  %v4121_v42 = vadd.f32 %v12861_v60, %v11428_v41 }
 0x384   :  { %v5886_v55 = vmax.f32 %v5515_v49, %v5516_v26  ;;  %v4995_v45 = vadd.f32 %v11469_v6, %v4100_v3  ;;  %v5386_v19 = vadd.f32 %v11450_v62, %v5123_v17  ;;  %v5128_v1 = vadd.f32 %v11469_v6, %v11431_v56 }
 0x385   :  { %v5870_v27 = vrot.slane %v5869_v29, 1  ;;  %v6319_v18 = vmax.f32 %v6317_v22, %v6318_v2  ;;  %v6335_v10 = vrot.slane %v6334_v46, 4  ;;  %v5000_v4 = vadd.f32 %v11469_v6, %v4121_v42 }
 0x386   :  { %v5878_v28 = vmax.f32 %v5876_v32, %v5877_v44  ;;  %v5887_v37 = vrot.slane %v5886_v55, 4  ;;  %v5258_v0 = vadd.f32 %v11450_v62, %v4995_v45  ;;  %v5642_v41 = vmax.f32 %v5386_v19, 0.0 }
 0x387   :  { %v5871_v60 = vmax.f32 %v5869_v29, %v5870_v27  ;;  %v6829_v49 = vsel %vm6755_vm5, %v6319_v18, %v6828_v31  ;;  %v5513_v26 = vmax.f32 %v5257_v43, 0.0  ;;  %v6336_v3 = vmax.f32 %v6334_v46, %v6335_v10  ;;  %v12863_v46 = vld [vmem:[#allocation24_spill] sm:$0xff] }
 0x388   :  { %v5888_v17 = vmax.f32 %v5886_v55, %v5887_v37  ;;  %v5514_v5 = vmax.f32 %v5258_v0, 0.0  ;;  %v6327_v56 = vmax.f32 %v5641_v50, %v5642_v41  ;;  %v6830_v22 = vsel %vm6757_vm6, %v6326_v16, %v6829_v49 }
 0x389   :  { %v6773_v2 = vsel %vm6755_vm5, %v5871_v60, %v11724_v54  ;;  %v6337_v32 = vrot.slane %v6336_v3, 2  ;;  %v5263_v44 = vadd.f32 %v11450_v62, %v5000_v4  ;;  %v5391_v42 = vadd.f32 %v11450_v62, %v5128_v1  ;;  %v12864_v54 = vld [vmem:[#allocation25_spill] sm:$0xff]  ;;  %v11785_v1 = vpop.f32.mrb[84].mxu0  ;;  %v11787_v4 = vpop.f32.mrb[84].mxu1 }
 0x38a   :  { %v5889_v29 = vrot.slane %v5888_v17, 2  ;;  %v5879_v45 = vmax.f32 %v5513_v26, %v5514_v5  ;;  %v11775_v31 = vsel %vm6757_vm6, %v5878_v28, %v6773_v2  ;;  %v6328_v10 = vrot.slane %v6327_v56, 4  ;;  %v11792_v0 = vpop.f32.mrb[85].mxu0 }
 0x38b   :  { %v6338_v43 = vmax.f32 %v6336_v3, %v6337_v32  ;;  %v4113_v50 = vadd.f32 %v12863_v46, %v11433_v39  ;;  %v5126_v16 = vadd.f32 %v11469_v6, %v11437_v51  ;;  %v4124_v55 = vadd.f32 %v12864_v54, %v11439_v58  ;;  %v11803_v54 = vpop.f32.mrb[86].mxu0 }
 0x38c   :  { %v5890_v19 = vmax.f32 %v5888_v17, %v5889_v29  ;;  %v5880_v27 = vrot.slane %v5879_v45, 4  ;;  %v6329_v18 = vmax.f32 %v6327_v56, %v6328_v10  ;;  %v5129_v5 = vadd.f32 %v11469_v6, %v11441_v48  ;;  %v11797_v10 = vpop.f32.mrb[85].mxu1 }
 0x38d   :  { %v6339_v28 = vrot.slane %v6338_v43, 1  ;;  %v4998_v37 = vadd.f32 %v11469_v6, %v4113_v50  ;;  %v5389_v39 = vadd.f32 %v11450_v62, %v5126_v16  ;;  %v5001_v51 = vadd.f32 %v11469_v6, %v4124_v55 }
 0x38e   :  { %v5881_v58 = vmax.f32 %v5879_v45, %v5880_v27  ;;  %v6330_v41 = vrot.slane %v6329_v18, 2  ;;  %v5519_v60 = vmax.f32 %v5263_v44, 0.0  ;;  %v5392_v49 = vadd.f32 %v11450_v62, %v5129_v5  ;;  %v12865_v45 = vld [vmem:[#allocation26_spill] sm:$0xff]  ;;  %v12868_v5 = vld [vmem:[#allocation27_spill] sm:$0xff] }
 0x38f   :  { %v5891_v26 = vrot.slane %v5890_v19, 1  ;;  %v6340_v48 = vmax.f32 %v6338_v43, %v6339_v28  ;;  %v5647_v3 = vmax.f32 %v5391_v42, 0.0  ;;  %v5264_v17 = vadd.f32 %v11450_v62, %v5001_v51  ;;  %v11805_v42 = vpop.f32.mrb[86].mxu1 }
 0x390   :  { %v5882_v56 = vrot.slane %v5881_v58, 2  ;;  %v6331_v2 = vmax.f32 %v6329_v18, %v6330_v41  ;;  %v5261_v32 = vadd.f32 %v11450_v62, %v4998_v37  ;;  %v5648_v29 = vmax.f32 %v5392_v49, 0.0  ;;  %12866 = vst [vmem:[#allocation112_spill] sm:$0xff] %v11805_v42  ;;  %v12867_v18 = vld [vmem:[#allocation2_spill] sm:$0xff]  ;;  %v11809_v37 = vpop.f32.mrb[87].mxu0  ;;  %v12870_v41 = vld [vmem:[#allocation3_spill] sm:$0xff] }
 0x391   :  { %v5645_v46 = vmax.f32 %v5389_v39, 0.0  ;;  %v5520_v50 = vmax.f32 %v5264_v17, 0.0  ;;  %v4116_v16 = vadd.f32 %v12865_v45, %v11443_v21  ;;  %v5127_v44 = vadd.f32 %v11469_v6, %v11453_v61  ;;  %12869 = vst [vmem:[#allocation22_spill] sm:$0xff] %v11809_v37  ;;  %v11818_v37 = vpop.f32.mrb[87].mxu1 }
 0x392   :  { %v5883_v43 = vmax.f32 %v5881_v58, %v5882_v56  ;;  %v6332_v55 = vrot.slane %v6331_v2, 1  ;;  %v6348_v27 = vmax.f32 %v5647_v3, %v5648_v29  ;;  %v4137_v28 = vadd.f32 %v12868_v5, %v12867_v18 }
 0x393   :  { %v5900_v39 = vmax.f32 %v5519_v60, %v5520_v50  ;;  %v4999_v51 = vadd.f32 %v11469_v6, %v4116_v16  ;;  %v5390_v21 = vadd.f32 %v11450_v62, %v5127_v44  ;;  %v5132_v61 = vadd.f32 %v11469_v6, %v12870_v41 }
 0x394   :  { %v5884_v49 = vrot.slane %v5883_v43, 1  ;;  %v6333_v17 = vmax.f32 %v6331_v2, %v6332_v55  ;;  %v6349_v45 = vrot.slane %v6348_v27, 4  ;;  %v5004_v58 = vadd.f32 %v11469_v6, %v4137_v28  ;;  %v12872_v28 = vld [vmem:[#allocation28_spill] sm:$0xff] }
 0x395   :  { %v5892_v56 = vmax.f32 %v5890_v19, %v5891_v26  ;;  %v5901_v3 = vrot.slane %v5900_v39, 4  ;;  %v5262_v29 = vadd.f32 %v11450_v62, %v4999_v51  ;;  %v5646_v18 = vmax.f32 %v5390_v21, 0.0  ;;  %v12873_v51 = vld [vmem:[#allocation5_spill] sm:$0xff] }
 0x396   :  { %v5885_v5 = vmax.f32 %v5883_v43, %v5884_v49  ;;  %v6831_v60 = vsel %vm6759_vm7, %v6333_v17, %v6830_v22  ;;  %v5517_v50 = vmax.f32 %v5261_v32, 0.0  ;;  %v6350_v16 = vmax.f32 %v6348_v27, %v6349_v45  ;;  %v12874_v49 = vld [vmem:[#allocation114_spill] sm:$0xff]  ;;  %v12875_v17 = vld [vmem:[#allocation29_spill] sm:$0xff] }
 0x397   :  { %v6832_v44 = vsel %vm6761_vm8, %v6340_v48, %v6831_v60  ;;  %v5902_v41 = vmax.f32 %v5900_v39, %v5901_v3  ;;  %v5518_v42 = vmax.f32 %v5262_v29, 0.0  ;;  %v6341_v2 = vmax.f32 %v5645_v46, %v5646_v18  ;;  %v12876_v3 = vld [vmem:[#allocation115_spill] sm:$0xff]  ;;  %v11840_v29 = vpop.f32.mrb[88].mxu0  ;;  %v11842_v18 = vpop.f32.mrb[88].mxu1 }
 0x398   :  { %v6775_v55 = vsel %vm6759_vm7, %v5885_v5, %v11775_v31  ;;  %6894 = vst [vmem:[%s12678_s7 + $0x50] sm:$0xff] %v6832_v44  ;;  %v6351_v19 = vrot.slane %v6350_v16, 2  ;;  %v5267_v26 = vadd.f32 %v11450_v62, %v5004_v58  ;;  %v5395_v22 = vadd.f32 %v11450_v62, %v5132_v61  ;;  %v12871_v31 = vld [vmem:[#allocation4_spill] sm:$0xff]  ;;  %v11846_v44 = vpop.f32.mrb[89].mxu0 }
 0x399   :  { %v6776_v32 = vsel %vm6761_vm8, %v5892_v56, %v6775_v55  ;;  %v5903_v43 = vrot.slane %v5902_v41, 2  ;;  %v5893_v27 = vmax.f32 %v5517_v50, %v5518_v42  ;;  %v6342_v48 = vrot.slane %v6341_v2, 4 }
 0x39a   :  { %6886 = vst [vmem:[%s12678_s7 + $0x10] sm:$0xff] %v6776_v32  ;;  %v6352_v46 = vmax.f32 %v6350_v16, %v6351_v19  ;;  %v4129_v39 = vadd.f32 %v12872_v28, %v12871_v31  ;;  %v5130_v21 = vadd.f32 %v11469_v6, %v12873_v51  ;;  %v4140_v45 = vadd.f32 %v12875_v17, %v12874_v49  ;;  %v11849_v32 = vpop.f32.mrb[89].mxu1  ;;  %v11854_v17 = vpop.f32.mrb[90].mxu0 }
 0x39b   :  { %v5904_v61 = vmax.f32 %v5902_v41, %v5903_v43  ;;  %v5894_v58 = vrot.slane %v5893_v27, 4  ;;  %v6343_v56 = vmax.f32 %v6341_v2, %v6342_v48  ;;  %v5133_v42 = vadd.f32 %v11469_v6, %v12876_v3  ;;  %12877 = vst [vmem:[#allocation113_spill] sm:$0xff] %v11849_v32  ;;  %v12878_v3 = vld [vmem:[#allocation116_spill] sm:$0xff] }
 0x39c   :  { %v6353_v5 = vrot.slane %v6352_v46, 1  ;;  %v5523_v60 = vmax.f32 %v5267_v26, 0.0  ;;  %v5002_v50 = vadd.f32 %v11469_v6, %v4129_v39  ;;  %v5005_v16 = vadd.f32 %v11469_v6, %v4140_v45  ;;  %v11856_v45 = vpop.f32.mrb[90].mxu1 }
 0x39d   :  { %v5905_v55 = vrot.slane %v5904_v61, 1  ;;  %v5895_v19 = vmax.f32 %v5893_v27, %v5894_v58  ;;  %v6344_v41 = vrot.slane %v6343_v56, 2  ;;  %v5396_v2 = vadd.f32 %v11450_v62, %v5133_v42  ;;  %v12879_v42 = vld [vmem:[#allocation30_spill] sm:$0xff] }
 0x39e   :  { %v6354_v43 = vmax.f32 %v6352_v46, %v6353_v5  ;;  %v5651_v48 = vmax.f32 %v5395_v22, 0.0  ;;  %v5393_v31 = vadd.f32 %v11450_v62, %v5130_v21  ;;  %v5268_v28 = vadd.f32 %v11450_v62, %v5005_v16  ;;  %v11862_v46 = vpop.f32.mrb[91].mxu0 }
 0x39f   :  { %v5896_v26 = vrot.slane %v5895_v19, 2  ;;  %v6345_v51 = vmax.f32 %v6343_v56, %v6344_v41  ;;  %v5265_v39 = vadd.f32 %v11450_v62, %v5002_v50  ;;  %v5652_v49 = vmax.f32 %v5396_v2, 0.0  ;;  %12880 = vst [vmem:[#allocation23_spill] sm:$0xff] %v11862_v46  ;;  %v12881_v50 = vld [vmem:[#allocation31_spill] sm:$0xff] }
 0x3a0   :  { %v5906_v27 = vmax.f32 %v5904_v61, %v5905_v55  ;;  %v5524_v58 = vmax.f32 %v5268_v28, 0.0  ;;  %v4132_v32 = vadd.f32 %v12879_v42, %v12878_v3  ;;  %v5131_v22 = vadd.f32 %v11469_v6, %v11496_v36 }
 0x3a1   :  { %v5897_v21 = vmax.f32 %v5895_v19, %v5896_v26  ;;  %v6346_v5 = vrot.slane %v6345_v51, 1  ;;  %v6362_v56 = vmax.f32 %v5651_v48, %v5652_v49  ;;  %v4153_v16 = vadd.f32 %v12881_v50, %v11509_v57  ;;  %v11872_v49 = vpop.f32.mrb[91].mxu1 }
 0x3a2   :  { %v5914_v41 = vmax.f32 %v5523_v60, %v5524_v58  ;;  %v5003_v2 = vadd.f32 %v11469_v6, %v4132_v32  ;;  %v5394_v61 = vadd.f32 %v11450_v62, %v5131_v22  ;;  %v5136_v55 = vadd.f32 %v11469_v6, %v11513_v7 }
 0x3a3   :  { %v5898_v28 = vrot.slane %v5897_v21, 1  ;;  %v6347_v3 = vmax.f32 %v6345_v51, %v6346_v5  ;;  %v6363_v42 = vrot.slane %v6362_v56, 4  ;;  %v5008_v36 = vadd.f32 %v11469_v6, %v4153_v16 }
 0x3a4   :  { %v5649_v46 = vmax.f32 %v5393_v31, 0.0  ;;  %v5915_v19 = vrot.slane %v5914_v41, 4  ;;  %v5266_v48 = vadd.f32 %v11450_v62, %v5003_v2  ;;  %v5650_v26 = vmax.f32 %v5394_v61, 0.0  ;;  %v12882_v2 = vld [vmem:[#allocation32_spill] sm:$0xff] }
 0x3a5   :  { %v5899_v57 = vmax.f32 %v5897_v21, %v5898_v28  ;;  %v11875_v60 = vsel %vm6749_vm2, %v6354_v43, %v6347_v3  ;;  %v5521_v32 = vmax.f32 %v5265_v39, 0.0  ;;  %v6364_v58 = vmax.f32 %v6362_v56, %v6363_v42 }
 0x3a6   :  { %v5916_v22 = vmax.f32 %v5914_v41, %v5915_v19  ;;  %v5522_v7 = vmax.f32 %v5266_v48, 0.0  ;;  %v6355_v50 = vmax.f32 %v5649_v46, %v5650_v26  ;;  %v5399_v51 = vadd.f32 %v11450_v62, %v5136_v55  ;;  %v12883_v41 = vld [vmem:[#allocation103_spill] sm:$0xff]  ;;  %v12884_v55 = vld [vmem:[#allocation33_spill] sm:$0xff]  ;;  %v11899_v26 = vpop.f32.mrb[92].mxu1 }
 0x3a7   :  { %v11879_v5 = vsel %vm6749_vm2, %v5906_v27, %v5899_v57  ;;  %v6365_v31 = vrot.slane %v6364_v58, 2  ;;  %v5271_v16 = vadd.f32 %v11450_v62, %v5008_v36  ;;  %v4145_v61 = vadd.f32 %v12882_v2, %v11515_v33  ;;  %v12885_v27 = vld [vmem:[#allocation6_spill] sm:$0xff]  ;;  %12887 = vst [vmem:[#allocation25_spill] sm:$0xff] %v11899_v26 }
 0x3a8   :  { %v5917_v21 = vrot.slane %v5916_v22, 2  ;;  %v5907_v28 = vmax.f32 %v5521_v32, %v5522_v7  ;;  %v6356_v43 = vrot.slane %v6355_v50, 4  ;;  %v5134_v39 = vadd.f32 %v11469_v6, %v11517_v34  ;;  %v11894_v33 = vld [vmem:[%s12677_s6] ss:$0 sm:$0xff]  ;;  %v11897_v34 = vpop.f32.mrb[92].mxu0 }
 0x3a9   :  { %v6366_v56 = vmax.f32 %v6364_v58, %v6365_v31  ;;  %v5006_v46 = vadd.f32 %v11469_v6, %v4145_v61  ;;  %v4156_v3 = vadd.f32 %v12884_v55, %v12883_v41  ;;  %v5137_v42 = vadd.f32 %v11469_v6, %v12885_v27  ;;  %12886 = vst [vmem:[#allocation24_spill] sm:$0xff] %v11897_v34 }
 0x3aa   :  { %v5918_v19 = vmax.f32 %v5916_v22, %v5917_v21  ;;  %v5908_v62 = vrot.slane %v5907_v28, 4  ;;  %v6357_v36 = vmax.f32 %v6355_v50, %v6356_v43  ;;  %v5397_v48 = vadd.f32 %v11894_v33, %v5134_v39  ;;  %v11903_v22 = vpop.f32.mrb[93].mxu0  ;;  %v11906_v21 = vpop.f32.mrb[93].mxu1 }
 0x3ab   :  { %v6367_v57 = vrot.slane %v6366_v56, 1  ;;  %v5655_v32 = vmax.f32 %v5399_v51, 0.0  ;;  %v5009_v58 = vadd.f32 %v11469_v6, %v4156_v3  ;;  %v5400_v7 = vadd.f32 %v11894_v33, %v5137_v42  ;;  %12888 = vst [vmem:[#allocation26_spill] sm:$0xff] %v11903_v22  ;;  %v12889_v6 = vld [vmem:[#allocation104_spill] sm:$0xff]  ;;  %v12890_v3 = vld [vmem:[#allocation34_spill] sm:$0xff] }
 0x3ac   :  { %v5909_v50 = vmax.f32 %v5907_v28, %v5908_v62  ;;  %v6358_v31 = vrot.slane %v6357_v36, 2  ;;  %v5527_v2 = vmax.f32 %v5271_v16, 0.0  ;;  %v5269_v61 = vadd.f32 %v11894_v33, %v5006_v46  ;;  %v11914_v16 = vld [vmem:[%s12676_s4] ss:$0 sm:$0xff]  ;;  %v12891_v46 = vld [vmem:[#allocation35_spill] sm:$0xff] }
 0x3ad   :  { %v5919_v43 = vrot.slane %v5918_v19, 1  ;;  %v5653_v39 = vmax.f32 %v5397_v48, 0.0  ;;  %v5272_v41 = vadd.f32 %v11894_v33, %v5009_v58  ;;  %v5656_v55 = vmax.f32 %v5400_v7, 0.0  ;;  %v11920_v48 = vpop.f32.mrb[94].mxu0 }
 0x3ae   :  { %v6368_v27 = vmax.f32 %v6366_v56, %v6367_v57  ;;  %v5910_v51 = vrot.slane %v5909_v50, 2  ;;  %v6359_v26 = vmax.f32 %v6357_v36, %v6358_v31  ;;  %v4148_v42 = vadd.f32 %v12890_v3, %v12889_v6  ;;  %12892 = vst [vmem:[#allocation2_spill] sm:$0xff] %v11920_v48  ;;  %v11922_v56 = vpop.f32.mrb[94].mxu1  ;;  %v11927_v7 = vpop.f32.mrb[95].mxu0 }
 0x3af   :  { %v5528_v34 = vmax.f32 %v5272_v41, 0.0  ;;  %v6376_v22 = vmax.f32 %v5655_v32, %v5656_v55  ;;  %v5135_v28 = vadd.f32 %v11914_v16, %v11530_v47  ;;  %v4169_v62 = vadd.f32 %v12891_v46, %v11546_v30  ;;  %12893 = vst [vmem:[#allocation27_spill] sm:$0xff] %v11922_v56  ;;  %12894 = vst [vmem:[#allocation3_spill] sm:$0xff] %v11927_v7  ;;  %v11932_v48 = vpop.f32.mrb[95].mxu1 }
 0x3b0   :  { %v5911_v36 = vmax.f32 %v5909_v50, %v5910_v51  ;;  %v6360_v57 = vrot.slane %v6359_v26, 1  ;;  %v5007_v58 = vadd.f32 %v11914_v16, %v4148_v42  ;;  %v5140_v32 = vadd.f32 %v11914_v16, %v11551_v59 }
 0x3b1   :  { %v5525_v31 = vmax.f32 %v5269_v61, 0.0  ;;  %v5928_v41 = vmax.f32 %v5527_v2, %v5528_v34  ;;  %v6377_v55 = vrot.slane %v6376_v22, 4  ;;  %v5398_v47 = vadd.f32 %v11894_v33, %v5135_v28 }
 0x3b2   :  { %v5912_v6 = vrot.slane %v5911_v36, 1  ;;  %v6361_v30 = vmax.f32 %v6359_v26, %v6360_v57  ;;  %v5270_v3 = vadd.f32 %v11894_v33, %v5007_v58  ;;  %v5012_v46 = vadd.f32 %v11914_v16, %v4169_v62  ;;  %v12895_v62 = vld [vmem:[#allocation7_spill] sm:$0xff]  ;;  %v12896_v58 = vld [vmem:[#allocation36_spill] sm:$0xff] }
 0x3b3   :  { %v5920_v50 = vmax.f32 %v5918_v19, %v5919_v43  ;;  %v5929_v51 = vrot.slane %v5928_v41, 4  ;;  %v6378_v56 = vmax.f32 %v6376_v22, %v6377_v55  ;;  %v5654_v42 = vmax.f32 %v5398_v47, 0.0 }
 0x3b4   :  { %v5913_v59 = vmax.f32 %v5911_v36, %v5912_v6  ;;  %v6834_v61 = vsel %vm6751_vm3, %v6361_v30, %v11875_v60  ;;  %v5526_v34 = vmax.f32 %v5270_v3, 0.0  ;;  %v5403_v2 = vadd.f32 %v11894_v33, %v5140_v32  ;;  %v12898_v30 = vld [vmem:[#allocation9_spill] sm:$0xff] }
 0x3b5   :  { %v5930_v28 = vmax.f32 %v5928_v41, %v5929_v51  ;;  %v6379_v7 = vrot.slane %v6378_v56, 2  ;;  %v6369_v26 = vmax.f32 %v5653_v39, %v5654_v42  ;;  %v6835_v57 = vsel %vm6753_vm4, %v6368_v27, %v6834_v61  ;;  %v12897_v39 = vld [vmem:[#allocation8_spill] sm:$0xff]  ;;  %v12899_v3 = vld [vmem:[#allocation37_spill] sm:$0xff] }
 0x3b6   :  { %v6778_v19 = vsel %vm6751_vm3, %v5913_v59, %v11879_v5  ;;  %v5921_v43 = vmax.f32 %v5525_v31, %v5526_v34  ;;  %v5275_v22 = vadd.f32 %v11894_v33, %v5012_v46  ;;  %v4161_v36 = vadd.f32 %v12896_v58, %v12895_v62  ;;  %v11951_v59 = vpop.f32.mrb[96].mxu0 }
 0x3b7   :  { %v5931_v55 = vrot.slane %v5930_v28, 2  ;;  %v6380_v47 = vmax.f32 %v6378_v56, %v6379_v7  ;;  %v6779_v60 = vsel %vm6753_vm4, %v5920_v50, %v6778_v19  ;;  %v6370_v6 = vrot.slane %v6369_v26, 4  ;;  %v11953_v56 = vpop.f32.mrb[96].mxu1  ;;  %v11957_v19 = vpop.f32.mrb[97].mxu0 }
 0x3b8   :  { %v5922_v32 = vrot.slane %v5921_v43, 4  ;;  %v5010_v41 = vadd.f32 %v11914_v16, %v4161_v36  ;;  %v5138_v27 = vadd.f32 %v11914_v16, %v12897_v39  ;;  %v4172_v5 = vadd.f32 %v12899_v3, %v12898_v30  ;;  %12900 = vst [vmem:[#allocation4_spill] sm:$0xff] %v11953_v56  ;;  %12901 = vst [vmem:[#allocation28_spill] sm:$0xff] %v11957_v19  ;;  %v11962_v39 = vpop.f32.mrb[97].mxu1  ;;  %v12904_v30 = vld [vmem:[#allocation38_spill] sm:$0xff] }
 0x3b9   :  { %v5932_v31 = vmax.f32 %v5930_v28, %v5931_v55  ;;  %v6381_v51 = vrot.slane %v6380_v47, 1  ;;  %v6371_v46 = vmax.f32 %v6369_v26, %v6370_v6  ;;  %v5141_v42 = vadd.f32 %v11914_v16, %v11560_v14  ;;  %12902 = vst [vmem:[#allocation5_spill] sm:$0xff] %v11962_v39 }
 0x3ba   :  { %v5923_v7 = vmax.f32 %v5921_v43, %v5922_v32  ;;  %v5659_v50 = vmax.f32 %v5403_v2, 0.0  ;;  %v5273_v61 = vadd.f32 %v11894_v33, %v5010_v41  ;;  %v5013_v34 = vadd.f32 %v11914_v16, %v4172_v5  ;;  %v12903_v41 = vld [vmem:[#allocation117_spill] sm:$0xff]  ;;  %v11966_v5 = vpop.f32.mrb[98].mxu0 }
 0x3bb   :  { %v6372_v62 = vrot.slane %v6371_v46, 2  ;;  %v5531_v58 = vmax.f32 %v5275_v22, 0.0  ;;  %v5401_v28 = vadd.f32 %v11894_v33, %v5138_v27  ;;  %v5404_v26 = vadd.f32 %v11894_v33, %v5141_v42  ;;  %12905 = vst [vmem:[#allocation114_spill] sm:$0xff] %v11966_v5  ;;  %v11968_v22 = vpop.f32.mrb[98].mxu1  ;;  %v12907_v42 = vld [vmem:[#allocation10_spill] sm:$0xff]  ;;  %v11974_v56 = vpop.f32.mrb[99].mxu0 }
 0x3bc   :  { %v5933_v36 = vrot.slane %v5932_v31, 1  ;;  %v6382_v14 = vmax.f32 %v6380_v47, %v6381_v51  ;;  %v5924_v55 = vrot.slane %v5923_v7, 2  ;;  %v5276_v6 = vadd.f32 %v11894_v33, %v5013_v34  ;;  %12906 = vst [vmem:[#allocation29_spill] sm:$0xff] %v11968_v22  ;;  %v12908_v51 = vld [vmem:[#allocation39_spill] sm:$0xff]  ;;  %12909 = vst [vmem:[#allocation115_spill] sm:$0xff] %v11974_v56 }
 0x3bd   :  { %v6373_v2 = vmax.f32 %v6371_v46, %v6372_v62  ;;  %v5529_v43 = vmax.f32 %v5273_v61, 0.0  ;;  %v5660_v32 = vmax.f32 %v5404_v26, 0.0  ;;  %v4164_v3 = vadd.f32 %v12904_v30, %v12903_v41 }
 0x3be   :  { %v5925_v27 = vmax.f32 %v5923_v7, %v5924_v55  ;;  %v5532_v19 = vmax.f32 %v5276_v6, 0.0  ;;  %v5139_v47 = vadd.f32 %v11914_v16, %v12907_v42  ;;  %v4185_v34 = vadd.f32 %v12908_v51, %v11579_v20 }
 0x3bf   :  { %v6374_v46 = vrot.slane %v6373_v2, 1  ;;  %v6390_v61 = vmax.f32 %v5659_v50, %v5660_v32  ;;  %v5011_v62 = vadd.f32 %v11914_v16, %v4164_v3  ;;  %v5144_v26 = vadd.f32 %v11914_v16, %v11581_v9  ;;  %v11982_v32 = vpop.f32.mrb[99].mxu1 }
 0x3c0   :  { %v5926_v41 = vrot.slane %v5925_v27, 1  ;;  %v5657_v30 = vmax.f32 %v5401_v28, 0.0  ;;  %v5942_v22 = vmax.f32 %v5531_v58, %v5532_v19  ;;  %v5402_v7 = vadd.f32 %v11894_v33, %v5139_v47 }
 0x3c1   :  { %v6375_v55 = vmax.f32 %v6373_v2, %v6374_v46  ;;  %v6391_v6 = vrot.slane %v6390_v61, 4  ;;  %v5274_v42 = vadd.f32 %v11894_v33, %v5011_v62  ;;  %v5016_v20 = vadd.f32 %v11914_v16, %v4185_v34 }
 0x3c2   :  { %v5934_v51 = vmax.f32 %v5932_v31, %v5933_v36  ;;  %v5927_v56 = vmax.f32 %v5925_v27, %v5926_v41  ;;  %v5943_v5 = vrot.slane %v5942_v22, 4  ;;  %v5658_v50 = vmax.f32 %v5402_v7, 0.0 }
 0x3c3   :  { %v6836_v3 = vsel %vm6755_vm5, %v6375_v55, %v6835_v57  ;;  %v6392_v9 = vmax.f32 %v6390_v61, %v6391_v6  ;;  %v5530_v39 = vmax.f32 %v5274_v42, 0.0  ;;  %v5407_v19 = vadd.f32 %v11894_v33, %v5144_v26  ;;  %v12910_v57 = vld [vmem:[#allocation40_spill] sm:$0xff]  ;;  %v12004_v6 = vpop.f32.mrb[100].mxu0  ;;  %v12006_v42 = vpop.f32.mrb[100].mxu1 }
 0x3c4   :  { %v6780_v58 = vsel %vm6755_vm5, %v5927_v56, %v6779_v60  ;;  %v5944_v28 = vmax.f32 %v5942_v22, %v5943_v5  ;;  %v6383_v2 = vmax.f32 %v5657_v30, %v5658_v50  ;;  %v6837_v47 = vsel %vm6757_vm6, %v6382_v14, %v6836_v3  ;;  %v12911_v5 = vld [vmem:[#allocation41_spill] sm:$0xff]  ;;  %v12008_v50 = vpop.f32.mrb[101].mxu0 }
 0x3c5   :  { %v6393_v46 = vrot.slane %v6392_v9, 2  ;;  %v5935_v34 = vmax.f32 %v5529_v43, %v5530_v39  ;;  %v11989_v31 = vsel %vm6757_vm6, %v5934_v51, %v6780_v58  ;;  %v5279_v36 = vadd.f32 %v11894_v33, %v5016_v20 }
 0x3c6   :  { %v5945_v27 = vrot.slane %v5944_v28, 2  ;;  %v6384_v62 = vrot.slane %v6383_v2, 4  ;;  %v4177_v61 = vadd.f32 %v12910_v57, %v11583_v63  ;;  %v5142_v26 = vadd.f32 %v11914_v16, %v11587_v23 }
 0x3c7   :  { %v6394_v60 = vmax.f32 %v6392_v9, %v6393_v46  ;;  %v5936_v56 = vrot.slane %v5935_v34, 4  ;;  %v4188_v14 = vadd.f32 %v12911_v5, %v11589_v53  ;;  %v5145_v39 = vadd.f32 %v11914_v16, %v11594_v24 }
 0x3c8   :  { %v5946_v43 = vmax.f32 %v5944_v28, %v5945_v27  ;;  %v6385_v22 = vmax.f32 %v6383_v2, %v6384_v62  ;;  %v5014_v41 = vadd.f32 %v11914_v16, %v4177_v61  ;;  %v5405_v30 = vadd.f32 %v11894_v33, %v5142_v26  ;;  %v12012_v2 = vpop.f32.mrb[101].mxu1  ;;  %v12912_v62 = vld [vmem:[#allocation42_spill] sm:$0xff]  ;;  %v12016_v61 = vpop.f32.mrb[102].mxu0 }
 0x3c9   :  { %v6395_v7 = vrot.slane %v6394_v60, 1  ;;  %v5937_v55 = vmax.f32 %v5935_v34, %v5936_v56  ;;  %v5017_v63 = vadd.f32 %v11914_v16, %v4188_v14  ;;  %v5408_v23 = vadd.f32 %v11894_v33, %v5145_v39  ;;  %v12022_v14 = vpop.f32.mrb[103].mxu0 }
 0x3ca   :  { %v5947_v53 = vrot.slane %v5946_v43, 1  ;;  %v6386_v20 = vrot.slane %v6385_v22, 2  ;;  %v5535_v51 = vmax.f32 %v5279_v36, 0.0  ;;  %v5663_v24 = vmax.f32 %v5407_v19, 0.0  ;;  %v12018_v36 = vpop.f32.mrb[102].mxu1  ;;  %12913 = vst [vmem:[#allocation116_spill] sm:$0xff] %v12022_v14 }
 0x3cb   :  { %v5938_v3 = vrot.slane %v5937_v55, 2  ;;  %v5277_v9 = vadd.f32 %v11894_v33, %v5014_v41  ;;  %v5280_v58 = vadd.f32 %v11894_v33, %v5017_v63  ;;  %v5664_v28 = vmax.f32 %v5408_v23, 0.0  ;;  %v12032_v14 = vpop.f32.mrb[103].mxu1 }
 0x3cc   :  { %v6396_v46 = vmax.f32 %v6394_v60, %v6395_v7  ;;  %v6387_v34 = vmax.f32 %v6385_v22, %v6386_v20  ;;  %v5661_v27 = vmax.f32 %v5405_v30, 0.0  ;;  %v4180_v57 = vadd.f32 %v12912_v62, %v11596_v12  ;;  %v12914_v22 = vld [vmem:[#allocation43_spill] sm:$0xff] }
 0x3cd   :  { %v5939_v19 = vmax.f32 %v5937_v55, %v5938_v3  ;;  %v5536_v26 = vmax.f32 %v5280_v58, 0.0  ;;  %v6404_v56 = vmax.f32 %v5663_v24, %v5664_v28  ;;  %v5143_v5 = vadd.f32 %v11914_v16, %v11603_v13  ;;  %v12915_v30 = vld [vmem:[#allocation11_spill] sm:$0xff] }
 0x3ce   :  { %v6388_v39 = vrot.slane %v6387_v34, 1  ;;  %v5015_v60 = vadd.f32 %v11914_v16, %v4180_v57  ;;  %v4201_v41 = vadd.f32 %v12914_v22, %v11619_v52  ;;  %v5148_v12 = vadd.f32 %v11914_v16, %v12915_v30 }
 0x3cf   :  { %v5940_v7 = vrot.slane %v5939_v19, 1  ;;  %v5956_v63 = vmax.f32 %v5535_v51, %v5536_v26  ;;  %v6405_v23 = vrot.slane %v6404_v56, 4  ;;  %v5406_v55 = vadd.f32 %v11894_v33, %v5143_v5 }
 0x3d0   :  { %v5948_v20 = vmax.f32 %v5946_v43, %v5947_v53  ;;  %v6389_v24 = vmax.f32 %v6387_v34, %v6388_v39  ;;  %v5278_v13 = vadd.f32 %v11894_v33, %v5015_v60  ;;  %v5020_v3 = vadd.f32 %v11914_v16, %v4201_v41  ;;  %v12916_v39 = vld [vmem:[#allocation12_spill] sm:$0xff]  ;;  %v12918_v41 = vld [vmem:[#allocation13_spill] sm:$0xff] }
 0x3d1   :  { %v5941_v58 = vmax.f32 %v5939_v19, %v5940_v7  ;;  %v5957_v28 = vrot.slane %v5956_v63, 4  ;;  %v6406_v62 = vmax.f32 %v6404_v56, %v6405_v23  ;;  %v5662_v57 = vmax.f32 %v5406_v55, 0.0  ;;  %v12919_v23 = vld [vmem:[#allocation118_spill] sm:$0xff]  ;;  %v12920_v55 = vld [vmem:[#allocation45_spill] sm:$0xff] }
 0x3d2   :  { %v6838_v52 = vsel %vm6759_vm7, %v6389_v24, %v6837_v47  ;;  %v5533_v22 = vmax.f32 %v5277_v9, 0.0  ;;  %v5534_v30 = vmax.f32 %v5278_v13, 0.0  ;;  %v5411_v51 = vadd.f32 %v11894_v33, %v5148_v12  ;;  %v12055_v13 = vpop.f32.mrb[104].mxu0 }
 0x3d3   :  { %v6782_v43 = vsel %vm6759_vm7, %v5941_v58, %v11989_v31  ;;  %v6839_v53 = vsel %vm6761_vm8, %v6396_v46, %v6838_v52  ;;  %v5958_v34 = vmax.f32 %v5956_v63, %v5957_v28  ;;  %v6407_v26 = vrot.slane %v6406_v62, 2  ;;  %v12917_v46 = vld [vmem:[#allocation44_spill] sm:$0xff]  ;;  %v12060_v52 = vpop.f32.mrb[105].mxu0 }
 0x3d4   :  { %v6783_v19 = vsel %vm6761_vm8, %v5948_v20, %v6782_v43  ;;  %6895 = vst [vmem:[%s12678_s7 + $0x58] sm:$0xff] %v6839_v53  ;;  %v5949_v56 = vmax.f32 %v5533_v22, %v5534_v30  ;;  %v6397_v5 = vmax.f32 %v5661_v27, %v5662_v57  ;;  %v5283_v47 = vadd.f32 %v11894_v33, %v5020_v3  ;;  %v12921_v27 = vld [vmem:[#allocation14_spill] sm:$0xff]  ;;  %v12057_v3 = vpop.f32.mrb[104].mxu1 }
 0x3d5   :  { %6887 = vst [vmem:[%s12678_s7 + $0x18] sm:$0xff] %v6783_v19  ;;  %v5959_v9 = vrot.slane %v5958_v34, 2  ;;  %v6408_v31 = vmax.f32 %v6406_v62, %v6407_v26  ;;  %v4193_v60 = vadd.f32 %v12917_v46, %v12916_v39  ;;  %v5146_v12 = vadd.f32 %v11914_v16, %v12918_v41  ;;  %12922 = vst [vmem:[#allocation30_spill] sm:$0xff] %v12060_v52  ;;  %v12065_v41 = vpop.f32.mrb[105].mxu1 }
 0x3d6   :  { %v5950_v7 = vrot.slane %v5949_v56, 4  ;;  %v6398_v63 = vrot.slane %v6397_v5, 4  ;;  %v4204_v20 = vadd.f32 %v12920_v55, %v12919_v23  ;;  %v5149_v24 = vadd.f32 %v11914_v16, %v12921_v27  ;;  %12923 = vst [vmem:[#allocation31_spill] sm:$0xff] %v12065_v41  ;;  %v12926_v55 = vld [vmem:[#allocation120_spill] sm:$0xff] }
 0x3d7   :  { %v5960_v58 = vmax.f32 %v5958_v34, %v5959_v9  ;;  %v6409_v28 = vrot.slane %v6408_v31, 1  ;;  %v5667_v62 = vmax.f32 %v5411_v51, 0.0  ;;  %v5018_v57 = vadd.f32 %v11914_v16, %v4193_v60 }
 0x3d8   :  { %v5951_v22 = vmax.f32 %v5949_v56, %v5950_v7  ;;  %v6399_v30 = vmax.f32 %v6397_v5, %v6398_v63  ;;  %v5021_v43 = vadd.f32 %v11914_v16, %v4204_v20  ;;  %v5412_v53 = vadd.f32 %v11894_v33, %v5149_v24  ;;  %v12924_v5 = vld [vmem:[#allocation119_spill] sm:$0xff]  ;;  %v12925_v7 = vld [vmem:[#allocation46_spill] sm:$0xff] }
 0x3d9   :  { %v5961_v26 = vrot.slane %v5960_v58, 1  ;;  %v6410_v19 = vmax.f32 %v6408_v31, %v6409_v28  ;;  %v5539_v39 = vmax.f32 %v5283_v47, 0.0  ;;  %v5409_v46 = vadd.f32 %v11894_v33, %v5146_v12  ;;  %v12073_v31 = vpop.f32.mrb[106].mxu0  ;;  %v12075_v47 = vpop.f32.mrb[106].mxu1 }
 0x3da   :  { %v5952_v34 = vrot.slane %v5951_v22, 2  ;;  %v6400_v9 = vrot.slane %v6399_v30, 2  ;;  %v5284_v51 = vadd.f32 %v11894_v33, %v5021_v43  ;;  %v5668_v60 = vmax.f32 %v5412_v53, 0.0  ;;  %12927 = vst [vmem:[#allocation32_spill] sm:$0xff] %v12073_v31  ;;  %12928 = vst [vmem:[#allocation103_spill] sm:$0xff] %v12075_v47  ;;  %v12077_v41 = vpop.f32.mrb[107].mxu0 }
 0x3db   :  { %v5962_v23 = vmax.f32 %v5960_v58, %v5961_v26  ;;  %v5281_v56 = vadd.f32 %v11894_v33, %v5018_v57  ;;  %v4196_v63 = vadd.f32 %v12925_v7, %v12924_v5  ;;  %v5147_v20 = vadd.f32 %v11914_v16, %v12926_v55  ;;  %12929 = vst [vmem:[#allocation33_spill] sm:$0xff] %v12077_v41  ;;  %v12930_v43 = vld [vmem:[#allocation47_spill] sm:$0xff] }
 0x3dc   :  { %v5953_v12 = vmax.f32 %v5951_v22, %v5952_v34  ;;  %v6401_v27 = vmax.f32 %v6399_v30, %v6400_v9  ;;  %v5540_v24 = vmax.f32 %v5284_v51, 0.0  ;;  %v6418_v28 = vmax.f32 %v5667_v62, %v5668_v60  ;;  %v12931_v26 = vld [vmem:[#allocation15_spill] sm:$0xff] }
 0x3dd   :  { %v5019_v58 = vadd.f32 %v11914_v16, %v4196_v63  ;;  %v5410_v57 = vadd.f32 %v11894_v33, %v5147_v20  ;;  %v4217_v53 = vadd.f32 %v12930_v43, %v11650_v8  ;;  %v5152_v5 = vadd.f32 %v11914_v16, %v12931_v26  ;;  %v12087_v20 = vpop.f32.mrb[107].mxu1 }
 0x3de   :  { %v5954_v7 = vrot.slane %v5953_v12, 1  ;;  %v6402_v55 = vrot.slane %v6401_v27, 1  ;;  %v5970_v31 = vmax.f32 %v5539_v39, %v5540_v24  ;;  %v6419_v47 = vrot.slane %v6418_v28, 4  ;;  %12932 = vst [vmem:[#allocation6_spill] sm:$0xff] %v12087_v20 }
 0x3df   :  { %v5665_v22 = vmax.f32 %v5409_v46, 0.0  ;;  %v5282_v30 = vadd.f32 %v11894_v33, %v5019_v58  ;;  %v5666_v62 = vmax.f32 %v5410_v57, 0.0  ;;  %v5024_v34 = vadd.f32 %v11914_v16, %v4217_v53 }
 0x3e0   :  { %v5955_v9 = vmax.f32 %v5953_v12, %v5954_v7  ;;  %v6403_v51 = vmax.f32 %v6401_v27, %v6402_v55  ;;  %v5971_v60 = vrot.slane %v5970_v31, 4  ;;  %v6420_v63 = vmax.f32 %v6418_v28, %v6419_v47  ;;  %v12933_v27 = vld [vmem:[#allocation121_spill] sm:$0xff]  ;;  %v12934_v47 = vld [vmem:[#allocation48_spill] sm:$0xff]  ;;  %v12935_v55 = vld [vmem:[#allocation122_spill] sm:$0xff] }
 0x3e1   :  { %v5537_v8 = vmax.f32 %v5281_v56, 0.0  ;;  %v5538_v43 = vmax.f32 %v5282_v30, 0.0  ;;  %v6411_v41 = vmax.f32 %v5665_v22, %v5666_v62  ;;  %v5415_v26 = vadd.f32 %v11894_v33, %v5152_v5  ;;  %v12936_v5 = vld [vmem:[#allocation123_spill] sm:$0xff]  ;;  %v12937_v30 = vld [vmem:[#allocation49_spill] sm:$0xff] }
 0x3e2   :  { %v12091_v39 = vsel %vm6749_vm2, %v5962_v23, %v5955_v9  ;;  %v6840_v46 = vsel %vm6749_vm2, %v6410_v19, %v6403_v51  ;;  %v5972_v24 = vmax.f32 %v5970_v31, %v5971_v60  ;;  %v6421_v58 = vrot.slane %v6420_v63, 2  ;;  %v12938_v31 = vld [vmem:[#allocation105_spill] sm:$0xff]  ;;  %v12104_v60 = vpop.f32.mrb[108].mxu0 }
 0x3e3   :  { %v5963_v57 = vmax.f32 %v5537_v8, %v5538_v43  ;;  %v6412_v53 = vrot.slane %v6411_v41, 4  ;;  %v5287_v12 = vadd.f32 %v11894_v33, %v5024_v34  ;;  %v4209_v28 = vadd.f32 %v12934_v47, %v12933_v27  ;;  %12939 = vst [vmem:[#allocation104_spill] sm:$0xff] %v12104_v60  ;;  %v12106_v34 = vpop.f32.mrb[108].mxu1  ;;  %v12110_v27 = vpop.f32.mrb[109].mxu0 }
 0x3e4   :  { %v5973_v7 = vrot.slane %v5972_v24, 2  ;;  %v6422_v56 = vmax.f32 %v6420_v63, %v6421_v58  ;;  %v5150_v22 = vadd.f32 %v11914_v16, %v12935_v55  ;;  %v4220_v23 = vadd.f32 %v12937_v30, %v12936_v5  ;;  %12940 = vst [vmem:[#allocation34_spill] sm:$0xff] %v12106_v34  ;;  %12941 = vst [vmem:[#allocation35_spill] sm:$0xff] %v12110_v27  ;;  %v12943_v27 = vld [vmem:[#allocation16_spill] sm:$0xff]  ;;  %v12121_v52 = vpop.f32.mrb[110].mxu0 }
 0x3e5   :  { %v5964_v62 = vrot.slane %v5963_v57, 4  ;;  %v6413_v9 = vmax.f32 %v6411_v41, %v6412_v53  ;;  %v5022_v19 = vadd.f32 %v11914_v16, %v4209_v28  ;;  %v5153_v51 = vadd.f32 %v11914_v16, %v12938_v31  ;;  %12946 = vst [vmem:[#allocation36_spill] sm:$0xff] %v12121_v52 }
 0x3e6   :  { %v5974_v8 = vmax.f32 %v5972_v24, %v5973_v7  ;;  %v6423_v43 = vrot.slane %v6422_v56, 1  ;;  %v5413_v63 = vadd.f32 %v11894_v33, %v5150_v22  ;;  %v5025_v58 = vadd.f32 %v11914_v16, %v4220_v23  ;;  %v12115_v22 = vpop.f32.mrb[109].mxu1 }
 0x3e7   :  { %v5965_v47 = vmax.f32 %v5963_v57, %v5964_v62  ;;  %v6414_v55 = vrot.slane %v6413_v9, 2  ;;  %v5671_v41 = vmax.f32 %v5415_v26, 0.0  ;;  %v5416_v53 = vadd.f32 %v11894_v33, %v5153_v51  ;;  %12942 = vst [vmem:[#allocation7_spill] sm:$0xff] %v12115_v22  ;;  %v12944_v57 = vld [vmem:[#allocation50_spill] sm:$0xff] }
 0x3e8   :  { %v5975_v28 = vrot.slane %v5974_v8, 1  ;;  %v5543_v5 = vmax.f32 %v5287_v12, 0.0  ;;  %v5285_v30 = vadd.f32 %v11894_v33, %v5022_v19  ;;  %v5288_v31 = vadd.f32 %v11894_v33, %v5025_v58  ;;  %v12945_v26 = vld [vmem:[#allocation106_spill] sm:$0xff]  ;;  %v12123_v12 = vpop.f32.mrb[110].mxu1 }
 0x3e9   :  { %v6424_v34 = vmax.f32 %v6422_v56, %v6423_v43  ;;  %v5966_v24 = vrot.slane %v5965_v47, 2  ;;  %v6415_v7 = vmax.f32 %v6413_v9, %v6414_v55  ;;  %v5672_v60 = vmax.f32 %v5416_v53, 0.0  ;;  %12947 = vst [vmem:[#allocation8_spill] sm:$0xff] %v12123_v12  ;;  %v12948_v9 = vld [vmem:[#allocation51_spill] sm:$0xff]  ;;  %v12127_v55 = vpop.f32.mrb[111].mxu0 }
 0x3ea   :  { %v5669_v23 = vmax.f32 %v5413_v63, 0.0  ;;  %v5544_v20 = vmax.f32 %v5288_v31, 0.0  ;;  %v4212_v62 = vadd.f32 %v12944_v57, %v12943_v27  ;;  %v5151_v51 = vadd.f32 %v11914_v16, %v12945_v26  ;;  %12949 = vst [vmem:[#allocation9_spill] sm:$0xff] %v12127_v55  ;;  %v12950_v31 = vld [vmem:[#allocation107_spill] sm:$0xff] }
 0x3eb   :  { %v5967_v19 = vmax.f32 %v5965_v47, %v5966_v24  ;;  %v6416_v58 = vrot.slane %v6415_v7, 1  ;;  %v6432_v56 = vmax.f32 %v5671_v41, %v5672_v60  ;;  %v4233_v43 = vadd.f32 %v12948_v9, %v11688_v15 }
 0x3ec   :  { %v5984_v63 = vmax.f32 %v5543_v5, %v5544_v20  ;;  %v5023_v53 = vadd.f32 %v11914_v16, %v4212_v62  ;;  %v5414_v27 = vadd.f32 %v11894_v33, %v5151_v51  ;;  %v5156_v57 = vadd.f32 %v11914_v16, %v12950_v31  ;;  %v12136_v62 = vpop.f32.mrb[111].mxu1 }
 0x3ed   :  { %v5968_v26 = vrot.slane %v5967_v19, 1  ;;  %v6417_v52 = vmax.f32 %v6415_v7, %v6416_v58  ;;  %v6433_v22 = vrot.slane %v6432_v56, 4  ;;  %v5028_v47 = vadd.f32 %v11914_v16, %v4233_v43 }
 0x3ee   :  { %v5541_v24 = vmax.f32 %v5285_v30, 0.0  ;;  %v5985_v60 = vrot.slane %v5984_v63, 4  ;;  %v5286_v41 = vadd.f32 %v11894_v33, %v5023_v53  ;;  %v5670_v15 = vmax.f32 %v5414_v27, 0.0  ;;  %v12954_v27 = vld [vmem:[#allocation18_spill] sm:$0xff] }
 0x3ef   :  { %v5976_v9 = vmax.f32 %v5974_v8, %v5975_v28  ;;  %v5969_v55 = vmax.f32 %v5967_v19, %v5968_v26  ;;  %v6841_v20 = vsel %vm6751_vm3, %v6417_v52, %v6840_v46  ;;  %v6434_v5 = vmax.f32 %v6432_v56, %v6433_v22  ;;  %v12951_v19 = vld [vmem:[#allocation17_spill] sm:$0xff]  ;;  %v12952_v56 = vld [vmem:[#allocation52_spill] sm:$0xff] }
 0x3f0   :  { %v5986_v51 = vmax.f32 %v5984_v63, %v5985_v60  ;;  %v5542_v12 = vmax.f32 %v5286_v41, 0.0  ;;  %v6425_v31 = vmax.f32 %v5669_v23, %v5670_v15  ;;  %v6842_v7 = vsel %vm6753_vm4, %v6424_v34, %v6841_v20  ;;  %v12953_v63 = vld [vmem:[#allocation108_spill] sm:$0xff]  ;;  %v12156_v41 = vpop.f32.mrb[112].mxu1 }
 0x3f1   :  { %v6785_v58 = vsel %vm6751_vm3, %v5969_v55, %v12091_v39  ;;  %v6435_v30 = vrot.slane %v6434_v5, 2  ;;  %v5291_v43 = vadd.f32 %v11894_v33, %v5028_v47  ;;  %v5419_v53 = vadd.f32 %v11894_v33, %v5156_v57  ;;  %v12955_v39 = vld [vmem:[#allocation53_spill] sm:$0xff]  ;;  %12957 = vst [vmem:[#allocation37_spill] sm:$0xff] %v12156_v41 }
 0x3f2   :  { %v5987_v8 = vrot.slane %v5986_v51, 2  ;;  %v5977_v28 = vmax.f32 %v5541_v24, %v5542_v12  ;;  %v12144_v52 = vsel %vm6753_vm4, %v5976_v9, %v6785_v58  ;;  %v6426_v46 = vrot.slane %v6425_v31, 4  ;;  %v12956_v57 = vld [vmem:[#allocation109_spill] sm:$0xff]  ;;  %v12154_v24 = vpop.f32.mrb[112].mxu0 }
 0x3f3   :  { %v6436_v22 = vmax.f32 %v6434_v5, %v6435_v30  ;;  %v4225_v23 = vadd.f32 %v12952_v56, %v12951_v19  ;;  %v5154_v34 = vadd.f32 %v11914_v16, %v12953_v63  ;;  %v4236_v55 = vadd.f32 %v12955_v39, %v12954_v27  ;;  %v12161_v58 = vpop.f32.mrb[113].mxu0 }
 0x3f4   :  { %v5988_v26 = vmax.f32 %v5986_v51, %v5987_v8  ;;  %v5978_v47 = vrot.slane %v5977_v28, 4  ;;  %v6427_v60 = vmax.f32 %v6425_v31, %v6426_v46  ;;  %v5157_v12 = vadd.f32 %v11914_v16, %v12956_v57  ;;  %12958 = vst [vmem:[#allocation117_spill] sm:$0xff] %v12161_v58  ;;  %v12959_v58 = vld [vmem:[#allocation19_spill] sm:$0xff] }
 0x3f5   :  { %v6437_v15 = vrot.slane %v6436_v22, 1  ;;  %v5026_v9 = vadd.f32 %v11914_v16, %v4225_v23  ;;  %v5417_v20 = vadd.f32 %v11894_v33, %v5154_v34  ;;  %v5029_v5 = vadd.f32 %v11914_v16, %v4236_v55  ;;  %v12166_v34 = vpop.f32.mrb[113].mxu1 }
 0x3f6   :  { %v5979_v30 = vmax.f32 %v5977_v28, %v5978_v47  ;;  %v6428_v51 = vrot.slane %v6427_v60, 2  ;;  %v5547_v8 = vmax.f32 %v5291_v43, 0.0  ;;  %v5420_v31 = vadd.f32 %v11894_v33, %v5157_v12  ;;  %v12960_v28 = vld [vmem:[#allocation54_spill] sm:$0xff]  ;;  %v12172_v12 = vpop.f32.mrb[114].mxu0 }
 0x3f7   :  { %v5989_v46 = vrot.slane %v5988_v26, 1  ;;  %v6438_v19 = vmax.f32 %v6436_v22, %v6437_v15  ;;  %v5675_v56 = vmax.f32 %v5419_v53, 0.0  ;;  %v5292_v63 = vadd.f32 %v11894_v33, %v5029_v5  ;;  %12961 = vst [vmem:[#allocation38_spill] sm:$0xff] %v12172_v12  ;;  %v12174_v53 = vpop.f32.mrb[114].mxu1 }
 0x3f8   :  { %v5980_v27 = vrot.slane %v5979_v30, 2  ;;  %v6429_v39 = vmax.f32 %v6427_v60, %v6428_v51  ;;  %v5289_v23 = vadd.f32 %v11894_v33, %v5026_v9  ;;  %v5676_v57 = vmax.f32 %v5420_v31, 0.0  ;;  %12962 = vst [vmem:[#allocation10_spill] sm:$0xff] %v12174_v53  ;;  %v12963_v9 = vld [vmem:[#allocation55_spill] sm:$0xff]  ;;  %v12178_v51 = vpop.f32.mrb[115].mxu0 }
 0x3f9   :  { %v5673_v55 = vmax.f32 %v5417_v20, 0.0  ;;  %v5548_v41 = vmax.f32 %v5292_v63, 0.0  ;;  %v4228_v47 = vadd.f32 %v12960_v28, %v12959_v58  ;;  %v5155_v43 = vadd.f32 %v11914_v16, %v11716_v35  ;;  %12964 = vst [vmem:[#allocation39_spill] sm:$0xff] %v12178_v51  ;;  %v12187_v51 = vpop.f32.mrb[115].mxu1 }
 0x3fa   :  { %v5981_v22 = vmax.f32 %v5979_v30, %v5980_v27  ;;  %v6430_v15 = vrot.slane %v6429_v39, 1  ;;  %v6446_v60 = vmax.f32 %v5675_v56, %v5676_v57  ;;  %v4249_v5 = vadd.f32 %v12963_v9, %v11734_v40 }
 0x3fb   :  { %v5998_v20 = vmax.f32 %v5547_v8, %v5548_v41  ;;  %v5027_v31 = vadd.f32 %v11914_v16, %v4228_v47  ;;  %v5418_v58 = vadd.f32 %v11894_v33, %v5155_v43  ;;  %v5160_v35 = vadd.f32 %v11914_v16, %v11736_v25 }
 0x3fc   :  { %v5982_v63 = vrot.slane %v5981_v22, 1  ;;  %v6431_v28 = vmax.f32 %v6429_v39, %v6430_v15  ;;  %v6447_v12 = vrot.slane %v6446_v60, 4  ;;  %v5032_v30 = vadd.f32 %v11914_v16, %v4249_v5 }
 0x3fd   :  { %v5990_v27 = vmax.f32 %v5988_v26, %v5989_v46  ;;  %v5999_v56 = vrot.slane %v5998_v20, 4  ;;  %v5290_v57 = vadd.f32 %v11894_v33, %v5027_v31  ;;  %v5674_v40 = vmax.f32 %v5418_v58, 0.0  ;;  %v12967_v58 = vld [vmem:[#allocation110_spill] sm:$0xff] }
 0x3fe   :  { %v5983_v9 = vmax.f32 %v5981_v22, %v5982_v63  ;;  %v6843_v41 = vsel %vm6755_vm5, %v6431_v28, %v6842_v7  ;;  %v5545_v8 = vmax.f32 %v5289_v23, 0.0  ;;  %v6448_v47 = vmax.f32 %v6446_v60, %v6447_v12  ;;  %v12965_v60 = vld [vmem:[#allocation20_spill] sm:$0xff] }
 0x3ff   :  { %v6000_v43 = vmax.f32 %v5998_v20, %v5999_v56  ;;  %v5546_v53 = vmax.f32 %v5290_v57, 0.0  ;;  %v6439_v25 = vmax.f32 %v5673_v55, %v5674_v40  ;;  %v6844_v39 = vsel %vm6757_vm6, %v6438_v19, %v6843_v41  ;;  %v12966_v20 = vld [vmem:[#allocation56_spill] sm:$0xff]  ;;  %v12205_v57 = vpop.f32.mrb[116].mxu0 }
 0x400   :  { %v6787_v15 = vsel %vm6755_vm5, %v5983_v9, %v12144_v52  ;;  %v6449_v26 = vrot.slane %v6448_v47, 2  ;;  %v5295_v46 = vadd.f32 %v11894_v33, %v5032_v30  ;;  %v5423_v5 = vadd.f32 %v11894_v33, %v5160_v35  ;;  %v12968_v52 = vld [vmem:[#allocation57_spill] sm:$0xff] }
 0x401   :  { %v6001_v22 = vrot.slane %v6000_v43, 2  ;;  %v5991_v31 = vmax.f32 %v5545_v8, %v5546_v53  ;;  %v12195_v7 = vsel %vm6757_vm6, %v5990_v27, %v6787_v15  ;;  %v6440_v23 = vrot.slane %v6439_v25, 4  ;;  %v12969_v35 = vld [vmem:[#allocation21_spill] sm:$0xff]  ;;  %v12207_v27 = vpop.f32.mrb[116].mxu1  ;;  %v12212_v8 = vpop.f32.mrb[117].mxu0 }
 0x402   :  { %v6450_v12 = vmax.f32 %v6448_v47, %v6449_v26  ;;  %v4241_v55 = vadd.f32 %v12966_v20, %v12965_v60  ;;  %v5158_v19 = vadd.f32 %v11914_v16, %v11746_v11  ;;  %v4252_v63 = vadd.f32 %v12968_v52, %v12967_v58  ;;  %12970 = vst [vmem:[#allocation40_spill] sm:$0xff] %v12212_v8  ;;  %v12971_v8 = vld [vmem:[#allocation111_spill] sm:$0xff] }
 0x403   :  { %v6002_v28 = vmax.f32 %v6000_v43, %v6001_v22  ;;  %v5992_v30 = vrot.slane %v5991_v31, 4  ;;  %v6441_v56 = vmax.f32 %v6439_v25, %v6440_v23  ;;  %v5161_v53 = vadd.f32 %v11914_v16, %v12969_v35 }
 0x404   :  { %v6451_v40 = vrot.slane %v6450_v12, 1  ;;  %v5030_v9 = vadd.f32 %v11914_v16, %v4241_v55  ;;  %v5421_v41 = vadd.f32 %v11894_v33, %v5158_v19  ;;  %v5033_v11 = vadd.f32 %v11914_v16, %v4252_v63  ;;  %v12217_v19 = vpop.f32.mrb[117].mxu1 }
 0x405   :  { %v5993_v47 = vmax.f32 %v5991_v31, %v5992_v30  ;;  %v6442_v43 = vrot.slane %v6441_v56, 2  ;;  %v5551_v15 = vmax.f32 %v5295_v46, 0.0  ;;  %v5424_v25 = vadd.f32 %v11894_v33, %v5161_v53  ;;  %v12972_v31 = vld [vmem:[#allocation58_spill] sm:$0xff]  ;;  %v12223_v53 = vpop.f32.mrb[118].mxu0 }
 0x406   :  { %v6003_v26 = vrot.slane %v6002_v28, 1  ;;  %v6452_v22 = vmax.f32 %v6450_v12, %v6451_v40  ;;  %v5679_v23 = vmax.f32 %v5423_v5, 0.0  ;;  %v5296_v60 = vadd.f32 %v11894_v33, %v5033_v11  ;;  %12973 = vst [vmem:[#allocation41_spill] sm:$0xff] %v12223_v53  ;;  %v12225_v5 = vpop.f32.mrb[118].mxu1 }
 0x407   :  { %v5994_v20 = vrot.slane %v5993_v47, 2  ;;  %v6443_v58 = vmax.f32 %v6441_v56, %v6442_v43  ;;  %v5293_v55 = vadd.f32 %v11894_v33, %v5030_v9  ;;  %v5680_v52 = vmax.f32 %v5424_v25, 0.0  ;;  %12974 = vst [vmem:[#allocation42_spill] sm:$0xff] %v12225_v5  ;;  %v12975_v9 = vld [vmem:[#allocation59_spill] sm:$0xff]  ;;  %v12229_v43 = vpop.f32.mrb[119].mxu0 }
 0x408   :  { %v5677_v63 = vmax.f32 %v5421_v41, 0.0  ;;  %v5552_v35 = vmax.f32 %v5296_v60, 0.0  ;;  %v4244_v30 = vadd.f32 %v12972_v31, %v12971_v8  ;;  %v5159_v46 = vadd.f32 %v11914_v16, %v11767_v38  ;;  %12976 = vst [vmem:[#allocation43_spill] sm:$0xff] %v12229_v43  ;;  %v12238_v43 = vpop.f32.mrb[119].mxu1 }
 0x409   :  { %v5995_v12 = vmax.f32 %v5993_v47, %v5994_v20  ;;  %v6444_v40 = vrot.slane %v6443_v58, 1  ;;  %v6460_v56 = vmax.f32 %v5679_v23, %v5680_v52  ;;  %v4265_v11 = vadd.f32 %v12975_v9, %v11785_v1 }
 0x40a   :  { %v6012_v41 = vmax.f32 %v5551_v15, %v5552_v35  ;;  %v5031_v25 = vadd.f32 %v11914_v16, %v4244_v30  ;;  %v5422_v8 = vadd.f32 %v11894_v33, %v5159_v46  ;;  %v5164_v38 = vadd.f32 %v11914_v16, %v11787_v4 }
 0x40b   :  { %v5996_v60 = vrot.slane %v5995_v12, 1  ;;  %v6445_v31 = vmax.f32 %v6443_v58, %v6444_v40  ;;  %v6461_v53 = vrot.slane %v6460_v56, 4  ;;  %v5036_v47 = vadd.f32 %v11914_v16, %v4265_v11 }
 0x40c   :  { %v6004_v20 = vmax.f32 %v6002_v28, %v6003_v26  ;;  %v6013_v23 = vrot.slane %v6012_v41, 4  ;;  %v5294_v52 = vadd.f32 %v11894_v33, %v5031_v25  ;;  %v5678_v1 = vmax.f32 %v5422_v8, 0.0 }
 0x40d   :  { %v5997_v9 = vmax.f32 %v5995_v12, %v5996_v60  ;;  %v6845_v15 = vsel %vm6759_vm7, %v6445_v31, %v6844_v39  ;;  %v5549_v35 = vmax.f32 %v5293_v55, 0.0  ;;  %v6462_v30 = vmax.f32 %v6460_v56, %v6461_v53  ;;  %v12979_v31 = vld [vmem:[#allocation112_spill] sm:$0xff] }
 0x40e   :  { %v6846_v46 = vsel %vm6761_vm8, %v6452_v22, %v6845_v15  ;;  %v6014_v4 = vmax.f32 %v6012_v41, %v6013_v23  ;;  %v5550_v5 = vmax.f32 %v5294_v52, 0.0  ;;  %v6453_v58 = vmax.f32 %v5677_v63, %v5678_v1  ;;  %v12978_v41 = vld [vmem:[#allocation61_spill] sm:$0xff] }
 0x40f   :  { %v6789_v40 = vsel %vm6759_vm7, %v5997_v9, %v12195_v7  ;;  %6896 = vst [vmem:[%s12678_s7 + $0x60] sm:$0xff] %v6846_v46  ;;  %v6463_v28 = vrot.slane %v6462_v30, 2  ;;  %v5299_v26 = vadd.f32 %v11894_v33, %v5036_v47  ;;  %v5427_v39 = vadd.f32 %v11894_v33, %v5164_v38  ;;  %v12977_v7 = vld [vmem:[#allocation60_spill] sm:$0xff]  ;;  %v12260_v47 = vpop.f32.mrb[120].mxu0 }
 0x410   :  { %v6790_v55 = vsel %vm6761_vm8, %v6004_v20, %v6789_v40  ;;  %v6015_v53 = vrot.slane %v6014_v4, 2  ;;  %v6005_v12 = vmax.f32 %v5549_v35, %v5550_v5  ;;  %v6454_v22 = vrot.slane %v6453_v58, 4  ;;  %v12262_v20 = vpop.f32.mrb[120].mxu1 }
 0x411   :  { %6888 = vst [vmem:[%s12678_s7 + $0x20] sm:$0xff] %v6790_v55  ;;  %v6464_v63 = vmax.f32 %v6462_v30, %v6463_v28  ;;  %v4257_v56 = vadd.f32 %v12977_v7, %v11792_v0  ;;  %v5162_v11 = vadd.f32 %v11914_v16, %v11797_v10  ;;  %v4268_v25 = vadd.f32 %v12978_v41, %v11803_v54  ;;  %v12266_v10 = vpop.f32.mrb[121].mxu0  ;;  %v12269_v30 = vpop.f32.mrb[121].mxu1  ;;  %v12980_v41 = vld [vmem:[#allocation22_spill] sm:$0xff] }
 0x412   :  { %v6016_v8 = vmax.f32 %v6014_v4, %v6015_v53  ;;  %v6006_v38 = vrot.slane %v6005_v12, 4  ;;  %v6455_v60 = vmax.f32 %v6453_v58, %v6454_v22  ;;  %v5165_v5 = vadd.f32 %v11914_v16, %v12979_v31  ;;  %v12274_v22 = vpop.f32.mrb[122].mxu0  ;;  %v12276_v7 = vpop.f32.mrb[122].mxu1 }
 0x413   :  { %v6465_v23 = vrot.slane %v6464_v63, 1  ;;  %v5555_v52 = vmax.f32 %v5299_v26, 0.0  ;;  %v5034_v0 = vadd.f32 %v11914_v16, %v4257_v56  ;;  %v5037_v1 = vadd.f32 %v11914_v16, %v4268_v25  ;;  %v12981_v25 = vld [vmem:[#allocation62_spill] sm:$0xff] }
 0x414   :  { %v6017_v9 = vrot.slane %v6016_v8, 1  ;;  %v6007_v54 = vmax.f32 %v6005_v12, %v6006_v38  ;;  %v6456_v15 = vrot.slane %v6455_v60, 2  ;;  %v5428_v35 = vadd.f32 %v11894_v33, %v5165_v5  ;;  %v12982_v5 = vld [vmem:[#allocation63_spill] sm:$0xff] }
 0x415   :  { %v6466_v46 = vmax.f32 %v6464_v63, %v6465_v23  ;;  %v5683_v4 = vmax.f32 %v5427_v39, 0.0  ;;  %v5425_v58 = vadd.f32 %v11894_v33, %v5162_v11  ;;  %v5300_v40 = vadd.f32 %v11894_v33, %v5037_v1  ;;  %v12282_v63 = vpop.f32.mrb[123].mxu0 }
 0x416   :  { %v6008_v28 = vrot.slane %v6007_v54, 2  ;;  %v6457_v26 = vmax.f32 %v6455_v60, %v6456_v15  ;;  %v5297_v55 = vadd.f32 %v11894_v33, %v5034_v0  ;;  %v5684_v53 = vmax.f32 %v5428_v35, 0.0 }
 0x417   :  { %v6018_v12 = vmax.f32 %v6016_v8, %v6017_v9  ;;  %v5556_v56 = vmax.f32 %v5300_v40, 0.0  ;;  %v4260_v38 = vadd.f32 %v12981_v25, %v12980_v41  ;;  %v5163_v39 = vadd.f32 %v11914_v16, %v11818_v37 }
 0x418   :  { %v6009_v11 = vmax.f32 %v6007_v54, %v6008_v28  ;;  %v6458_v31 = vrot.slane %v6457_v26, 1  ;;  %v6474_v60 = vmax.f32 %v5683_v4, %v5684_v53  ;;  %v4281_v23 = vadd.f32 %v12982_v5, %v11840_v29  ;;  %v12294_v4 = vld [vmem:[%s12677_s6] ss:$0 sm:$0xff]  ;;  %v12297_v28 = vpop.f32.mrb[123].mxu1  ;;  %v12983_v5 = vld [vmem:[#allocation64_spill] sm:$0xff] }
 0x419   :  { %v6026_v0 = vmax.f32 %v5555_v52, %v5556_v56  ;;  %v5035_v1 = vadd.f32 %v11914_v16, %v4260_v38  ;;  %v5426_v8 = vadd.f32 %v11894_v33, %v5163_v39  ;;  %v5168_v9 = vadd.f32 %v11914_v16, %v11842_v18 }
 0x41a   :  { %v6010_v15 = vrot.slane %v6009_v11, 1  ;;  %v6459_v35 = vmax.f32 %v6457_v26, %v6458_v31  ;;  %v6475_v40 = vrot.slane %v6474_v60, 4  ;;  %v5040_v37 = vadd.f32 %v11914_v16, %v4281_v23 }
 0x41b   :  { %v5681_v41 = vmax.f32 %v5425_v58, 0.0  ;;  %v6027_v54 = vrot.slane %v6026_v0, 4  ;;  %v5298_v29 = vadd.f32 %v12294_v4, %v5035_v1  ;;  %v5682_v52 = vmax.f32 %v5426_v8, 0.0 }
 0x41c   :  { %v6011_v33 = vmax.f32 %v6009_v11, %v6010_v15  ;;  %v12300_v18 = vsel %vm6749_vm2, %v6466_v46, %v6459_v35  ;;  %v5553_v26 = vmax.f32 %v5297_v55, 0.0  ;;  %v6476_v53 = vmax.f32 %v6474_v60, %v6475_v40  ;;  %v12312_v55 = vld [vmem:[%s12676_s4] ss:$0 sm:$0xff]  ;;  %v12984_v60 = vld [vmem:[#allocation113_spill] sm:$0xff] }
 0x41d   :  { %v6028_v56 = vmax.f32 %v6026_v0, %v6027_v54  ;;  %v5554_v16 = vmax.f32 %v5298_v29, 0.0  ;;  %v6467_v58 = vmax.f32 %v5681_v41, %v5682_v52  ;;  %v5431_v25 = vadd.f32 %v12294_v4, %v5168_v9  ;;  %v12985_v9 = vld [vmem:[#allocation65_spill] sm:$0xff]  ;;  %v12322_v54 = vpop.f32.mrb[124].mxu0  ;;  %v12324_v29 = vpop.f32.mrb[124].mxu1 }
 0x41e   :  { %v12304_v38 = vsel %vm6749_vm2, %v6018_v12, %v6011_v33  ;;  %v6477_v39 = vrot.slane %v6476_v53, 2  ;;  %v5303_v31 = vadd.f32 %v12294_v4, %v5040_v37  ;;  %v4273_v23 = vadd.f32 %v12983_v5, %v11846_v44  ;;  %12986 = vst [vmem:[#allocation11_spill] sm:$0xff] %v12324_v29 }
 0x41f   :  { %v6029_v11 = vrot.slane %v6028_v56, 2  ;;  %v6019_v1 = vmax.f32 %v5553_v26, %v5554_v16  ;;  %v6468_v46 = vrot.slane %v6467_v58, 4  ;;  %v5166_v0 = vadd.f32 %v12312_v55, %v12984_v60  ;;  %v12328_v16 = vpop.f32.mrb[125].mxu0 }
 0x420   :  { %v6478_v8 = vmax.f32 %v6476_v53, %v6477_v39  ;;  %v5038_v12 = vadd.f32 %v12312_v55, %v4273_v23  ;;  %v4284_v15 = vadd.f32 %v12985_v9, %v11854_v17  ;;  %v5169_v44 = vadd.f32 %v12312_v55, %v11856_v45  ;;  %12987 = vst [vmem:[#allocation12_spill] sm:$0xff] %v12328_v16  ;;  %v12989_v9 = vld [vmem:[#allocation23_spill] sm:$0xff] }
 0x421   :  { %v6030_v35 = vmax.f32 %v6028_v56, %v6029_v11  ;;  %v6020_v40 = vrot.slane %v6019_v1, 4  ;;  %v6469_v37 = vmax.f32 %v6467_v58, %v6468_v46  ;;  %v5429_v41 = vadd.f32 %v12294_v4, %v5166_v0  ;;  %v12331_v58 = vpop.f32.mrb[125].mxu1 }
 0x422   :  { %v6479_v52 = vrot.slane %v6478_v8, 1  ;;  %v5687_v33 = vmax.f32 %v5431_v25, 0.0  ;;  %v5041_v26 = vadd.f32 %v12312_v55, %v4284_v15  ;;  %v5432_v53 = vadd.f32 %v12294_v4, %v5169_v44  ;;  %12988 = vst [vmem:[#allocation44_spill] sm:$0xff] %v12331_v58  ;;  %v12990_v15 = vld [vmem:[#allocation66_spill] sm:$0xff]  ;;  %v12340_v58 = vpop.f32.mrb[126].mxu0 }
 0x423   :  { %v6021_v17 = vmax.f32 %v6019_v1, %v6020_v40  ;;  %v6470_v39 = vrot.slane %v6469_v37, 2  ;;  %v5559_v45 = vmax.f32 %v5303_v31, 0.0  ;;  %v5301_v56 = vadd.f32 %v12294_v4, %v5038_v12  ;;  %v12991_v1 = vld [vmem:[#allocation24_spill] sm:$0xff]  ;;  %v12992_v12 = vld [vmem:[#allocation67_spill] sm:$0xff]  ;;  %12993 = vst [vmem:[#allocation13_spill] sm:$0xff] %v12340_v58 }
 0x424   :  { %v6031_v5 = vrot.slane %v6030_v35, 1  ;;  %v5685_v23 = vmax.f32 %v5429_v41, 0.0  ;;  %v5304_v11 = vadd.f32 %v12294_v4, %v5041_v26  ;;  %v5688_v46 = vmax.f32 %v5432_v53, 0.0  ;;  %v12342_v41 = vpop.f32.mrb[126].mxu1 }
 0x425   :  { %v6480_v60 = vmax.f32 %v6478_v8, %v6479_v52  ;;  %v6022_v25 = vrot.slane %v6021_v17, 2  ;;  %v6471_v0 = vmax.f32 %v6469_v37, %v6470_v39  ;;  %v4276_v44 = vadd.f32 %v12990_v15, %v12989_v9  ;;  %12994 = vst [vmem:[#allocation118_spill] sm:$0xff] %v12342_v41  ;;  %v12995_v37 = vld [vmem:[#allocation25_spill] sm:$0xff]  ;;  %v12347_v39 = vpop.f32.mrb[127].mxu0  ;;  %v12352_v58 = vpop.f32.mrb[127].mxu1 }
 0x426   :  { %v5560_v29 = vmax.f32 %v5304_v11, 0.0  ;;  %v6488_v16 = vmax.f32 %v5687_v33, %v5688_v46  ;;  %v5167_v31 = vadd.f32 %v12312_v55, %v11872_v49  ;;  %v4297_v40 = vadd.f32 %v12992_v12, %v12991_v1  ;;  %12996 = vst [vmem:[#allocation45_spill] sm:$0xff] %v12347_v39 }
 0x427   :  { %v6023_v26 = vmax.f32 %v6021_v17, %v6022_v25  ;;  %v6472_v53 = vrot.slane %v6471_v0, 1  ;;  %v5039_v8 = vadd.f32 %v12312_v55, %v4276_v44  ;;  %v5172_v52 = vadd.f32 %v12312_v55, %v12995_v37 }
 0x428   :  { %v5557_v33 = vmax.f32 %v5301_v56, 0.0  ;;  %v6040_v11 = vmax.f32 %v5559_v45, %v5560_v29  ;;  %v6489_v46 = vrot.slane %v6488_v16, 4  ;;  %v5430_v49 = vadd.f32 %v12294_v4, %v5167_v31 }
 0x429   :  { %v6024_v9 = vrot.slane %v6023_v26, 1  ;;  %v6473_v15 = vmax.f32 %v6471_v0, %v6472_v53  ;;  %v5302_v1 = vadd.f32 %v12294_v4, %v5039_v8  ;;  %v5044_v12 = vadd.f32 %v12312_v55, %v4297_v40  ;;  %v12997_v40 = vld [vmem:[#allocation26_spill] sm:$0xff]  ;;  %v12998_v8 = vld [vmem:[#allocation68_spill] sm:$0xff] }
 0x42a   :  { %v6032_v17 = vmax.f32 %v6030_v35, %v6031_v5  ;;  %v6041_v25 = vrot.slane %v6040_v11, 4  ;;  %v6490_v41 = vmax.f32 %v6488_v16, %v6489_v46  ;;  %v5686_v44 = vmax.f32 %v5430_v49, 0.0 }
 0x42b   :  { %v6025_v37 = vmax.f32 %v6023_v26, %v6024_v9  ;;  %v6848_v56 = vsel %vm6751_vm3, %v6473_v15, %v12300_v18  ;;  %v5558_v29 = vmax.f32 %v5302_v1, 0.0  ;;  %v5435_v45 = vadd.f32 %v12294_v4, %v5172_v52  ;;  %v13000_v15 = vld [vmem:[#allocation69_spill] sm:$0xff] }
 0x42c   :  { %v6042_v31 = vmax.f32 %v6040_v11, %v6041_v25  ;;  %v6491_v39 = vrot.slane %v6490_v41, 2  ;;  %v6481_v0 = vmax.f32 %v5685_v23, %v5686_v44  ;;  %v6849_v53 = vsel %vm6753_vm4, %v6480_v60, %v6848_v56  ;;  %v12999_v60 = vld [vmem:[#allocation2_spill] sm:$0xff]  ;;  %v13001_v25 = vld [vmem:[#allocation27_spill] sm:$0xff] }
 0x42d   :  { %v6792_v35 = vsel %vm6751_vm3, %v6025_v37, %v12304_v38  ;;  %v6033_v5 = vmax.f32 %v5557_v33, %v5558_v29  ;;  %v5307_v16 = vadd.f32 %v12294_v4, %v5044_v12  ;;  %v4289_v26 = vadd.f32 %v12998_v8, %v12997_v40 }
 0x42e   :  { %v6043_v46 = vrot.slane %v6042_v31, 2  ;;  %v6492_v49 = vmax.f32 %v6490_v41, %v6491_v39  ;;  %v6793_v18 = vsel %vm6753_vm4, %v6032_v17, %v6792_v35  ;;  %v6482_v9 = vrot.slane %v6481_v0, 4 }
 0x42f   :  { %v6034_v52 = vrot.slane %v6033_v5, 4  ;;  %v5042_v11 = vadd.f32 %v12312_v55, %v4289_v26  ;;  %v5170_v23 = vadd.f32 %v12312_v55, %v11906_v21  ;;  %v4300_v38 = vadd.f32 %v13000_v15, %v12999_v60 }
 0x430   :  { %v6044_v33 = vmax.f32 %v6042_v31, %v6043_v46  ;;  %v6493_v1 = vrot.slane %v6492_v49, 1  ;;  %v6483_v12 = vmax.f32 %v6481_v0, %v6482_v9  ;;  %v5173_v44 = vadd.f32 %v12312_v55, %v13001_v25 }
 0x431   :  { %v6035_v37 = vmax.f32 %v6033_v5, %v6034_v52  ;;  %v5691_v41 = vmax.f32 %v5435_v45, 0.0  ;;  %v5305_v39 = vadd.f32 %v12294_v4, %v5042_v11  ;;  %v5045_v17 = vadd.f32 %v12312_v55, %v4300_v38  ;;  %v13002_v5 = vld [vmem:[#allocation3_spill] sm:$0xff]  ;;  %v13003_v45 = vld [vmem:[#allocation70_spill] sm:$0xff] }
 0x432   :  { %v6484_v56 = vrot.slane %v6483_v12, 2  ;;  %v5563_v29 = vmax.f32 %v5307_v16, 0.0  ;;  %v5433_v35 = vadd.f32 %v12294_v4, %v5170_v23  ;;  %v5436_v21 = vadd.f32 %v12294_v4, %v5173_v44  ;;  %v13004_v23 = vld [vmem:[#allocation71_spill] sm:$0xff] }
 0x433   :  { %v6045_v40 = vrot.slane %v6044_v33, 1  ;;  %v6494_v8 = vmax.f32 %v6492_v49, %v6493_v1  ;;  %v6036_v31 = vrot.slane %v6035_v37, 2  ;;  %v5308_v0 = vadd.f32 %v12294_v4, %v5045_v17  ;;  %v13005_v1 = vld [vmem:[#allocation4_spill] sm:$0xff] }
 0x434   :  { %v6485_v26 = vmax.f32 %v6483_v12, %v6484_v56  ;;  %v5561_v46 = vmax.f32 %v5305_v39, 0.0  ;;  %v5692_v9 = vmax.f32 %v5436_v21, 0.0  ;;  %v4292_v52 = vadd.f32 %v13003_v45, %v13002_v5 }
 0x435   :  { %v6037_v11 = vmax.f32 %v6035_v37, %v6036_v31  ;;  %v5564_v60 = vmax.f32 %v5308_v0, 0.0  ;;  %v5171_v16 = vadd.f32 %v12312_v55, %v11932_v48  ;;  %v4313_v15 = vadd.f32 %v13004_v23, %v11951_v59 }
 0x436   :  { %v6486_v38 = vrot.slane %v6485_v26, 1  ;;  %v6502_v25 = vmax.f32 %v5691_v41, %v5692_v9  ;;  %v5043_v49 = vadd.f32 %v12312_v55, %v4292_v52  ;;  %v5176_v12 = vadd.f32 %v12312_v55, %v13005_v1  ;;  %v13008_v1 = vld [vmem:[#allocation5_spill] sm:$0xff] }
 0x437   :  { %v6038_v44 = vrot.slane %v6037_v11, 1  ;;  %v5689_v39 = vmax.f32 %v5433_v35, 0.0  ;;  %v6054_v17 = vmax.f32 %v5563_v29, %v5564_v60  ;;  %v5434_v56 = vadd.f32 %v12294_v4, %v5171_v16 }
 0x438   :  { %v6487_v37 = vmax.f32 %v6485_v26, %v6486_v38  ;;  %v6503_v21 = vrot.slane %v6502_v25, 4  ;;  %v5306_v31 = vadd.f32 %v12294_v4, %v5043_v49  ;;  %v5048_v48 = vadd.f32 %v12312_v55, %v4313_v15  ;;  %v13006_v49 = vld [vmem:[#allocation28_spill] sm:$0xff] }
 0x439   :  { %v6046_v0 = vmax.f32 %v6044_v33, %v6045_v40  ;;  %v6039_v59 = vmax.f32 %v6037_v11, %v6038_v44  ;;  %v6055_v5 = vrot.slane %v6054_v17, 4  ;;  %v5690_v41 = vmax.f32 %v5434_v56, 0.0 }
 0x43a   :  { %v6850_v9 = vsel %vm6755_vm5, %v6487_v37, %v6849_v53  ;;  %v6504_v45 = vmax.f32 %v6502_v25, %v6503_v21  ;;  %v5562_v52 = vmax.f32 %v5306_v31, 0.0  ;;  %v5439_v23 = vadd.f32 %v12294_v4, %v5176_v12  ;;  %v13007_v53 = vld [vmem:[#allocation72_spill] sm:$0xff] }
 0x43b   :  { %v6794_v29 = vsel %vm6755_vm5, %v6039_v59, %v6793_v18  ;;  %v6056_v35 = vmax.f32 %v6054_v17, %v6055_v5  ;;  %v6495_v60 = vmax.f32 %v5689_v39, %v5690_v41  ;;  %v6851_v26 = vsel %vm6757_vm6, %v6494_v8, %v6850_v9  ;;  %v13009_v17 = vld [vmem:[#allocation114_spill] sm:$0xff]  ;;  %v13010_v39 = vld [vmem:[#allocation73_spill] sm:$0xff] }
 0x43c   :  { %v6505_v16 = vrot.slane %v6504_v45, 2  ;;  %v6047_v38 = vmax.f32 %v5561_v46, %v5562_v52  ;;  %v6795_v15 = vsel %vm6757_vm6, %v6046_v0, %v6794_v29  ;;  %v5311_v33 = vadd.f32 %v12294_v4, %v5048_v48  ;;  %v13011_v8 = vld [vmem:[#allocation29_spill] sm:$0xff] }
 0x43d   :  { %v6057_v40 = vrot.slane %v6056_v35, 2  ;;  %v6496_v11 = vrot.slane %v6495_v60, 4  ;;  %v4305_v25 = vadd.f32 %v13007_v53, %v13006_v49  ;;  %v5174_v12 = vadd.f32 %v12312_v55, %v13008_v1  ;;  %v13013_v1 = vld [vmem:[#allocation74_spill] sm:$0xff] }
 0x43e   :  { %v6506_v44 = vmax.f32 %v6504_v45, %v6505_v16  ;;  %v6048_v18 = vrot.slane %v6047_v38, 4  ;;  %v4316_v56 = vadd.f32 %v13010_v39, %v13009_v17  ;;  %v5177_v46 = vadd.f32 %v12312_v55, %v13011_v8 }
 0x43f   :  { %v6058_v37 = vmax.f32 %v6056_v35, %v6057_v40  ;;  %v6497_v21 = vmax.f32 %v6495_v60, %v6496_v11  ;;  %v5046_v31 = vadd.f32 %v12312_v55, %v4305_v25  ;;  %v5437_v48 = vadd.f32 %v12294_v4, %v5174_v12  ;;  %v13012_v25 = vld [vmem:[#allocation115_spill] sm:$0xff] }
 0x440   :  { %v6507_v0 = vrot.slane %v6506_v44, 1  ;;  %v6049_v59 = vmax.f32 %v6047_v38, %v6048_v18  ;;  %v5049_v5 = vadd.f32 %v12312_v55, %v4316_v56  ;;  %v5440_v41 = vadd.f32 %v12294_v4, %v5177_v46  ;;  %v13014_v56 = vld [vmem:[#allocation75_spill] sm:$0xff] }
 0x441   :  { %v6059_v9 = vrot.slane %v6058_v37, 1  ;;  %v6498_v45 = vrot.slane %v6497_v21, 2  ;;  %v5567_v52 = vmax.f32 %v5311_v33, 0.0  ;;  %v5695_v29 = vmax.f32 %v5439_v23, 0.0 }
 0x442   :  { %v6050_v16 = vrot.slane %v6049_v59, 2  ;;  %v5309_v49 = vadd.f32 %v12294_v4, %v5046_v31  ;;  %v5312_v35 = vadd.f32 %v12294_v4, %v5049_v5  ;;  %v5696_v60 = vmax.f32 %v5440_v41, 0.0 }
 0x443   :  { %v6508_v40 = vmax.f32 %v6506_v44, %v6507_v0  ;;  %v6499_v11 = vmax.f32 %v6497_v21, %v6498_v45  ;;  %v5693_v53 = vmax.f32 %v5437_v48, 0.0  ;;  %v4308_v38 = vadd.f32 %v13013_v1, %v13012_v25 }
 0x444   :  { %v6051_v12 = vmax.f32 %v6049_v59, %v6050_v16  ;;  %v5568_v18 = vmax.f32 %v5312_v35, 0.0  ;;  %v6516_v17 = vmax.f32 %v5695_v29, %v5696_v60  ;;  %v5175_v39 = vadd.f32 %v12312_v55, %v11982_v32 }
 0x445   :  { %v6500_v33 = vrot.slane %v6499_v11, 1  ;;  %v5047_v23 = vadd.f32 %v12312_v55, %v4308_v38  ;;  %v4329_v8 = vadd.f32 %v13014_v56, %v12004_v6  ;;  %v5180_v44 = vadd.f32 %v12312_v55, %v12006_v42 }
 0x446   :  { %v6052_v46 = vrot.slane %v6051_v12, 1  ;;  %v6068_v21 = vmax.f32 %v5567_v52, %v5568_v18  ;;  %v6517_v31 = vrot.slane %v6516_v17, 4  ;;  %v5438_v48 = vadd.f32 %v12294_v4, %v5175_v39 }
 0x447   :  { %v6060_v0 = vmax.f32 %v6058_v37, %v6059_v9  ;;  %v6501_v59 = vmax.f32 %v6499_v11, %v6500_v33  ;;  %v5310_v5 = vadd.f32 %v12294_v4, %v5047_v23  ;;  %v5052_v32 = vadd.f32 %v12312_v55, %v4329_v8  ;;  %v13016_v33 = vld [vmem:[#allocation77_spill] sm:$0xff] }
 0x448   :  { %v6053_v41 = vmax.f32 %v6051_v12, %v6052_v46  ;;  %v6069_v45 = vrot.slane %v6068_v21, 4  ;;  %v6518_v29 = vmax.f32 %v6516_v17, %v6517_v31  ;;  %v5694_v16 = vmax.f32 %v5438_v48, 0.0 }
 0x449   :  { %v6852_v6 = vsel %vm6759_vm7, %v6501_v59, %v6851_v26  ;;  %v5565_v35 = vmax.f32 %v5309_v49, 0.0  ;;  %v5566_v60 = vmax.f32 %v5310_v5, 0.0  ;;  %v5443_v42 = vadd.f32 %v12294_v4, %v5180_v44 }
 0x44a   :  { %v6796_v52 = vsel %vm6759_vm7, %v6053_v41, %v6795_v15  ;;  %v6853_v25 = vsel %vm6761_vm8, %v6508_v40, %v6852_v6  ;;  %v6070_v37 = vmax.f32 %v6068_v21, %v6069_v45  ;;  %v6519_v9 = vrot.slane %v6518_v29, 2  ;;  %v13015_v40 = vld [vmem:[#allocation76_spill] sm:$0xff]  ;;  %v13018_v6 = vld [vmem:[#allocation78_spill] sm:$0xff] }
 0x44b   :  { %v6797_v11 = vsel %vm6761_vm8, %v6060_v0, %v6796_v52  ;;  %6897 = vst [vmem:[%s12678_s7 + $0x68] sm:$0xff] %v6853_v25  ;;  %v6061_v1 = vmax.f32 %v5565_v35, %v5566_v60  ;;  %v6509_v38 = vmax.f32 %v5693_v53, %v5694_v16  ;;  %v5315_v26 = vadd.f32 %v12294_v4, %v5052_v32  ;;  %v13017_v16 = vld [vmem:[#allocation116_spill] sm:$0xff] }
 0x44c   :  { %6889 = vst [vmem:[%s12678_s7 + $0x28] sm:$0xff] %v6797_v11  ;;  %v6071_v49 = vrot.slane %v6070_v37, 2  ;;  %v6520_v15 = vmax.f32 %v6518_v29, %v6519_v9  ;;  %v4321_v12 = vadd.f32 %v13015_v40, %v12008_v50  ;;  %v5178_v18 = vadd.f32 %v12312_v55, %v12012_v2 }
 0x44d   :  { %v6062_v17 = vrot.slane %v6061_v1, 4  ;;  %v6510_v39 = vrot.slane %v6509_v38, 4  ;;  %v4332_v23 = vadd.f32 %v13016_v33, %v12016_v61  ;;  %v5181_v53 = vadd.f32 %v12312_v55, %v12018_v36 }
 0x44e   :  { %v6072_v56 = vmax.f32 %v6070_v37, %v6071_v49  ;;  %v6521_v8 = vrot.slane %v6520_v15, 1  ;;  %v5699_v44 = vmax.f32 %v5443_v42, 0.0  ;;  %v5050_v46 = vadd.f32 %v12312_v55, %v4321_v12 }
 0x44f   :  { %v6063_v21 = vmax.f32 %v6061_v1, %v6062_v17  ;;  %v6511_v31 = vmax.f32 %v6509_v38, %v6510_v39  ;;  %v5053_v50 = vadd.f32 %v12312_v55, %v4332_v23  ;;  %v5444_v48 = vadd.f32 %v12294_v4, %v5181_v53  ;;  %v13019_v1 = vld [vmem:[#allocation79_spill] sm:$0xff] }
 0x450   :  { %v6073_v2 = vrot.slane %v6072_v56, 1  ;;  %v6522_v0 = vmax.f32 %v6520_v15, %v6521_v8  ;;  %v5571_v59 = vmax.f32 %v5315_v26, 0.0  ;;  %v5441_v5 = vadd.f32 %v12294_v4, %v5178_v18 }
 0x451   :  { %v6064_v61 = vrot.slane %v6063_v21, 2  ;;  %v6512_v32 = vrot.slane %v6511_v31, 2  ;;  %v5316_v36 = vadd.f32 %v12294_v4, %v5053_v50  ;;  %v5700_v41 = vmax.f32 %v5444_v48, 0.0 }
 0x452   :  { %v6074_v45 = vmax.f32 %v6072_v56, %v6073_v2  ;;  %v5313_v29 = vadd.f32 %v12294_v4, %v5050_v46  ;;  %v4324_v35 = vadd.f32 %v13018_v6, %v13017_v16  ;;  %v5179_v60 = vadd.f32 %v12312_v55, %v12032_v14  ;;  %v13023_v6 = vld [vmem:[#allocation32_spill] sm:$0xff] }
 0x453   :  { %v6065_v42 = vmax.f32 %v6063_v21, %v6064_v61  ;;  %v6513_v52 = vmax.f32 %v6511_v31, %v6512_v32  ;;  %v5572_v25 = vmax.f32 %v5316_v36, 0.0  ;;  %v6530_v37 = vmax.f32 %v5699_v44, %v5700_v41  ;;  %v13021_v61 = vld [vmem:[#allocation80_spill] sm:$0xff] }
 0x454   :  { %v5051_v9 = vadd.f32 %v12312_v55, %v4324_v35  ;;  %v5442_v11 = vadd.f32 %v12294_v4, %v5179_v60  ;;  %v4345_v38 = vadd.f32 %v13019_v1, %v12055_v13  ;;  %v5184_v26 = vadd.f32 %v12312_v55, %v12057_v3  ;;  %v13024_v35 = vld [vmem:[#allocation81_spill] sm:$0xff] }
 0x455   :  { %v6066_v49 = vrot.slane %v6065_v42, 1  ;;  %v6514_v15 = vrot.slane %v6513_v52, 1  ;;  %v6082_v40 = vmax.f32 %v5571_v59, %v5572_v25  ;;  %v6531_v12 = vrot.slane %v6530_v37, 4 }
 0x456   :  { %v5697_v18 = vmax.f32 %v5441_v5, 0.0  ;;  %v5314_v14 = vadd.f32 %v12294_v4, %v5051_v9  ;;  %v5698_v17 = vmax.f32 %v5442_v11, 0.0  ;;  %v5056_v39 = vadd.f32 %v12312_v55, %v4345_v38  ;;  %v13020_v5 = vld [vmem:[#allocation30_spill] sm:$0xff] }
 0x457   :  { %v6067_v33 = vmax.f32 %v6065_v42, %v6066_v49  ;;  %v6515_v23 = vmax.f32 %v6513_v52, %v6514_v15  ;;  %v6083_v53 = vrot.slane %v6082_v40, 4  ;;  %v6532_v56 = vmax.f32 %v6530_v37, %v6531_v12  ;;  %v13025_v52 = vld [vmem:[#allocation103_spill] sm:$0xff] }
 0x458   :  { %v5569_v8 = vmax.f32 %v5313_v29, 0.0  ;;  %v5570_v44 = vmax.f32 %v5314_v14, 0.0  ;;  %v6523_v13 = vmax.f32 %v5697_v18, %v5698_v17  ;;  %v5447_v46 = vadd.f32 %v12294_v4, %v5184_v26  ;;  %v13022_v29 = vld [vmem:[#allocation31_spill] sm:$0xff] }
 0x459   :  { %v6798_v3 = vsel %vm6749_vm2, %v6074_v45, %v6067_v33  ;;  %v6854_v21 = vsel %vm6749_vm2, %v6522_v0, %v6515_v23  ;;  %v6084_v31 = vmax.f32 %v6082_v40, %v6083_v53  ;;  %v6533_v50 = vrot.slane %v6532_v56, 2 }
 0x45a   :  { %v6075_v48 = vmax.f32 %v5569_v8, %v5570_v44  ;;  %v6524_v2 = vrot.slane %v6523_v13, 4  ;;  %v5319_v59 = vadd.f32 %v12294_v4, %v5056_v39  ;;  %v4337_v32 = vadd.f32 %v13021_v61, %v13020_v5  ;;  %v13026_v8 = vld [vmem:[#allocation33_spill] sm:$0xff]  ;;  %v13027_v44 = vld [vmem:[#allocation82_spill] sm:$0xff]  ;;  %v13030_v5 = vld [vmem:[#allocation83_spill] sm:$0xff] }
 0x45b   :  { %v6085_v36 = vrot.slane %v6084_v31, 2  ;;  %v6534_v41 = vmax.f32 %v6532_v56, %v6533_v50  ;;  %v5182_v16 = vadd.f32 %v12312_v55, %v13022_v29  ;;  %v4348_v60 = vadd.f32 %v13024_v35, %v13023_v6  ;;  %v13031_v29 = vld [vmem:[#allocation34_spill] sm:$0xff] }
 0x45c   :  { %v6076_v45 = vrot.slane %v6075_v48, 4  ;;  %v6525_v42 = vmax.f32 %v6523_v13, %v6524_v2  ;;  %v5054_v0 = vadd.f32 %v12312_v55, %v4337_v32  ;;  %v5185_v25 = vadd.f32 %v12312_v55, %v13025_v52 }
 0x45d   :  { %v6086_v37 = vmax.f32 %v6084_v31, %v6085_v36  ;;  %v6535_v9 = vrot.slane %v6534_v41, 1  ;;  %v5445_v11 = vadd.f32 %v12294_v4, %v5182_v16  ;;  %v5057_v1 = vadd.f32 %v12312_v55, %v4348_v60  ;;  %v13028_v31 = vld [vmem:[#allocation6_spill] sm:$0xff] }
 0x45e   :  { %v6077_v38 = vmax.f32 %v6075_v48, %v6076_v45  ;;  %v6526_v26 = vrot.slane %v6525_v42, 2  ;;  %v5703_v49 = vmax.f32 %v5447_v46, 0.0  ;;  %v5448_v15 = vadd.f32 %v12294_v4, %v5185_v25 }
 0x45f   :  { %v6087_v40 = vrot.slane %v6086_v37, 1  ;;  %v5575_v12 = vmax.f32 %v5319_v59, 0.0  ;;  %v5317_v18 = vadd.f32 %v12294_v4, %v5054_v0  ;;  %v5320_v14 = vadd.f32 %v12294_v4, %v5057_v1  ;;  %v13029_v59 = vld [vmem:[#allocation104_spill] sm:$0xff] }
 0x460   :  { %v6536_v17 = vmax.f32 %v6534_v41, %v6535_v9  ;;  %v6078_v39 = vrot.slane %v6077_v38, 2  ;;  %v6527_v33 = vmax.f32 %v6525_v42, %v6526_v26  ;;  %v5704_v23 = vmax.f32 %v5448_v15, 0.0 }
 0x461   :  { %v5701_v53 = vmax.f32 %v5445_v11, 0.0  ;;  %v5576_v56 = vmax.f32 %v5320_v14, 0.0  ;;  %v4340_v13 = vadd.f32 %v13027_v44, %v13026_v8  ;;  %v5183_v46 = vadd.f32 %v12312_v55, %v13028_v31  ;;  %v13033_v44 = vld [vmem:[#allocation84_spill] sm:$0xff]  ;;  %v13034_v31 = vld [vmem:[#allocation7_spill] sm:$0xff] }
 0x462   :  { %v6079_v50 = vmax.f32 %v6077_v38, %v6078_v39  ;;  %v6528_v48 = vrot.slane %v6527_v33, 1  ;;  %v6544_v2 = vmax.f32 %v5703_v49, %v5704_v23  ;;  %v4361_v61 = vadd.f32 %v13030_v5, %v13029_v59  ;;  %v13037_v59 = vld [vmem:[#allocation8_spill] sm:$0xff] }
 0x463   :  { %v6096_v32 = vmax.f32 %v5575_v12, %v5576_v56  ;;  %v5055_v36 = vadd.f32 %v12312_v55, %v4340_v13  ;;  %v5446_v41 = vadd.f32 %v12294_v4, %v5183_v46  ;;  %v5188_v16 = vadd.f32 %v12312_v55, %v13031_v29  ;;  %v13036_v46 = vld [vmem:[#allocation85_spill] sm:$0xff] }
 0x464   :  { %v6080_v6 = vrot.slane %v6079_v50, 1  ;;  %v6529_v35 = vmax.f32 %v6527_v33, %v6528_v48  ;;  %v6545_v60 = vrot.slane %v6544_v2, 4  ;;  %v5060_v45 = vadd.f32 %v12312_v55, %v4361_v61 }
 0x465   :  { %v5573_v42 = vmax.f32 %v5317_v18, 0.0  ;;  %v6097_v0 = vrot.slane %v6096_v32, 4  ;;  %v5318_v52 = vadd.f32 %v12294_v4, %v5055_v36  ;;  %v5702_v25 = vmax.f32 %v5446_v41, 0.0 }
 0x466   :  { %v6088_v9 = vmax.f32 %v6086_v37, %v6087_v40  ;;  %v6081_v11 = vmax.f32 %v6079_v50, %v6080_v6  ;;  %v6855_v1 = vsel %vm6751_vm3, %v6529_v35, %v6854_v21  ;;  %v6546_v38 = vmax.f32 %v6544_v2, %v6545_v60  ;;  %v13032_v21 = vld [vmem:[#allocation35_spill] sm:$0xff] }
 0x467   :  { %v6098_v26 = vmax.f32 %v6096_v32, %v6097_v0  ;;  %v5574_v49 = vmax.f32 %v5318_v52, 0.0  ;;  %v6537_v15 = vmax.f32 %v5701_v53, %v5702_v25  ;;  %v6856_v12 = vsel %vm6753_vm4, %v6536_v17, %v6855_v1  ;;  %v13035_v17 = vld [vmem:[#allocation36_spill] sm:$0xff] }
 0x468   :  { %v6799_v14 = vsel %vm6751_vm3, %v6081_v11, %v6798_v3  ;;  %v6547_v39 = vrot.slane %v6546_v38, 2  ;;  %v5323_v33 = vadd.f32 %v12294_v4, %v5060_v45  ;;  %v5451_v18 = vadd.f32 %v12294_v4, %v5188_v16 }
 0x469   :  { %v6099_v23 = vrot.slane %v6098_v26, 2  ;;  %v6089_v56 = vmax.f32 %v5573_v42, %v5574_v49  ;;  %v6800_v37 = vsel %vm6753_vm4, %v6088_v9, %v6799_v14  ;;  %v6538_v40 = vrot.slane %v6537_v15, 4  ;;  %v13039_v49 = vld [vmem:[#allocation86_spill] sm:$0xff] }
 0x46a   :  { %v6548_v8 = vmax.f32 %v6546_v38, %v6547_v39  ;;  %v4353_v13 = vadd.f32 %v13033_v44, %v13032_v21  ;;  %v5186_v53 = vadd.f32 %v12312_v55, %v13034_v31  ;;  %v4364_v3 = vadd.f32 %v13036_v46, %v13035_v17  ;;  %v13041_v44 = vld [vmem:[#allocation37_spill] sm:$0xff] }
 0x46b   :  { %v6100_v50 = vmax.f32 %v6098_v26, %v6099_v23  ;;  %v6090_v48 = vrot.slane %v6089_v56, 4  ;;  %v6539_v2 = vmax.f32 %v6537_v15, %v6538_v40  ;;  %v5189_v5 = vadd.f32 %v12312_v55, %v13037_v59  ;;  %v13038_v26 = vld [vmem:[#allocation9_spill] sm:$0xff] }
 0x46c   :  { %v6549_v61 = vrot.slane %v6548_v8, 1  ;;  %v5058_v32 = vadd.f32 %v12312_v55, %v4353_v13  ;;  %v5449_v36 = vadd.f32 %v12294_v4, %v5186_v53  ;;  %v5061_v41 = vadd.f32 %v12312_v55, %v4364_v3 }
 0x46d   :  { %v6091_v29 = vmax.f32 %v6089_v56, %v6090_v48  ;;  %v6540_v16 = vrot.slane %v6539_v2, 2  ;;  %v5579_v6 = vmax.f32 %v5323_v33, 0.0  ;;  %v5452_v35 = vadd.f32 %v12294_v4, %v5189_v5 }
 0x46e   :  { %v6101_v60 = vrot.slane %v6100_v50, 1  ;;  %v6550_v45 = vmax.f32 %v6548_v8, %v6549_v61  ;;  %v5707_v42 = vmax.f32 %v5451_v18, 0.0  ;;  %v5324_v0 = vadd.f32 %v12294_v4, %v5061_v41  ;;  %v13040_v18 = vld [vmem:[#allocation87_spill] sm:$0xff] }
 0x46f   :  { %v6092_v52 = vrot.slane %v6091_v29, 2  ;;  %v6541_v25 = vmax.f32 %v6539_v2, %v6540_v16  ;;  %v5321_v9 = vadd.f32 %v12294_v4, %v5058_v32  ;;  %v5708_v11 = vmax.f32 %v5452_v35, 0.0 }
 0x470   :  { %v5705_v1 = vmax.f32 %v5449_v36, 0.0  ;;  %v5580_v38 = vmax.f32 %v5324_v0, 0.0  ;;  %v4356_v15 = vadd.f32 %v13039_v49, %v13038_v26  ;;  %v5187_v14 = vadd.f32 %v12312_v55, %v12136_v62 }
 0x471   :  { %v6093_v39 = vmax.f32 %v6091_v29, %v6092_v52  ;;  %v6542_v33 = vrot.slane %v6541_v25, 1  ;;  %v6558_v23 = vmax.f32 %v5707_v42, %v5708_v11  ;;  %v4377_v56 = vadd.f32 %v13040_v18, %v12154_v24 }
 0x472   :  { %v6110_v40 = vmax.f32 %v5579_v6, %v5580_v38  ;;  %v5059_v8 = vadd.f32 %v12312_v55, %v4356_v15  ;;  %v5450_v21 = vadd.f32 %v12294_v4, %v5187_v14  ;;  %v5192_v13 = vadd.f32 %v12312_v55, %v13041_v44  ;;  %v13045_v38 = vld [vmem:[#allocation89_spill] sm:$0xff]  ;;  %v13046_v14 = vld [vmem:[#allocation10_spill] sm:$0xff] }
 0x473   :  { %v6094_v31 = vrot.slane %v6093_v39, 1  ;;  %v6543_v53 = vmax.f32 %v6541_v25, %v6542_v33  ;;  %v6559_v17 = vrot.slane %v6558_v23, 4  ;;  %v5064_v46 = vadd.f32 %v12312_v55, %v4377_v56  ;;  %v13042_v25 = vld [vmem:[#allocation117_spill] sm:$0xff] }
 0x474   :  { %v6102_v62 = vmax.f32 %v6100_v50, %v6101_v60  ;;  %v6111_v3 = vrot.slane %v6110_v40, 4  ;;  %v5322_v48 = vadd.f32 %v12294_v4, %v5059_v8  ;;  %v5706_v2 = vmax.f32 %v5450_v21, 0.0 }
 0x475   :  { %v6095_v59 = vmax.f32 %v6093_v39, %v6094_v31  ;;  %v6857_v24 = vsel %vm6755_vm5, %v6543_v53, %v6856_v12  ;;  %v5577_v5 = vmax.f32 %v5321_v9, 0.0  ;;  %v6560_v61 = vmax.f32 %v6558_v23, %v6559_v17  ;;  %v13043_v9 = vld [vmem:[#allocation88_spill] sm:$0xff] }
 0x476   :  { %v6112_v32 = vmax.f32 %v6110_v40, %v6111_v3  ;;  %v5578_v36 = vmax.f32 %v5322_v48, 0.0  ;;  %v6551_v41 = vmax.f32 %v5705_v1, %v5706_v2  ;;  %v6858_v29 = vsel %vm6757_vm6, %v6550_v45, %v6857_v24  ;;  %v13044_v45 = vld [vmem:[#allocation38_spill] sm:$0xff] }
 0x477   :  { %v6801_v16 = vsel %vm6755_vm5, %v6095_v59, %v6800_v37  ;;  %v6561_v6 = vrot.slane %v6560_v61, 2  ;;  %v5327_v35 = vadd.f32 %v12294_v4, %v5064_v46  ;;  %v5455_v50 = vadd.f32 %v12294_v4, %v5192_v13  ;;  %v13047_v59 = vld [vmem:[#allocation39_spill] sm:$0xff]  ;;  %v13048_v24 = vld [vmem:[#allocation90_spill] sm:$0xff] }
 0x478   :  { %v6113_v60 = vrot.slane %v6112_v32, 2  ;;  %v6103_v42 = vmax.f32 %v5577_v5, %v5578_v36  ;;  %v6802_v0 = vsel %vm6757_vm6, %v6102_v62, %v6801_v16  ;;  %v6552_v52 = vrot.slane %v6551_v41, 4  ;;  %v13049_v16 = vld [vmem:[#allocation91_spill] sm:$0xff] }
 0x479   :  { %v6562_v12 = vmax.f32 %v6560_v61, %v6561_v6  ;;  %v4369_v11 = vadd.f32 %v13043_v9, %v13042_v25  ;;  %v5190_v1 = vadd.f32 %v12312_v55, %v12166_v34  ;;  %v4380_v37 = vadd.f32 %v13045_v38, %v13044_v45 }
 0x47a   :  { %v6114_v26 = vmax.f32 %v6112_v32, %v6113_v60  ;;  %v6104_v49 = vrot.slane %v6103_v42, 4  ;;  %v6553_v15 = vmax.f32 %v6551_v41, %v6552_v52  ;;  %v5193_v39 = vadd.f32 %v12312_v55, %v13046_v14 }
 0x47b   :  { %v6563_v33 = vrot.slane %v6562_v12, 1  ;;  %v5062_v23 = vadd.f32 %v12312_v55, %v4369_v11  ;;  %v5453_v18 = vadd.f32 %v12294_v4, %v5190_v1  ;;  %v5065_v56 = vadd.f32 %v12312_v55, %v4380_v37 }
 0x47c   :  { %v6105_v40 = vmax.f32 %v6103_v42, %v6104_v49  ;;  %v6554_v8 = vrot.slane %v6553_v15, 2  ;;  %v5583_v21 = vmax.f32 %v5327_v35, 0.0  ;;  %v5456_v34 = vadd.f32 %v12294_v4, %v5193_v39 }
 0x47d   :  { %v6115_v44 = vrot.slane %v6114_v26, 1  ;;  %v6564_v13 = vmax.f32 %v6562_v12, %v6563_v33  ;;  %v5711_v31 = vmax.f32 %v5455_v50, 0.0  ;;  %v5328_v53 = vadd.f32 %v12294_v4, %v5065_v56 }
 0x47e   :  { %v6106_v17 = vrot.slane %v6105_v40, 2  ;;  %v6555_v46 = vmax.f32 %v6553_v15, %v6554_v8  ;;  %v5325_v62 = vadd.f32 %v12294_v4, %v5062_v23  ;;  %v5712_v3 = vmax.f32 %v5456_v34, 0.0  ;;  %v13051_v34 = vld [vmem:[#allocation92_spill] sm:$0xff] }
 0x47f   :  { %v5709_v48 = vmax.f32 %v5453_v18, 0.0  ;;  %v5584_v2 = vmax.f32 %v5328_v53, 0.0  ;;  %v4372_v5 = vadd.f32 %v13048_v24, %v13047_v59  ;;  %v5191_v61 = vadd.f32 %v12312_v55, %v12187_v51  ;;  %v13053_v53 = vld [vmem:[#allocation93_spill] sm:$0xff] }
 0x480   :  { %v6107_v32 = vmax.f32 %v6105_v40, %v6106_v17  ;;  %v6556_v36 = vrot.slane %v6555_v46, 1  ;;  %v6572_v41 = vmax.f32 %v5711_v31, %v5712_v3  ;;  %v4393_v6 = vadd.f32 %v13049_v16, %v12205_v57  ;;  %v13052_v31 = vld [vmem:[#allocation41_spill] sm:$0xff] }
 0x481   :  { %v6124_v35 = vmax.f32 %v5583_v21, %v5584_v2  ;;  %v5063_v50 = vadd.f32 %v12312_v55, %v4372_v5  ;;  %v5454_v60 = vadd.f32 %v12294_v4, %v5191_v61  ;;  %v5196_v42 = vadd.f32 %v12312_v55, %v12207_v27 }
 0x482   :  { %v6108_v52 = vrot.slane %v6107_v32, 1  ;;  %v6557_v12 = vmax.f32 %v6555_v46, %v6556_v36  ;;  %v6573_v25 = vrot.slane %v6572_v41, 4  ;;  %v5068_v9 = vadd.f32 %v12312_v55, %v4393_v6 }
 0x483   :  { %v6116_v51 = vmax.f32 %v6114_v26, %v6115_v44  ;;  %v6125_v11 = vrot.slane %v6124_v35, 4  ;;  %v5326_v1 = vadd.f32 %v12294_v4, %v5063_v50  ;;  %v5710_v45 = vmax.f32 %v5454_v60, 0.0 }
 0x484   :  { %v6109_v38 = vmax.f32 %v6107_v32, %v6108_v52  ;;  %v6859_v57 = vsel %vm6759_vm7, %v6557_v12, %v6858_v29  ;;  %v5581_v37 = vmax.f32 %v5325_v62, 0.0  ;;  %v6574_v49 = vmax.f32 %v6572_v41, %v6573_v25 }
 0x485   :  { %v6860_v15 = vsel %vm6761_vm8, %v6564_v13, %v6859_v57  ;;  %v6126_v14 = vmax.f32 %v6124_v35, %v6125_v11  ;;  %v5582_v39 = vmax.f32 %v5326_v1, 0.0  ;;  %v6565_v27 = vmax.f32 %v5709_v48, %v5710_v45  ;;  %v13054_v48 = vld [vmem:[#allocation42_spill] sm:$0xff] }
 0x486   :  { %v6803_v33 = vsel %vm6759_vm7, %v6109_v38, %v6802_v0  ;;  %6898 = vst [vmem:[%s12678_s7 + $0x70] sm:$0xff] %v6860_v15  ;;  %v6575_v26 = vrot.slane %v6574_v49, 2  ;;  %v5331_v23 = vadd.f32 %v12294_v4, %v5068_v9  ;;  %v5459_v18 = vadd.f32 %v12294_v4, %v5196_v42  ;;  %v13050_v0 = vld [vmem:[#allocation40_spill] sm:$0xff]  ;;  %v13056_v11 = vld [vmem:[#allocation94_spill] sm:$0xff] }
 0x487   :  { %v6804_v29 = vsel %vm6761_vm8, %v6116_v51, %v6803_v33  ;;  %v6127_v56 = vrot.slane %v6126_v14, 2  ;;  %v6117_v40 = vmax.f32 %v5581_v37, %v5582_v39  ;;  %v6566_v8 = vrot.slane %v6565_v27, 4  ;;  %v13055_v51 = vld [vmem:[#allocation43_spill] sm:$0xff] }
 0x488   :  { %6890 = vst [vmem:[%s12678_s7 + $0x30] sm:$0xff] %v6804_v29  ;;  %v6576_v21 = vmax.f32 %v6574_v49, %v6575_v26  ;;  %v4385_v44 = vadd.f32 %v13051_v34, %v13050_v0  ;;  %v5194_v13 = vadd.f32 %v12312_v55, %v12217_v19  ;;  %v4396_v17 = vadd.f32 %v13053_v53, %v13052_v31  ;;  %v13057_v49 = vld [vmem:[#allocation95_spill] sm:$0xff] }
 0x489   :  { %v6128_v46 = vmax.f32 %v6126_v14, %v6127_v56  ;;  %v6118_v62 = vrot.slane %v6117_v40, 4  ;;  %v6567_v3 = vmax.f32 %v6565_v27, %v6566_v8  ;;  %v5197_v2 = vadd.f32 %v12312_v55, %v13054_v48 }
 0x48a   :  { %v6577_v59 = vrot.slane %v6576_v21, 1  ;;  %v5587_v24 = vmax.f32 %v5331_v23, 0.0  ;;  %v5066_v5 = vadd.f32 %v12312_v55, %v4385_v44  ;;  %v5069_v61 = vadd.f32 %v12312_v55, %v4396_v17 }
 0x48b   :  { %v6129_v32 = vrot.slane %v6128_v46, 1  ;;  %v6119_v36 = vmax.f32 %v6117_v40, %v6118_v62  ;;  %v6568_v41 = vrot.slane %v6567_v3, 2  ;;  %v5460_v19 = vadd.f32 %v12294_v4, %v5197_v2  ;;  %v13058_v62 = vld [vmem:[#allocation96_spill] sm:$0xff] }
 0x48c   :  { %v6578_v16 = vmax.f32 %v6576_v21, %v6577_v59  ;;  %v5715_v6 = vmax.f32 %v5459_v18, 0.0  ;;  %v5457_v35 = vadd.f32 %v12294_v4, %v5194_v13  ;;  %v5332_v50 = vadd.f32 %v12294_v4, %v5069_v61 }
 0x48d   :  { %v6120_v60 = vrot.slane %v6119_v36, 2  ;;  %v6569_v42 = vmax.f32 %v6567_v3, %v6568_v41  ;;  %v5329_v52 = vadd.f32 %v12294_v4, %v5066_v5  ;;  %v5716_v12 = vmax.f32 %v5460_v19, 0.0 }
 0x48e   :  { %v6130_v25 = vmax.f32 %v6128_v46, %v6129_v32  ;;  %v5588_v9 = vmax.f32 %v5332_v50, 0.0  ;;  %v4388_v1 = vadd.f32 %v13056_v11, %v13055_v51  ;;  %v5195_v45 = vadd.f32 %v12312_v55, %v12238_v43  ;;  %v13059_v32 = vld [vmem:[#allocation97_spill] sm:$0xff] }
 0x48f   :  { %v6121_v38 = vmax.f32 %v6119_v36, %v6120_v60  ;;  %v6570_v57 = vrot.slane %v6569_v42, 1  ;;  %v6586_v37 = vmax.f32 %v5715_v6, %v5716_v12  ;;  %v4409_v15 = vadd.f32 %v13057_v49, %v12260_v47 }
 0x490   :  { %v6138_v14 = vmax.f32 %v5587_v24, %v5588_v9  ;;  %v5067_v39 = vadd.f32 %v12312_v55, %v4388_v1  ;;  %v5458_v27 = vadd.f32 %v12294_v4, %v5195_v45  ;;  %v5200_v33 = vadd.f32 %v12312_v55, %v12262_v20  ;;  %v13060_v45 = vld [vmem:[#allocation98_spill] sm:$0xff] }
 0x491   :  { %v6122_v26 = vrot.slane %v6121_v38, 1  ;;  %v6571_v23 = vmax.f32 %v6569_v42, %v6570_v57  ;;  %v6587_v18 = vrot.slane %v6586_v37, 4  ;;  %v5072_v29 = vadd.f32 %v12312_v55, %v4409_v15  ;;  %v13061_v15 = vld [vmem:[#allocation99_spill] sm:$0xff] }
 0x492   :  { %v5713_v43 = vmax.f32 %v5457_v35, 0.0  ;;  %v6139_v56 = vrot.slane %v6138_v14, 4  ;;  %v5330_v40 = vadd.f32 %v12294_v4, %v5067_v39  ;;  %v5714_v8 = vmax.f32 %v5458_v27, 0.0 }
 0x493   :  { %v6123_v21 = vmax.f32 %v6121_v38, %v6122_v26  ;;  %v6861_v47 = vsel %vm6749_vm2, %v6578_v16, %v6571_v23  ;;  %v5585_v0 = vmax.f32 %v5329_v52, 0.0  ;;  %v6588_v34 = vmax.f32 %v6586_v37, %v6587_v18  ;;  %v12618_v37 = vld [vmem:[%s12676_s4] ss:$0 sm:$0xff] }
 0x494   :  { %v6140_v44 = vmax.f32 %v6138_v14, %v6139_v56  ;;  %v5586_v13 = vmax.f32 %v5330_v40, 0.0  ;;  %v6579_v31 = vmax.f32 %v5713_v43, %v5714_v8  ;;  %v5463_v20 = vadd.f32 %v12294_v4, %v5200_v33 }
 0x495   :  { %v6805_v53 = vsel %vm6749_vm2, %v6130_v25, %v6123_v21  ;;  %v6589_v17 = vrot.slane %v6588_v34, 2  ;;  %v5335_v46 = vadd.f32 %v12294_v4, %v5072_v29  ;;  %v4401_v3 = vadd.f32 %v13058_v62, %v12266_v10  ;;  %v12606_v10 = vld [vmem:[%s12677_s6] ss:$0 sm:$0xff] }
 0x496   :  { %v6141_v48 = vrot.slane %v6140_v44, 2  ;;  %v6131_v2 = vmax.f32 %v5585_v0, %v5586_v13  ;;  %v6580_v59 = vrot.slane %v6579_v31, 4  ;;  %v5198_v24 = vadd.f32 %v12312_v55, %v12269_v30 }
 0x497   :  { %v6590_v5 = vmax.f32 %v6588_v34, %v6589_v17  ;;  %v5070_v61 = vadd.f32 %v12312_v55, %v4401_v3  ;;  %v4412_v36 = vadd.f32 %v13059_v32, %v12274_v22  ;;  %v5201_v41 = vadd.f32 %v12312_v55, %v12276_v7  ;;  %v13062_v34 = vld [vmem:[#allocation11_spill] sm:$0xff] }
 0x498   :  { %v6142_v19 = vmax.f32 %v6140_v44, %v6141_v48  ;;  %v6132_v4 = vrot.slane %v6131_v2, 4  ;;  %v6581_v16 = vmax.f32 %v6579_v31, %v6580_v59  ;;  %v5461_v6 = vadd.f32 %v12606_v10, %v5198_v24  ;;  %v13063_v59 = vld [vmem:[#allocation12_spill] sm:$0xff] }
 0x499   :  { %v5719_v30 = vmax.f32 %v5463_v20, 0.0  ;;  %v5073_v35 = vadd.f32 %v12312_v55, %v4412_v36  ;;  %v5464_v50 = vadd.f32 %v12606_v10, %v5201_v41  ;;  %v6591_v60 = vrot.slane %v6590_v5, 1  ;;  %v13064_v24 = vld [vmem:[#allocation100_spill] sm:$0xff] }
 0x49a   :  { %v6133_v22 = vmax.f32 %v6131_v2, %v6132_v4  ;;  %v6582_v42 = vrot.slane %v6581_v16, 2  ;;  %v5591_v52 = vmax.f32 %v5335_v46, 0.0  ;;  %v6143_v7 = vrot.slane %v6142_v19, 1 }
 0x49b   :  { %v5333_v12 = vadd.f32 %v12606_v10, %v5070_v61  ;;  %v5336_v25 = vadd.f32 %v12606_v10, %v5073_v35  ;;  %v5720_v9 = vmax.f32 %v5464_v50, 0.0  ;;  %v5717_v1 = vmax.f32 %v5461_v6, 0.0  ;;  %v13066_v6 = vld [vmem:[#allocation101_spill] sm:$0xff]  ;;  %v13067_v50 = vld [vmem:[#allocation118_spill] sm:$0xff] }
 0x49c   :  { %v6134_v51 = vrot.slane %v6133_v22, 2  ;;  %v6583_v11 = vmax.f32 %v6581_v16, %v6582_v42  ;;  %v4404_v38 = vadd.f32 %v13060_v45, %v12282_v63  ;;  %v5199_v49 = vadd.f32 %v12618_v37, %v12297_v28  ;;  %v13065_v16 = vld [vmem:[#allocation13_spill] sm:$0xff]  ;;  %v13068_v42 = vld [vmem:[#allocation44_spill] sm:$0xff] }
 0x49d   :  { %v5592_v57 = vmax.f32 %v5336_v25, 0.0  ;;  %v6600_v55 = vmax.f32 %v5719_v30, %v5720_v9  ;;  %v4425_v14 = vadd.f32 %v13061_v15, %v12322_v54  ;;  %v6592_v39 = vmax.f32 %v6590_v5, %v6591_v60  ;;  %v13069_v15 = vld [vmem:[#allocation45_spill] sm:$0xff] }
 0x49e   :  { %v6135_v27 = vmax.f32 %v6133_v22, %v6134_v51  ;;  %v6584_v33 = vrot.slane %v6583_v11, 1  ;;  %v5071_v26 = vadd.f32 %v12618_v37, %v4404_v38  ;;  %v5589_v23 = vmax.f32 %v5333_v12, 0.0 }
 0x49f   :  { %v6152_v63 = vmax.f32 %v5591_v52, %v5592_v57  ;;  %v6601_v18 = vrot.slane %v6600_v55, 4  ;;  %v5462_v29 = vadd.f32 %v12606_v10, %v5199_v49  ;;  %v6144_v43 = vmax.f32 %v6142_v19, %v6143_v7 }
 0x4a0   :  { %v6136_v56 = vrot.slane %v6135_v27, 1  ;;  %v6585_v40 = vmax.f32 %v6583_v11, %v6584_v33  ;;  %v5334_v8 = vadd.f32 %v12606_v10, %v5071_v26  ;;  %v5204_v54 = vadd.f32 %v12618_v37, %v13062_v34 }
 0x4a1   :  { %v6153_v21 = vrot.slane %v6152_v63, 4  ;;  %v6602_v28 = vmax.f32 %v6600_v55, %v6601_v18  ;;  %v5718_v0 = vmax.f32 %v5462_v29, 0.0  ;;  %v5076_v20 = vadd.f32 %v12618_v37, %v4425_v14  ;;  %v13070_v14 = vld [vmem:[#allocation102_spill] sm:$0xff] }
 0x4a2   :  { %v6137_v44 = vmax.f32 %v6135_v27, %v6136_v56  ;;  %v6862_v13 = vsel %vm6751_vm3, %v6585_v40, %v6861_v47  ;;  %v5590_v31 = vmax.f32 %v5334_v8, 0.0  ;;  %v4417_v5 = vadd.f32 %v13064_v24, %v13063_v59 }
 0x4a3   :  { %v6154_v17 = vmax.f32 %v6152_v63, %v6153_v21  ;;  %v6603_v46 = vrot.slane %v6602_v28, 2  ;;  %v6593_v62 = vmax.f32 %v5717_v1, %v5718_v0  ;;  %v6863_v3 = vsel %vm6753_vm4, %v6592_v39, %v6862_v13 }
 0x4a4   :  { %v6806_v48 = vsel %vm6751_vm3, %v6137_v44, %v6805_v53  ;;  %v6145_v2 = vmax.f32 %v5589_v23, %v5590_v31  ;;  %v5467_v47 = vadd.f32 %v12606_v10, %v5204_v54  ;;  %v5339_v4 = vadd.f32 %v12606_v10, %v5076_v20 }
 0x4a5   :  { %v6155_v61 = vrot.slane %v6154_v17, 2  ;;  %v6807_v32 = vsel %vm6753_vm4, %v6144_v43, %v6806_v48  ;;  %v6594_v36 = vrot.slane %v6593_v62, 4  ;;  %v6604_v41 = vmax.f32 %v6602_v28, %v6603_v46 }
 0x4a6   :  { %v6146_v19 = vrot.slane %v6145_v2, 4  ;;  %v4428_v30 = vadd.f32 %v13066_v6, %v13065_v16  ;;  %v5074_v53 = vadd.f32 %v12618_v37, %v4417_v5  ;;  %v5205_v60 = vadd.f32 %v12618_v37, %v13067_v50 }
 0x4a7   :  { %v6595_v35 = vmax.f32 %v6593_v62, %v6594_v36  ;;  %v5202_v52 = vadd.f32 %v12618_v37, %v13068_v42  ;;  %v6156_v12 = vmax.f32 %v6154_v17, %v6155_v61  ;;  %v5723_v9 = vmax.f32 %v5467_v47, 0.0 }
 0x4a8   :  { %v6147_v22 = vmax.f32 %v6145_v2, %v6146_v19  ;;  %v5077_v7 = vadd.f32 %v12618_v37, %v4428_v30  ;;  %v5468_v51 = vadd.f32 %v12606_v10, %v5205_v60  ;;  %v6605_v11 = vrot.slane %v6604_v41, 1 }
 0x4a9   :  { %v6596_v25 = vrot.slane %v6595_v35, 2  ;;  %v5595_v45 = vmax.f32 %v5339_v4, 0.0  ;;  %v5337_v55 = vadd.f32 %v12606_v10, %v5074_v53  ;;  %v4420_v39 = vadd.f32 %v13070_v14, %v13069_v15 }
 0x4aa   :  { %v6148_v1 = vrot.slane %v6147_v22, 2  ;;  %v5340_v38 = vadd.f32 %v12606_v10, %v5077_v7  ;;  %v5724_v49 = vmax.f32 %v5468_v51, 0.0  ;;  %v5465_v33 = vadd.f32 %v12606_v10, %v5202_v52 }
 0x4ab   :  { %v6597_v57 = vmax.f32 %v6595_v35, %v6596_v25  ;;  %v5203_v23 = vadd.f32 %v12618_v37, %v12352_v58  ;;  %v6157_v63 = vrot.slane %v6156_v12, 1  ;;  %v5075_v43 = vadd.f32 %v12618_v37, %v4420_v39 }
 0x4ac   :  { %v6149_v27 = vmax.f32 %v6147_v22, %v6148_v1  ;;  %v5596_v26 = vmax.f32 %v5340_v38, 0.0  ;;  %v6614_v29 = vmax.f32 %v5723_v9, %v5724_v49  ;;  %v6606_v56 = vmax.f32 %v6604_v41, %v6605_v11 }
 0x4ad   :  { %v6598_v18 = vrot.slane %v6597_v57, 1  ;;  %v5466_v21 = vadd.f32 %v12606_v10, %v5203_v23  ;;  %v5593_v0 = vmax.f32 %v5337_v55, 0.0  ;;  %v5338_v54 = vadd.f32 %v12606_v10, %v5075_v43 }
 0x4ae   :  { %v6150_v40 = vrot.slane %v6149_v27, 1  ;;  %v6166_v8 = vmax.f32 %v5595_v45, %v5596_v26  ;;  %v6615_v34 = vrot.slane %v6614_v29, 4  ;;  %v5721_v13 = vmax.f32 %v5465_v33, 0.0 }
 0x4af   :  { %v6599_v28 = vmax.f32 %v6597_v57, %v6598_v18  ;;  %v5722_v20 = vmax.f32 %v5466_v21, 0.0  ;;  %v6158_v58 = vmax.f32 %v6156_v12, %v6157_v63  ;;  %v5594_v62 = vmax.f32 %v5338_v54, 0.0 }
 0x4b0   :  { %v6151_v44 = vmax.f32 %v6149_v27, %v6150_v40  ;;  %v6167_v31 = vrot.slane %v6166_v8, 4  ;;  %v6616_v46 = vmax.f32 %v6614_v29, %v6615_v34 }
 0x4b1   :  { %v6864_v17 = vsel %vm6755_vm5, %v6599_v28, %v6863_v3  ;;  %v6607_v2 = vmax.f32 %v5721_v13, %v5722_v20  ;;  %v6159_v5 = vmax.f32 %v5593_v0, %v5594_v62 }
 0x4b2   :  { %v6808_v37 = vsel %vm6755_vm5, %v6151_v44, %v6807_v32  ;;  %v6168_v48 = vmax.f32 %v6166_v8, %v6167_v31  ;;  %v6865_v59 = vsel %vm6757_vm6, %v6606_v56, %v6864_v17  ;;  %v6617_v24 = vrot.slane %v6616_v46, 2 }
 0x4b3   :  { %v6809_v61 = vsel %vm6757_vm6, %v6158_v58, %v6808_v37  ;;  %v6608_v36 = vrot.slane %v6607_v2, 4  ;;  %v6160_v47 = vrot.slane %v6159_v5, 4 }
 0x4b4   :  { %v6169_v10 = vrot.slane %v6168_v48, 2  ;;  %v6618_v19 = vmax.f32 %v6616_v46, %v6617_v24 }
 0x4b5   :  { %v6609_v41 = vmax.f32 %v6607_v2, %v6608_v36  ;;  %v6161_v4 = vmax.f32 %v6159_v5, %v6160_v47 }
 0x4b6   :  { %v6170_v16 = vmax.f32 %v6168_v48, %v6169_v10  ;;  %v6619_v35 = vrot.slane %v6618_v19, 1 }
 0x4b7   :  { %v6610_v3 = vrot.slane %v6609_v41, 2  ;;  %v6162_v6 = vrot.slane %v6161_v4, 2 }
 0x4b8   :  { %v6171_v53 = vrot.slane %v6170_v16, 1  ;;  %v6620_v42 = vmax.f32 %v6618_v19, %v6619_v35 }
 0x4b9   :  { %v6611_v30 = vmax.f32 %v6609_v41, %v6610_v3  ;;  %v6163_v32 = vmax.f32 %v6161_v4, %v6162_v6 }
 0x4ba   :  { %v6172_v7 = vmax.f32 %v6170_v16, %v6171_v53 }
 0x4bb   :  { %v6612_v50 = vrot.slane %v6611_v30, 1  ;;  %v6164_v60 = vrot.slane %v6163_v32, 1 }
 0x4bd   :  { %v6613_v22 = vmax.f32 %v6611_v30, %v6612_v50  ;;  %v6165_v52 = vmax.f32 %v6163_v32, %v6164_v60 }
 0x4bf   :  { %v6866_v12 = vsel %vm6759_vm7, %v6613_v22, %v6865_v59  ;;  %v6810_v25 = vsel %vm6759_vm7, %v6165_v52, %v6809_v61 }
 0x4c0   :  { %v6867_v9 = vsel %vm6761_vm8, %v6620_v42, %v6866_v12  ;;  %v6811_v51 = vsel %vm6761_vm8, %v6172_v7, %v6810_v25 }
 0x4c1   :  { %6899 = vst [vmem:[%s12678_s7 + $0x78] sm:$0xff] %v6867_v9  ;;  %6891 = vst [vmem:[%s12678_s7 + $0x38] sm:$0xff] %v6811_v51 }

// kernel: posterior_encoder_forward.5
= control target key start
LH: loop header
LB: loop body
LE: loop exit
PB: predicated region body
PF: predicated region fallthrough
CT: control target
= control target key end

     0   :  { %vm294_vm0 = vcmask 588800   ;;  %vm391_vm1 = vcmask 1043456   ;;  %vm1923_vm2 = vcmask 1041409   ;;  %vm1925_vm3 = vcmask 1042434   ;;  %s3207_s1 = inlined_call_operand.vmem [shape: bf16[72,128], index: 1, kind: input, shape index: {}]   ;;  %s3208_s0 = inlined_call_operand.vmem [shape: bf16[512,72], index: 0, kind: input, shape index: {}]   ;;  %s3209_s5 = inlined_call_operand.vmem [shape: bf16[72,128], index: 5, kind: input, shape index: {}]   ;;  %s3210_s3 = inlined_call_operand.vmem [shape: bf16[128,128], index: 3, kind: input, shape index: {}]   ;;  %s3211_s2 = inlined_call_operand.vmem [shape: f32[1,128], index: 2, kind: input, shape index: {}]   ;;  %s3212_s4 = inlined_call_operand.vmem [shape: f32[1,128], index: 4, kind: input, shape index: {}]   ;;  %s3213_s6 = inlined_call_operand.vmem [shape: f32[1,128], index: 6, kind: input, shape index: {}]   ;;  %s3214_s7 = inlined_call_operand.vmem [shape: f32[32,128], index: 7, kind: output, shape index: {}]  }
   0x1   :  { %v2506_v0 = vld [vmem:[%s3207_s1] sm:$0xff]   ;;  %v2507_v1 = vld [vmem:[%s3207_s1 + $0x8] sm:$0xff]   ;;  %v2508_v2 = vld [vmem:[%s3207_s1 + $0x10] sm:$0xff]   ;;  %vm1927_vm4 = vcmask 1043459   ;;  %vm1929_vm5 = vcmask 1044484   ;;  %vm1931_vm6 = vcmask 1045509  }
   0x2   :  { %2201 = vmatprep.subr.bf16.mxu0 %v2506_v0  ;;  %v2610_v3 = vld [vmem:[%s3208_s0] sm:$0xff]   ;;  %v2509_v4 = vld [vmem:[%s3207_s1 + $0x18] sm:$0xff]   ;;  %v2625_v7 = vld [vmem:[%s3208_s0 + $0x8] sm:$0xff]   ;;  %vm1933_vm7 = vcmask 1046534   ;;  %vm1935_vm8 = vcmask 1047559  }
   0x3   :  { %2202 = vmatpush3.bf16.msra.mxu0 %v2506_v0  ;;  %2211 = vmatprep.mubr.msk.bf16.mxu0 %vm294_vm0, %v2610_v3  ;;  %v2510_v5 = vld [vmem:[%s3207_s1 + $0x20] ss:$0 sps:$4 sm:$0xff]   ;;  %v2630_v8 = vld [vmem:[%s3208_s0 + $0x10] sm:$0xff]   ;;  %v2646_v10 = vld [vmem:[%s3208_s0 + $0x18] sm:$0xff]  }
   0x4   :  { %2203 = vmatprep.subr.bf16.mxu0 %v2507_v1  ;;  %v393_v6 = vsel %vm391_vm1, %v2510_v5, 0  ;;  %v2635_v9 = vld [vmem:[%s3208_s0 + $0x80] sm:$0xff]   ;;  %v2660_v12 = vld [vmem:[%s3208_s0 + $0x28] sm:$0xff]   ;;  %v2665_v13 = vld [vmem:[%s3208_s0 + $0x30] sm:$0xff]  }
   0x5   :  { %2317 = vmatprep.mubr.msk.bf16.mxu1 %vm294_vm0, %v2635_v9  ;;  %v2651_v11 = vld [vmem:[%s3208_s0 + $0x20] sm:$0xff]   ;;  %v2544_v15 = vld [vmem:[%s3209_s5 + $0x8] sm:$0xff]   ;;  %v2545_v16 = vld [vmem:[%s3209_s5 + $0x10] sm:$0xff]  }
   0x6   :  { %v2543_v14 = vld [vmem:[%s3209_s5] sm:$0xff]   ;;  %v2683_v17 = vld [vmem:[%s3208_s0 + $0x38] sm:$0xff]   ;;  %v2703_v21 = vld [vmem:[%s3208_s0 + $0x48] sm:$0xff]  }
   0x7   :  { %2204 = vmatpush3.bf16.msra.mxu0 %v2507_v1  ;;  %2429 = vmatprep.subr.bf16.mxu1 %v2543_v14  ;;  %v2688_v18 = vld [vmem:[%s3208_s0 + $0x40] sm:$0xff]   ;;  %v2546_v19 = vld [vmem:[%s3209_s5 + $0x18] sm:$0xff]   ;;  %v2708_v22 = vld [vmem:[%s3208_s0 + $0x50] sm:$0xff]  }
   0x8   :  { %2205 = vmatprep.subr.bf16.mxu0 %v2508_v2  ;;  %2434 = vmatpush3.bf16.msra.mxu1 %v2543_v14  ;;  %v2547_v20 = vld [vmem:[%s3209_s5 + $0x20] ss:$0 sps:$4 sm:$0xff]   ;;  %v2528_v25 = vld [vmem:[%s3208_s0 + $0x88] sm:$0xff]   ;;  %v2729_v27 = vld [vmem:[%s3208_s0 + $0x58] sm:$0xff]  }
   0x9   :  { %2430 = vmatprep.subr.bf16.mxu1 %v2544_v15  ;;  %v833_v23 = vsel %vm391_vm1, %v2547_v20, 0  ;;  %v2548_v24 = vld [vmem:[%s3210_s3] sm:$0xff]   ;;  %v2549_v26 = vld [vmem:[%s3210_s3 + $0x8] sm:$0xff]   ;;  %v2529_v28 = vld [vmem:[%s3208_s0 + $0x90] sm:$0xff]  }
   0xa   :  { %v2737_v29 = vld [vmem:[%s3208_s0 + $0x60] sm:$0xff]   ;;  %v2550_v30 = vld [vmem:[%s3210_s3 + $0x10] sm:$0xff]   ;;  %v2530_v31 = vld [vmem:[%s3208_s0 + $0x98] sm:$0xff]  }
   0xb   :  { %2206 = vmatpush3.bf16.msra.mxu0 %v2508_v2  ;;  %v2551_v32 = vld [vmem:[%s3210_s3 + $0x18] sm:$0xff]   ;;  %v2757_v33 = vld [vmem:[%s3208_s0 + $0x68] sm:$0xff]   ;;  %v2531_v34 = vld [vmem:[%s3208_s0 + $0xa0] sm:$0xff]  }
   0xc   :  { %2207 = vmatprep.subr.bf16.mxu0 %v2509_v4  ;;  %2435 = vmatpush3.bf16.msra.mxu1 %v2544_v15  ;;  %v2765_v35 = vld [vmem:[%s3208_s0 + $0x70] sm:$0xff]   ;;  %v2552_v36 = vld [vmem:[%s3210_s3 + $0x20] sm:$0xff]   ;;  %v2532_v37 = vld [vmem:[%s3208_s0 + $0xa8] sm:$0xff]  }
   0xd   :  { %2431 = vmatprep.subr.bf16.mxu1 %v2545_v16  ;;  %v2553_v38 = vld [vmem:[%s3210_s3 + $0x28] sm:$0xff]   ;;  %v2785_v39 = vld [vmem:[%s3208_s0 + $0x78] sm:$0xff]   ;;  %v2533_v40 = vld [vmem:[%s3208_s0 + $0xb0] sm:$0xff]  }
   0xe   :  { %v2554_v41 = vld [vmem:[%s3210_s3 + $0x30] sm:$0xff]   ;;  %v2534_v42 = vld [vmem:[%s3208_s0 + $0xb8] sm:$0xff]   ;;  %v2535_v43 = vld [vmem:[%s3208_s0 + $0xc0] sm:$0xff]  }
   0xf   :  { %2208 = vmatpush3.bf16.msra.mxu0 %v2509_v4  ;;  %v2536_v44 = vld [vmem:[%s3208_s0 + $0xc8] sm:$0xff]   ;;  %v2537_v45 = vld [vmem:[%s3208_s0 + $0xd0] sm:$0xff]   ;;  %v2538_v46 = vld [vmem:[%s3208_s0 + $0xd8] sm:$0xff]  }
  0x10   :  { %2503 = vmatprep.subr.msk.bf16.mxu0 %vm391_vm1, %v2510_v5  ;;  %2436 = vmatpush3.bf16.msra.mxu1 %v2545_v16  ;;  %v2539_v47 = vld [vmem:[%s3208_s0 + $0xe0] sm:$0xff]   ;;  %v2540_v48 = vld [vmem:[%s3208_s0 + $0xe8] sm:$0xff]   ;;  %v2541_v49 = vld [vmem:[%s3208_s0 + $0xf0] sm:$0xff]  }
  0x11   :  { %2432 = vmatprep.subr.bf16.mxu1 %v2546_v19  ;;  %v2555_v50 = vld [vmem:[%s3210_s3 + $0x38] sm:$0xff]   ;;  %v2888_v52 = vld [vmem:[%s3211_s2] ss:$0 sm:$0xff] }
  0x12   :  { %v2542_v51 = vld [vmem:[%s3208_s0 + $0xf8] sm:$0xff]  }
  0x13   :  { %2210 = vmatpush3.bf16.msra.mxu0 %v393_v6 }
  0x14   :  { %2275 = vmatprep.subr.bf16.mxu0 %v2543_v14  ;;  %2437 = vmatpush3.bf16.msra.mxu1 %v2546_v19 }
  0x15   :  { %2505 = vmatprep.subr.msk.bf16.mxu1 %vm391_vm1, %v2547_v20 }
  0x16   :  { %2212 = vmatmul.mubr.msk.bf16.vlgmr.msra.gmra.mrb[0].mxu0 %vm294_vm0, %v2625_v7 }
  0x17   :  { %2215 = vmatprep.mubr.msk.bf16.mxu0 %vm294_vm0, %v2630_v8  ;;  %2276 = vmatpush3.bf16.msra.mxu0 %v2543_v14 }
  0x18   :  { %2277 = vmatprep.subr.bf16.mxu0 %v2544_v15  ;;  %2438 = vmatpush3.bf16.msra.mxu1 %v833_v23 }
  0x19   :  { %2349 = vmatprep.subr.bf16.mxu1 %v2548_v24 }
  0x1b   :  { %2278 = vmatpush3.bf16.msra.mxu0 %v2544_v15  ;;  %2318 = vmatmul.mubr.msk.bf16.vlgmr.msra.gmra.mrb[0].mxu1 %vm294_vm0, %v2528_v25 }
  0x1c   :  { %2279 = vmatprep.subr.bf16.mxu0 %v2545_v16  ;;  %2350 = vmatpush3.bf16.msra.mxu1 %v2548_v24 }
  0x1d   :  { %2321 = vmatprep.mubr.msk.bf16.mxu1 %vm294_vm0, %v2529_v28  ;;  %2351 = vmatprep.subr.bf16.mxu1 %v2549_v26 }
  0x1e   :  { %2216 = vmatmul.mubr.msk.bf16.gmra.mrb[4].mxu0 %vm294_vm0, %v2646_v10 }
  0x1f   :  { %2219 = vmatprep.mubr.msk.bf16.mxu0 %vm294_vm0, %v2651_v11  ;;  %2280 = vmatpush3.bf16.msra.mxu0 %v2545_v16 }
  0x20   :  { %2281 = vmatprep.subr.bf16.mxu0 %v2546_v19  ;;  %2352 = vmatpush3.bf16.msra.mxu1 %v2549_v26 }
  0x21   :  { %2353 = vmatprep.subr.bf16.mxu1 %v2550_v30 }
  0x23   :  { %2282 = vmatpush3.bf16.msra.mxu0 %v2546_v19  ;;  %2322 = vmatmul.mubr.msk.bf16.gmra.mrb[4].mxu1 %vm294_vm0, %v2530_v31 }
  0x24   :  { %2504 = vmatprep.subr.msk.bf16.mxu0 %vm391_vm1, %v2547_v20  ;;  %2325 = vmatprep.mubr.msk.bf16.mxu1 %vm294_vm0, %v2531_v34 }
  0x25   :  { %2354 = vmatpush3.bf16.msra.mxu1 %v2550_v30 }
  0x26   :  { %2220 = vmatmul.mubr.msk.bf16.gmra.mrb[8].mxu0 %vm294_vm0, %v2660_v12  ;;  %2355 = vmatprep.subr.bf16.mxu1 %v2551_v32 }
  0x27   :  { %2223 = vmatprep.mubr.msk.bf16.mxu0 %vm294_vm0, %v2665_v13  ;;  %2284 = vmatpush3.bf16.msra.mxu0 %v833_v23 }
  0x29   :  { %2356 = vmatpush3.bf16.msra.mxu1 %v2551_v32 }
  0x2a   :  { %2357 = vmatprep.subr.bf16.mxu1 %v2552_v36 }
  0x2b   :  { %2326 = vmatmul.mubr.msk.bf16.gmra.mrb[8].mxu1 %vm294_vm0, %v2532_v37 }
  0x2c   :  { %2329 = vmatprep.mubr.msk.bf16.mxu1 %vm294_vm0, %v2533_v40 }
  0x2d   :  { %2358 = vmatpush3.bf16.msra.mxu1 %v2552_v36 }
  0x2e   :  { %2224 = vmatmul.mubr.msk.bf16.gmra.mrb[12].mxu0 %vm294_vm0, %v2683_v17  ;;  %2359 = vmatprep.subr.bf16.mxu1 %v2553_v38 }
  0x2f   :  { %2227 = vmatprep.mubr.msk.bf16.mxu0 %vm294_vm0, %v2688_v18 }
  0x31   :  { %2360 = vmatpush3.bf16.msra.mxu1 %v2553_v38 }
  0x32   :  { %2361 = vmatprep.subr.bf16.mxu1 %v2554_v41 }
  0x33   :  { %2330 = vmatmul.mubr.msk.bf16.gmra.mrb[12].mxu1 %vm294_vm0, %v2534_v42 }
  0x34   :  { %2333 = vmatprep.mubr.msk.bf16.mxu1 %vm294_vm0, %v2535_v43 }
  0x35   :  { %2362 = vmatpush3.bf16.msra.mxu1 %v2554_v41 }
  0x36   :  { %2228 = vmatmul.mubr.msk.bf16.gmra.mrb[16].mxu0 %vm294_vm0, %v2703_v21  ;;  %2363 = vmatprep.subr.bf16.mxu1 %v2555_v50 }
  0x37   :  { %2231 = vmatprep.mubr.msk.bf16.mxu0 %vm294_vm0, %v2708_v22 }
  0x39   :  { %2364 = vmatpush3.bf16.msra.mxu1 %v2555_v50 }
  0x3b   :  { %2334 = vmatmul.mubr.msk.bf16.gmra.mrb[16].mxu1 %vm294_vm0, %v2536_v44 }
  0x3c   :  { %2337 = vmatprep.mubr.msk.bf16.mxu1 %vm294_vm0, %v2537_v45 }
  0x3e   :  { %2232 = vmatmul.mubr.msk.bf16.gmra.mrb[20].mxu0 %vm294_vm0, %v2729_v27 }
  0x3f   :  { %2235 = vmatprep.mubr.msk.bf16.mxu0 %vm294_vm0, %v2737_v29 }
  0x43   :  { %2338 = vmatmul.mubr.msk.bf16.gmra.mrb[20].mxu1 %vm294_vm0, %v2538_v46 }
  0x44   :  { %2341 = vmatprep.mubr.msk.bf16.mxu1 %vm294_vm0, %v2539_v47 }
  0x46   :  { %2236 = vmatmul.mubr.msk.bf16.gmra.mrb[24].mxu0 %vm294_vm0, %v2757_v33 }
  0x47   :  { %2239 = vmatprep.mubr.msk.bf16.mxu0 %vm294_vm0, %v2765_v35 }
  0x4b   :  { %2342 = vmatmul.mubr.msk.bf16.gmra.mrb[24].mxu1 %vm294_vm0, %v2540_v48 }
  0x4c   :  { %2345 = vmatprep.mubr.msk.bf16.mxu1 %vm294_vm0, %v2541_v49 }
  0x4e   :  { %2240 = vmatmul.mubr.msk.bf16.gmra.mrb[28].mxu0 %vm294_vm0, %v2785_v39 }
  0x4f   :  { %2243 = vmatprep.mubr.msk.bf16.mxu0 %vm294_vm0, %v2635_v9 }
  0x53   :  { %2346 = vmatmul.mubr.msk.bf16.gmra.mrb[28].mxu1 %vm294_vm0, %v2542_v51 }
  0x56   :  { %2244 = vmatmul.mubr.msk.bf16.gmra.mrb[32].mxu0 %vm294_vm0, %v2528_v25 }
  0x57   :  { %2247 = vmatprep.mubr.msk.bf16.mxu0 %vm294_vm0, %v2529_v28 }
  0x5e   :  { %2248 = vmatmul.mubr.msk.bf16.gmra.mrb[36].mxu0 %vm294_vm0, %v2530_v31 }
  0x5f   :  { %2251 = vmatprep.mubr.msk.bf16.mxu0 %vm294_vm0, %v2531_v34 }
  0x66   :  { %2252 = vmatmul.mubr.msk.bf16.gmra.mrb[40].mxu0 %vm294_vm0, %v2532_v37 }
  0x67   :  { %2255 = vmatprep.mubr.msk.bf16.mxu0 %vm294_vm0, %v2533_v40 }
  0x6e   :  { %2256 = vmatmul.mubr.msk.bf16.gmra.mrb[44].mxu0 %vm294_vm0, %v2534_v42 }
  0x6f   :  { %2259 = vmatprep.mubr.msk.bf16.mxu0 %vm294_vm0, %v2535_v43 }
  0x76   :  { %2260 = vmatmul.mubr.msk.bf16.gmra.mrb[48].mxu0 %vm294_vm0, %v2536_v44 }
  0x77   :  { %2263 = vmatprep.mubr.msk.bf16.mxu0 %vm294_vm0, %v2537_v45 }
  0x7e   :  { %2264 = vmatmul.mubr.msk.bf16.gmra.mrb[52].mxu0 %vm294_vm0, %v2538_v46 }
  0x7f   :  { %2267 = vmatprep.mubr.msk.bf16.mxu0 %vm294_vm0, %v2539_v47 }
  0x86   :  { %2268 = vmatmul.mubr.msk.bf16.gmra.mrb[56].mxu0 %vm294_vm0, %v2540_v48 }
  0x87   :  { %2271 = vmatprep.mubr.msk.bf16.mxu0 %vm294_vm0, %v2541_v49 }
  0x8e   :  { %2272 = vmatmul.mubr.msk.bf16.gmra.mrb[60].mxu0 %vm294_vm0, %v2542_v51 }
  0x8f   :  { %2285 = vmatprep.mubr.msk.bf16.mxu0 %vm294_vm0, %v2610_v3 }
  0x96   :  { %2286 = vmatmul.mubr.msk.bf16.vlgmr.msra.gmra.mrb[64].mxu0 %vm294_vm0, %v2625_v7 }
  0x97   :  { %2289 = vmatprep.mubr.msk.bf16.mxu0 %vm294_vm0, %v2630_v8 }
  0x9e   :  { %2290 = vmatmul.mubr.msk.bf16.gmra.mrb[68].mxu0 %vm294_vm0, %v2646_v10 }
  0x9f   :  { %2293 = vmatprep.mubr.msk.bf16.mxu0 %vm294_vm0, %v2651_v11 }
  0xa6   :  { %2294 = vmatmul.mubr.msk.bf16.gmra.mrb[72].mxu0 %vm294_vm0, %v2660_v12 }
  0xa7   :  { %2297 = vmatprep.mubr.msk.bf16.mxu0 %vm294_vm0, %v2665_v13 }
  0xae   :  { %2298 = vmatmul.mubr.msk.bf16.gmra.mrb[76].mxu0 %vm294_vm0, %v2683_v17 }
  0xaf   :  { %2301 = vmatprep.mubr.msk.bf16.mxu0 %vm294_vm0, %v2688_v18 }
  0xb6   :  { %2302 = vmatmul.mubr.msk.bf16.gmra.mrb[80].mxu0 %vm294_vm0, %v2703_v21 }
  0xb7   :  { %2305 = vmatprep.mubr.msk.bf16.mxu0 %vm294_vm0, %v2708_v22 }
  0xbe   :  { %2306 = vmatmul.mubr.msk.bf16.gmra.mrb[84].mxu0 %vm294_vm0, %v2729_v27 }
  0xbf   :  { %2309 = vmatprep.mubr.msk.bf16.mxu0 %vm294_vm0, %v2737_v29 }
  0xc6   :  { %2310 = vmatmul.mubr.msk.bf16.gmra.mrb[88].mxu0 %vm294_vm0, %v2757_v33 }
  0xc7   :  { %2313 = vmatprep.mubr.msk.bf16.mxu0 %vm294_vm0, %v2765_v35 }
  0xce   :  { %2314 = vmatmul.mubr.msk.bf16.gmra.mrb[92].mxu0 %vm294_vm0, %v2785_v39 }
  0xe9   :  { %v2213_v53 = vpop.f32.mrb[0].mxu0 }
  0xea   :  { %v438_v54 = vadd.f32 %v2213_v53, %v2888_v52  ;;  %v429_v55 = vpop.f32.mrb[1].mxu0 }
  0xeb   :  { %v430_v56 = vadd.f32 %v2888_v52, %v429_v55  ;;  %v2214_v57 = vpop.f32.mrb[2].mxu0 }
  0xec   :  { %v441_v58 = vadd.f32 %v2214_v57, %v2888_v52  ;;  %v432_v59 = vpop.f32.mrb[3].mxu0  ;;  %v686_v61 = vmax.f32 %v438_v54, 0.0 }
  0xed   :  { %v433_v60 = vadd.f32 %v2888_v52, %v432_v59  ;;  %v684_v63 = vmax.f32 %v430_v56, 0.0 }
  0xee   :  { %v687_v62 = vmax.f32 %v441_v58, 0.0 }
  0xef   :  { %v685_v0 = vmax.f32 %v433_v60, 0.0 }
  0xf0   :  { %v749_v1 = vpack.c.bf16 %v687_v62, %v686_v61 }
  0xf1   :  { %v748_v2 = vpack.c.bf16 %v685_v0, %v684_v63  ;;  %v2217_v3 = vpop.f32.mrb[4].mxu0 }
  0xf2   :  { %v454_v4 = vadd.f32 %v2217_v3, %v2888_v52  ;;  %v445_v5 = vpop.f32.mrb[5].mxu0 }
  0xf3   :  { %v446_v6 = vadd.f32 %v2888_v52, %v445_v5  ;;  %v2218_v7 = vpop.f32.mrb[6].mxu0  ;;  %2365 = vmatprep.mubr.bf16.mxu1 %v748_v2 }
  0xf4   :  { %v457_v8 = vadd.f32 %v2218_v7, %v2888_v52  ;;  %v448_v9 = vpop.f32.mrb[7].mxu0  ;;  %2366 = vmatmul.mubr.bf16.vlgmr.msra.gmra.mrb[32].mxu1 %v749_v1  ;;  %v690_v11 = vmax.f32 %v454_v4, 0.0 }
  0xf5   :  { %v449_v10 = vadd.f32 %v2888_v52, %v448_v9  ;;  %v688_v13 = vmax.f32 %v446_v6, 0.0 }
  0xf6   :  { %v691_v12 = vmax.f32 %v457_v8, 0.0 }
  0xf7   :  { %v689_v14 = vmax.f32 %v449_v10, 0.0 }
  0xf8   :  { %v751_v15 = vpack.c.bf16 %v691_v12, %v690_v11 }
  0xf9   :  { %v750_v16 = vpack.c.bf16 %v689_v14, %v688_v13  ;;  %v2221_v17 = vpop.f32.mrb[8].mxu0 }
  0xfa   :  { %v470_v18 = vadd.f32 %v2221_v17, %v2888_v52  ;;  %v461_v19 = vpop.f32.mrb[9].mxu0 }
  0xfb   :  { %v462_v20 = vadd.f32 %v2888_v52, %v461_v19  ;;  %v2222_v21 = vpop.f32.mrb[10].mxu0  ;;  %2369 = vmatprep.mubr.bf16.mxu1 %v750_v16 }
  0xfc   :  { %v473_v22 = vadd.f32 %v2222_v21, %v2888_v52  ;;  %v464_v23 = vpop.f32.mrb[11].mxu0  ;;  %2370 = vmatmul.mubr.bf16.gmra.mrb[36].mxu1 %v751_v15  ;;  %v694_v25 = vmax.f32 %v470_v18, 0.0 }
  0xfd   :  { %v465_v24 = vadd.f32 %v2888_v52, %v464_v23  ;;  %v692_v27 = vmax.f32 %v462_v20, 0.0 }
  0xfe   :  { %v695_v26 = vmax.f32 %v473_v22, 0.0 }
  0xff   :  { %v693_v28 = vmax.f32 %v465_v24, 0.0 }
 0x100   :  { %v753_v29 = vpack.c.bf16 %v695_v26, %v694_v25 }
 0x101   :  { %v752_v30 = vpack.c.bf16 %v693_v28, %v692_v27  ;;  %v2225_v31 = vpop.f32.mrb[12].mxu0 }
 0x102   :  { %v486_v32 = vadd.f32 %v2225_v31, %v2888_v52  ;;  %v477_v33 = vpop.f32.mrb[13].mxu0 }
 0x103   :  { %v478_v34 = vadd.f32 %v2888_v52, %v477_v33  ;;  %v2226_v35 = vpop.f32.mrb[14].mxu0  ;;  %2373 = vmatprep.mubr.bf16.mxu1 %v752_v30 }
 0x104   :  { %v489_v36 = vadd.f32 %v2226_v35, %v2888_v52  ;;  %v480_v37 = vpop.f32.mrb[15].mxu0  ;;  %2374 = vmatmul.mubr.bf16.gmra.mrb[40].mxu1 %v753_v29  ;;  %v698_v39 = vmax.f32 %v486_v32, 0.0 }
 0x105   :  { %v481_v38 = vadd.f32 %v2888_v52, %v480_v37  ;;  %v696_v41 = vmax.f32 %v478_v34, 0.0 }
 0x106   :  { %v699_v40 = vmax.f32 %v489_v36, 0.0 }
 0x107   :  { %v697_v42 = vmax.f32 %v481_v38, 0.0 }
 0x108   :  { %v755_v43 = vpack.c.bf16 %v699_v40, %v698_v39 }
 0x109   :  { %v754_v44 = vpack.c.bf16 %v697_v42, %v696_v41  ;;  %v2229_v45 = vpop.f32.mrb[16].mxu0 }
 0x10a   :  { %v502_v46 = vadd.f32 %v2229_v45, %v2888_v52  ;;  %v493_v47 = vpop.f32.mrb[17].mxu0 }
 0x10b   :  { %v494_v48 = vadd.f32 %v2888_v52, %v493_v47  ;;  %v2230_v49 = vpop.f32.mrb[18].mxu0  ;;  %2377 = vmatprep.mubr.bf16.mxu1 %v754_v44 }
 0x10c   :  { %v505_v50 = vadd.f32 %v2230_v49, %v2888_v52  ;;  %v496_v51 = vpop.f32.mrb[19].mxu0  ;;  %2378 = vmatmul.mubr.bf16.gmra.mrb[44].mxu1 %v755_v43  ;;  %v702_v54 = vmax.f32 %v502_v46, 0.0 }
 0x10d   :  { %v497_v53 = vadd.f32 %v2888_v52, %v496_v51  ;;  %v700_v56 = vmax.f32 %v494_v48, 0.0 }
 0x10e   :  { %v703_v55 = vmax.f32 %v505_v50, 0.0 }
 0x10f   :  { %v701_v57 = vmax.f32 %v497_v53, 0.0 }
 0x110   :  { %v757_v58 = vpack.c.bf16 %v703_v55, %v702_v54 }
 0x111   :  { %v756_v59 = vpack.c.bf16 %v701_v57, %v700_v56  ;;  %v2233_v60 = vpop.f32.mrb[20].mxu0 }
 0x112   :  { %v518_v61 = vadd.f32 %v2233_v60, %v2888_v52  ;;  %v509_v62 = vpop.f32.mrb[21].mxu0 }
 0x113   :  { %v510_v63 = vadd.f32 %v2888_v52, %v509_v62  ;;  %v2234_v0 = vpop.f32.mrb[22].mxu0  ;;  %2381 = vmatprep.mubr.bf16.mxu1 %v756_v59 }
 0x114   :  { %v521_v1 = vadd.f32 %v2234_v0, %v2888_v52  ;;  %v512_v2 = vpop.f32.mrb[23].mxu0  ;;  %2382 = vmatmul.mubr.bf16.gmra.mrb[48].mxu1 %v757_v58  ;;  %v706_v4 = vmax.f32 %v518_v61, 0.0 }
 0x115   :  { %v513_v3 = vadd.f32 %v2888_v52, %v512_v2  ;;  %v704_v6 = vmax.f32 %v510_v63, 0.0 }
 0x116   :  { %v707_v5 = vmax.f32 %v521_v1, 0.0 }
 0x117   :  { %v705_v7 = vmax.f32 %v513_v3, 0.0 }
 0x118   :  { %v759_v8 = vpack.c.bf16 %v707_v5, %v706_v4 }
 0x119   :  { %v758_v9 = vpack.c.bf16 %v705_v7, %v704_v6  ;;  %v2237_v10 = vpop.f32.mrb[24].mxu0 }
 0x11a   :  { %v534_v11 = vadd.f32 %v2237_v10, %v2888_v52  ;;  %v525_v12 = vpop.f32.mrb[25].mxu0 }
 0x11b   :  { %v526_v13 = vadd.f32 %v2888_v52, %v525_v12  ;;  %v2238_v14 = vpop.f32.mrb[26].mxu0  ;;  %2385 = vmatprep.mubr.bf16.mxu1 %v758_v9 }
 0x11c   :  { %v537_v15 = vadd.f32 %v2238_v14, %v2888_v52  ;;  %v528_v16 = vpop.f32.mrb[27].mxu0  ;;  %2386 = vmatmul.mubr.bf16.gmra.mrb[52].mxu1 %v759_v8  ;;  %v710_v18 = vmax.f32 %v534_v11, 0.0 }
 0x11d   :  { %v529_v17 = vadd.f32 %v2888_v52, %v528_v16  ;;  %v708_v20 = vmax.f32 %v526_v13, 0.0 }
 0x11e   :  { %v711_v19 = vmax.f32 %v537_v15, 0.0 }
 0x11f   :  { %v709_v21 = vmax.f32 %v529_v17, 0.0 }
 0x120   :  { %v761_v22 = vpack.c.bf16 %v711_v19, %v710_v18 }
 0x121   :  { %v760_v23 = vpack.c.bf16 %v709_v21, %v708_v20  ;;  %v2241_v24 = vpop.f32.mrb[28].mxu0 }
 0x122   :  { %v550_v25 = vadd.f32 %v2241_v24, %v2888_v52  ;;  %v541_v26 = vpop.f32.mrb[29].mxu0 }
 0x123   :  { %v542_v27 = vadd.f32 %v2888_v52, %v541_v26  ;;  %v2242_v28 = vpop.f32.mrb[30].mxu0  ;;  %2389 = vmatprep.mubr.bf16.mxu1 %v760_v23 }
 0x124   :  { %v553_v29 = vadd.f32 %v2242_v28, %v2888_v52  ;;  %v544_v30 = vpop.f32.mrb[31].mxu0  ;;  %2390 = vmatmul.mubr.bf16.gmra.mrb[56].mxu1 %v761_v22  ;;  %v714_v32 = vmax.f32 %v550_v25, 0.0 }
 0x125   :  { %v545_v31 = vadd.f32 %v2888_v52, %v544_v30  ;;  %v712_v34 = vmax.f32 %v542_v27, 0.0 }
 0x126   :  { %v715_v33 = vmax.f32 %v553_v29, 0.0 }
 0x127   :  { %v713_v35 = vmax.f32 %v545_v31, 0.0 }
 0x128   :  { %v763_v36 = vpack.c.bf16 %v715_v33, %v714_v32 }
 0x129   :  { %v762_v37 = vpack.c.bf16 %v713_v35, %v712_v34  ;;  %v2245_v38 = vpop.f32.mrb[32].mxu0 }
 0x12a   :  { %v566_v39 = vadd.f32 %v2245_v38, %v2888_v52  ;;  %v557_v40 = vpop.f32.mrb[33].mxu0 }
 0x12b   :  { %v558_v41 = vadd.f32 %v2888_v52, %v557_v40  ;;  %v2246_v42 = vpop.f32.mrb[34].mxu0  ;;  %2393 = vmatprep.mubr.bf16.mxu1 %v762_v37 }
 0x12c   :  { %v569_v43 = vadd.f32 %v2246_v42, %v2888_v52  ;;  %v560_v44 = vpop.f32.mrb[35].mxu0  ;;  %2394 = vmatmul.mubr.bf16.gmra.mrb[60].mxu1 %v763_v36  ;;  %v718_v46 = vmax.f32 %v566_v39, 0.0 }
 0x12d   :  { %v561_v45 = vadd.f32 %v2888_v52, %v560_v44  ;;  %v716_v48 = vmax.f32 %v558_v41, 0.0 }
 0x12e   :  { %v719_v47 = vmax.f32 %v569_v43, 0.0 }
 0x12f   :  { %v717_v49 = vmax.f32 %v561_v45, 0.0 }
 0x130   :  { %v765_v50 = vpack.c.bf16 %v719_v47, %v718_v46 }
 0x131   :  { %v764_v51 = vpack.c.bf16 %v717_v49, %v716_v48  ;;  %v2249_v53 = vpop.f32.mrb[36].mxu0 }
 0x132   :  { %v582_v54 = vadd.f32 %v2249_v53, %v2888_v52  ;;  %v573_v55 = vpop.f32.mrb[37].mxu0 }
 0x133   :  { %v574_v56 = vadd.f32 %v2888_v52, %v573_v55  ;;  %v2250_v57 = vpop.f32.mrb[38].mxu0  ;;  %2397 = vmatprep.mubr.bf16.mxu1 %v764_v51 }
 0x134   :  { %v585_v58 = vadd.f32 %v2250_v57, %v2888_v52  ;;  %v576_v59 = vpop.f32.mrb[39].mxu0  ;;  %2398 = vmatmul.mubr.bf16.gmra.mrb[0].mxu1 %v765_v50  ;;  %v722_v61 = vmax.f32 %v582_v54, 0.0 }
 0x135   :  { %v577_v60 = vadd.f32 %v2888_v52, %v576_v59  ;;  %v720_v63 = vmax.f32 %v574_v56, 0.0 }
 0x136   :  { %v723_v62 = vmax.f32 %v585_v58, 0.0 }
 0x137   :  { %v721_v0 = vmax.f32 %v577_v60, 0.0 }
 0x138   :  { %v767_v1 = vpack.c.bf16 %v723_v62, %v722_v61 }
 0x139   :  { %v766_v2 = vpack.c.bf16 %v721_v0, %v720_v63  ;;  %v2253_v3 = vpop.f32.mrb[40].mxu0 }
 0x13a   :  { %v598_v4 = vadd.f32 %v2253_v3, %v2888_v52  ;;  %v589_v5 = vpop.f32.mrb[41].mxu0 }
 0x13b   :  { %v590_v6 = vadd.f32 %v2888_v52, %v589_v5  ;;  %v2254_v7 = vpop.f32.mrb[42].mxu0  ;;  %2401 = vmatprep.mubr.bf16.mxu1 %v766_v2 }
 0x13c   :  { %v601_v8 = vadd.f32 %v2254_v7, %v2888_v52  ;;  %v592_v9 = vpop.f32.mrb[43].mxu0  ;;  %2402 = vmatmul.mubr.bf16.gmra.mrb[4].mxu1 %v767_v1  ;;  %v726_v11 = vmax.f32 %v598_v4, 0.0 }
 0x13d   :  { %v593_v10 = vadd.f32 %v2888_v52, %v592_v9  ;;  %v724_v13 = vmax.f32 %v590_v6, 0.0 }
 0x13e   :  { %v727_v12 = vmax.f32 %v601_v8, 0.0 }
 0x13f   :  { %v725_v14 = vmax.f32 %v593_v10, 0.0 }
 0x140   :  { %v769_v15 = vpack.c.bf16 %v727_v12, %v726_v11 }
 0x141   :  { %v768_v16 = vpack.c.bf16 %v725_v14, %v724_v13  ;;  %v2257_v17 = vpop.f32.mrb[44].mxu0 }
 0x142   :  { %v614_v18 = vadd.f32 %v2257_v17, %v2888_v52  ;;  %v605_v19 = vpop.f32.mrb[45].mxu0 }
 0x143   :  { %v606_v20 = vadd.f32 %v2888_v52, %v605_v19  ;;  %v2258_v21 = vpop.f32.mrb[46].mxu0  ;;  %2405 = vmatprep.mubr.bf16.mxu1 %v768_v16 }
 0x144   :  { %v617_v22 = vadd.f32 %v2258_v21, %v2888_v52  ;;  %v608_v23 = vpop.f32.mrb[47].mxu0  ;;  %2406 = vmatmul.mubr.bf16.gmra.mrb[8].mxu1 %v769_v15  ;;  %v730_v25 = vmax.f32 %v614_v18, 0.0 }
 0x145   :  { %v609_v24 = vadd.f32 %v2888_v52, %v608_v23  ;;  %v728_v27 = vmax.f32 %v606_v20, 0.0 }
 0x146   :  { %v731_v26 = vmax.f32 %v617_v22, 0.0 }
 0x147   :  { %v729_v28 = vmax.f32 %v609_v24, 0.0 }
 0x148   :  { %v771_v29 = vpack.c.bf16 %v731_v26, %v730_v25 }
 0x149   :  { %v770_v30 = vpack.c.bf16 %v729_v28, %v728_v27  ;;  %v2261_v31 = vpop.f32.mrb[48].mxu0 }
 0x14a   :  { %v630_v32 = vadd.f32 %v2261_v31, %v2888_v52  ;;  %v621_v33 = vpop.f32.mrb[49].mxu0 }
 0x14b   :  { %v622_v34 = vadd.f32 %v2888_v52, %v621_v33  ;;  %v2262_v35 = vpop.f32.mrb[50].mxu0  ;;  %2409 = vmatprep.mubr.bf16.mxu1 %v770_v30 }
 0x14c   :  { %v633_v36 = vadd.f32 %v2262_v35, %v2888_v52  ;;  %v624_v37 = vpop.f32.mrb[51].mxu0  ;;  %2410 = vmatmul.mubr.bf16.gmra.mrb[12].mxu1 %v771_v29  ;;  %v734_v39 = vmax.f32 %v630_v32, 0.0 }
 0x14d   :  { %v625_v38 = vadd.f32 %v2888_v52, %v624_v37  ;;  %v732_v41 = vmax.f32 %v622_v34, 0.0 }
 0x14e   :  { %v735_v40 = vmax.f32 %v633_v36, 0.0 }
 0x14f   :  { %v733_v42 = vmax.f32 %v625_v38, 0.0 }
 0x150   :  { %v773_v43 = vpack.c.bf16 %v735_v40, %v734_v39 }
 0x151   :  { %v772_v44 = vpack.c.bf16 %v733_v42, %v732_v41  ;;  %v2265_v45 = vpop.f32.mrb[52].mxu0 }
 0x152   :  { %v646_v46 = vadd.f32 %v2265_v45, %v2888_v52  ;;  %v637_v47 = vpop.f32.mrb[53].mxu0 }
 0x153   :  { %v638_v48 = vadd.f32 %v2888_v52, %v637_v47  ;;  %v2266_v49 = vpop.f32.mrb[54].mxu0  ;;  %2413 = vmatprep.mubr.bf16.mxu1 %v772_v44 }
 0x154   :  { %v649_v50 = vadd.f32 %v2266_v49, %v2888_v52  ;;  %v640_v51 = vpop.f32.mrb[55].mxu0  ;;  %2414 = vmatmul.mubr.bf16.gmra.mrb[16].mxu1 %v773_v43  ;;  %v738_v54 = vmax.f32 %v646_v46, 0.0 }
 0x155   :  { %v641_v53 = vadd.f32 %v2888_v52, %v640_v51  ;;  %v736_v56 = vmax.f32 %v638_v48, 0.0 }
 0x156   :  { %v739_v55 = vmax.f32 %v649_v50, 0.0 }
 0x157   :  { %v737_v57 = vmax.f32 %v641_v53, 0.0 }
 0x158   :  { %v775_v58 = vpack.c.bf16 %v739_v55, %v738_v54 }
 0x159   :  { %v774_v59 = vpack.c.bf16 %v737_v57, %v736_v56  ;;  %v2269_v60 = vpop.f32.mrb[56].mxu0  ;;  %v3005_v57 = vld [vmem:[%s3212_s4] ss:$0 sm:$0xff] }
 0x15a   :  { %v662_v61 = vadd.f32 %v2269_v60, %v2888_v52  ;;  %v653_v62 = vpop.f32.mrb[57].mxu0  ;;  %v3010_v60 = vld [vmem:[%s3213_s6] ss:$0 sm:$0xff] }
 0x15b   :  { %v654_v63 = vadd.f32 %v2888_v52, %v653_v62  ;;  %v2270_v0 = vpop.f32.mrb[58].mxu0  ;;  %2417 = vmatprep.mubr.bf16.mxu1 %v774_v59 }
 0x15c   :  { %v665_v1 = vadd.f32 %v2270_v0, %v2888_v52  ;;  %v656_v2 = vpop.f32.mrb[59].mxu0  ;;  %2418 = vmatmul.mubr.bf16.gmra.mrb[20].mxu1 %v775_v58  ;;  %v742_v4 = vmax.f32 %v662_v61, 0.0 }
 0x15d   :  { %v657_v3 = vadd.f32 %v2888_v52, %v656_v2  ;;  %v740_v6 = vmax.f32 %v654_v63, 0.0 }
 0x15e   :  { %v743_v5 = vmax.f32 %v665_v1, 0.0 }
 0x15f   :  { %v741_v7 = vmax.f32 %v657_v3, 0.0 }
 0x160   :  { %v777_v8 = vpack.c.bf16 %v743_v5, %v742_v4 }
 0x161   :  { %v776_v9 = vpack.c.bf16 %v741_v7, %v740_v6  ;;  %v2273_v10 = vpop.f32.mrb[60].mxu0 }
 0x162   :  { %v678_v11 = vadd.f32 %v2273_v10, %v2888_v52  ;;  %v669_v12 = vpop.f32.mrb[61].mxu0 }
 0x163   :  { %v670_v13 = vadd.f32 %v2888_v52, %v669_v12  ;;  %v2274_v14 = vpop.f32.mrb[62].mxu0  ;;  %2421 = vmatprep.mubr.bf16.mxu1 %v776_v9 }
 0x164   :  { %v681_v15 = vadd.f32 %v2274_v14, %v2888_v52  ;;  %v672_v16 = vpop.f32.mrb[63].mxu0  ;;  %2422 = vmatmul.mubr.bf16.gmra.mrb[24].mxu1 %v777_v8  ;;  %v746_v18 = vmax.f32 %v678_v11, 0.0 }
 0x165   :  { %v673_v17 = vadd.f32 %v2888_v52, %v672_v16  ;;  %v744_v20 = vmax.f32 %v670_v13, 0.0 }
 0x166   :  { %v747_v19 = vmax.f32 %v681_v15, 0.0 }
 0x167   :  { %v745_v21 = vmax.f32 %v673_v17, 0.0 }
 0x168   :  { %v779_v22 = vpack.c.bf16 %v747_v19, %v746_v18 }
 0x169   :  { %v778_v23 = vpack.c.bf16 %v745_v21, %v744_v20  ;;  %v2287_v24 = vpop.f32.mrb[64].mxu0 }
 0x16a   :  { %v869_v25 = vpop.f32.mrb[65].mxu0 }
 0x16b   :  { %2425 = vmatprep.mubr.bf16.mxu1 %v778_v23  ;;  %v2288_v26 = vpop.f32.mrb[66].mxu0 }
 0x16c   :  { %2426 = vmatmul.mubr.bf16.gmra.mrb[28].mxu1 %v779_v22  ;;  %v872_v27 = vpop.f32.mrb[67].mxu0 }
 0x171   :  { %v2291_v28 = vpop.f32.mrb[68].mxu0 }
 0x172   :  { %v885_v29 = vpop.f32.mrb[69].mxu0 }
 0x173   :  { %v2292_v30 = vpop.f32.mrb[70].mxu0 }
 0x174   :  { %v888_v31 = vpop.f32.mrb[71].mxu0 }
 0x179   :  { %v2954_v32 = vpop.f32.mrb[72].mxu0 }
 0x17a   :  { %v2956_v33 = vpop.f32.mrb[73].mxu0 }
 0x17b   :  { %v2958_v52 = vpop.f32.mrb[74].mxu0 }
 0x17c   :  { %v2960_v34 = vpop.f32.mrb[75].mxu0 }
 0x181   :  { %v2962_v35 = vpop.f32.mrb[76].mxu0 }
 0x182   :  { %v2964_v36 = vpop.f32.mrb[77].mxu0 }
 0x183   :  { %v2966_v37 = vpop.f32.mrb[78].mxu0 }
 0x184   :  { %v2968_v38 = vpop.f32.mrb[79].mxu0 }
 0x189   :  { %v2970_v39 = vpop.f32.mrb[80].mxu0 }
 0x18a   :  { %v2972_v40 = vpop.f32.mrb[81].mxu0 }
 0x18b   :  { %v2974_v41 = vpop.f32.mrb[82].mxu0 }
 0x18c   :  { %v2976_v42 = vpop.f32.mrb[83].mxu0 }
 0x191   :  { %v2978_v43 = vpop.f32.mrb[84].mxu0 }
 0x192   :  { %v2980_v44 = vpop.f32.mrb[85].mxu0 }
 0x193   :  { %v2982_v45 = vpop.f32.mrb[86].mxu0 }
 0x194   :  { %v2984_v46 = vpop.f32.mrb[87].mxu0 }
 0x199   :  { %v2986_v47 = vpop.f32.mrb[88].mxu0 }
 0x19a   :  { %v2988_v48 = vpop.f32.mrb[89].mxu0 }
 0x19b   :  { %v2990_v49 = vpop.f32.mrb[90].mxu0 }
 0x19c   :  { %v2992_v50 = vpop.f32.mrb[91].mxu0 }
 0x1a1   :  { %v2994_v51 = vpop.f32.mrb[92].mxu0 }
 0x1a2   :  { %v2996_v53 = vpop.f32.mrb[93].mxu0 }
 0x1a3   :  { %v2998_v54 = vpop.f32.mrb[94].mxu0 }
 0x1a4   :  { %v3000_v55 = vpop.f32.mrb[95].mxu0 }
 0x1c7   :  { %v2367_v56 = vpop.f32.mrb[32].mxu1 }
 0x1c8   :  { %v1215_v58 = vadd.f32 %v2367_v56, %v2287_v24  ;;  %v1206_v59 = vpop.f32.mrb[33].mxu1 }
 0x1c9   :  { %v1207_v61 = vadd.f32 %v1206_v59, %v869_v25  ;;  %v2368_v62 = vpop.f32.mrb[34].mxu1 }
 0x1ca   :  { %v1470_v63 = vadd.f32 %v3005_v57, %v1215_v58  ;;  %v1218_v0 = vadd.f32 %v2368_v62, %v2288_v26  ;;  %v1209_v1 = vpop.f32.mrb[35].mxu1 }
 0x1cb   :  { %v1468_v2 = vadd.f32 %v3005_v57, %v1207_v61  ;;  %v1210_v3 = vadd.f32 %v1209_v1, %v872_v27 }
 0x1cc   :  { %v1541_v4 = vadd.f32 %v3010_v60, %v1470_v63  ;;  %v1471_v5 = vadd.f32 %v3005_v57, %v1218_v0 }
 0x1cd   :  { %v1539_v6 = vadd.f32 %v3010_v60, %v1468_v2  ;;  %v1469_v7 = vadd.f32 %v3005_v57, %v1210_v3 }
 0x1ce   :  { %v1542_v8 = vadd.f32 %v3010_v60, %v1471_v5  ;;  %v1605_v11 = vmax.f32 %v1541_v4, 0.0 }
 0x1cf   :  { %v1540_v9 = vadd.f32 %v3010_v60, %v1469_v7  ;;  %v2371_v10 = vpop.f32.mrb[36].mxu1  ;;  %v1603_v15 = vmax.f32 %v1539_v6, 0.0 }
 0x1d0   :  { %v1606_v12 = vmax.f32 %v1542_v8, 0.0  ;;  %v1231_v13 = vadd.f32 %v2371_v10, %v2291_v28  ;;  %v1222_v14 = vpop.f32.mrb[37].mxu1 }
 0x1d1   :  { %v1604_v16 = vmax.f32 %v1540_v9, 0.0  ;;  %v1223_v17 = vadd.f32 %v1222_v14, %v885_v29  ;;  %v2372_v18 = vpop.f32.mrb[38].mxu1 }
 0x1d2   :  { %v1674_v19 = vmax.f32 %v1605_v11, %v1606_v12  ;;  %v1474_v20 = vadd.f32 %v3005_v57, %v1231_v13  ;;  %v1234_v21 = vadd.f32 %v2372_v18, %v2292_v30  ;;  %v1225_v22 = vpop.f32.mrb[39].mxu1 }
 0x1d3   :  { %v1667_v23 = vmax.f32 %v1603_v15, %v1604_v16  ;;  %v1472_v24 = vadd.f32 %v3005_v57, %v1223_v17  ;;  %v1226_v25 = vadd.f32 %v1225_v22, %v888_v31 }
 0x1d4   :  { %v1675_v26 = vrot.slane %v1674_v19, 4  ;;  %v1545_v27 = vadd.f32 %v3010_v60, %v1474_v20  ;;  %v1475_v56 = vadd.f32 %v3005_v57, %v1234_v21 }
 0x1d5   :  { %v1668_v28 = vrot.slane %v1667_v23, 4  ;;  %v1543_v58 = vadd.f32 %v3010_v60, %v1472_v24  ;;  %v1473_v29 = vadd.f32 %v3005_v57, %v1226_v25 }
 0x1d6   :  { %v1676_v59 = vmax.f32 %v1674_v19, %v1675_v26  ;;  %v1546_v61 = vadd.f32 %v3010_v60, %v1475_v56  ;;  %v1609_v31 = vmax.f32 %v1545_v27, 0.0 }
 0x1d7   :  { %v1669_v62 = vmax.f32 %v1667_v23, %v1668_v28  ;;  %v1544_v30 = vadd.f32 %v3010_v60, %v1473_v29  ;;  %v2375_v63 = vpop.f32.mrb[40].mxu1  ;;  %v1607_v5 = vmax.f32 %v1543_v58, 0.0 }
 0x1d8   :  { %v1677_v0 = vrot.slane %v1676_v59, 2  ;;  %v1610_v1 = vmax.f32 %v1546_v61, 0.0  ;;  %v1247_v2 = vadd.f32 %v2375_v63, %v2954_v32  ;;  %v1238_v3 = vpop.f32.mrb[41].mxu1 }
 0x1d9   :  { %v1670_v4 = vrot.slane %v1669_v62, 2  ;;  %v1608_v6 = vmax.f32 %v1544_v30, 0.0  ;;  %v1239_v7 = vadd.f32 %v1238_v3, %v2956_v33  ;;  %v2376_v8 = vpop.f32.mrb[42].mxu1 }
 0x1da   :  { %v1678_v9 = vmax.f32 %v1676_v59, %v1677_v0  ;;  %v1688_v10 = vmax.f32 %v1609_v31, %v1610_v1  ;;  %v1478_v11 = vadd.f32 %v3005_v57, %v1247_v2  ;;  %v1250_v12 = vadd.f32 %v2376_v8, %v2958_v52  ;;  %v1241_v13 = vpop.f32.mrb[43].mxu1 }
 0x1db   :  { %v1671_v14 = vmax.f32 %v1669_v62, %v1670_v4  ;;  %v1681_v15 = vmax.f32 %v1607_v5, %v1608_v6  ;;  %v1476_v16 = vadd.f32 %v3005_v57, %v1239_v7  ;;  %v1242_v32 = vadd.f32 %v1241_v13, %v2960_v34 }
 0x1dc   :  { %v1679_v17 = vrot.slane %v1678_v9, 1  ;;  %v1689_v18 = vrot.slane %v1688_v10, 4  ;;  %v1549_v19 = vadd.f32 %v3010_v60, %v1478_v11  ;;  %v1479_v33 = vadd.f32 %v3005_v57, %v1250_v12 }
 0x1dd   :  { %v1672_v20 = vrot.slane %v1671_v14, 1  ;;  %v1682_v21 = vrot.slane %v1681_v15, 4  ;;  %v1547_v22 = vadd.f32 %v3010_v60, %v1476_v16  ;;  %v1477_v23 = vadd.f32 %v3005_v57, %v1242_v32 }
 0x1de   :  { %v1680_v52 = vmax.f32 %v1678_v9, %v1679_v17  ;;  %v1690_v24 = vmax.f32 %v1688_v10, %v1689_v18  ;;  %v1550_v25 = vadd.f32 %v3010_v60, %v1479_v33  ;;  %v1613_v34 = vmax.f32 %v1549_v19, 0.0 }
 0x1df   :  { %v1673_v26 = vmax.f32 %v1671_v14, %v1672_v20  ;;  %v1683_v27 = vmax.f32 %v1681_v15, %v1682_v21  ;;  %v1548_v56 = vadd.f32 %v3010_v60, %v1477_v23  ;;  %v2379_v28 = vpop.f32.mrb[44].mxu1  ;;  %v1611_v29 = vmax.f32 %v1547_v22, 0.0 }
 0x1e0   :  { %v1691_v58 = vrot.slane %v1690_v24, 2  ;;  %v1614_v59 = vmax.f32 %v1550_v25, 0.0  ;;  %v1263_v61 = vadd.f32 %v2379_v28, %v2962_v35  ;;  %v1254_v62 = vpop.f32.mrb[45].mxu1 }
 0x1e1   :  { %v1924_v30 = vsel %vm1923_vm2, %v1680_v52, %v1673_v26  ;;  %v1684_v63 = vrot.slane %v1683_v27, 2  ;;  %v1612_v0 = vmax.f32 %v1548_v56, 0.0  ;;  %v1255_v31 = vadd.f32 %v1254_v62, %v2964_v36  ;;  %v2380_v1 = vpop.f32.mrb[46].mxu1 }
 0x1e2   :  { %v1692_v2 = vmax.f32 %v1690_v24, %v1691_v58  ;;  %v1702_v3 = vmax.f32 %v1613_v34, %v1614_v59  ;;  %v1482_v4 = vadd.f32 %v3005_v57, %v1263_v61  ;;  %v1266_v5 = vadd.f32 %v2380_v1, %v2966_v37  ;;  %v1257_v6 = vpop.f32.mrb[47].mxu1 }
 0x1e3   :  { %v1685_v7 = vmax.f32 %v1683_v27, %v1684_v63  ;;  %v1695_v8 = vmax.f32 %v1611_v29, %v1612_v0  ;;  %v1480_v9 = vadd.f32 %v3005_v57, %v1255_v31  ;;  %v1258_v35 = vadd.f32 %v1257_v6, %v2968_v38 }
 0x1e4   :  { %v1693_v10 = vrot.slane %v1692_v2, 1  ;;  %v1703_v11 = vrot.slane %v1702_v3, 4  ;;  %v1553_v12 = vadd.f32 %v3010_v60, %v1482_v4  ;;  %v1483_v36 = vadd.f32 %v3005_v57, %v1266_v5 }
 0x1e5   :  { %v1686_v13 = vrot.slane %v1685_v7, 1  ;;  %v1696_v14 = vrot.slane %v1695_v8, 4  ;;  %v1551_v15 = vadd.f32 %v3010_v60, %v1480_v9  ;;  %v1481_v16 = vadd.f32 %v3005_v57, %v1258_v35 }
 0x1e6   :  { %v1694_v37 = vmax.f32 %v1692_v2, %v1693_v10  ;;  %v1704_v32 = vmax.f32 %v1702_v3, %v1703_v11  ;;  %v1554_v17 = vadd.f32 %v3010_v60, %v1483_v36  ;;  %v1617_v38 = vmax.f32 %v1553_v12, 0.0 }
 0x1e7   :  { %v1687_v18 = vmax.f32 %v1685_v7, %v1686_v13  ;;  %v1697_v19 = vmax.f32 %v1695_v8, %v1696_v14  ;;  %v1552_v33 = vadd.f32 %v3010_v60, %v1481_v16  ;;  %v2383_v20 = vpop.f32.mrb[48].mxu1  ;;  %v1615_v22 = vmax.f32 %v1551_v15, 0.0 }
 0x1e8   :  { %v1705_v21 = vrot.slane %v1704_v32, 2  ;;  %v1618_v23 = vmax.f32 %v1554_v17, 0.0  ;;  %v1279_v52 = vadd.f32 %v2383_v20, %v2970_v39  ;;  %v1270_v24 = vpop.f32.mrb[49].mxu1 }
 0x1e9   :  { %v1926_v25 = vsel %vm1925_vm3, %v1687_v18, %v1924_v30  ;;  %v1698_v26 = vrot.slane %v1697_v19, 2  ;;  %v1616_v27 = vmax.f32 %v1552_v33, 0.0  ;;  %v1271_v34 = vadd.f32 %v1270_v24, %v2972_v40  ;;  %v2384_v56 = vpop.f32.mrb[50].mxu1 }
 0x1ea   :  { %v1706_v28 = vmax.f32 %v1704_v32, %v1705_v21  ;;  %v1928_v58 = vsel %vm1927_vm4, %v1694_v37, %v1926_v25  ;;  %v1716_v29 = vmax.f32 %v1617_v38, %v1618_v23  ;;  %v1486_v59 = vadd.f32 %v3005_v57, %v1279_v52  ;;  %v1273_v61 = vpop.f32.mrb[51].mxu1 }
 0x1eb   :  { %v1699_v62 = vmax.f32 %v1697_v19, %v1698_v26  ;;  %v1709_v63 = vmax.f32 %v1615_v22, %v1616_v27  ;;  %v1484_v0 = vadd.f32 %v3005_v57, %v1271_v34  ;;  %v1282_v39 = vadd.f32 %v2384_v56, %v2974_v41 }
 0x1ec   :  { %v1707_v31 = vrot.slane %v1706_v28, 1  ;;  %v1717_v30 = vrot.slane %v1716_v29, 4  ;;  %v1557_v1 = vadd.f32 %v3010_v60, %v1486_v59  ;;  %v1274_v40 = vadd.f32 %v1273_v61, %v2976_v42 }
 0x1ed   :  { %v1700_v2 = vrot.slane %v1699_v62, 1  ;;  %v1710_v3 = vrot.slane %v1709_v63, 4  ;;  %v1555_v4 = vadd.f32 %v3010_v60, %v1484_v0  ;;  %v1487_v5 = vadd.f32 %v3005_v57, %v1282_v39 }
 0x1ee   :  { %v1708_v6 = vmax.f32 %v1706_v28, %v1707_v31  ;;  %v1718_v7 = vmax.f32 %v1716_v29, %v1717_v30  ;;  %v1485_v8 = vadd.f32 %v3005_v57, %v1274_v40  ;;  %v1621_v41 = vmax.f32 %v1557_v1, 0.0 }
 0x1ef   :  { %v1701_v9 = vmax.f32 %v1699_v62, %v1700_v2  ;;  %v1711_v35 = vmax.f32 %v1709_v63, %v1710_v3  ;;  %v1558_v10 = vadd.f32 %v3010_v60, %v1487_v5  ;;  %v2387_v11 = vpop.f32.mrb[52].mxu1  ;;  %v1619_v36 = vmax.f32 %v1555_v4, 0.0 }
 0x1f0   :  { %v1719_v12 = vrot.slane %v1718_v7, 2  ;;  %v1556_v42 = vadd.f32 %v3010_v60, %v1485_v8  ;;  %v1295_v13 = vadd.f32 %v2387_v11, %v2978_v43  ;;  %v1286_v14 = vpop.f32.mrb[53].mxu1 }
 0x1f1   :  { %v1930_v15 = vsel %vm1929_vm5, %v1701_v9, %v1928_v58  ;;  %v1712_v16 = vrot.slane %v1711_v35, 2  ;;  %v1622_v37 = vmax.f32 %v1558_v10, 0.0  ;;  %v1287_v32 = vadd.f32 %v1286_v14, %v2980_v44  ;;  %v2388_v17 = vpop.f32.mrb[54].mxu1 }
 0x1f2   :  { %v1720_v18 = vmax.f32 %v1718_v7, %v1719_v12  ;;  %v1932_v19 = vsel %vm1931_vm6, %v1708_v6, %v1930_v15  ;;  %v1620_v38 = vmax.f32 %v1556_v42, 0.0  ;;  %v1490_v33 = vadd.f32 %v3005_v57, %v1295_v13  ;;  %v1289_v20 = vpop.f32.mrb[55].mxu1 }
 0x1f3   :  { %v1713_v21 = vmax.f32 %v1711_v35, %v1712_v16  ;;  %v1730_v22 = vmax.f32 %v1621_v41, %v1622_v37  ;;  %v1488_v23 = vadd.f32 %v3005_v57, %v1287_v32  ;;  %v1298_v43 = vadd.f32 %v2388_v17, %v2982_v45 }
 0x1f4   :  { %v1721_v52 = vrot.slane %v1720_v18, 1  ;;  %v1723_v24 = vmax.f32 %v1619_v36, %v1620_v38  ;;  %v1561_v25 = vadd.f32 %v3010_v60, %v1490_v33  ;;  %v1290_v44 = vadd.f32 %v1289_v20, %v2984_v46 }
 0x1f5   :  { %v1714_v26 = vrot.slane %v1713_v21, 1  ;;  %v1731_v27 = vrot.slane %v1730_v22, 4  ;;  %v1559_v34 = vadd.f32 %v3010_v60, %v1488_v23  ;;  %v1491_v56 = vadd.f32 %v3005_v57, %v1298_v43 }
 0x1f6   :  { %v1722_v28 = vmax.f32 %v1720_v18, %v1721_v52  ;;  %v1724_v58 = vrot.slane %v1723_v24, 4  ;;  %v1489_v29 = vadd.f32 %v3005_v57, %v1290_v44  ;;  %v1625_v45 = vmax.f32 %v1561_v25, 0.0 }
 0x1f7   :  { %v1715_v59 = vmax.f32 %v1713_v21, %v1714_v26  ;;  %v1732_v61 = vmax.f32 %v1730_v22, %v1731_v27  ;;  %v1562_v62 = vadd.f32 %v3010_v60, %v1491_v56  ;;  %v2391_v63 = vpop.f32.mrb[56].mxu1  ;;  %v1623_v39 = vmax.f32 %v1559_v34, 0.0 }
 0x1f8   :  { %v1725_v0 = vmax.f32 %v1723_v24, %v1724_v58  ;;  %v1560_v46 = vadd.f32 %v3010_v60, %v1489_v29  ;;  %v1311_v31 = vadd.f32 %v2391_v63, %v2986_v47  ;;  %v1302_v30 = vpop.f32.mrb[57].mxu1 }
 0x1f9   :  { %v1934_v1 = vsel %vm1933_vm7, %v1715_v59, %v1932_v19  ;;  %v1733_v40 = vrot.slane %v1732_v61, 2  ;;  %v1626_v2 = vmax.f32 %v1562_v62, 0.0  ;;  %v1303_v3 = vadd.f32 %v1302_v30, %v2988_v48  ;;  %v2392_v4 = vpop.f32.mrb[58].mxu1 }
 0x1fa   :  { %v1936_v5 = vsel %vm1935_vm8, %v1722_v28, %v1934_v1  ;;  %v1726_v6 = vrot.slane %v1725_v0, 2  ;;  %v1624_v7 = vmax.f32 %v1560_v46, 0.0  ;;  %v1494_v8 = vadd.f32 %v3005_v57, %v1311_v31  ;;  %v1305_v9 = vpop.f32.mrb[59].mxu1 }
 0x1fb   :  { %1962 = vst [vmem:[%s3214_s7] sm:$0xff] %v1936_v5  ;;  %v1734_v47 = vmax.f32 %v1732_v61, %v1733_v40  ;;  %v1744_v35 = vmax.f32 %v1625_v45, %v1626_v2  ;;  %v1492_v41 = vadd.f32 %v3005_v57, %v1303_v3  ;;  %v1314_v10 = vadd.f32 %v2392_v4, %v2990_v49 }
 0x1fc   :  { %v1727_v11 = vmax.f32 %v1725_v0, %v1726_v6  ;;  %v1737_v48 = vmax.f32 %v1623_v39, %v1624_v7  ;;  %v1565_v12 = vadd.f32 %v3010_v60, %v1494_v8  ;;  %v1306_v36 = vadd.f32 %v1305_v9, %v2992_v50 }
 0x1fd   :  { %v1735_v42 = vrot.slane %v1734_v47, 1  ;;  %v1745_v13 = vrot.slane %v1744_v35, 4  ;;  %v1563_v14 = vadd.f32 %v3010_v60, %v1492_v41  ;;  %v1495_v15 = vadd.f32 %v3005_v57, %v1314_v10 }
 0x1fe   :  { %v1728_v16 = vrot.slane %v1727_v11, 1  ;;  %v1738_v37 = vrot.slane %v1737_v48, 4  ;;  %v1493_v32 = vadd.f32 %v3005_v57, %v1306_v36  ;;  %v1629_v19 = vmax.f32 %v1565_v12, 0.0 }
 0x1ff   :  { %v1736_v17 = vmax.f32 %v1734_v47, %v1735_v42  ;;  %v1746_v18 = vmax.f32 %v1744_v35, %v1745_v13  ;;  %v1566_v49 = vadd.f32 %v3010_v60, %v1495_v15  ;;  %v2395_v38 = vpop.f32.mrb[60].mxu1  ;;  %v1627_v43 = vmax.f32 %v1563_v14, 0.0 }
 0x200   :  { %v1729_v33 = vmax.f32 %v1727_v11, %v1728_v16  ;;  %v1739_v20 = vmax.f32 %v1737_v48, %v1738_v37  ;;  %v1564_v50 = vadd.f32 %v3010_v60, %v1493_v32  ;;  %v1327_v21 = vadd.f32 %v2395_v38, %v2994_v51  ;;  %v1318_v22 = vpop.f32.mrb[61].mxu1 }
 0x201   :  { %v1747_v23 = vrot.slane %v1746_v18, 2  ;;  %v1630_v52 = vmax.f32 %v1566_v49, 0.0  ;;  %v1319_v24 = vadd.f32 %v1318_v22, %v2996_v53  ;;  %v2396_v25 = vpop.f32.mrb[62].mxu1 }
 0x202   :  { %v1937_v44 = vsel %vm1923_vm2, %v1736_v17, %v1729_v33  ;;  %v1740_v26 = vrot.slane %v1739_v20, 2  ;;  %v1628_v27 = vmax.f32 %v1564_v50, 0.0  ;;  %v1498_v34 = vadd.f32 %v3005_v57, %v1327_v21  ;;  %v1321_v56 = vpop.f32.mrb[63].mxu1 }
 0x203   :  { %v1748_v28 = vmax.f32 %v1746_v18, %v1747_v23  ;;  %v1758_v58 = vmax.f32 %v1629_v19, %v1630_v52  ;;  %v1496_v29 = vadd.f32 %v3005_v57, %v1319_v24  ;;  %v1330_v51 = vadd.f32 %v2396_v25, %v2998_v54 }
 0x204   :  { %v1741_v59 = vmax.f32 %v1739_v20, %v1740_v26  ;;  %v1751_v61 = vmax.f32 %v1627_v43, %v1628_v27  ;;  %v1569_v45 = vadd.f32 %v3010_v60, %v1498_v34  ;;  %v1322_v53 = vadd.f32 %v1321_v56, %v3000_v55 }
 0x205   :  { %v1749_v62 = vrot.slane %v1748_v28, 1  ;;  %v1759_v63 = vrot.slane %v1758_v58, 4  ;;  %v1567_v0 = vadd.f32 %v3010_v60, %v1496_v29  ;;  %v1499_v39 = vadd.f32 %v3005_v57, %v1330_v51 }
 0x206   :  { %v1742_v46 = vrot.slane %v1741_v59, 1  ;;  %v1752_v31 = vrot.slane %v1751_v61, 4  ;;  %v1497_v30 = vadd.f32 %v3005_v57, %v1322_v53  ;;  %v1633_v2 = vmax.f32 %v1569_v45, 0.0 }
 0x207   :  { %v1750_v1 = vmax.f32 %v1748_v28, %v1749_v62  ;;  %v1760_v40 = vmax.f32 %v1758_v58, %v1759_v63  ;;  %v1570_v54 = vadd.f32 %v3010_v60, %v1499_v39  ;;  %v2399_v3 = vpop.f32.mrb[0].mxu1  ;;  %v1631_v9 = vmax.f32 %v1567_v0, 0.0 }
 0x208   :  { %v1743_v4 = vmax.f32 %v1741_v59, %v1742_v46  ;;  %v1753_v5 = vmax.f32 %v1751_v61, %v1752_v31  ;;  %v1568_v55 = vadd.f32 %v3010_v60, %v1497_v30  ;;  %v1502_v6 = vadd.f32 %v2399_v3, %v3005_v57  ;;  %v1334_v7 = vpop.f32.mrb[1].mxu1 }
 0x209   :  { %v1761_v8 = vrot.slane %v1760_v40, 2  ;;  %v1634_v47 = vmax.f32 %v1570_v54, 0.0  ;;  %v1500_v35 = vadd.f32 %v3005_v57, %v1334_v7  ;;  %v2400_v41 = vpop.f32.mrb[2].mxu1 }
 0x20a   :  { %v1938_v10 = vsel %vm1925_vm3, %v1743_v4, %v1937_v44  ;;  %v1754_v11 = vrot.slane %v1753_v5, 2  ;;  %v1632_v48 = vmax.f32 %v1568_v55, 0.0  ;;  %v1573_v12 = vadd.f32 %v3010_v60, %v1502_v6  ;;  %v1337_v36 = vpop.f32.mrb[3].mxu1 }
 0x20b   :  { %v1762_v42 = vmax.f32 %v1760_v40, %v1761_v8  ;;  %v1939_v13 = vsel %vm1927_vm4, %v1750_v1, %v1938_v10  ;;  %v1772_v14 = vmax.f32 %v1633_v2, %v1634_v47  ;;  %v1571_v15 = vadd.f32 %v3010_v60, %v1500_v35 }
 0x20c   :  { %v1755_v16 = vmax.f32 %v1753_v5, %v1754_v11  ;;  %v1765_v37 = vmax.f32 %v1631_v9, %v1632_v48  ;;  %v1503_v32 = vadd.f32 %v2400_v41, %v3005_v57  ;;  %v1501_v19 = vadd.f32 %v3005_v57, %v1337_v36 }
 0x20d   :  { %v1763_v17 = vrot.slane %v1762_v42, 1  ;;  %v1773_v18 = vrot.slane %v1772_v14, 4  ;;  %v1637_v50 = vmax.f32 %v1573_v12, 0.0  ;;  %v1635_v21 = vmax.f32 %v1571_v15, 0.0 }
 0x20e   :  { %v1756_v49 = vrot.slane %v1755_v16, 1  ;;  %v1766_v38 = vrot.slane %v1765_v37, 4  ;;  %v1574_v33 = vadd.f32 %v3010_v60, %v1503_v32  ;;  %v1572_v22 = vadd.f32 %v3010_v60, %v1501_v19 }
 0x20f   :  { %v1774_v20 = vmax.f32 %v1772_v14, %v1773_v18  ;;  %v2403_v23 = vpop.f32.mrb[4].mxu1  ;;  %v1764_v26 = vmax.f32 %v1762_v42, %v1763_v17 }
 0x210   :  { %v1757_v43 = vmax.f32 %v1755_v16, %v1756_v49  ;;  %v1767_v52 = vmax.f32 %v1765_v37, %v1766_v38  ;;  %v1638_v24 = vmax.f32 %v1574_v33, 0.0  ;;  %v1506_v25 = vadd.f32 %v2403_v23, %v3005_v57  ;;  %v1350_v44 = vpop.f32.mrb[5].mxu1 }
 0x211   :  { %v1775_v27 = vrot.slane %v1774_v20, 2  ;;  %v1636_v34 = vmax.f32 %v1572_v22, 0.0  ;;  %v1504_v56 = vadd.f32 %v3005_v57, %v1350_v44  ;;  %v2404_v28 = vpop.f32.mrb[6].mxu1 }
 0x212   :  { %v1940_v58 = vsel %vm1929_vm5, %v1757_v43, %v1939_v13  ;;  %v1768_v29 = vrot.slane %v1767_v52, 2  ;;  %v1786_v51 = vmax.f32 %v1637_v50, %v1638_v24  ;;  %v1577_v59 = vadd.f32 %v3010_v60, %v1506_v25  ;;  %v1353_v61 = vpop.f32.mrb[7].mxu1 }
 0x213   :  { %v1776_v45 = vmax.f32 %v1774_v20, %v1775_v27  ;;  %v1941_v53 = vsel %vm1931_vm6, %v1764_v26, %v1940_v58  ;;  %v1779_v62 = vmax.f32 %v1635_v21, %v1636_v34  ;;  %v1575_v63 = vadd.f32 %v3010_v60, %v1504_v56 }
 0x214   :  { %v1769_v0 = vmax.f32 %v1767_v52, %v1768_v29  ;;  %v1787_v39 = vrot.slane %v1786_v51, 4  ;;  %v1507_v46 = vadd.f32 %v2404_v28, %v3005_v57  ;;  %v1505_v1 = vadd.f32 %v3005_v57, %v1353_v61 }
 0x215   :  { %v1777_v31 = vrot.slane %v1776_v45, 1  ;;  %v1780_v30 = vrot.slane %v1779_v62, 4  ;;  %v1641_v4 = vmax.f32 %v1577_v59, 0.0  ;;  %v1639_v5 = vmax.f32 %v1575_v63, 0.0 }
 0x216   :  { %v1770_v40 = vrot.slane %v1769_v0, 1  ;;  %v1788_v2 = vmax.f32 %v1786_v51, %v1787_v39  ;;  %v1578_v54 = vadd.f32 %v3010_v60, %v1507_v46  ;;  %v1576_v55 = vadd.f32 %v3010_v60, %v1505_v1 }
 0x217   :  { %v1781_v3 = vmax.f32 %v1779_v62, %v1780_v30  ;;  %v2407_v6 = vpop.f32.mrb[8].mxu1  ;;  %v1778_v41 = vmax.f32 %v1776_v45, %v1777_v31 }
 0x218   :  { %v1771_v7 = vmax.f32 %v1769_v0, %v1770_v40  ;;  %v1789_v8 = vrot.slane %v1788_v2, 2  ;;  %v1642_v9 = vmax.f32 %v1578_v54, 0.0  ;;  %v1510_v47 = vadd.f32 %v2407_v6, %v3005_v57  ;;  %v1366_v35 = vpop.f32.mrb[9].mxu1 }
 0x219   :  { %v1782_v10 = vrot.slane %v1781_v3, 2  ;;  %v1640_v11 = vmax.f32 %v1576_v55, 0.0  ;;  %v1508_v48 = vadd.f32 %v3005_v57, %v1366_v35  ;;  %v2408_v12 = vpop.f32.mrb[10].mxu1 }
 0x21a   :  { %v1942_v36 = vsel %vm1933_vm7, %v1771_v7, %v1941_v53  ;;  %v1790_v42 = vmax.f32 %v1788_v2, %v1789_v8  ;;  %v1800_v13 = vmax.f32 %v1641_v4, %v1642_v9  ;;  %v1369_v14 = vpop.f32.mrb[11].mxu1  ;;  %v1581_v32 = vadd.f32 %v3010_v60, %v1510_v47 }
 0x21b   :  { %v1943_v15 = vsel %vm1935_vm8, %v1778_v41, %v1942_v36  ;;  %v1783_v16 = vmax.f32 %v1781_v3, %v1782_v10  ;;  %v1793_v37 = vmax.f32 %v1639_v5, %v1640_v11  ;;  %v1579_v19 = vadd.f32 %v3010_v60, %v1508_v48 }
 0x21c   :  { %1963 = vst [vmem:[%s3214_s7 + $0x8] sm:$0xff] %v1943_v15  ;;  %v1791_v17 = vrot.slane %v1790_v42, 1  ;;  %v1801_v18 = vrot.slane %v1800_v13, 4  ;;  %v1511_v49 = vadd.f32 %v2408_v12, %v3005_v57  ;;  %v1509_v20 = vadd.f32 %v3005_v57, %v1369_v14 }
 0x21d   :  { %v1784_v38 = vrot.slane %v1783_v16, 1  ;;  %v1794_v33 = vrot.slane %v1793_v37, 4  ;;  %v1645_v52 = vmax.f32 %v1581_v32, 0.0  ;;  %v1643_v26 = vmax.f32 %v1579_v19, 0.0 }
 0x21e   :  { %v1792_v50 = vmax.f32 %v1790_v42, %v1791_v17  ;;  %v1802_v21 = vmax.f32 %v1800_v13, %v1801_v18  ;;  %v1582_v22 = vadd.f32 %v3010_v60, %v1511_v49  ;;  %v1580_v24 = vadd.f32 %v3010_v60, %v1509_v20 }
 0x21f   :  { %v1785_v23 = vmax.f32 %v1783_v16, %v1784_v38  ;;  %v1795_v43 = vmax.f32 %v1793_v37, %v1794_v33  ;;  %v2411_v25 = vpop.f32.mrb[12].mxu1 }
 0x220   :  { %v1803_v44 = vrot.slane %v1802_v21, 2  ;;  %v1646_v27 = vmax.f32 %v1582_v22, 0.0  ;;  %v1514_v34 = vadd.f32 %v2411_v25, %v3005_v57  ;;  %v1382_v56 = vpop.f32.mrb[13].mxu1  ;;  %v1644_v29 = vmax.f32 %v1580_v24, 0.0 }
 0x221   :  { %v1944_v28 = vsel %vm1923_vm2, %v1792_v50, %v1785_v23  ;;  %v1796_v58 = vrot.slane %v1795_v43, 2  ;;  %v1512_v51 = vadd.f32 %v3005_v57, %v1382_v56  ;;  %v2412_v59 = vpop.f32.mrb[14].mxu1 }
 0x222   :  { %v1804_v61 = vmax.f32 %v1802_v21, %v1803_v44  ;;  %v1814_v45 = vmax.f32 %v1645_v52, %v1646_v27  ;;  %v1585_v53 = vadd.f32 %v3010_v60, %v1514_v34  ;;  %v1515_v62 = vadd.f32 %v2412_v59, %v3005_v57  ;;  %v1385_v63 = vpop.f32.mrb[15].mxu1 }
 0x223   :  { %v1797_v0 = vmax.f32 %v1795_v43, %v1796_v58  ;;  %v1807_v39 = vmax.f32 %v1643_v26, %v1644_v29  ;;  %v1583_v46 = vadd.f32 %v3010_v60, %v1512_v51  ;;  %v1513_v31 = vadd.f32 %v3005_v57, %v1385_v63 }
 0x224   :  { %v1805_v30 = vrot.slane %v1804_v61, 1  ;;  %v1815_v1 = vrot.slane %v1814_v45, 4  ;;  %v1586_v40 = vadd.f32 %v3010_v60, %v1515_v62  ;;  %v1649_v5 = vmax.f32 %v1585_v53, 0.0 }
 0x225   :  { %v1798_v2 = vrot.slane %v1797_v0, 1  ;;  %v1808_v54 = vrot.slane %v1807_v39, 4  ;;  %v1584_v3 = vadd.f32 %v3010_v60, %v1513_v31  ;;  %v1647_v8 = vmax.f32 %v1583_v46, 0.0 }
 0x226   :  { %v1816_v4 = vmax.f32 %v1814_v45, %v1815_v1  ;;  %v1650_v55 = vmax.f32 %v1586_v40, 0.0  ;;  %v1806_v35 = vmax.f32 %v1804_v61, %v1805_v30 }
 0x227   :  { %v1799_v6 = vmax.f32 %v1797_v0, %v1798_v2  ;;  %v1809_v7 = vmax.f32 %v1807_v39, %v1808_v54  ;;  %v1648_v9 = vmax.f32 %v1584_v3, 0.0  ;;  %v2415_v47 = vpop.f32.mrb[16].mxu1 }
 0x228   :  { %v1817_v41 = vrot.slane %v1816_v4, 2  ;;  %v1828_v10 = vmax.f32 %v1649_v5, %v1650_v55  ;;  %v1518_v11 = vadd.f32 %v2415_v47, %v3005_v57  ;;  %v1398_v48 = vpop.f32.mrb[17].mxu1 }
 0x229   :  { %v1945_v12 = vsel %vm1925_vm3, %v1799_v6, %v1944_v28  ;;  %v1810_v36 = vrot.slane %v1809_v7, 2  ;;  %v1821_v42 = vmax.f32 %v1647_v8, %v1648_v9  ;;  %v1516_v13 = vadd.f32 %v3005_v57, %v1398_v48  ;;  %v2416_v14 = vpop.f32.mrb[18].mxu1 }
 0x22a   :  { %v1818_v15 = vmax.f32 %v1816_v4, %v1817_v41  ;;  %v1946_v16 = vsel %vm1927_vm4, %v1806_v35, %v1945_v12  ;;  %v1829_v37 = vrot.slane %v1828_v10, 4  ;;  %v1589_v32 = vadd.f32 %v3010_v60, %v1518_v11  ;;  %v1401_v17 = vpop.f32.mrb[19].mxu1 }
 0x22b   :  { %v1811_v18 = vmax.f32 %v1809_v7, %v1810_v36  ;;  %v1822_v19 = vrot.slane %v1821_v42, 4  ;;  %v1587_v49 = vadd.f32 %v3010_v60, %v1516_v13  ;;  %v1519_v38 = vadd.f32 %v2416_v14, %v3005_v57 }
 0x22c   :  { %v1819_v33 = vrot.slane %v1818_v15, 1  ;;  %v1830_v20 = vmax.f32 %v1828_v10, %v1829_v37  ;;  %v1517_v50 = vadd.f32 %v3005_v57, %v1401_v17  ;;  %v1653_v52 = vmax.f32 %v1589_v32, 0.0 }
 0x22d   :  { %v1812_v21 = vrot.slane %v1811_v18, 1  ;;  %v1823_v22 = vmax.f32 %v1821_v42, %v1822_v19  ;;  %v1590_v23 = vadd.f32 %v3010_v60, %v1519_v38  ;;  %v1651_v26 = vmax.f32 %v1587_v49, 0.0 }
 0x22e   :  { %v1831_v43 = vrot.slane %v1830_v20, 2  ;;  %v1588_v24 = vadd.f32 %v3010_v60, %v1517_v50  ;;  %v1820_v56 = vmax.f32 %v1818_v15, %v1819_v33 }
 0x22f   :  { %v1813_v25 = vmax.f32 %v1811_v18, %v1812_v21  ;;  %v1824_v44 = vrot.slane %v1823_v22, 2  ;;  %v1654_v27 = vmax.f32 %v1590_v23, 0.0  ;;  %v2419_v34 = vpop.f32.mrb[20].mxu1 }
 0x230   :  { %v1832_v28 = vmax.f32 %v1830_v20, %v1831_v43  ;;  %v1652_v58 = vmax.f32 %v1588_v24, 0.0  ;;  %v1522_v29 = vadd.f32 %v2419_v34, %v3005_v57  ;;  %v1414_v51 = vpop.f32.mrb[21].mxu1 }
 0x231   :  { %v1947_v59 = vsel %vm1929_vm5, %v1813_v25, %v1946_v16  ;;  %v1825_v61 = vmax.f32 %v1823_v22, %v1824_v44  ;;  %v1842_v45 = vmax.f32 %v1653_v52, %v1654_v27  ;;  %v1520_v53 = vadd.f32 %v3005_v57, %v1414_v51  ;;  %v2420_v62 = vpop.f32.mrb[22].mxu1 }
 0x232   :  { %v1833_v63 = vrot.slane %v1832_v28, 1  ;;  %v1948_v0 = vsel %vm1931_vm6, %v1820_v56, %v1947_v59  ;;  %v1835_v39 = vmax.f32 %v1651_v26, %v1652_v58  ;;  %v1593_v46 = vadd.f32 %v3010_v60, %v1522_v29  ;;  %v1417_v31 = vpop.f32.mrb[23].mxu1 }
 0x233   :  { %v1826_v30 = vrot.slane %v1825_v61, 1  ;;  %v1843_v1 = vrot.slane %v1842_v45, 4  ;;  %v1591_v40 = vadd.f32 %v3010_v60, %v1520_v53  ;;  %v1523_v2 = vadd.f32 %v2420_v62, %v3005_v57 }
 0x234   :  { %v1836_v54 = vrot.slane %v1835_v39, 4  ;;  %v1521_v3 = vadd.f32 %v3005_v57, %v1417_v31  ;;  %v1834_v6 = vmax.f32 %v1832_v28, %v1833_v63  ;;  %v1657_v8 = vmax.f32 %v1593_v46, 0.0 }
 0x235   :  { %v1827_v4 = vmax.f32 %v1825_v61, %v1826_v30  ;;  %v1844_v5 = vmax.f32 %v1842_v45, %v1843_v1  ;;  %v1594_v55 = vadd.f32 %v3010_v60, %v1523_v2  ;;  %v1655_v41 = vmax.f32 %v1591_v40, 0.0 }
 0x236   :  { %v1837_v7 = vmax.f32 %v1835_v39, %v1836_v54  ;;  %v1592_v9 = vadd.f32 %v3010_v60, %v1521_v3  ;;  %v2556_v3 = vld [vmem:[%s3212_s4] ss:$0 sm:$0xff] }
 0x237   :  { %v1949_v47 = vsel %vm1933_vm7, %v1827_v4, %v1948_v0  ;;  %v1845_v35 = vrot.slane %v1844_v5, 2  ;;  %v1658_v10 = vmax.f32 %v1594_v55, 0.0  ;;  %v2423_v11 = vpop.f32.mrb[24].mxu1 }
 0x238   :  { %v1950_v48 = vsel %vm1935_vm8, %v1834_v6, %v1949_v47  ;;  %v1838_v12 = vrot.slane %v1837_v7, 2  ;;  %v1656_v36 = vmax.f32 %v1592_v9, 0.0  ;;  %v1526_v42 = vadd.f32 %v2423_v11, %v3005_v57  ;;  %v1430_v13 = vpop.f32.mrb[25].mxu1  ;;  %v2557_v6 = vld [vmem:[%s3213_s6] ss:$0 sm:$0xff] }
 0x239   :  { %1964 = vst [vmem:[%s3214_s7 + $0x10] sm:$0xff] %v1950_v48  ;;  %v1846_v14 = vmax.f32 %v1844_v5, %v1845_v35  ;;  %v1856_v15 = vmax.f32 %v1657_v8, %v1658_v10  ;;  %v1524_v16 = vadd.f32 %v3005_v57, %v1430_v13  ;;  %v2424_v37 = vpop.f32.mrb[26].mxu1 }
 0x23a   :  { %v1839_v32 = vmax.f32 %v1837_v7, %v1838_v12  ;;  %v1849_v17 = vmax.f32 %v1655_v41, %v1656_v36  ;;  %v1597_v18 = vadd.f32 %v3010_v60, %v1526_v42  ;;  %v1527_v19 = vadd.f32 %v2424_v37, %v3005_v57  ;;  %v1433_v49 = vpop.f32.mrb[27].mxu1 }
 0x23b   :  { %v1847_v38 = vrot.slane %v1846_v14, 1  ;;  %v1857_v33 = vrot.slane %v1856_v15, 4  ;;  %v1595_v20 = vadd.f32 %v3010_v60, %v1524_v16  ;;  %v1525_v50 = vadd.f32 %v3005_v57, %v1433_v49 }
 0x23c   :  { %v1840_v21 = vrot.slane %v1839_v32, 1  ;;  %v1850_v22 = vrot.slane %v1849_v17, 4  ;;  %v1598_v23 = vadd.f32 %v3010_v60, %v1527_v19  ;;  %v1661_v26 = vmax.f32 %v1597_v18, 0.0 }
 0x23d   :  { %v1848_v43 = vmax.f32 %v1846_v14, %v1847_v38  ;;  %v1858_v52 = vmax.f32 %v1856_v15, %v1857_v33  ;;  %v1596_v24 = vadd.f32 %v3010_v60, %v1525_v50  ;;  %v1659_v56 = vmax.f32 %v1595_v20, 0.0 }
 0x23e   :  { %v1841_v25 = vmax.f32 %v1839_v32, %v1840_v21  ;;  %v1851_v44 = vmax.f32 %v1849_v17, %v1850_v22  ;;  %v1662_v27 = vmax.f32 %v1598_v23, 0.0 }
 0x23f   :  { %v1859_v34 = vrot.slane %v1858_v52, 2  ;;  %v1660_v28 = vmax.f32 %v1596_v24, 0.0  ;;  %v2427_v58 = vpop.f32.mrb[28].mxu1 }
 0x240   :  { %v1951_v29 = vsel %vm1923_vm2, %v1848_v43, %v1841_v25  ;;  %v1852_v51 = vrot.slane %v1851_v44, 2  ;;  %v1870_v59 = vmax.f32 %v1661_v26, %v1662_v27  ;;  %v1530_v61 = vadd.f32 %v2427_v58, %v3005_v57  ;;  %v1446_v45 = vpop.f32.mrb[29].mxu1 }
 0x241   :  { %v1860_v53 = vmax.f32 %v1858_v52, %v1859_v34  ;;  %v1863_v62 = vmax.f32 %v1659_v56, %v1660_v28  ;;  %v1528_v63 = vadd.f32 %v3005_v57, %v1446_v45  ;;  %v2428_v0 = vpop.f32.mrb[30].mxu1 }
 0x242   :  { %v1853_v39 = vmax.f32 %v1851_v44, %v1852_v51  ;;  %v1871_v46 = vrot.slane %v1870_v59, 4  ;;  %v1601_v31 = vadd.f32 %v3010_v60, %v1530_v61  ;;  %v1531_v30 = vadd.f32 %v2428_v0, %v3005_v57  ;;  %v1449_v1 = vpop.f32.mrb[31].mxu1 }
 0x243   :  { %v1861_v40 = vrot.slane %v1860_v53, 1  ;;  %v1864_v2 = vrot.slane %v1863_v62, 4  ;;  %v1599_v54 = vadd.f32 %v3010_v60, %v1528_v63  ;;  %v1529_v4 = vadd.f32 %v2556_v3, %v1449_v1 }
 0x244   :  { %v1854_v5 = vrot.slane %v1853_v39, 1  ;;  %v1872_v55 = vmax.f32 %v1870_v59, %v1871_v46  ;;  %v1602_v7 = vadd.f32 %v2557_v6, %v1531_v30  ;;  %v1665_v35 = vmax.f32 %v1601_v31, 0.0 }
 0x245   :  { %v1865_v8 = vmax.f32 %v1863_v62, %v1864_v2  ;;  %v1600_v9 = vadd.f32 %v2557_v6, %v1529_v4  ;;  %v1862_v10 = vmax.f32 %v1860_v53, %v1861_v40  ;;  %v1663_v11 = vmax.f32 %v1599_v54, 0.0 }
 0x246   :  { %v1855_v57 = vmax.f32 %v1853_v39, %v1854_v5  ;;  %v1873_v47 = vrot.slane %v1872_v55, 2  ;;  %v1666_v41 = vmax.f32 %v1602_v7, 0.0 }
 0x247   :  { %v1866_v60 = vrot.slane %v1865_v8, 2  ;;  %v1664_v48 = vmax.f32 %v1600_v9, 0.0 }
 0x248   :  { %v1952_v12 = vsel %vm1925_vm3, %v1855_v57, %v1951_v29  ;;  %v1874_v36 = vmax.f32 %v1872_v55, %v1873_v47  ;;  %v1884_v42 = vmax.f32 %v1665_v35, %v1666_v41 }
 0x249   :  { %v1867_v13 = vmax.f32 %v1865_v8, %v1866_v60  ;;  %v1953_v14 = vsel %vm1927_vm4, %v1862_v10, %v1952_v12  ;;  %v1877_v15 = vmax.f32 %v1663_v11, %v1664_v48 }
 0x24a   :  { %v1875_v16 = vrot.slane %v1874_v36, 1  ;;  %v1885_v37 = vrot.slane %v1884_v42, 4 }
 0x24b   :  { %v1868_v32 = vrot.slane %v1867_v13, 1  ;;  %v1878_v17 = vrot.slane %v1877_v15, 4 }
 0x24c   :  { %v1886_v18 = vmax.f32 %v1884_v42, %v1885_v37  ;;  %v1876_v38 = vmax.f32 %v1874_v36, %v1875_v16 }
 0x24d   :  { %v1869_v19 = vmax.f32 %v1867_v13, %v1868_v32  ;;  %v1879_v49 = vmax.f32 %v1877_v15, %v1878_v17 }
 0x24e   :  { %v1887_v33 = vrot.slane %v1886_v18, 2 }
 0x24f   :  { %v1954_v20 = vsel %vm1929_vm5, %v1869_v19, %v1953_v14  ;;  %v1880_v50 = vrot.slane %v1879_v49, 2 }
 0x250   :  { %v1888_v21 = vmax.f32 %v1886_v18, %v1887_v33  ;;  %v1955_v22 = vsel %vm1931_vm6, %v1876_v38, %v1954_v20 }
 0x251   :  { %v1881_v23 = vmax.f32 %v1879_v49, %v1880_v50 }
 0x252   :  { %v1889_v43 = vrot.slane %v1888_v21, 1 }
 0x253   :  { %v1882_v52 = vrot.slane %v1881_v23, 1 }
 0x254   :  { %v1890_v25 = vmax.f32 %v1888_v21, %v1889_v43 }
 0x255   :  { %v1883_v24 = vmax.f32 %v1881_v23, %v1882_v52 }
 0x257   :  { %v1956_v44 = vsel %vm1933_vm7, %v1883_v24, %v1955_v22 }
 0x258   :  { %v1957_v26 = vsel %vm1935_vm8, %v1890_v25, %v1956_v44 }
 0x259   :  { %1965 = vst [vmem:[%s3214_s7 + $0x18] sm:$0xff] %v1957_v26 }

// kernel: neg.5
= control target key start
LH: loop header
LB: loop body
LE: loop exit
PB: predicated region body
PF: predicated region fallthrough
CT: control target
= control target key end

     0   :  { %s40_s0 = inlined_call_operand.vmem [shape: f32[2,4,16], index: 0, kind: input, shape index: {}]   ;;  %s41_s1 = inlined_call_operand.vmem [shape: f32[2,4,16], index: 1, kind: output, shape index: {}]  }
   0x1   :  { %v2_v0 = vld [vmem:[%s40_s0] sm:$0xf]  ;;  %v16_v1 = vld [vmem:[%s40_s0 + $0x4] sm:$0xf] }
   0x2   :  { %v5_v2 = vxor.u32 2147483648, %v2_v0  ;;  %v12_v3 = vxor.u32 2147483648, %v16_v1 }
   0x4   :  { %7 = vst [vmem:[%s41_s1] sm:$0xf] %v5_v2  ;;  %17 = vst [vmem:[%s41_s1 + $0x4] sm:$0xf] %v12_v3 }

// kernel: posterior_encoder_forward.6
= control target key start
LH: loop header
LB: loop body
LE: loop exit
PB: predicated region body
PF: predicated region fallthrough
CT: control target
= control target key end

     0   :  { %vm229_vm0 = vcmask 64512   ;;  %vm254_vm1 = vcmask 1043456   ;;  %vm1196_vm2 = vcmask 1041409   ;;  %vm1198_vm3 = vcmask 1042434   ;;  %s2048_s1 = inlined_call_operand.vmem [shape: bf16[136,256], index: 1, kind: input, shape index: {}]   ;;  %s2049_s0 = inlined_call_operand.vmem [shape: bf16[128,136], index: 0, kind: input, shape index: {}]   ;;  %s2050_s5 = inlined_call_operand.vmem [shape: bf16[136,256], index: 5, kind: input, shape index: {}]   ;;  %s2051_s3 = inlined_call_operand.vmem [shape: bf16[256,256], index: 3, kind: input, shape index: {}]   ;;  %s2052_s2 = inlined_call_operand.vmem [shape: f32[1,256], index: 2, kind: input, shape index: {}]   ;;  %s2053_s4 = inlined_call_operand.vmem [shape: f32[1,256], index: 4, kind: input, shape index: {}]   ;;  %s2054_s6 = inlined_call_operand.vmem [shape: f32[1,256], index: 6, kind: input, shape index: {}]   ;;  %s2055_s7 = inlined_call_operand.vmem [shape: f32[8,256], index: 7, kind: output, shape index: {}]  }
   0x1   :  { %v1391_v0 = vld [vmem:[%s2048_s1 + $0x4] ss:$8 sps:$4 sm:$0xff]   ;;  %v1393_v1 = vld [vmem:[%s2048_s1] ss:$8 sps:$4 sm:$0xff]   ;;  %v1394_v2 = vld [vmem:[%s2048_s1 + $0x14] ss:$8 sps:$4 sm:$0xff]  }
   0x2   :  { %261 = vmatprep.subr.bf16.mxu0 %v1391_v0  ;;  %v1396_v3 = vld [vmem:[%s2048_s1 + $0x10] ss:$8 sps:$4 sm:$0xff]   ;;  %v1397_v4 = vld [vmem:[%s2048_s1 + $0x24] ss:$8 sps:$4 sm:$0xff]   ;;  %v1399_v5 = vld [vmem:[%s2048_s1 + $0x20] ss:$8 sps:$4 sm:$0xff]  }
   0x3   :  { %262 = vmatpush1.bf16.msra.mxu0 %v1393_v1  ;;  %v1400_v6 = vld [vmem:[%s2048_s1 + $0x34] ss:$8 sps:$4 sm:$0xff]   ;;  %v1402_v7 = vld [vmem:[%s2048_s1 + $0x30] ss:$8 sps:$4 sm:$0xff]   ;;  %v1403_v8 = vld [vmem:[%s2048_s1 + $0x44] ss:$8 sps:$4 sm:$0xff]  }
   0x4   :  { %263 = vmatprep.subr.bf16.mxu0 %v1394_v2  ;;  %v1419_v9 = vld [vmem:[%s2049_s0 + $0x4] ss:$8 sps:$4 sm:$0xff]   ;;  %v1405_v10 = vld [vmem:[%s2048_s1 + $0x40] ss:$8 sps:$4 sm:$0xff]   ;;  %v1406_v11 = vld [vmem:[%s2048_s1 + $0x54] ss:$8 sps:$4 sm:$0xff]  }
   0x5   :  { %1260 = vmatprep.mubr.msk.bf16.mxu0 %vm229_vm0, %v1419_v9  ;;  %1287 = vmatprep.mubr.msk.bf16.mxu1 %vm229_vm0, %v1419_v9  ;;  %v1408_v12 = vld [vmem:[%s2048_s1 + $0x50] ss:$8 sps:$4 sm:$0xff]   ;;  %v1409_v13 = vld [vmem:[%s2048_s1 + $0x64] ss:$8 sps:$4 sm:$0xff]   ;;  %v1411_v14 = vld [vmem:[%s2048_s1 + $0x60] ss:$8 sps:$4 sm:$0xff]  }
   0x6   :  { %v1441_v15 = vld [vmem:[%s2050_s5 + $0x4] ss:$8 sps:$4 sm:$0xff]   ;;  %v1443_v16 = vld [vmem:[%s2050_s5] ss:$8 sps:$4 sm:$0xff]   ;;  %v1444_v17 = vld [vmem:[%s2050_s5 + $0x14] ss:$8 sps:$4 sm:$0xff]  }
   0x7   :  { %264 = vmatpush1.bf16.msra.mxu0 %v1396_v3  ;;  %v1412_v18 = vld [vmem:[%s2048_s1 + $0x74] ss:$8 sps:$4 sm:$0xff]   ;;  %562 = vmatprep.subr.bf16.mxu1 %v1441_v15  ;;  %v59_v19 = vld [vmem:[%s2048_s1 + $0x80] sm:$0xff]  ;;  %v1446_v20 = vld [vmem:[%s2050_s5 + $0x10] ss:$8 sps:$4 sm:$0xff]   ;;  %vm1200_vm4 = vcmask 1043459  }
   0x8   :  { %265 = vmatprep.subr.bf16.mxu0 %v1397_v4  ;;  %563 = vmatpush1.bf16.msra.mxu1 %v1443_v16  ;;  %v1450_v21 = vld [vmem:[%s2050_s5 + $0x24] ss:$8 sps:$4 sm:$0xff]   ;;  %v1414_v22 = vld [vmem:[%s2048_s1 + $0x70] ss:$8 sps:$4 sm:$0xff]   ;;  %v1258_v23 = vcombine.high %v59_v19, %v59_v19  ;;  %v1257_v24 = vcombine.low %v59_v19, %v59_v19  ;;  %v1452_v25 = vld [vmem:[%s2050_s5 + $0x20] ss:$8 sps:$4 sm:$0xff]  }
   0x9   :  { %564 = vmatprep.subr.bf16.mxu1 %v1444_v17  ;;  %v1456_v26 = vld [vmem:[%s2050_s5 + $0x34] ss:$8 sps:$4 sm:$0xff]   ;;  %v1637_v28 = vld [vmem:[%s2051_s3 + $0x4] ss:$8 sps:$4 sm:$0xff]   ;;  %v1642_v29 = vld [vmem:[%s2049_s0] ss:$8 sps:$4 sm:$0xff]  }
   0xa   :  { %v256_v27 = vsel %vm254_vm1, %v1257_v24, 0  ;;  %v1458_v30 = vld [vmem:[%s2050_s5 + $0x30] ss:$8 sps:$4 sm:$0xff]   ;;  %v1650_v31 = vld [vmem:[%s2049_s0 + $0x14] ss:$8 sps:$4 sm:$0xff]   ;;  %v470_v48 = vld [vmem:[%s2050_s5 + $0x80] sm:$0xff]  ;;  %v62_v24 = vlaneseq }
   0xb   :  { %266 = vmatpush1.bf16.msra.mxu0 %v1399_v5  ;;  %v1462_v32 = vld [vmem:[%s2050_s5 + $0x44] ss:$8 sps:$4 sm:$0xff]   ;;  %v1447_v33 = vld [vmem:[%s2051_s3] ss:$8 sps:$4 sm:$0xff]   ;;  %v1662_v34 = vld [vmem:[%s2051_s3 + $0x14] ss:$8 sps:$4 sm:$0xff]   ;;  %v1285_v53 = vcombine.high %v470_v48, %v470_v48  ;;  %v1284_v54 = vcombine.low %v470_v48, %v470_v48 }
   0xc   :  { %267 = vmatprep.subr.bf16.mxu0 %v1400_v6  ;;  %565 = vmatpush1.bf16.msra.mxu1 %v1446_v20  ;;  %v1464_v35 = vld [vmem:[%s2050_s5 + $0x40] ss:$8 sps:$4 sm:$0xff]   ;;  %v1468_v36 = vld [vmem:[%s2050_s5 + $0x54] ss:$8 sps:$4 sm:$0xff]   ;;  %v1453_v37 = vld [vmem:[%s2051_s3 + $0x10] ss:$8 sps:$4 sm:$0xff]  }
   0xd   :  { %566 = vmatprep.subr.bf16.mxu1 %v1450_v21  ;;  %v1461_v38 = vld [vmem:[%s2051_s3 + $0x24] ss:$8 sps:$4 sm:$0xff]   ;;  %v1683_v39 = vld [vmem:[%s2049_s0 + $0x10] ss:$8 sps:$4 sm:$0xff]   ;;  %v1459_v43 = vld [vmem:[%s2051_s3 + $0x20] ss:$8 sps:$4 sm:$0xff]  }
   0xe   :  { %v1688_v40 = vld [vmem:[%s2049_s0 + $0x24] ss:$8 sps:$4 sm:$0xff]   ;;  %v1470_v41 = vld [vmem:[%s2050_s5 + $0x50] ss:$8 sps:$4 sm:$0xff]   ;;  %v1467_v44 = vld [vmem:[%s2051_s3 + $0x34] ss:$8 sps:$4 sm:$0xff]  }
   0xf   :  { %268 = vmatpush1.bf16.msra.mxu0 %v1402_v7  ;;  %v1474_v42 = vld [vmem:[%s2050_s5 + $0x64] ss:$8 sps:$4 sm:$0xff]   ;;  %v1705_v45 = vld [vmem:[%s2051_s3 + $0x30] ss:$8 sps:$4 sm:$0xff]   ;;  %v1476_v46 = vld [vmem:[%s2050_s5 + $0x60] ss:$8 sps:$4 sm:$0xff]  }
  0x10   :  { %269 = vmatprep.subr.bf16.mxu0 %v1403_v8  ;;  %567 = vmatpush1.bf16.msra.mxu1 %v1452_v25  ;;  %v1480_v47 = vld [vmem:[%s2050_s5 + $0x74] ss:$8 sps:$4 sm:$0xff]   ;;  %v1473_v49 = vld [vmem:[%s2051_s3 + $0x44] ss:$8 sps:$4 sm:$0xff]   ;;  %v1725_v50 = vld [vmem:[%s2049_s0 + $0x20] ss:$8 sps:$4 sm:$0xff]  }
  0x11   :  { %568 = vmatprep.subr.bf16.mxu1 %v1456_v26  ;;  %v1482_v51 = vld [vmem:[%s2050_s5 + $0x70] ss:$8 sps:$4 sm:$0xff]   ;;  %v1733_v52 = vld [vmem:[%s2049_s0 + $0x34] ss:$8 sps:$4 sm:$0xff]   ;;  %v1471_v55 = vld [vmem:[%s2051_s3 + $0x40] ss:$8 sps:$4 sm:$0xff]  }
  0x12   :  { %v1479_v56 = vld [vmem:[%s2051_s3 + $0x54] ss:$8 sps:$4 sm:$0xff]   ;;  %v557_v57 = vsel %vm254_vm1, %v1284_v54, 0  ;;  %v1477_v58 = vld [vmem:[%s2051_s3 + $0x50] ss:$8 sps:$4 sm:$0xff]   ;;  %v63_v25 = vshrl.u32 %v62_v24, 7 }
  0x13   :  { %270 = vmatpush1.bf16.msra.mxu0 %v1405_v10  ;;  %v1485_v59 = vld [vmem:[%s2051_s3 + $0x64] ss:$8 sps:$4 sm:$0xff]   ;;  %v1428_v60 = vld [vmem:[%s2049_s0 + $0x30] ss:$8 sps:$4 sm:$0xff]   ;;  %v1483_v62 = vld [vmem:[%s2051_s3 + $0x60] ss:$8 sps:$4 sm:$0xff]  }
  0x14   :  { %271 = vmatprep.subr.bf16.mxu0 %v1406_v11  ;;  %569 = vmatpush1.bf16.msra.mxu1 %v1458_v30  ;;  %v1429_v61 = vld [vmem:[%s2049_s0 + $0x44] ss:$8 sps:$4 sm:$0xff]   ;;  %v1490_v63 = vld [vmem:[%s2051_s3 + $0x74] ss:$8 sps:$4 sm:$0xff]   ;;  %v1488_v0 = vld [vmem:[%s2051_s3 + $0x70] ss:$8 sps:$4 sm:$0xff]  }
  0x15   :  { %570 = vmatprep.subr.bf16.mxu1 %v1462_v32  ;;  %v1493_v1 = vld [vmem:[%s2051_s3 + $0x84] ss:$8 sps:$4 sm:$0xff]   ;;  %v1431_v2 = vld [vmem:[%s2049_s0 + $0x40] ss:$8 sps:$4 sm:$0xff]   ;;  %v1432_v3 = vld [vmem:[%s2049_s0 + $0x54] ss:$8 sps:$4 sm:$0xff]  }
  0x16   :  { %v1491_v4 = vld [vmem:[%s2051_s3 + $0x80] ss:$8 sps:$4 sm:$0xff]   ;;  %v1496_v5 = vld [vmem:[%s2051_s3 + $0x94] ss:$8 sps:$4 sm:$0xff]   ;;  %v1494_v6 = vld [vmem:[%s2051_s3 + $0x90] ss:$8 sps:$4 sm:$0xff]  }
  0x17   :  { %272 = vmatpush1.bf16.msra.mxu0 %v1408_v12  ;;  %v1499_v7 = vld [vmem:[%s2051_s3 + $0xa4] ss:$8 sps:$4 sm:$0xff]   ;;  %v1434_v8 = vld [vmem:[%s2049_s0 + $0x50] ss:$8 sps:$4 sm:$0xff]   ;;  %v1497_v10 = vld [vmem:[%s2051_s3 + $0xa0] ss:$8 sps:$4 sm:$0xff]  }
  0x18   :  { %273 = vmatprep.subr.bf16.mxu0 %v1409_v13  ;;  %571 = vmatpush1.bf16.msra.mxu1 %v1464_v35  ;;  %v1435_v9 = vld [vmem:[%s2049_s0 + $0x64] ss:$8 sps:$4 sm:$0xff]   ;;  %v1502_v11 = vld [vmem:[%s2051_s3 + $0xb4] ss:$8 sps:$4 sm:$0xff]   ;;  %v1500_v12 = vld [vmem:[%s2051_s3 + $0xb0] ss:$8 sps:$4 sm:$0xff]  }
  0x19   :  { %572 = vmatprep.subr.bf16.mxu1 %v1468_v36  ;;  %v1505_v13 = vld [vmem:[%s2051_s3 + $0xc4] ss:$8 sps:$4 sm:$0xff]   ;;  %v1438_v15 = vld [vmem:[%s2049_s0 + $0x74] ss:$8 sps:$4 sm:$0xff]   ;;  %v1503_v16 = vld [vmem:[%s2051_s3 + $0xc0] ss:$8 sps:$4 sm:$0xff]  }
  0x1a   :  { %v1508_v17 = vld [vmem:[%s2051_s3 + $0xd4] ss:$8 sps:$4 sm:$0xff]   ;;  %v1440_v19 = vld [vmem:[%s2049_s0 + $0x70] ss:$8 sps:$4 sm:$0xff]   ;;  %v1511_v20 = vld [vmem:[%s2051_s3 + $0xe4] ss:$8 sps:$4 sm:$0xff]  }
  0x1b   :  { %274 = vmatpush1.bf16.msra.mxu0 %v1411_v14  ;;  %v1437_v14 = vld [vmem:[%s2049_s0 + $0x60] ss:$8 sps:$4 sm:$0xff]   ;;  %v1857_v26 = vsub.s32 0, %v63_v25  ;;  %vm1202_vm5 = vcmask 1044484   ;;  %vm1204_vm6 = vcmask 1045509   ;;  %vm1206_vm7 = vcmask 1046534  }
  0x1c   :  { %275 = vmatprep.subr.bf16.mxu0 %v1412_v18  ;;  %573 = vmatpush1.bf16.msra.mxu1 %v1470_v41  ;;  %v1506_v18 = vld [vmem:[%s2051_s3 + $0xd0] ss:$8 sps:$4 sm:$0xff]   ;;  %v1509_v21 = vld [vmem:[%s2051_s3 + $0xe0] ss:$8 sps:$4 sm:$0xff]   ;;  %vm1208_vm8 = vcmask 1047559  }
  0x1d   :  { %574 = vmatprep.subr.bf16.mxu1 %v1474_v42 }
  0x1f   :  { %276 = vmatpush1.bf16.msra.mxu0 %v1414_v22  ;;  %v1514_v22 = vld [vmem:[%s2051_s3 + $0xf4] ss:$8 sps:$4 sm:$0xff]  }
  0x20   :  { %1259 = vmatprep.subr.msk.bf16.mxu0 %vm254_vm1, %v1258_v23  ;;  %575 = vmatpush1.bf16.msra.mxu1 %v1476_v46  ;;  %v1512_v23 = vld [vmem:[%s2051_s3 + $0xf0] ss:$8 sps:$4 sm:$0xff]  }
  0x21   :  { %576 = vmatprep.subr.bf16.mxu1 %v1480_v47 }
  0x23   :  { %278 = vmatpush1.bf16.msra.mxu0 %v256_v27  ;;  %v60_v27 = vld [vmem:[%s2052_s2] sm:$0x3] }
  0x24   :  { %835 = vmatprep.subr.bf16.mxu0 %v1637_v28  ;;  %577 = vmatpush1.bf16.msra.mxu1 %v1482_v51 }
  0x25   :  { %1286 = vmatprep.subr.msk.bf16.mxu1 %vm254_vm1, %v1285_v53 }
  0x26   :  { %294 = vmatmul.mubr.bf16.vlgmr.msra.gmra.mrb[0].mxu0 %v1642_v29 }
  0x27   :  { %1261 = vmatprep.mubr.msk.bf16.mxu0 %vm229_vm0, %v1650_v31  ;;  %836 = vmatpush1.bf16.msra.mxu0 %v1447_v33 }
  0x28   :  { %837 = vmatprep.subr.bf16.mxu0 %v1662_v34  ;;  %579 = vmatpush1.bf16.msra.mxu1 %v557_v57 }
  0x29   :  { %1327 = vmatprep.subr.bf16.mxu1 %v1637_v28  ;;  %v1862_v28 = vsub.s32 1, %v63_v25 }
  0x2b   :  { %838 = vmatpush1.bf16.msra.mxu0 %v1453_v37  ;;  %595 = vmatmul.mubr.bf16.vlgmr.msra.gmra.mrb[0].mxu1 %v1642_v29  ;;  %v1865_v29 = vrot.slane %v60_v27, %v1857_v26  ;;  %v1868_v30 = vrot.slane %v60_v27, %v1862_v28 }
  0x2c   :  { %839 = vmatprep.subr.bf16.mxu0 %v1461_v38  ;;  %1343 = vmatpush1.bf16.msra.mxu1 %v1447_v33 }
  0x2d   :  { %1288 = vmatprep.mubr.msk.bf16.mxu1 %vm229_vm0, %v1650_v31  ;;  %1328 = vmatprep.subr.bf16.mxu1 %v1662_v34 }
  0x2e   :  { %304 = vmatmul.mubr.bf16.gmra.mrb[4].mxu0 %v1683_v39 }
  0x2f   :  { %1262 = vmatprep.mubr.msk.bf16.mxu0 %vm229_vm0, %v1688_v40  ;;  %840 = vmatpush1.bf16.msra.mxu0 %v1459_v43 }
  0x30   :  { %841 = vmatprep.subr.bf16.mxu0 %v1467_v44  ;;  %1344 = vmatpush1.bf16.msra.mxu1 %v1453_v37 }
  0x31   :  { %1329 = vmatprep.subr.bf16.mxu1 %v1461_v38 }
  0x33   :  { %842 = vmatpush1.bf16.msra.mxu0 %v1705_v45  ;;  %605 = vmatmul.mubr.bf16.gmra.mrb[4].mxu1 %v1683_v39 }
  0x34   :  { %843 = vmatprep.subr.bf16.mxu0 %v1473_v49  ;;  %1345 = vmatpush1.bf16.msra.mxu1 %v1459_v43 }
  0x35   :  { %1289 = vmatprep.mubr.msk.bf16.mxu1 %vm229_vm0, %v1688_v40  ;;  %1330 = vmatprep.subr.bf16.mxu1 %v1467_v44 }
  0x36   :  { %314 = vmatmul.mubr.bf16.gmra.mrb[8].mxu0 %v1725_v50 }
  0x37   :  { %1263 = vmatprep.mubr.msk.bf16.mxu0 %vm229_vm0, %v1733_v52  ;;  %844 = vmatpush1.bf16.msra.mxu0 %v1471_v55 }
  0x38   :  { %845 = vmatprep.subr.bf16.mxu0 %v1479_v56  ;;  %1346 = vmatpush1.bf16.msra.mxu1 %v1705_v45 }
  0x39   :  { %1331 = vmatprep.subr.bf16.mxu1 %v1473_v49 }
  0x3b   :  { %846 = vmatpush1.bf16.msra.mxu0 %v1477_v58  ;;  %615 = vmatmul.mubr.bf16.gmra.mrb[8].mxu1 %v1725_v50 }
  0x3c   :  { %847 = vmatprep.subr.bf16.mxu0 %v1485_v59  ;;  %1347 = vmatpush1.bf16.msra.mxu1 %v1471_v55 }
  0x3d   :  { %1290 = vmatprep.mubr.msk.bf16.mxu1 %vm229_vm0, %v1733_v52  ;;  %1332 = vmatprep.subr.bf16.mxu1 %v1479_v56 }
  0x3e   :  { %324 = vmatmul.mubr.bf16.gmra.mrb[12].mxu0 %v1428_v60 }
  0x3f   :  { %1264 = vmatprep.mubr.msk.bf16.mxu0 %vm229_vm0, %v1429_v61  ;;  %848 = vmatpush1.bf16.msra.mxu0 %v1483_v62 }
  0x40   :  { %849 = vmatprep.subr.bf16.mxu0 %v1490_v63  ;;  %1348 = vmatpush1.bf16.msra.mxu1 %v1477_v58 }
  0x41   :  { %1333 = vmatprep.subr.bf16.mxu1 %v1485_v59 }
  0x43   :  { %850 = vmatpush1.bf16.msra.mxu0 %v1488_v0  ;;  %625 = vmatmul.mubr.bf16.gmra.mrb[12].mxu1 %v1428_v60 }
  0x44   :  { %851 = vmatprep.subr.bf16.mxu0 %v1493_v1  ;;  %1349 = vmatpush1.bf16.msra.mxu1 %v1483_v62 }
  0x45   :  { %1291 = vmatprep.mubr.msk.bf16.mxu1 %vm229_vm0, %v1429_v61  ;;  %1334 = vmatprep.subr.bf16.mxu1 %v1490_v63 }
  0x46   :  { %334 = vmatmul.mubr.bf16.gmra.mrb[16].mxu0 %v1431_v2 }
  0x47   :  { %1265 = vmatprep.mubr.msk.bf16.mxu0 %vm229_vm0, %v1432_v3  ;;  %852 = vmatpush1.bf16.msra.mxu0 %v1491_v4 }
  0x48   :  { %853 = vmatprep.subr.bf16.mxu0 %v1496_v5  ;;  %1350 = vmatpush1.bf16.msra.mxu1 %v1488_v0 }
  0x49   :  { %1335 = vmatprep.subr.bf16.mxu1 %v1493_v1 }
  0x4b   :  { %854 = vmatpush1.bf16.msra.mxu0 %v1494_v6  ;;  %635 = vmatmul.mubr.bf16.gmra.mrb[16].mxu1 %v1431_v2 }
  0x4c   :  { %855 = vmatprep.subr.bf16.mxu0 %v1499_v7  ;;  %1351 = vmatpush1.bf16.msra.mxu1 %v1491_v4 }
  0x4d   :  { %1292 = vmatprep.mubr.msk.bf16.mxu1 %vm229_vm0, %v1432_v3  ;;  %1336 = vmatprep.subr.bf16.mxu1 %v1496_v5 }
  0x4e   :  { %344 = vmatmul.mubr.bf16.gmra.mrb[20].mxu0 %v1434_v8 }
  0x4f   :  { %1266 = vmatprep.mubr.msk.bf16.mxu0 %vm229_vm0, %v1435_v9  ;;  %856 = vmatpush1.bf16.msra.mxu0 %v1497_v10 }
  0x50   :  { %857 = vmatprep.subr.bf16.mxu0 %v1502_v11  ;;  %1352 = vmatpush1.bf16.msra.mxu1 %v1494_v6 }
  0x51   :  { %1337 = vmatprep.subr.bf16.mxu1 %v1499_v7 }
  0x53   :  { %858 = vmatpush1.bf16.msra.mxu0 %v1500_v12  ;;  %645 = vmatmul.mubr.bf16.gmra.mrb[20].mxu1 %v1434_v8 }
  0x54   :  { %859 = vmatprep.subr.bf16.mxu0 %v1505_v13  ;;  %1353 = vmatpush1.bf16.msra.mxu1 %v1497_v10 }
  0x55   :  { %1293 = vmatprep.mubr.msk.bf16.mxu1 %vm229_vm0, %v1435_v9  ;;  %1338 = vmatprep.subr.bf16.mxu1 %v1502_v11 }
  0x56   :  { %354 = vmatmul.mubr.bf16.gmra.mrb[24].mxu0 %v1437_v14 }
  0x57   :  { %1267 = vmatprep.mubr.msk.bf16.mxu0 %vm229_vm0, %v1438_v15  ;;  %860 = vmatpush1.bf16.msra.mxu0 %v1503_v16 }
  0x58   :  { %861 = vmatprep.subr.bf16.mxu0 %v1508_v17  ;;  %1354 = vmatpush1.bf16.msra.mxu1 %v1500_v12 }
  0x59   :  { %1339 = vmatprep.subr.bf16.mxu1 %v1505_v13 }
  0x5b   :  { %862 = vmatpush1.bf16.msra.mxu0 %v1506_v18  ;;  %655 = vmatmul.mubr.bf16.gmra.mrb[24].mxu1 %v1437_v14 }
  0x5c   :  { %1355 = vmatpush1.bf16.msra.mxu1 %v1503_v16  ;;  %1294 = vmatprep.mubr.msk.bf16.mxu1 %vm229_vm0, %v1438_v15 }
  0x5d   :  { %1340 = vmatprep.subr.bf16.mxu1 %v1508_v17  ;;  %863 = vmatprep.subr.bf16.mxu0 %v1511_v20 }
  0x5e   :  { %364 = vmatmul.mubr.bf16.gmra.mrb[28].mxu0 %v1440_v19 }
  0x5f   :  { %864 = vmatpush1.bf16.msra.mxu0 %v1509_v21 }
  0x60   :  { %1356 = vmatpush1.bf16.msra.mxu1 %v1506_v18  ;;  %865 = vmatprep.subr.bf16.mxu0 %v1514_v22 }
  0x61   :  { %1341 = vmatprep.subr.bf16.mxu1 %v1511_v20 }
  0x63   :  { %665 = vmatmul.mubr.bf16.gmra.mrb[28].mxu1 %v1440_v19  ;;  %866 = vmatpush1.bf16.msra.mxu0 %v1512_v23 }
  0x64   :  { %1357 = vmatpush1.bf16.msra.mxu1 %v1509_v21 }
  0x65   :  { %1342 = vmatprep.subr.bf16.mxu1 %v1514_v22 }
  0x68   :  { %1358 = vmatpush1.bf16.msra.mxu1 %v1512_v23 }
  0xf9   :  { %v295_v31 = vpop.f32.mrb[0].mxu0 }
  0xfa   :  { %v296_v32 = vadd.f32 %v295_v31, %v1865_v29  ;;  %v297_v33 = vpop.f32.mrb[1].mxu0 }
  0xfb   :  { %v298_v34 = vadd.f32 %v297_v33, %v1868_v30  ;;  %v299_v35 = vpop.f32.mrb[2].mxu0 }
  0xfc   :  { %v300_v36 = vadd.f32 %v299_v35, %v1865_v29  ;;  %v301_v37 = vpop.f32.mrb[3].mxu0  ;;  %v374_v39 = vmax.f32 %v296_v32, 0.0 }
  0xfd   :  { %v302_v38 = vadd.f32 %v301_v37, %v1868_v30  ;;  %v375_v41 = vmax.f32 %v298_v34, 0.0 }
  0xfe   :  { %v376_v40 = vmax.f32 %v300_v36, 0.0  ;;  %v1882_v7 = vpop.f32.mrb[0].mxu1 }
  0xff   :  { %v377_v42 = vmax.f32 %v302_v38, 0.0  ;;  %v1884_v9 = vpop.f32.mrb[1].mxu1 }
 0x100   :  { %v406_v43 = vpack.c.bf16 %v376_v40, %v374_v39  ;;  %v1886_v12 = vpop.f32.mrb[2].mxu1 }
 0x101   :  { %v407_v44 = vpack.c.bf16 %v377_v42, %v375_v41  ;;  %v305_v45 = vpop.f32.mrb[4].mxu0  ;;  %v1889_v15 = vpop.f32.mrb[3].mxu1 }
 0x102   :  { %v306_v46 = vadd.f32 %v305_v45, %v1865_v29  ;;  %v307_v47 = vpop.f32.mrb[5].mxu0 }
 0x103   :  { %v308_v48 = vadd.f32 %v307_v47, %v1868_v30  ;;  %v309_v49 = vpop.f32.mrb[6].mxu0  ;;  %867 = vmatprep.mubr.bf16.mxu0 %v407_v44 }
 0x104   :  { %v310_v50 = vadd.f32 %v309_v49, %v1865_v29  ;;  %v311_v51 = vpop.f32.mrb[7].mxu0  ;;  %868 = vmatmul.mubr.bf16.vlgmr.msra.gmra.mrb[32].mxu0 %v406_v43  ;;  %v378_v53 = vmax.f32 %v306_v46, 0.0 }
 0x105   :  { %v312_v52 = vadd.f32 %v311_v51, %v1868_v30  ;;  %v379_v55 = vmax.f32 %v308_v48, 0.0 }
 0x106   :  { %v380_v54 = vmax.f32 %v310_v50, 0.0  ;;  %v1894_v25 = vpop.f32.mrb[4].mxu1 }
 0x107   :  { %v381_v56 = vmax.f32 %v312_v52, 0.0  ;;  %v1896_v31 = vpop.f32.mrb[5].mxu1 }
 0x108   :  { %v408_v57 = vpack.c.bf16 %v380_v54, %v378_v53  ;;  %v1898_v34 = vpop.f32.mrb[6].mxu1 }
 0x109   :  { %v409_v58 = vpack.c.bf16 %v381_v56, %v379_v55  ;;  %v315_v59 = vpop.f32.mrb[8].mxu0  ;;  %v1901_v37 = vpop.f32.mrb[7].mxu1 }
 0x10a   :  { %v316_v60 = vadd.f32 %v315_v59, %v1865_v29  ;;  %v317_v61 = vpop.f32.mrb[9].mxu0 }
 0x10b   :  { %v318_v62 = vadd.f32 %v317_v61, %v1868_v30  ;;  %v319_v63 = vpop.f32.mrb[10].mxu0  ;;  %877 = vmatprep.mubr.bf16.mxu0 %v409_v58 }
 0x10c   :  { %v320_v0 = vadd.f32 %v319_v63, %v1865_v29  ;;  %v321_v1 = vpop.f32.mrb[11].mxu0  ;;  %878 = vmatmul.mubr.bf16.gmra.mrb[36].mxu0 %v408_v57  ;;  %v382_v3 = vmax.f32 %v316_v60, 0.0 }
 0x10d   :  { %v322_v2 = vadd.f32 %v321_v1, %v1868_v30  ;;  %v383_v5 = vmax.f32 %v318_v62, 0.0 }
 0x10e   :  { %v384_v4 = vmax.f32 %v320_v0, 0.0  ;;  %v1906_v47 = vpop.f32.mrb[8].mxu1 }
 0x10f   :  { %v385_v6 = vmax.f32 %v322_v2, 0.0  ;;  %v1908_v49 = vpop.f32.mrb[9].mxu1 }
 0x110   :  { %v410_v8 = vpack.c.bf16 %v384_v4, %v382_v3  ;;  %v1910_v52 = vpop.f32.mrb[10].mxu1 }
 0x111   :  { %v411_v10 = vpack.c.bf16 %v385_v6, %v383_v5  ;;  %v325_v11 = vpop.f32.mrb[12].mxu0  ;;  %v1913_v55 = vpop.f32.mrb[11].mxu1 }
 0x112   :  { %v326_v13 = vadd.f32 %v325_v11, %v1865_v29  ;;  %v327_v14 = vpop.f32.mrb[13].mxu0 }
 0x113   :  { %v328_v16 = vadd.f32 %v327_v14, %v1868_v30  ;;  %v329_v17 = vpop.f32.mrb[14].mxu0  ;;  %887 = vmatprep.mubr.bf16.mxu0 %v411_v10 }
 0x114   :  { %v330_v18 = vadd.f32 %v329_v17, %v1865_v29  ;;  %v331_v19 = vpop.f32.mrb[15].mxu0  ;;  %888 = vmatmul.mubr.bf16.gmra.mrb[40].mxu0 %v410_v8  ;;  %v386_v21 = vmax.f32 %v326_v13, 0.0 }
 0x115   :  { %v332_v20 = vadd.f32 %v331_v19, %v1868_v30  ;;  %v387_v23 = vmax.f32 %v328_v16, 0.0 }
 0x116   :  { %v388_v22 = vmax.f32 %v330_v18, 0.0  ;;  %v1918_v1 = vpop.f32.mrb[12].mxu1 }
 0x117   :  { %v389_v24 = vmax.f32 %v332_v20, 0.0  ;;  %v1920_v3 = vpop.f32.mrb[13].mxu1 }
 0x118   :  { %v412_v27 = vpack.c.bf16 %v388_v22, %v386_v21  ;;  %v1922_v6 = vpop.f32.mrb[14].mxu1 }
 0x119   :  { %v413_v32 = vpack.c.bf16 %v389_v24, %v387_v23  ;;  %v335_v33 = vpop.f32.mrb[16].mxu0  ;;  %v1925_v11 = vpop.f32.mrb[15].mxu1 }
 0x11a   :  { %v336_v35 = vadd.f32 %v335_v33, %v1865_v29  ;;  %v337_v36 = vpop.f32.mrb[17].mxu0 }
 0x11b   :  { %v338_v38 = vadd.f32 %v337_v36, %v1868_v30  ;;  %v339_v39 = vpop.f32.mrb[18].mxu0  ;;  %897 = vmatprep.mubr.bf16.mxu0 %v413_v32 }
 0x11c   :  { %v340_v40 = vadd.f32 %v339_v39, %v1865_v29  ;;  %v341_v41 = vpop.f32.mrb[19].mxu0  ;;  %898 = vmatmul.mubr.bf16.gmra.mrb[44].mxu0 %v412_v27  ;;  %v390_v43 = vmax.f32 %v336_v35, 0.0 }
 0x11d   :  { %v342_v42 = vadd.f32 %v341_v41, %v1868_v30  ;;  %v391_v45 = vmax.f32 %v338_v38, 0.0 }
 0x11e   :  { %v392_v44 = vmax.f32 %v340_v40, 0.0 }
 0x11f   :  { %v393_v46 = vmax.f32 %v342_v42, 0.0 }
 0x120   :  { %v414_v48 = vpack.c.bf16 %v392_v44, %v390_v43 }
 0x121   :  { %v415_v50 = vpack.c.bf16 %v393_v46, %v391_v45  ;;  %v345_v51 = vpop.f32.mrb[20].mxu0 }
 0x122   :  { %v346_v53 = vadd.f32 %v345_v51, %v1865_v29  ;;  %v347_v54 = vpop.f32.mrb[21].mxu0 }
 0x123   :  { %v348_v56 = vadd.f32 %v347_v54, %v1868_v30  ;;  %v349_v57 = vpop.f32.mrb[22].mxu0  ;;  %907 = vmatprep.mubr.bf16.mxu1 %v415_v50 }
 0x124   :  { %v350_v58 = vadd.f32 %v349_v57, %v1865_v29  ;;  %v351_v59 = vpop.f32.mrb[23].mxu0  ;;  %908 = vmatmul.mubr.bf16.vlgmr.msra.gmra.mrb[16].mxu1 %v414_v48  ;;  %v394_v61 = vmax.f32 %v346_v53, 0.0  ;;  %v948_v48 = vld [vmem:[%s2053_s4] sm:$0x3] }
 0x125   :  { %v352_v60 = vadd.f32 %v351_v59, %v1868_v30  ;;  %v395_v63 = vmax.f32 %v348_v56, 0.0  ;;  %v1941_v50 = vrot.slane %v948_v48, %v1857_v26  ;;  %v1944_v51 = vrot.slane %v948_v48, %v1862_v28 }
 0x126   :  { %v396_v62 = vmax.f32 %v350_v58, 0.0 }
 0x127   :  { %v397_v0 = vmax.f32 %v352_v60, 0.0 }
 0x128   :  { %v416_v2 = vpack.c.bf16 %v396_v62, %v394_v61 }
 0x129   :  { %v417_v4 = vpack.c.bf16 %v397_v0, %v395_v63  ;;  %v355_v5 = vpop.f32.mrb[24].mxu0 }
 0x12a   :  { %v356_v8 = vadd.f32 %v355_v5, %v1865_v29  ;;  %v357_v10 = vpop.f32.mrb[25].mxu0 }
 0x12b   :  { %v358_v13 = vadd.f32 %v357_v10, %v1868_v30  ;;  %v359_v14 = vpop.f32.mrb[26].mxu0  ;;  %917 = vmatprep.mubr.bf16.mxu1 %v417_v4 }
 0x12c   :  { %v360_v16 = vadd.f32 %v359_v14, %v1865_v29  ;;  %v361_v17 = vpop.f32.mrb[27].mxu0  ;;  %918 = vmatmul.mubr.bf16.gmra.mrb[20].mxu1 %v416_v2  ;;  %v398_v19 = vmax.f32 %v356_v8, 0.0 }
 0x12d   :  { %v362_v18 = vadd.f32 %v361_v17, %v1868_v30  ;;  %v399_v21 = vmax.f32 %v358_v13, 0.0 }
 0x12e   :  { %v400_v20 = vmax.f32 %v360_v16, 0.0 }
 0x12f   :  { %v401_v22 = vmax.f32 %v362_v18, 0.0 }
 0x130   :  { %v418_v23 = vpack.c.bf16 %v400_v20, %v398_v19 }
 0x131   :  { %v419_v24 = vpack.c.bf16 %v401_v22, %v399_v21  ;;  %v365_v27 = vpop.f32.mrb[28].mxu0 }
 0x132   :  { %v366_v32 = vadd.f32 %v365_v27, %v1865_v29  ;;  %v367_v33 = vpop.f32.mrb[29].mxu0 }
 0x133   :  { %v368_v35 = vadd.f32 %v367_v33, %v1868_v30  ;;  %v369_v36 = vpop.f32.mrb[30].mxu0  ;;  %927 = vmatprep.mubr.bf16.mxu1 %v419_v24 }
 0x134   :  { %v370_v38 = vadd.f32 %v369_v36, %v1865_v29  ;;  %v371_v39 = vpop.f32.mrb[31].mxu0  ;;  %928 = vmatmul.mubr.bf16.gmra.mrb[24].mxu1 %v418_v23  ;;  %v402_v41 = vmax.f32 %v366_v32, 0.0  ;;  %v992_v29 = vld [vmem:[%s2054_s6] sm:$0x3] }
 0x135   :  { %v372_v40 = vadd.f32 %v371_v39, %v1868_v30  ;;  %v403_v43 = vmax.f32 %v368_v35, 0.0  ;;  %v1948_v54 = vrot.slane %v992_v29, %v1857_v26  ;;  %v1952_v58 = vrot.slane %v992_v29, %v1862_v28 }
 0x136   :  { %v404_v42 = vmax.f32 %v370_v38, 0.0 }
 0x137   :  { %v405_v44 = vmax.f32 %v372_v40, 0.0 }
 0x138   :  { %v420_v45 = vpack.c.bf16 %v404_v42, %v402_v41 }
 0x139   :  { %v421_v46 = vpack.c.bf16 %v405_v44, %v403_v43 }
 0x13b   :  { %937 = vmatprep.mubr.bf16.mxu1 %v421_v46 }
 0x13c   :  { %938 = vmatmul.mubr.bf16.gmra.mrb[28].mxu1 %v420_v45 }
 0x1d7   :  { %v869_v30 = vpop.f32.mrb[32].mxu0 }
 0x1d8   :  { %v870_v53 = vadd.f32 %v869_v30, %v1882_v7  ;;  %v871_v56 = vpop.f32.mrb[33].mxu0 }
 0x1d9   :  { %v872_v57 = vadd.f32 %v871_v56, %v1884_v9  ;;  %v873_v59 = vpop.f32.mrb[34].mxu0 }
 0x1da   :  { %v960_v60 = vadd.f32 %v1941_v50, %v870_v53  ;;  %v874_v61 = vadd.f32 %v873_v59, %v1886_v12  ;;  %v875_v62 = vpop.f32.mrb[35].mxu0 }
 0x1db   :  { %v961_v63 = vadd.f32 %v1944_v51, %v872_v57  ;;  %v876_v0 = vadd.f32 %v875_v62, %v1889_v15 }
 0x1dc   :  { %v1004_v7 = vadd.f32 %v1948_v54, %v960_v60  ;;  %v962_v26 = vadd.f32 %v1941_v50, %v874_v61 }
 0x1dd   :  { %v1005_v2 = vadd.f32 %v1952_v58, %v961_v63  ;;  %v963_v9 = vadd.f32 %v1944_v51, %v876_v0 }
 0x1de   :  { %v1006_v28 = vadd.f32 %v1948_v54, %v962_v26  ;;  %v1036_v8 = vmax.f32 %v1004_v7, 0.0 }
 0x1df   :  { %v1007_v4 = vadd.f32 %v1952_v58, %v963_v9  ;;  %v879_v5 = vpop.f32.mrb[36].mxu0  ;;  %v1037_v14 = vmax.f32 %v1005_v2, 0.0 }
 0x1e0   :  { %v1038_v12 = vmax.f32 %v1006_v28, 0.0  ;;  %v880_v10 = vadd.f32 %v879_v5, %v1894_v25  ;;  %v881_v13 = vpop.f32.mrb[37].mxu0 }
 0x1e1   :  { %v1039_v15 = vmax.f32 %v1007_v4, 0.0  ;;  %v882_v16 = vadd.f32 %v881_v13, %v1896_v31  ;;  %v883_v17 = vpop.f32.mrb[38].mxu0 }
 0x1e2   :  { %v1068_v18 = vmax.f32 %v1036_v8, %v1038_v12  ;;  %v964_v19 = vadd.f32 %v1941_v50, %v880_v10  ;;  %v884_v20 = vadd.f32 %v883_v17, %v1898_v34  ;;  %v885_v21 = vpop.f32.mrb[39].mxu0 }
 0x1e3   :  { %v1075_v22 = vmax.f32 %v1037_v14, %v1039_v15  ;;  %v965_v23 = vadd.f32 %v1944_v51, %v882_v16  ;;  %v886_v24 = vadd.f32 %v885_v21, %v1901_v37 }
 0x1e4   :  { %v1069_v27 = vrot.slane %v1068_v18, 4  ;;  %v1008_v25 = vadd.f32 %v1948_v54, %v964_v19  ;;  %v966_v32 = vadd.f32 %v1941_v50, %v884_v20 }
 0x1e5   :  { %v1076_v33 = vrot.slane %v1075_v22, 4  ;;  %v1009_v31 = vadd.f32 %v1952_v58, %v965_v23  ;;  %v967_v35 = vadd.f32 %v1944_v51, %v886_v24 }
 0x1e6   :  { %v1070_v36 = vmax.f32 %v1068_v18, %v1069_v27  ;;  %v1010_v38 = vadd.f32 %v1948_v54, %v966_v32  ;;  %v1040_v42 = vmax.f32 %v1008_v25, 0.0 }
 0x1e7   :  { %v1077_v34 = vmax.f32 %v1075_v22, %v1076_v33  ;;  %v1011_v39 = vadd.f32 %v1952_v58, %v967_v35  ;;  %v889_v40 = vpop.f32.mrb[40].mxu0  ;;  %v1041_v46 = vmax.f32 %v1009_v31, 0.0 }
 0x1e8   :  { %v1071_v41 = vrot.slane %v1070_v36, 2  ;;  %v1042_v37 = vmax.f32 %v1010_v38, 0.0  ;;  %v890_v43 = vadd.f32 %v889_v40, %v1906_v47  ;;  %v891_v44 = vpop.f32.mrb[41].mxu0 }
 0x1e9   :  { %v1078_v45 = vrot.slane %v1077_v34, 2  ;;  %v1043_v48 = vmax.f32 %v1011_v39, 0.0  ;;  %v892_v29 = vadd.f32 %v891_v44, %v1908_v49  ;;  %v893_v30 = vpop.f32.mrb[42].mxu0 }
 0x1ea   :  { %v1072_v53 = vmax.f32 %v1070_v36, %v1071_v41  ;;  %v1082_v56 = vmax.f32 %v1040_v42, %v1042_v37  ;;  %v968_v57 = vadd.f32 %v1941_v50, %v890_v43  ;;  %v894_v59 = vadd.f32 %v893_v30, %v1910_v52  ;;  %v895_v60 = vpop.f32.mrb[43].mxu0 }
 0x1eb   :  { %v1079_v61 = vmax.f32 %v1077_v34, %v1078_v45  ;;  %v1089_v62 = vmax.f32 %v1041_v46, %v1043_v48  ;;  %v969_v63 = vadd.f32 %v1944_v51, %v892_v29  ;;  %v896_v47 = vadd.f32 %v895_v60, %v1913_v55 }
 0x1ec   :  { %v1073_v0 = vrot.slane %v1072_v53, 1  ;;  %v1083_v7 = vrot.slane %v1082_v56, 4  ;;  %v1012_v26 = vadd.f32 %v1948_v54, %v968_v57  ;;  %v970_v49 = vadd.f32 %v1941_v50, %v894_v59 }
 0x1ed   :  { %v1080_v2 = vrot.slane %v1079_v61, 1  ;;  %v1090_v9 = vrot.slane %v1089_v62, 4  ;;  %v1013_v28 = vadd.f32 %v1952_v58, %v969_v63  ;;  %v971_v4 = vadd.f32 %v1944_v51, %v896_v47 }
 0x1ee   :  { %v1084_v52 = vmax.f32 %v1082_v56, %v1083_v7  ;;  %v1014_v5 = vadd.f32 %v1948_v54, %v970_v49  ;;  %v1074_v8 = vmax.f32 %v1072_v53, %v1073_v0  ;;  %v1044_v10 = vmax.f32 %v1012_v26, 0.0 }
 0x1ef   :  { %v1091_v12 = vmax.f32 %v1089_v62, %v1090_v9  ;;  %v1015_v55 = vadd.f32 %v1952_v58, %v971_v4  ;;  %v899_v13 = vpop.f32.mrb[44].mxu0  ;;  %v1081_v14 = vmax.f32 %v1079_v61, %v1080_v2  ;;  %v1045_v20 = vmax.f32 %v1013_v28, 0.0 }
 0x1f0   :  { %v1085_v15 = vrot.slane %v1084_v52, 2  ;;  %v1046_v16 = vmax.f32 %v1014_v5, 0.0  ;;  %v900_v17 = vadd.f32 %v899_v13, %v1918_v1  ;;  %v901_v18 = vpop.f32.mrb[45].mxu0 }
 0x1f1   :  { %v1092_v19 = vrot.slane %v1091_v12, 2  ;;  %v1047_v21 = vmax.f32 %v1015_v55, 0.0  ;;  %v902_v22 = vadd.f32 %v901_v18, %v1920_v3  ;;  %v903_v23 = vpop.f32.mrb[46].mxu0 }
 0x1f2   :  { %v1086_v24 = vmax.f32 %v1084_v52, %v1085_v15  ;;  %v1096_v27 = vmax.f32 %v1044_v10, %v1046_v16  ;;  %v972_v25 = vadd.f32 %v1941_v50, %v900_v17  ;;  %v904_v32 = vadd.f32 %v903_v23, %v1922_v6  ;;  %v905_v33 = vpop.f32.mrb[47].mxu0 }
 0x1f3   :  { %v1093_v31 = vmax.f32 %v1091_v12, %v1092_v19  ;;  %v1103_v35 = vmax.f32 %v1045_v20, %v1047_v21  ;;  %v973_v36 = vadd.f32 %v1944_v51, %v902_v22  ;;  %v906_v1 = vadd.f32 %v905_v33, %v1925_v11 }
 0x1f4   :  { %v1087_v38 = vrot.slane %v1086_v24, 1  ;;  %v1097_v34 = vrot.slane %v1096_v27, 4  ;;  %v1016_v39 = vadd.f32 %v1948_v54, %v972_v25  ;;  %v974_v3 = vadd.f32 %v1941_v50, %v904_v32 }
 0x1f5   :  { %v1094_v40 = vrot.slane %v1093_v31, 1  ;;  %v1104_v41 = vrot.slane %v1103_v35, 4  ;;  %v1017_v42 = vadd.f32 %v1952_v58, %v973_v36  ;;  %v975_v37 = vadd.f32 %v1944_v51, %v906_v1 }
 0x1f6   :  { %v1088_v6 = vmax.f32 %v1086_v24, %v1087_v38  ;;  %v1098_v43 = vmax.f32 %v1096_v27, %v1097_v34  ;;  %v1048_v44 = vmax.f32 %v1016_v39, 0.0  ;;  %v1018_v45 = vadd.f32 %v1948_v54, %v974_v3 }
 0x1f7   :  { %v1095_v46 = vmax.f32 %v1093_v31, %v1094_v40  ;;  %v1105_v48 = vmax.f32 %v1103_v35, %v1104_v41  ;;  %v1049_v11 = vmax.f32 %v1017_v42, 0.0  ;;  %v1019_v29 = vadd.f32 %v1952_v58, %v975_v37  ;;  %v909_v30 = vpop.f32.mrb[16].mxu1 }
 0x1f8   :  { %v1197_v53 = vsel %vm1196_vm2, %v1088_v6, %v1074_v8  ;;  %v1099_v56 = vrot.slane %v1098_v43, 2  ;;  %v1050_v57 = vmax.f32 %v1018_v45, 0.0  ;;  %v976_v59 = vadd.f32 %v1941_v50, %v909_v30  ;;  %v911_v60 = vpop.f32.mrb[17].mxu1 }
 0x1f9   :  { %v1210_v61 = vsel %vm1196_vm2, %v1095_v46, %v1081_v14  ;;  %v1106_v62 = vrot.slane %v1105_v48, 2  ;;  %v1051_v63 = vmax.f32 %v1019_v29, 0.0  ;;  %v977_v47 = vadd.f32 %v1944_v51, %v911_v60  ;;  %v913_v0 = vpop.f32.mrb[18].mxu1 }
 0x1fa   :  { %v1100_v7 = vmax.f32 %v1098_v43, %v1099_v56  ;;  %v1110_v26 = vmax.f32 %v1048_v44, %v1050_v57  ;;  %v1020_v49 = vadd.f32 %v1948_v54, %v976_v59  ;;  %v978_v2 = vadd.f32 %v1941_v50, %v913_v0  ;;  %v915_v9 = vpop.f32.mrb[19].mxu1 }
 0x1fb   :  { %v1107_v28 = vmax.f32 %v1105_v48, %v1106_v62  ;;  %v1117_v4 = vmax.f32 %v1049_v11, %v1051_v63  ;;  %v1021_v52 = vadd.f32 %v1952_v58, %v977_v47  ;;  %v979_v5 = vadd.f32 %v1944_v51, %v915_v9 }
 0x1fc   :  { %v1101_v8 = vrot.slane %v1100_v7, 1  ;;  %v1111_v12 = vrot.slane %v1110_v26, 4  ;;  %v1022_v10 = vadd.f32 %v1948_v54, %v978_v2  ;;  %v1052_v17 = vmax.f32 %v1020_v49, 0.0 }
 0x1fd   :  { %v1108_v55 = vrot.slane %v1107_v28, 1  ;;  %v1118_v13 = vrot.slane %v1117_v4, 4  ;;  %v1023_v14 = vadd.f32 %v1952_v58, %v979_v5  ;;  %v1053_v21 = vmax.f32 %v1021_v52, 0.0 }
 0x1fe   :  { %v1102_v15 = vmax.f32 %v1100_v7, %v1101_v8  ;;  %v1112_v16 = vmax.f32 %v1110_v26, %v1111_v12  ;;  %v1054_v18 = vmax.f32 %v1022_v10, 0.0 }
 0x1ff   :  { %v1109_v19 = vmax.f32 %v1107_v28, %v1108_v55  ;;  %v1119_v20 = vmax.f32 %v1117_v4, %v1118_v13  ;;  %v1055_v22 = vmax.f32 %v1023_v14, 0.0  ;;  %v919_v23 = vpop.f32.mrb[20].mxu1 }
 0x200   :  { %v1199_v24 = vsel %vm1198_vm3, %v1102_v15, %v1197_v53  ;;  %v1113_v27 = vrot.slane %v1112_v16, 2  ;;  %v1124_v25 = vmax.f32 %v1052_v17, %v1054_v18  ;;  %v980_v32 = vadd.f32 %v1941_v50, %v919_v23  ;;  %v921_v33 = vpop.f32.mrb[21].mxu1 }
 0x201   :  { %v1211_v31 = vsel %vm1198_vm3, %v1109_v19, %v1210_v61  ;;  %v1120_v35 = vrot.slane %v1119_v20, 2  ;;  %v1131_v36 = vmax.f32 %v1053_v21, %v1055_v22  ;;  %v981_v1 = vadd.f32 %v1944_v51, %v921_v33  ;;  %v923_v38 = vpop.f32.mrb[22].mxu1 }
 0x202   :  { %v1114_v34 = vmax.f32 %v1112_v16, %v1113_v27  ;;  %v1125_v39 = vrot.slane %v1124_v25, 4  ;;  %v1024_v3 = vadd.f32 %v1948_v54, %v980_v32  ;;  %v982_v40 = vadd.f32 %v1941_v50, %v923_v38  ;;  %v925_v41 = vpop.f32.mrb[23].mxu1 }
 0x203   :  { %v1121_v42 = vmax.f32 %v1119_v20, %v1120_v35  ;;  %v1132_v37 = vrot.slane %v1131_v36, 4  ;;  %v1025_v6 = vadd.f32 %v1952_v58, %v981_v1  ;;  %v983_v43 = vadd.f32 %v1944_v51, %v925_v41 }
 0x204   :  { %v1115_v44 = vrot.slane %v1114_v34, 1  ;;  %v1126_v45 = vmax.f32 %v1124_v25, %v1125_v39  ;;  %v1026_v46 = vadd.f32 %v1948_v54, %v982_v40  ;;  %v1056_v56 = vmax.f32 %v1024_v3, 0.0 }
 0x205   :  { %v1122_v48 = vrot.slane %v1121_v42, 1  ;;  %v1133_v11 = vmax.f32 %v1131_v36, %v1132_v37  ;;  %v1027_v29 = vadd.f32 %v1952_v58, %v983_v43  ;;  %v1057_v61 = vmax.f32 %v1025_v6, 0.0 }
 0x206   :  { %v1116_v30 = vmax.f32 %v1114_v34, %v1115_v44  ;;  %v1127_v53 = vrot.slane %v1126_v45, 2  ;;  %v1058_v57 = vmax.f32 %v1026_v46, 0.0 }
 0x207   :  { %v1123_v59 = vmax.f32 %v1121_v42, %v1122_v48  ;;  %v1134_v60 = vrot.slane %v1133_v11, 2  ;;  %v1059_v62 = vmax.f32 %v1027_v29, 0.0  ;;  %v929_v63 = vpop.f32.mrb[24].mxu1 }
 0x208   :  { %v1201_v47 = vsel %vm1200_vm4, %v1116_v30, %v1199_v24  ;;  %v1128_v0 = vmax.f32 %v1126_v45, %v1127_v53  ;;  %v1138_v7 = vmax.f32 %v1056_v56, %v1058_v57  ;;  %v984_v26 = vadd.f32 %v1941_v50, %v929_v63  ;;  %v931_v49 = vpop.f32.mrb[25].mxu1 }
 0x209   :  { %v1212_v2 = vsel %vm1200_vm4, %v1123_v59, %v1211_v31  ;;  %v1135_v9 = vmax.f32 %v1133_v11, %v1134_v60  ;;  %v1145_v28 = vmax.f32 %v1057_v61, %v1059_v62  ;;  %v985_v4 = vadd.f32 %v1944_v51, %v931_v49  ;;  %v933_v52 = vpop.f32.mrb[26].mxu1 }
 0x20a   :  { %v1129_v5 = vrot.slane %v1128_v0, 1  ;;  %v1139_v8 = vrot.slane %v1138_v7, 4  ;;  %v1028_v12 = vadd.f32 %v1948_v54, %v984_v26  ;;  %v986_v10 = vadd.f32 %v1941_v50, %v933_v52  ;;  %v935_v55 = vpop.f32.mrb[27].mxu1 }
 0x20b   :  { %v1136_v13 = vrot.slane %v1135_v9, 1  ;;  %v1146_v14 = vrot.slane %v1145_v28, 4  ;;  %v1029_v15 = vadd.f32 %v1952_v58, %v985_v4  ;;  %v987_v16 = vadd.f32 %v1944_v51, %v935_v55 }
 0x20c   :  { %v1130_v17 = vmax.f32 %v1128_v0, %v1129_v5  ;;  %v1140_v18 = vmax.f32 %v1138_v7, %v1139_v8  ;;  %v1030_v19 = vadd.f32 %v1948_v54, %v986_v10  ;;  %v1060_v27 = vmax.f32 %v1028_v12, 0.0 }
 0x20d   :  { %v1137_v20 = vmax.f32 %v1135_v9, %v1136_v13  ;;  %v1147_v21 = vmax.f32 %v1145_v28, %v1146_v14  ;;  %v1031_v22 = vadd.f32 %v1952_v58, %v987_v16  ;;  %v1061_v31 = vmax.f32 %v1029_v15, 0.0 }
 0x20e   :  { %v1203_v23 = vsel %vm1202_vm5, %v1130_v17, %v1201_v47  ;;  %v1141_v24 = vrot.slane %v1140_v18, 2  ;;  %v1062_v25 = vmax.f32 %v1030_v19, 0.0 }
 0x20f   :  { %v1213_v32 = vsel %vm1202_vm5, %v1137_v20, %v1212_v2  ;;  %v1148_v33 = vrot.slane %v1147_v21, 2  ;;  %v1063_v35 = vmax.f32 %v1031_v22, 0.0  ;;  %v939_v36 = vpop.f32.mrb[28].mxu1 }
 0x210   :  { %v1142_v1 = vmax.f32 %v1140_v18, %v1141_v24  ;;  %v1152_v38 = vmax.f32 %v1060_v27, %v1062_v25  ;;  %v988_v34 = vadd.f32 %v1941_v50, %v939_v36  ;;  %v941_v39 = vpop.f32.mrb[29].mxu1 }
 0x211   :  { %v1149_v3 = vmax.f32 %v1147_v21, %v1148_v33  ;;  %v1159_v40 = vmax.f32 %v1061_v31, %v1063_v35  ;;  %v989_v41 = vadd.f32 %v1944_v51, %v941_v39  ;;  %v943_v42 = vpop.f32.mrb[30].mxu1 }
 0x212   :  { %v1143_v37 = vrot.slane %v1142_v1, 1  ;;  %v1153_v6 = vrot.slane %v1152_v38, 4  ;;  %v1032_v43 = vadd.f32 %v1948_v54, %v988_v34  ;;  %v990_v44 = vadd.f32 %v1941_v50, %v943_v42  ;;  %v945_v45 = vpop.f32.mrb[31].mxu1 }
 0x213   :  { %v1150_v46 = vrot.slane %v1149_v3, 1  ;;  %v1160_v48 = vrot.slane %v1159_v40, 4  ;;  %v1033_v11 = vadd.f32 %v1952_v58, %v989_v41  ;;  %v991_v29 = vadd.f32 %v1944_v51, %v945_v45 }
 0x214   :  { %v1144_v30 = vmax.f32 %v1142_v1, %v1143_v37  ;;  %v1154_v53 = vmax.f32 %v1152_v38, %v1153_v6  ;;  %v1034_v56 = vadd.f32 %v1948_v54, %v990_v44  ;;  %v1064_v63 = vmax.f32 %v1032_v43, 0.0 }
 0x215   :  { %v1151_v57 = vmax.f32 %v1149_v3, %v1150_v46  ;;  %v1161_v59 = vmax.f32 %v1159_v40, %v1160_v48  ;;  %v1035_v60 = vadd.f32 %v1952_v58, %v991_v29  ;;  %v1065_v7 = vmax.f32 %v1033_v11, 0.0 }
 0x216   :  { %v1205_v61 = vsel %vm1204_vm6, %v1144_v30, %v1203_v23  ;;  %v1155_v62 = vrot.slane %v1154_v53, 2  ;;  %v1066_v50 = vmax.f32 %v1034_v56, 0.0 }
 0x217   :  { %v1214_v47 = vsel %vm1204_vm6, %v1151_v57, %v1213_v32  ;;  %v1162_v0 = vrot.slane %v1161_v59, 2  ;;  %v1067_v26 = vmax.f32 %v1035_v60, 0.0 }
 0x218   :  { %v1156_v49 = vmax.f32 %v1154_v53, %v1155_v62  ;;  %v1166_v51 = vmax.f32 %v1064_v63, %v1066_v50 }
 0x219   :  { %v1163_v2 = vmax.f32 %v1161_v59, %v1162_v0  ;;  %v1173_v9 = vmax.f32 %v1065_v7, %v1067_v26 }
 0x21a   :  { %v1157_v28 = vrot.slane %v1156_v49, 1  ;;  %v1167_v54 = vrot.slane %v1166_v51, 4 }
 0x21b   :  { %v1164_v4 = vrot.slane %v1163_v2, 1  ;;  %v1174_v52 = vrot.slane %v1173_v9, 4 }
 0x21c   :  { %v1158_v58 = vmax.f32 %v1156_v49, %v1157_v28  ;;  %v1168_v5 = vmax.f32 %v1166_v51, %v1167_v54 }
 0x21d   :  { %v1165_v8 = vmax.f32 %v1163_v2, %v1164_v4  ;;  %v1175_v12 = vmax.f32 %v1173_v9, %v1174_v52 }
 0x21e   :  { %v1207_v10 = vsel %vm1206_vm7, %v1158_v58, %v1205_v61  ;;  %v1169_v55 = vrot.slane %v1168_v5, 2 }
 0x21f   :  { %v1215_v13 = vsel %vm1206_vm7, %v1165_v8, %v1214_v47  ;;  %v1176_v14 = vrot.slane %v1175_v12, 2 }
 0x220   :  { %v1170_v15 = vmax.f32 %v1168_v5, %v1169_v55 }
 0x221   :  { %v1177_v16 = vmax.f32 %v1175_v12, %v1176_v14 }
 0x222   :  { %v1171_v17 = vrot.slane %v1170_v15, 1 }
 0x223   :  { %v1178_v18 = vrot.slane %v1177_v16, 1 }
 0x224   :  { %v1172_v19 = vmax.f32 %v1170_v15, %v1171_v17 }
 0x225   :  { %v1179_v20 = vmax.f32 %v1177_v16, %v1178_v18 }
 0x226   :  { %v1209_v21 = vsel %vm1208_vm8, %v1172_v19, %v1207_v10 }
 0x227   :  { %1219 = vst [vmem:[%s2055_s7] sm:$0xff] %v1209_v21  ;;  %v1216_v22 = vsel %vm1208_vm8, %v1179_v20, %v1215_v13 }
 0x228   :  { %1220 = vst [vmem:[%s2055_s7 + $0x8] sm:$0xff] %v1216_v22 }

// kernel: posterior_encoder_forward.7
= control target key start
LH: loop header
LB: loop body
LE: loop exit
PB: predicated region body
PF: predicated region fallthrough
CT: control target
= control target key end

     0   :  { %v3402_v1 = vmov 0   ;;  %vm173_vm0 = vcmask 130048   ;;  %vm50_vm1 = vcmask 1043456   ;;  %vm267_vm2 = vcmask 1041409   ;;  %s4444_s3 = inlined_call_operand.vmem [shape: bf16[16,512], index: 3, kind: input, shape index: {}]   ;;  %s4445_s1 = inlined_call_operand.vmem [shape: f32[2,16], index: 1, kind: input, shape index: {}]   ;;  %s4446_s2 = inlined_call_operand.vmem [shape: bf16[256,512], index: 2, kind: input, shape index: {}]   ;;  %s4447_s0 = inlined_call_operand.vmem [shape: f32[2,4,256], index: 0, kind: input, shape index: {}]   ;;  %s4448_s7 = inlined_call_operand.vmem [shape: bf16[256,512], index: 7, kind: input, shape index: {}]   ;;  %s4449_s5 = inlined_call_operand.vmem [shape: bf16[512,512], index: 5, kind: input, shape index: {}]   ;;  %s4450_s8 = inlined_call_operand.vmem [shape: bf16[16,512], index: 8, kind: input, shape index: {}]   ;;  %s4451_s4 = inlined_call_operand.vmem [shape: f32[1,512], index: 4, kind: input, shape index: {}]   ;;  %s4452_s10 = inlined_call_operand.vmem [shape: bf16[512,128], index: 10, kind: input, shape index: {}]   ;;  %s4453_s6 = inlined_call_operand.vmem [shape: f32[1,512], index: 6, kind: input, shape index: {}]   ;;  %s4454_s9 = inlined_call_operand.vmem [shape: f32[1,512], index: 9, kind: input, shape index: {}]   ;;  %s4455_s11 = inlined_call_operand.vmem [shape: f32[1,128], index: 11, kind: input, shape index: {}]   ;;  %s4456_s12 = inlined_call_operand.vmem [shape: f32[2,128], index: 12, kind: output, shape index: {}]  }
   0x1   :  { %v2972_v0 = vld [vmem:[%s4444_s3 + $0x4] ss:$16 sps:$4 sm:$0xff]   ;;  %209 = vmatprep.mubr.bf16.mxu0 %v3402_v1  ;;  %250 = vmatprep.mubr.bf16.mxu1 %v3402_v1  ;;  %v2974_v2 = vld [vmem:[%s4444_s3 + $0xc] ss:$16 sps:$4 sm:$0xff]   ;;  %v2976_v3 = vld [vmem:[%s4444_s3] ss:$16 sps:$4 sm:$0xff]  }
   0x2   :  { %177 = vmatprep.subr.bf16.mxu0 %v2972_v0  ;;  %v2977_v4 = vld [vmem:[%s4444_s3 + $0x8] ss:$16 sps:$4 sm:$0xff]   ;;  %v83_v5 = vld [vmem:[%s4445_s1] sm:$0x3]  ;;  %218 = vmatprep.subr.bf16.mxu1 %v2974_v2  ;;  %v2980_v8 = vld [vmem:[%s4446_s2 + $0x4] ss:$16 sps:$4 sm:$0xff]  }
   0x3   :  { %v3485_v6 = vpack.c.bf16 %v83_v5, %v83_v5  ;;  %v2978_v7 = vld [vmem:[%s4446_s2] ss:$16 sps:$4 sm:$0xff]   ;;  %178 = vmatpush1.bf16.msra.mxu0 %v2976_v3  ;;  %219 = vmatpush1.bf16.msra.mxu1 %v2977_v4  ;;  %v2981_v9 = vld [vmem:[%s4446_s2 + $0x8] ss:$16 sps:$4 sm:$0xff]   ;;  %v2983_v10 = vld [vmem:[%s4446_s2 + $0xc] ss:$16 sps:$4 sm:$0xff]  }
   0x4   :  { %594 = vmatprep.subr.bf16.mxu0 %v2980_v8  ;;  %v2986_v11 = vld [vmem:[%s4446_s2 + $0x24] ss:$16 sps:$4 sm:$0xff]   ;;  %v2984_v12 = vld [vmem:[%s4446_s2 + $0x20] ss:$16 sps:$4 sm:$0xff]   ;;  %635 = vmatprep.subr.bf16.mxu1 %v2983_v10  ;;  %v2989_v13 = vld [vmem:[%s4446_s2 + $0x2c] ss:$16 sps:$4 sm:$0xff]  }
   0x5   :  { %v2987_v14 = vld [vmem:[%s4446_s2 + $0x28] ss:$16 sps:$4 sm:$0xff]   ;;  %v2992_v15 = vld [vmem:[%s4446_s2 + $0x44] ss:$16 sps:$4 sm:$0xff]   ;;  %v2995_v16 = vld [vmem:[%s4446_s2 + $0x4c] ss:$16 sps:$4 sm:$0xff]  }
   0x6   :  { %2630 = vmatmul.mubr.msk.bf16.vlgmr.msra.gmra.mrb[0].mxu0 %vm173_vm0, %v3485_v6  ;;  %2631 = vmatmul.mubr.msk.bf16.vlgmr.msra.gmra.mrb[0].mxu1 %vm173_vm0, %v3485_v6  ;;  %v2990_v17 = vld [vmem:[%s4446_s2 + $0x40] ss:$16 sps:$4 sm:$0xff]   ;;  %v2993_v18 = vld [vmem:[%s4446_s2 + $0x48] ss:$16 sps:$4 sm:$0xff]   ;;  %v2998_v19 = vld [vmem:[%s4446_s2 + $0x64] ss:$16 sps:$4 sm:$0xff]  }
   0x7   :  { %595 = vmatpush1.bf16.msra.mxu0 %v2978_v7  ;;  %636 = vmatpush1.bf16.msra.mxu1 %v2981_v9  ;;  %v3001_v20 = vld [vmem:[%s4446_s2 + $0x6c] ss:$16 sps:$4 sm:$0xff]   ;;  %v2996_v21 = vld [vmem:[%s4446_s2 + $0x60] ss:$16 sps:$4 sm:$0xff]   ;;  %v2999_v22 = vld [vmem:[%s4446_s2 + $0x68] ss:$16 sps:$4 sm:$0xff]  }
   0x8   :  { %596 = vmatprep.subr.bf16.mxu0 %v2986_v11  ;;  %637 = vmatprep.subr.bf16.mxu1 %v2989_v13  ;;  %v3004_v23 = vld [vmem:[%s4446_s2 + $0x84] ss:$16 sps:$4 sm:$0xff]   ;;  %v3007_v24 = vld [vmem:[%s4446_s2 + $0x8c] ss:$16 sps:$4 sm:$0xff]   ;;  %v3002_v25 = vld [vmem:[%s4446_s2 + $0x80] ss:$16 sps:$4 sm:$0xff]  }
   0x9   :  { %v3005_v26 = vld [vmem:[%s4446_s2 + $0x88] ss:$16 sps:$4 sm:$0xff]   ;;  %v3010_v27 = vld [vmem:[%s4446_s2 + $0xa4] ss:$16 sps:$4 sm:$0xff]   ;;  %v3013_v28 = vld [vmem:[%s4446_s2 + $0xac] ss:$16 sps:$4 sm:$0xff]  }
   0xa   :  { %v3008_v29 = vld [vmem:[%s4446_s2 + $0xa0] ss:$16 sps:$4 sm:$0xff]   ;;  %v3011_v30 = vld [vmem:[%s4446_s2 + $0xa8] ss:$16 sps:$4 sm:$0xff]   ;;  %v3016_v31 = vld [vmem:[%s4446_s2 + $0xc4] ss:$16 sps:$4 sm:$0xff]  }
   0xb   :  { %597 = vmatpush1.bf16.msra.mxu0 %v2984_v12  ;;  %638 = vmatpush1.bf16.msra.mxu1 %v2987_v14  ;;  %v3019_v32 = vld [vmem:[%s4446_s2 + $0xcc] ss:$16 sps:$4 sm:$0xff]   ;;  %v3014_v33 = vld [vmem:[%s4446_s2 + $0xc0] ss:$16 sps:$4 sm:$0xff]   ;;  %v3017_v34 = vld [vmem:[%s4446_s2 + $0xc8] ss:$16 sps:$4 sm:$0xff]  }
   0xc   :  { %598 = vmatprep.subr.bf16.mxu0 %v2992_v15  ;;  %639 = vmatprep.subr.bf16.mxu1 %v2995_v16  ;;  %v3022_v35 = vld [vmem:[%s4446_s2 + $0xe4] ss:$16 sps:$4 sm:$0xff]   ;;  %v3025_v36 = vld [vmem:[%s4446_s2 + $0xec] ss:$16 sps:$4 sm:$0xff]   ;;  %v3020_v37 = vld [vmem:[%s4446_s2 + $0xe0] ss:$16 sps:$4 sm:$0xff]  }
   0xd   :  { %v3023_v38 = vld [vmem:[%s4446_s2 + $0xe8] ss:$16 sps:$4 sm:$0xff]   ;;  %v3028_v39 = vld [vmem:[%s4446_s2 + $0x104] ss:$16 sps:$4 sm:$0xff]   ;;  %v3031_v40 = vld [vmem:[%s4446_s2 + $0x10c] ss:$16 sps:$4 sm:$0xff]  }
   0xe   :  { %v3026_v41 = vld [vmem:[%s4446_s2 + $0x100] ss:$16 sps:$4 sm:$0xff]   ;;  %v3029_v42 = vld [vmem:[%s4446_s2 + $0x108] ss:$16 sps:$4 sm:$0xff]   ;;  %v3034_v43 = vld [vmem:[%s4446_s2 + $0x124] ss:$16 sps:$4 sm:$0xff]  }
   0xf   :  { %599 = vmatpush1.bf16.msra.mxu0 %v2990_v17  ;;  %640 = vmatpush1.bf16.msra.mxu1 %v2993_v18  ;;  %v3037_v44 = vld [vmem:[%s4446_s2 + $0x12c] ss:$16 sps:$4 sm:$0xff]   ;;  %v3032_v45 = vld [vmem:[%s4446_s2 + $0x120] ss:$16 sps:$4 sm:$0xff]   ;;  %v3035_v46 = vld [vmem:[%s4446_s2 + $0x128] ss:$16 sps:$4 sm:$0xff]  }
  0x10   :  { %600 = vmatprep.subr.bf16.mxu0 %v2998_v19  ;;  %641 = vmatprep.subr.bf16.mxu1 %v3001_v20  ;;  %v3040_v47 = vld [vmem:[%s4446_s2 + $0x144] ss:$16 sps:$4 sm:$0xff]   ;;  %v3043_v48 = vld [vmem:[%s4446_s2 + $0x14c] ss:$16 sps:$4 sm:$0xff]   ;;  %v3038_v49 = vld [vmem:[%s4446_s2 + $0x140] ss:$16 sps:$4 sm:$0xff]  }
  0x11   :  { %v3041_v50 = vld [vmem:[%s4446_s2 + $0x148] ss:$16 sps:$4 sm:$0xff]   ;;  %v3046_v51 = vld [vmem:[%s4446_s2 + $0x164] ss:$16 sps:$4 sm:$0xff]   ;;  %v3049_v52 = vld [vmem:[%s4446_s2 + $0x16c] ss:$16 sps:$4 sm:$0xff]  }
  0x12   :  { %v42_v53 = vld [vmem:[%s4447_s0] sm:$0xff]  ;;  %v43_v54 = vld [vmem:[%s4447_s0 + $0x8] sm:$0xff] }
  0x13   :  { %601 = vmatpush1.bf16.msra.mxu0 %v2996_v21  ;;  %642 = vmatpush1.bf16.msra.mxu1 %v2999_v22  ;;  %v46_v55 = vcombine.high %v42_v53, %v42_v53  ;;  %v51_v56 = vsel %vm50_vm1, %v42_v53, -inf  ;;  %v3044_v57 = vld [vmem:[%s4446_s2 + $0x160] ss:$16 sps:$4 sm:$0xff]   ;;  %v47_v58 = vcombine.high %v43_v54, %v43_v54  ;;  %v65_v60 = vsel %vm50_vm1, %v43_v54, -inf  ;;  %v3047_v61 = vld [vmem:[%s4446_s2 + $0x168] ss:$16 sps:$4 sm:$0xff]  }
  0x14   :  { %602 = vmatprep.subr.bf16.mxu0 %v3004_v23  ;;  %643 = vmatprep.subr.bf16.mxu1 %v3007_v24  ;;  %v52_v59 = vrot.slane %v51_v56, 4  ;;  %v66_v63 = vrot.slane %v65_v60, 4  ;;  %v3052_v0 = vld [vmem:[%s4446_s2 + $0x184] ss:$16 sps:$4 sm:$0xff]   ;;  %v3055_v5 = vld [vmem:[%s4446_s2 + $0x18c] ss:$16 sps:$4 sm:$0xff]  }
  0x15   :  { %v58_v62 = vsel %vm50_vm1, %v46_v55, -inf  ;;  %v72_v3 = vsel %vm50_vm1, %v47_v58, -inf  ;;  %v3050_v9 = vld [vmem:[%s4446_s2 + $0x180] ss:$16 sps:$4 sm:$0xff]   ;;  %v3053_v12 = vld [vmem:[%s4446_s2 + $0x188] ss:$16 sps:$4 sm:$0xff]  }
  0x16   :  { %v59_v2 = vrot.slane %v58_v62, 4  ;;  %v53_v4 = vmax.f32 %v51_v56, %v52_v59  ;;  %v73_v7 = vrot.slane %v72_v3, 4  ;;  %v67_v8 = vmax.f32 %v65_v60, %v66_v63  ;;  %v3058_v15 = vld [vmem:[%s4446_s2 + $0x1a4] ss:$16 sps:$4 sm:$0xff]   ;;  %v3061_v18 = vld [vmem:[%s4446_s2 + $0x1ac] ss:$16 sps:$4 sm:$0xff]  }
  0x17   :  { %603 = vmatpush1.bf16.msra.mxu0 %v3002_v25  ;;  %644 = vmatpush1.bf16.msra.mxu1 %v3005_v26  ;;  %v3056_v21 = vld [vmem:[%s4446_s2 + $0x1a0] ss:$16 sps:$4 sm:$0xff]   ;;  %v3059_v24 = vld [vmem:[%s4446_s2 + $0x1a8] ss:$16 sps:$4 sm:$0xff]   ;;  %v3081_v55 = vld [vmem:[%s4448_s7 + $0xc] ss:$16 sps:$4 sm:$0xff]  }
  0x18   :  { %604 = vmatprep.subr.bf16.mxu0 %v3010_v27  ;;  %645 = vmatprep.subr.bf16.mxu1 %v3013_v28  ;;  %v60_v10 = vmax.f32 %v58_v62, %v59_v2  ;;  %v54_v11 = vrot.slane %v53_v4, 2  ;;  %v74_v13 = vmax.f32 %v72_v3, %v73_v7  ;;  %v68_v14 = vrot.slane %v67_v8, 2  ;;  %v3064_v27 = vld [vmem:[%s4446_s2 + $0x1c4] ss:$16 sps:$4 sm:$0xff]   ;;  %v3076_v54 = vld [vmem:[%s4448_s7] ss:$16 sps:$4 sm:$0xff]  }
  0x19   :  { %v3079_v56 = vld [vmem:[%s4448_s7 + $0x8] ss:$16 sps:$4 sm:$0xff]   ;;  %v3087_v58 = vld [vmem:[%s4448_s7 + $0x2c] ss:$16 sps:$4 sm:$0xff]   ;;  %v3082_v59 = vld [vmem:[%s4448_s7 + $0x20] ss:$16 sps:$4 sm:$0xff]  }
  0x1a   :  { %v61_v16 = vrot.slane %v60_v10, 2  ;;  %v55_v17 = vmax.f32 %v53_v4, %v54_v11  ;;  %v75_v19 = vrot.slane %v74_v13, 2  ;;  %v69_v20 = vmax.f32 %v67_v8, %v68_v14  ;;  %v3085_v60 = vld [vmem:[%s4448_s7 + $0x28] ss:$16 sps:$4 sm:$0xff]   ;;  %v3093_v62 = vld [vmem:[%s4448_s7 + $0x4c] ss:$16 sps:$4 sm:$0xff]  }
  0x1b   :  { %605 = vmatpush1.bf16.msra.mxu0 %v3008_v29  ;;  %646 = vmatpush1.bf16.msra.mxu1 %v3011_v30  ;;  %v3067_v30 = vld [vmem:[%s4446_s2 + $0x1cc] ss:$16 sps:$4 sm:$0xff]   ;;  %v3088_v63 = vld [vmem:[%s4448_s7 + $0x40] ss:$16 sps:$4 sm:$0xff]   ;;  %v3096_v2 = vld [vmem:[%s4448_s7 + $0x64] ss:$16 sps:$4 sm:$0xff]  }
  0x1c   :  { %606 = vmatprep.subr.bf16.mxu0 %v3016_v31  ;;  %647 = vmatprep.subr.bf16.mxu1 %v3019_v32  ;;  %v62_v22 = vmax.f32 %v60_v10, %v61_v16  ;;  %v56_v23 = vrot.slane %v55_v17, 1  ;;  %v76_v25 = vmax.f32 %v74_v13, %v75_v19  ;;  %v70_v26 = vrot.slane %v69_v20, 1  ;;  %v3099_v3 = vld [vmem:[%s4448_s7 + $0x6c] ss:$16 sps:$4 sm:$0xff]   ;;  %v3094_v4 = vld [vmem:[%s4448_s7 + $0x60] ss:$16 sps:$4 sm:$0xff]  }
  0x1d   :  { %v3102_v7 = vld [vmem:[%s4448_s7 + $0x84] ss:$16 sps:$4 sm:$0xff]   ;;  %v3100_v8 = vld [vmem:[%s4448_s7 + $0x80] ss:$16 sps:$4 sm:$0xff]   ;;  %v3103_v10 = vld [vmem:[%s4448_s7 + $0x88] ss:$16 sps:$4 sm:$0xff]  }
  0x1e   :  { %v63_v28 = vrot.slane %v62_v22, 1  ;;  %v57_v29 = vmax.f32 %v55_v17, %v56_v23  ;;  %v77_v31 = vrot.slane %v76_v25, 1  ;;  %v71_v32 = vmax.f32 %v69_v20, %v70_v26  ;;  %v3108_v11 = vld [vmem:[%s4448_s7 + $0xa4] ss:$16 sps:$4 sm:$0xff]   ;;  %v3106_v13 = vld [vmem:[%s4448_s7 + $0xa0] ss:$16 sps:$4 sm:$0xff]  }
  0x1f   :  { %607 = vmatpush1.bf16.msra.mxu0 %v3014_v33  ;;  %648 = vmatpush1.bf16.msra.mxu1 %v3017_v34  ;;  %v3062_v33 = vld [vmem:[%s4446_s2 + $0x1c0] ss:$16 sps:$4 sm:$0xff]   ;;  %v3109_v14 = vld [vmem:[%s4448_s7 + $0xa8] ss:$16 sps:$4 sm:$0xff]   ;;  %v3117_v16 = vld [vmem:[%s4448_s7 + $0xcc] ss:$16 sps:$4 sm:$0xff]  }
  0x20   :  { %608 = vmatprep.subr.bf16.mxu0 %v3022_v35  ;;  %649 = vmatprep.subr.bf16.mxu1 %v3025_v36  ;;  %v64_v34 = vmax.f32 %v62_v22, %v63_v28  ;;  %v79_v35 = vpack.c.bf16 %v57_v29, %v57_v29  ;;  %v3065_v36 = vld [vmem:[%s4446_s2 + $0x1c8] ss:$16 sps:$4 sm:$0xff]   ;;  %v3112_v17 = vld [vmem:[%s4448_s7 + $0xc0] ss:$16 sps:$4 sm:$0xff]   ;;  %v3120_v19 = vld [vmem:[%s4448_s7 + $0xe4] ss:$16 sps:$4 sm:$0xff]  }
  0x21   :  { %v3123_v20 = vld [vmem:[%s4448_s7 + $0xec] ss:$16 sps:$4 sm:$0xff]   ;;  %v3121_v22 = vld [vmem:[%s4448_s7 + $0xe8] ss:$16 sps:$4 sm:$0xff]   ;;  %v3126_v23 = vld [vmem:[%s4448_s7 + $0x104] ss:$16 sps:$4 sm:$0xff]  }
  0x22   :  { %v3127_v26 = vld [vmem:[%s4448_s7 + $0x108] ss:$16 sps:$4 sm:$0xff]   ;;  %v3135_v28 = vld [vmem:[%s4448_s7 + $0x12c] ss:$16 sps:$4 sm:$0xff]   ;;  %v3130_v29 = vld [vmem:[%s4448_s7 + $0x120] ss:$16 sps:$4 sm:$0xff]  }
  0x23   :  { %609 = vmatpush1.bf16.msra.mxu0 %v3020_v37  ;;  %650 = vmatpush1.bf16.msra.mxu1 %v3023_v38  ;;  %v78_v37 = vmax.f32 %v76_v25, %v77_v31  ;;  %v81_v38 = vpack.c.bf16 %v71_v32, %v71_v32  ;;  %v3124_v25 = vld [vmem:[%s4448_s7 + $0x100] ss:$16 sps:$4 sm:$0xff]   ;;  %v3138_v31 = vld [vmem:[%s4448_s7 + $0x144] ss:$16 sps:$4 sm:$0xff]   ;;  %v3141_v32 = vld [vmem:[%s4448_s7 + $0x14c] ss:$16 sps:$4 sm:$0xff]  }
  0x24   :  { %610 = vmatprep.subr.bf16.mxu0 %v3028_v39  ;;  %651 = vmatprep.subr.bf16.mxu1 %v3031_v40  ;;  %v3070_v39 = vld [vmem:[%s4446_s2 + $0x1e4] ss:$16 sps:$4 sm:$0xff]   ;;  %v80_v40 = vpack.c.bf16 %v64_v34, %v64_v34  ;;  %v3139_v34 = vld [vmem:[%s4448_s7 + $0x148] ss:$16 sps:$4 sm:$0xff]  }
  0x27   :  { %611 = vmatpush1.bf16.msra.mxu0 %v3026_v41  ;;  %652 = vmatpush1.bf16.msra.mxu1 %v3029_v42  ;;  %v263_v41 = vunpack.c.l.b16 %v79_v35  ;;  %v3073_v42 = vld [vmem:[%s4446_s2 + $0x1ec] ss:$16 sps:$4 sm:$0xff]   ;;  %v3144_v35 = vld [vmem:[%s4448_s7 + $0x164] ss:$16 sps:$4 sm:$0xff]  }
  0x28   :  { %612 = vmatprep.subr.bf16.mxu0 %v3034_v43  ;;  %653 = vmatprep.subr.bf16.mxu1 %v3037_v44  ;;  %v82_v43 = vpack.c.bf16 %v78_v37, %v78_v37  ;;  %v265_v44 = vunpack.c.l.b16 %v81_v38  ;;  %v3142_v37 = vld [vmem:[%s4448_s7 + $0x160] ss:$16 sps:$4 sm:$0xff]   ;;  %v3145_v38 = vld [vmem:[%s4448_s7 + $0x168] ss:$16 sps:$4 sm:$0xff]  }
  0x2b   :  { %613 = vmatpush1.bf16.msra.mxu0 %v3032_v45  ;;  %654 = vmatpush1.bf16.msra.mxu1 %v3035_v46  ;;  %v264_v45 = vunpack.c.l.b16 %v80_v40  ;;  %v3068_v46 = vld [vmem:[%s4446_s2 + $0x1e0] ss:$16 sps:$4 sm:$0xff]   ;;  %v3153_v40 = vld [vmem:[%s4448_s7 + $0x18c] ss:$16 sps:$4 sm:$0xff]  }
  0x2c   :  { %614 = vmatprep.subr.bf16.mxu0 %v3040_v47  ;;  %655 = vmatprep.subr.bf16.mxu1 %v3043_v48  ;;  %v266_v47 = vunpack.c.l.b16 %v82_v43  ;;  %v268_v48 = vsel %vm267_vm2, %v265_v44, %v263_v41  ;;  %v3148_v41 = vld [vmem:[%s4448_s7 + $0x180] ss:$16 sps:$4 sm:$0xff]   ;;  %v3156_v43 = vld [vmem:[%s4448_s7 + $0x1a4] ss:$16 sps:$4 sm:$0xff]   ;;  %v3159_v44 = vld [vmem:[%s4448_s7 + $0x1ac] ss:$16 sps:$4 sm:$0xff]  }
  0x2d   :  { %v3696_v53 = vpack.c.b16 %v268_v48, %v268_v48  ;;  %v3165_v48 = vld [vmem:[%s4448_s7 + $0x1cc] ss:$16 sps:$4 sm:$0xff]  }
  0x2f   :  { %615 = vmatpush1.bf16.msra.mxu0 %v3038_v49  ;;  %656 = vmatpush1.bf16.msra.mxu1 %v3041_v50  ;;  %v3071_v49 = vld [vmem:[%s4446_s2 + $0x1e8] ss:$16 sps:$4 sm:$0xff]   ;;  %v269_v50 = vsel %vm267_vm2, %v266_v47, %v264_v45  ;;  %v3154_v45 = vld [vmem:[%s4448_s7 + $0x1a0] ss:$16 sps:$4 sm:$0xff]   ;;  %v3162_v47 = vld [vmem:[%s4448_s7 + $0x1c4] ss:$16 sps:$4 sm:$0xff]  }
  0x30   :  { %616 = vmatprep.subr.bf16.mxu0 %v3046_v51  ;;  %657 = vmatprep.subr.bf16.mxu1 %v3049_v52  ;;  %v3078_v51 = vld [vmem:[%s4448_s7 + $0x4] ss:$16 sps:$4 sm:$0xff]   ;;  %v271_v52 = vpack.c.b16 %v269_v50, %v269_v50  ;;  %v3163_v50 = vld [vmem:[%s4448_s7 + $0x1c8] ss:$16 sps:$4 sm:$0xff]  }
  0x32   :  { %626 = vmatprep.mubr.bf16.mxu0 %v271_v52  ;;  %667 = vmatprep.mubr.bf16.mxu1 %v271_v52 }
  0x33   :  { %617 = vmatpush1.bf16.msra.mxu0 %v3044_v57  ;;  %658 = vmatpush1.bf16.msra.mxu1 %v3047_v61  ;;  %v3084_v57 = vld [vmem:[%s4448_s7 + $0x24] ss:$16 sps:$4 sm:$0xff]  }
  0x34   :  { %618 = vmatprep.subr.bf16.mxu0 %v3052_v0  ;;  %659 = vmatprep.subr.bf16.mxu1 %v3055_v5  ;;  %v3090_v61 = vld [vmem:[%s4448_s7 + $0x44] ss:$16 sps:$4 sm:$0xff]   ;;  %v3091_v0 = vld [vmem:[%s4448_s7 + $0x48] ss:$16 sps:$4 sm:$0xff]  }
  0x35   :  { %v3097_v5 = vld [vmem:[%s4448_s7 + $0x68] ss:$16 sps:$4 sm:$0xff]  }
  0x37   :  { %619 = vmatpush1.bf16.msra.mxu0 %v3050_v9  ;;  %660 = vmatpush1.bf16.msra.mxu1 %v3053_v12  ;;  %v3105_v9 = vld [vmem:[%s4448_s7 + $0x8c] ss:$16 sps:$4 sm:$0xff]  }
  0x38   :  { %620 = vmatprep.subr.bf16.mxu0 %v3058_v15  ;;  %661 = vmatprep.subr.bf16.mxu1 %v3061_v18  ;;  %v3111_v12 = vld [vmem:[%s4448_s7 + $0xac] ss:$16 sps:$4 sm:$0xff]   ;;  %v3114_v15 = vld [vmem:[%s4448_s7 + $0xc4] ss:$16 sps:$4 sm:$0xff]   ;;  %v3115_v18 = vld [vmem:[%s4448_s7 + $0xc8] ss:$16 sps:$4 sm:$0xff]  }
  0x3b   :  { %621 = vmatpush1.bf16.msra.mxu0 %v3056_v21  ;;  %662 = vmatpush1.bf16.msra.mxu1 %v3059_v24  ;;  %v3118_v21 = vld [vmem:[%s4448_s7 + $0xe0] ss:$16 sps:$4 sm:$0xff]   ;;  %v3129_v24 = vld [vmem:[%s4448_s7 + $0x10c] ss:$16 sps:$4 sm:$0xff]  }
  0x3c   :  { %622 = vmatprep.subr.bf16.mxu0 %v3064_v27  ;;  %663 = vmatprep.subr.bf16.mxu1 %v3067_v30  ;;  %v3132_v27 = vld [vmem:[%s4448_s7 + $0x124] ss:$16 sps:$4 sm:$0xff]   ;;  %v3133_v30 = vld [vmem:[%s4448_s7 + $0x128] ss:$16 sps:$4 sm:$0xff]  }
  0x3f   :  { %623 = vmatpush1.bf16.msra.mxu0 %v3062_v33  ;;  %664 = vmatpush1.bf16.msra.mxu1 %v3065_v36  ;;  %v3136_v33 = vld [vmem:[%s4448_s7 + $0x140] ss:$16 sps:$4 sm:$0xff]   ;;  %v3147_v36 = vld [vmem:[%s4448_s7 + $0x16c] ss:$16 sps:$4 sm:$0xff]  }
  0x40   :  { %624 = vmatprep.subr.bf16.mxu0 %v3070_v39  ;;  %665 = vmatprep.subr.bf16.mxu1 %v3073_v42  ;;  %v3150_v39 = vld [vmem:[%s4448_s7 + $0x184] ss:$16 sps:$4 sm:$0xff]   ;;  %v3151_v42 = vld [vmem:[%s4448_s7 + $0x188] ss:$16 sps:$4 sm:$0xff]  }
  0x43   :  { %625 = vmatpush1.bf16.msra.mxu0 %v3068_v46  ;;  %666 = vmatpush1.bf16.msra.mxu1 %v3071_v49  ;;  %v3157_v46 = vld [vmem:[%s4448_s7 + $0x1a8] ss:$16 sps:$4 sm:$0xff]   ;;  %v3160_v49 = vld [vmem:[%s4448_s7 + $0x1c0] ss:$16 sps:$4 sm:$0xff]  }
  0x44   :  { %1222 = vmatprep.subr.bf16.mxu0 %v3078_v51  ;;  %1263 = vmatprep.subr.bf16.mxu1 %v3081_v55  ;;  %v3168_v51 = vld [vmem:[%s4448_s7 + $0x1e4] ss:$16 sps:$4 sm:$0xff]   ;;  %v3169_v55 = vld [vmem:[%s4448_s7 + $0x1e8] ss:$16 sps:$4 sm:$0xff]  }
  0x46   :  { %627 = vmatmul.mubr.bf16.vlgmr.msra.gmra.mrb[4].mxu0 %v3696_v53  ;;  %668 = vmatmul.mubr.bf16.vlgmr.msra.gmra.mrb[4].mxu1 %v3696_v53 }
  0x47   :  { %1223 = vmatpush1.bf16.msra.mxu0 %v3076_v54  ;;  %1264 = vmatpush1.bf16.msra.mxu1 %v3079_v56  ;;  %v3166_v54 = vld [vmem:[%s4448_s7 + $0x1e0] ss:$16 sps:$4 sm:$0xff]   ;;  %v3174_v56 = vld [vmem:[%s4449_s5 + $0x4] ss:$16 sps:$4 sm:$0xff]  }
  0x48   :  { %1224 = vmatprep.subr.bf16.mxu0 %v3084_v57  ;;  %1265 = vmatprep.subr.bf16.mxu1 %v3087_v58  ;;  %v3172_v57 = vld [vmem:[%s4449_s5] ss:$16 sps:$4 sm:$0xff]   ;;  %v3177_v58 = vld [vmem:[%s4449_s5 + $0x204] ss:$16 sps:$4 sm:$0xff]  }
  0x49   :  { %1254 = vmatprep.mubr.bf16.mxu0 %v271_v52  ;;  %1295 = vmatprep.mubr.bf16.mxu1 %v271_v52  ;;  %v3171_v52 = vld [vmem:[%s4448_s7 + $0x1ec] ss:$16 sps:$4 sm:$0xff]  }
  0x4b   :  { %1225 = vmatpush1.bf16.msra.mxu0 %v3082_v59  ;;  %1266 = vmatpush1.bf16.msra.mxu1 %v3085_v60  ;;  %v3175_v59 = vld [vmem:[%s4449_s5 + $0x200] ss:$16 sps:$4 sm:$0xff]   ;;  %v3180_v60 = vld [vmem:[%s4449_s5 + $0x24] ss:$16 sps:$4 sm:$0xff]  }
  0x4c   :  { %1226 = vmatprep.subr.bf16.mxu0 %v3090_v61  ;;  %1267 = vmatprep.subr.bf16.mxu1 %v3093_v62  ;;  %v3183_v61 = vld [vmem:[%s4449_s5 + $0x224] ss:$16 sps:$4 sm:$0xff]   ;;  %v3178_v62 = vld [vmem:[%s4449_s5 + $0x20] ss:$16 sps:$4 sm:$0xff]  }
  0x4f   :  { %1227 = vmatpush1.bf16.msra.mxu0 %v3088_v63  ;;  %1268 = vmatpush1.bf16.msra.mxu1 %v3091_v0  ;;  %v3181_v63 = vld [vmem:[%s4449_s5 + $0x220] ss:$16 sps:$4 sm:$0xff]   ;;  %v3186_v0 = vld [vmem:[%s4449_s5 + $0x44] ss:$16 sps:$4 sm:$0xff]  }
  0x50   :  { %1228 = vmatprep.subr.bf16.mxu0 %v3096_v2  ;;  %1269 = vmatprep.subr.bf16.mxu1 %v3099_v3  ;;  %v3189_v2 = vld [vmem:[%s4449_s5 + $0x244] ss:$16 sps:$4 sm:$0xff]   ;;  %v3184_v3 = vld [vmem:[%s4449_s5 + $0x40] ss:$16 sps:$4 sm:$0xff]  }
  0x53   :  { %1229 = vmatpush1.bf16.msra.mxu0 %v3094_v4  ;;  %1270 = vmatpush1.bf16.msra.mxu1 %v3097_v5  ;;  %v3187_v4 = vld [vmem:[%s4449_s5 + $0x240] ss:$16 sps:$4 sm:$0xff]   ;;  %v3195_v5 = vld [vmem:[%s4449_s5 + $0x264] ss:$16 sps:$4 sm:$0xff]  }
  0x54   :  { %1230 = vmatprep.subr.bf16.mxu0 %v3102_v7  ;;  %1271 = vmatprep.subr.bf16.mxu1 %v3105_v9  ;;  %v3190_v7 = vld [vmem:[%s4449_s5 + $0x60] ss:$16 sps:$4 sm:$0xff]   ;;  %v3198_v9 = vld [vmem:[%s4449_s5 + $0x84] ss:$16 sps:$4 sm:$0xff]  }
  0x57   :  { %1231 = vmatpush1.bf16.msra.mxu0 %v3100_v8  ;;  %1272 = vmatpush1.bf16.msra.mxu1 %v3103_v10  ;;  %v3193_v8 = vld [vmem:[%s4449_s5 + $0x260] ss:$16 sps:$4 sm:$0xff]   ;;  %v3201_v10 = vld [vmem:[%s4449_s5 + $0x284] ss:$16 sps:$4 sm:$0xff]  }
  0x58   :  { %1232 = vmatprep.subr.bf16.mxu0 %v3108_v11  ;;  %1273 = vmatprep.subr.bf16.mxu1 %v3111_v12  ;;  %v3196_v11 = vld [vmem:[%s4449_s5 + $0x80] ss:$16 sps:$4 sm:$0xff]  }
  0x59   :  { %v3199_v12 = vld [vmem:[%s4449_s5 + $0x280] ss:$16 sps:$4 sm:$0xff]  }
  0x5b   :  { %1233 = vmatpush1.bf16.msra.mxu0 %v3106_v13  ;;  %1274 = vmatpush1.bf16.msra.mxu1 %v3109_v14  ;;  %v3204_v13 = vld [vmem:[%s4449_s5 + $0xa4] ss:$16 sps:$4 sm:$0xff]  }
  0x5c   :  { %1234 = vmatprep.subr.bf16.mxu0 %v3114_v15  ;;  %1275 = vmatprep.subr.bf16.mxu1 %v3117_v16  ;;  %v3207_v14 = vld [vmem:[%s4449_s5 + $0x2a4] ss:$16 sps:$4 sm:$0xff]   ;;  %v3202_v15 = vld [vmem:[%s4449_s5 + $0xa0] ss:$16 sps:$4 sm:$0xff]  }
  0x5d   :  { %v3205_v16 = vld [vmem:[%s4449_s5 + $0x2a0] ss:$16 sps:$4 sm:$0xff]  }
  0x5f   :  { %1235 = vmatpush1.bf16.msra.mxu0 %v3112_v17  ;;  %1276 = vmatpush1.bf16.msra.mxu1 %v3115_v18  ;;  %v3210_v17 = vld [vmem:[%s4449_s5 + $0xc4] ss:$16 sps:$4 sm:$0xff]  }
  0x60   :  { %1236 = vmatprep.subr.bf16.mxu0 %v3120_v19  ;;  %1277 = vmatprep.subr.bf16.mxu1 %v3123_v20  ;;  %v3213_v18 = vld [vmem:[%s4449_s5 + $0x2c4] ss:$16 sps:$4 sm:$0xff]   ;;  %v3208_v19 = vld [vmem:[%s4449_s5 + $0xc0] ss:$16 sps:$4 sm:$0xff]  }
  0x61   :  { %v3211_v20 = vld [vmem:[%s4449_s5 + $0x2c0] ss:$16 sps:$4 sm:$0xff]  }
  0x63   :  { %1237 = vmatpush1.bf16.msra.mxu0 %v3118_v21  ;;  %1278 = vmatpush1.bf16.msra.mxu1 %v3121_v22  ;;  %v3216_v21 = vld [vmem:[%s4449_s5 + $0xe4] ss:$16 sps:$4 sm:$0xff]  }
  0x64   :  { %1238 = vmatprep.subr.bf16.mxu0 %v3126_v23  ;;  %1279 = vmatprep.subr.bf16.mxu1 %v3129_v24  ;;  %v3219_v22 = vld [vmem:[%s4449_s5 + $0x2e4] ss:$16 sps:$4 sm:$0xff]   ;;  %v3214_v23 = vld [vmem:[%s4449_s5 + $0xe0] ss:$16 sps:$4 sm:$0xff]  }
  0x65   :  { %v3217_v24 = vld [vmem:[%s4449_s5 + $0x2e0] ss:$16 sps:$4 sm:$0xff]  }
  0x67   :  { %1239 = vmatpush1.bf16.msra.mxu0 %v3124_v25  ;;  %1280 = vmatpush1.bf16.msra.mxu1 %v3127_v26  ;;  %v3222_v25 = vld [vmem:[%s4449_s5 + $0x104] ss:$16 sps:$4 sm:$0xff]  }
  0x68   :  { %1240 = vmatprep.subr.bf16.mxu0 %v3132_v27  ;;  %1281 = vmatprep.subr.bf16.mxu1 %v3135_v28  ;;  %v3225_v26 = vld [vmem:[%s4449_s5 + $0x304] ss:$16 sps:$4 sm:$0xff]   ;;  %v3220_v27 = vld [vmem:[%s4449_s5 + $0x100] ss:$16 sps:$4 sm:$0xff]  }
  0x69   :  { %v3223_v28 = vld [vmem:[%s4449_s5 + $0x300] ss:$16 sps:$4 sm:$0xff]  }
  0x6b   :  { %1241 = vmatpush1.bf16.msra.mxu0 %v3130_v29  ;;  %1282 = vmatpush1.bf16.msra.mxu1 %v3133_v30  ;;  %v3228_v29 = vld [vmem:[%s4449_s5 + $0x124] ss:$16 sps:$4 sm:$0xff]  }
  0x6c   :  { %1242 = vmatprep.subr.bf16.mxu0 %v3138_v31  ;;  %1283 = vmatprep.subr.bf16.mxu1 %v3141_v32  ;;  %v3231_v30 = vld [vmem:[%s4449_s5 + $0x324] ss:$16 sps:$4 sm:$0xff]   ;;  %v3226_v31 = vld [vmem:[%s4449_s5 + $0x120] ss:$16 sps:$4 sm:$0xff]  }
  0x6d   :  { %v3229_v32 = vld [vmem:[%s4449_s5 + $0x320] ss:$16 sps:$4 sm:$0xff]  }
  0x6f   :  { %1243 = vmatpush1.bf16.msra.mxu0 %v3136_v33  ;;  %1284 = vmatpush1.bf16.msra.mxu1 %v3139_v34  ;;  %v3234_v33 = vld [vmem:[%s4449_s5 + $0x144] ss:$16 sps:$4 sm:$0xff]  }
  0x70   :  { %1244 = vmatprep.subr.bf16.mxu0 %v3144_v35  ;;  %1285 = vmatprep.subr.bf16.mxu1 %v3147_v36  ;;  %v3237_v34 = vld [vmem:[%s4449_s5 + $0x344] ss:$16 sps:$4 sm:$0xff]   ;;  %v3232_v35 = vld [vmem:[%s4449_s5 + $0x140] ss:$16 sps:$4 sm:$0xff]  }
  0x71   :  { %v3235_v36 = vld [vmem:[%s4449_s5 + $0x340] ss:$16 sps:$4 sm:$0xff]  }
  0x73   :  { %1245 = vmatpush1.bf16.msra.mxu0 %v3142_v37  ;;  %1286 = vmatpush1.bf16.msra.mxu1 %v3145_v38  ;;  %v3240_v37 = vld [vmem:[%s4449_s5 + $0x164] ss:$16 sps:$4 sm:$0xff]  }
  0x74   :  { %1246 = vmatprep.subr.bf16.mxu0 %v3150_v39  ;;  %1287 = vmatprep.subr.bf16.mxu1 %v3153_v40  ;;  %v3243_v38 = vld [vmem:[%s4449_s5 + $0x364] ss:$16 sps:$4 sm:$0xff]   ;;  %v3238_v39 = vld [vmem:[%s4449_s5 + $0x160] ss:$16 sps:$4 sm:$0xff]  }
  0x75   :  { %v3241_v40 = vld [vmem:[%s4449_s5 + $0x360] ss:$16 sps:$4 sm:$0xff]  }
  0x77   :  { %1247 = vmatpush1.bf16.msra.mxu0 %v3148_v41  ;;  %1288 = vmatpush1.bf16.msra.mxu1 %v3151_v42  ;;  %v3246_v41 = vld [vmem:[%s4449_s5 + $0x184] ss:$16 sps:$4 sm:$0xff]  }
  0x78   :  { %1248 = vmatprep.subr.bf16.mxu0 %v3156_v43  ;;  %1289 = vmatprep.subr.bf16.mxu1 %v3159_v44  ;;  %v3249_v42 = vld [vmem:[%s4449_s5 + $0x384] ss:$16 sps:$4 sm:$0xff]   ;;  %v3244_v43 = vld [vmem:[%s4449_s5 + $0x180] ss:$16 sps:$4 sm:$0xff]  }
  0x79   :  { %v3247_v44 = vld [vmem:[%s4449_s5 + $0x380] ss:$16 sps:$4 sm:$0xff]  }
  0x7b   :  { %1249 = vmatpush1.bf16.msra.mxu0 %v3154_v45  ;;  %1290 = vmatpush1.bf16.msra.mxu1 %v3157_v46  ;;  %v3252_v45 = vld [vmem:[%s4449_s5 + $0x1a4] ss:$16 sps:$4 sm:$0xff]  }
  0x7c   :  { %1250 = vmatprep.subr.bf16.mxu0 %v3162_v47  ;;  %1291 = vmatprep.subr.bf16.mxu1 %v3165_v48  ;;  %v3255_v46 = vld [vmem:[%s4449_s5 + $0x3a4] ss:$16 sps:$4 sm:$0xff]   ;;  %v3250_v47 = vld [vmem:[%s4449_s5 + $0x1a0] ss:$16 sps:$4 sm:$0xff]  }
  0x7d   :  { %v3253_v48 = vld [vmem:[%s4449_s5 + $0x3a0] ss:$16 sps:$4 sm:$0xff]  }
  0x7f   :  { %1251 = vmatpush1.bf16.msra.mxu0 %v3160_v49  ;;  %1292 = vmatpush1.bf16.msra.mxu1 %v3163_v50  ;;  %v3258_v49 = vld [vmem:[%s4449_s5 + $0x1c4] ss:$16 sps:$4 sm:$0xff]  }
  0x80   :  { %1252 = vmatprep.subr.bf16.mxu0 %v3168_v51  ;;  %1293 = vmatprep.subr.bf16.mxu1 %v3171_v52  ;;  %v3261_v50 = vld [vmem:[%s4449_s5 + $0x3c4] ss:$16 sps:$4 sm:$0xff]   ;;  %v3256_v51 = vld [vmem:[%s4449_s5 + $0x1c0] ss:$16 sps:$4 sm:$0xff]  }
  0x81   :  { %v3259_v52 = vld [vmem:[%s4449_s5 + $0x3c0] ss:$16 sps:$4 sm:$0xff]  }
  0x83   :  { %1253 = vmatpush1.bf16.msra.mxu0 %v3166_v54  ;;  %1294 = vmatpush1.bf16.msra.mxu1 %v3169_v55  ;;  %v3264_v54 = vld [vmem:[%s4449_s5 + $0x1e4] ss:$16 sps:$4 sm:$0xff]  }
  0x84   :  { %1944 = vmatprep.subr.bf16.mxu0 %v3174_v56  ;;  %1985 = vmatprep.subr.bf16.mxu1 %v3177_v58  ;;  %v3267_v55 = vld [vmem:[%s4449_s5 + $0x3e4] ss:$16 sps:$4 sm:$0xff]   ;;  %v3262_v56 = vld [vmem:[%s4449_s5 + $0x1e0] ss:$16 sps:$4 sm:$0xff]   ;;  %v3270_v58 = vld [vmem:[%s4449_s5 + $0xc] ss:$16 sps:$4 sm:$0xff]  }
  0x86   :  { %1255 = vmatmul.mubr.bf16.vlgmr.msra.gmra.mrb[8].mxu0 %v3696_v53  ;;  %1296 = vmatmul.mubr.bf16.vlgmr.msra.gmra.mrb[8].mxu1 %v3696_v53  ;;  %v3192_v53 = vld [vmem:[%s4449_s5 + $0x64] ss:$16 sps:$4 sm:$0xff]  }
  0x87   :  { %1945 = vmatpush1.bf16.msra.mxu0 %v3172_v57  ;;  %1986 = vmatpush1.bf16.msra.mxu1 %v3175_v59  ;;  %v3265_v57 = vld [vmem:[%s4449_s5 + $0x3e0] ss:$16 sps:$4 sm:$0xff]   ;;  %v3273_v59 = vld [vmem:[%s4449_s5 + $0x20c] ss:$16 sps:$4 sm:$0xff]  }
  0x88   :  { %1946 = vmatprep.subr.bf16.mxu0 %v3180_v60  ;;  %1987 = vmatprep.subr.bf16.mxu1 %v3183_v61 }
  0x8b   :  { %1947 = vmatpush1.bf16.msra.mxu0 %v3178_v62  ;;  %1988 = vmatpush1.bf16.msra.mxu1 %v3181_v63 }
  0x8c   :  { %1948 = vmatprep.subr.bf16.mxu0 %v3186_v0  ;;  %1989 = vmatprep.subr.bf16.mxu1 %v3189_v2 }
  0x8f   :  { %1949 = vmatpush1.bf16.msra.mxu0 %v3184_v3  ;;  %1990 = vmatpush1.bf16.msra.mxu1 %v3187_v4 }
  0x90   :  { %1950 = vmatprep.subr.bf16.mxu0 %v3192_v53  ;;  %1991 = vmatprep.subr.bf16.mxu1 %v3195_v5  ;;  %v678_v53 = vlaneseq }
  0x92   :  { %v679_v5 = vshrl.u32 %v678_v53, 7  ;;  %v3315_v53 = vld [vmem:[%s4449_s5 + $0x2ec] ss:$16 sps:$4 sm:$0xff]  }
  0x93   :  { %1951 = vmatpush1.bf16.msra.mxu0 %v3190_v7  ;;  %1992 = vmatpush1.bf16.msra.mxu1 %v3193_v8  ;;  %v676_v8 = vld [vmem:[%s4451_s4] sm:$0xf] }
  0x94   :  { %1952 = vmatprep.subr.bf16.mxu0 %v3198_v9  ;;  %1993 = vmatprep.subr.bf16.mxu1 %v3201_v10  ;;  %v4089_v7 = vsub.s32 0, %v679_v5  ;;  %v4094_v9 = vsub.s32 2, %v679_v5  ;;  %v4096_v10 = vsub.s32 1, %v679_v5 }
  0x97   :  { %1953 = vmatpush1.bf16.msra.mxu0 %v3196_v11  ;;  %1994 = vmatpush1.bf16.msra.mxu1 %v3199_v12  ;;  %v4098_v11 = vsub.s32 3, %v679_v5  ;;  %v681_v12 = vrot.slane %v676_v8, %v4089_v7  ;;  %v3310_v5 = vld [vmem:[%s4449_s5 + $0xe8] ss:$16 sps:$4 sm:$0xff]  }
  0x98   :  { %1954 = vmatprep.subr.bf16.mxu0 %v3204_v13  ;;  %1995 = vmatprep.subr.bf16.mxu1 %v3207_v14  ;;  %v689_v14 = vrot.slane %v676_v8, %v4094_v9 }
  0x9b   :  { %1955 = vmatpush1.bf16.msra.mxu0 %v3202_v15  ;;  %1996 = vmatpush1.bf16.msra.mxu1 %v3205_v16  ;;  %v685_v15 = vrot.slane %v676_v8, %v4096_v10 }
  0x9c   :  { %1956 = vmatprep.subr.bf16.mxu0 %v3210_v17  ;;  %1997 = vmatprep.subr.bf16.mxu1 %v3213_v18 }
  0x9f   :  { %1957 = vmatpush1.bf16.msra.mxu0 %v3208_v19  ;;  %1998 = vmatpush1.bf16.msra.mxu1 %v3211_v20  ;;  %v693_v19 = vrot.slane %v676_v8, %v4098_v11  ;;  %v3313_v8 = vld [vmem:[%s4449_s5 + $0x2e8] ss:$16 sps:$4 sm:$0xff]  }
  0xa0   :  { %1958 = vmatprep.subr.bf16.mxu0 %v3216_v21  ;;  %1999 = vmatprep.subr.bf16.mxu1 %v3219_v22 }
  0xa3   :  { %1959 = vmatpush1.bf16.msra.mxu0 %v3214_v23  ;;  %2000 = vmatpush1.bf16.msra.mxu1 %v3217_v24 }
  0xa4   :  { %1960 = vmatprep.subr.bf16.mxu0 %v3222_v25  ;;  %2001 = vmatprep.subr.bf16.mxu1 %v3225_v26 }
  0xa7   :  { %1961 = vmatpush1.bf16.msra.mxu0 %v3220_v27  ;;  %2002 = vmatpush1.bf16.msra.mxu1 %v3223_v28 }
  0xa8   :  { %1962 = vmatprep.subr.bf16.mxu0 %v3228_v29  ;;  %2003 = vmatprep.subr.bf16.mxu1 %v3231_v30 }
  0xab   :  { %1963 = vmatpush1.bf16.msra.mxu0 %v3226_v31  ;;  %2004 = vmatpush1.bf16.msra.mxu1 %v3229_v32 }
  0xac   :  { %1964 = vmatprep.subr.bf16.mxu0 %v3234_v33  ;;  %2005 = vmatprep.subr.bf16.mxu1 %v3237_v34 }
  0xaf   :  { %1965 = vmatpush1.bf16.msra.mxu0 %v3232_v35  ;;  %2006 = vmatpush1.bf16.msra.mxu1 %v3235_v36 }
  0xb0   :  { %1966 = vmatprep.subr.bf16.mxu0 %v3240_v37  ;;  %2007 = vmatprep.subr.bf16.mxu1 %v3243_v38  ;;  %v3268_v37 = vld [vmem:[%s4449_s5 + $0x8] ss:$16 sps:$4 sm:$0xff]  }
  0xb3   :  { %1967 = vmatpush1.bf16.msra.mxu0 %v3238_v39  ;;  %2008 = vmatpush1.bf16.msra.mxu1 %v3241_v40  ;;  %v3271_v40 = vld [vmem:[%s4449_s5 + $0x208] ss:$16 sps:$4 sm:$0xff]  }
  0xb4   :  { %1968 = vmatprep.subr.bf16.mxu0 %v3246_v41  ;;  %2009 = vmatprep.subr.bf16.mxu1 %v3249_v42  ;;  %v3276_v42 = vld [vmem:[%s4449_s5 + $0x2c] ss:$16 sps:$4 sm:$0xff]  }
  0xb7   :  { %1969 = vmatpush1.bf16.msra.mxu0 %v3244_v43  ;;  %2010 = vmatpush1.bf16.msra.mxu1 %v3247_v44  ;;  %v3279_v43 = vld [vmem:[%s4449_s5 + $0x22c] ss:$16 sps:$4 sm:$0xff]   ;;  %v3274_v44 = vld [vmem:[%s4449_s5 + $0x28] ss:$16 sps:$4 sm:$0xff]  }
  0xb8   :  { %1970 = vmatprep.subr.bf16.mxu0 %v3252_v45  ;;  %2011 = vmatprep.subr.bf16.mxu1 %v3255_v46  ;;  %v3277_v45 = vld [vmem:[%s4449_s5 + $0x228] ss:$16 sps:$4 sm:$0xff]   ;;  %v3282_v46 = vld [vmem:[%s4449_s5 + $0x4c] ss:$16 sps:$4 sm:$0xff]  }
  0xbb   :  { %1971 = vmatpush1.bf16.msra.mxu0 %v3250_v47  ;;  %2012 = vmatpush1.bf16.msra.mxu1 %v3253_v48  ;;  %v3285_v47 = vld [vmem:[%s4449_s5 + $0x24c] ss:$16 sps:$4 sm:$0xff]   ;;  %v3280_v48 = vld [vmem:[%s4449_s5 + $0x48] ss:$16 sps:$4 sm:$0xff]  }
  0xbc   :  { %1972 = vmatprep.subr.bf16.mxu0 %v3258_v49  ;;  %2013 = vmatprep.subr.bf16.mxu1 %v3261_v50  ;;  %v3283_v49 = vld [vmem:[%s4449_s5 + $0x248] ss:$16 sps:$4 sm:$0xff]   ;;  %v3288_v50 = vld [vmem:[%s4449_s5 + $0x6c] ss:$16 sps:$4 sm:$0xff]  }
  0xbf   :  { %1973 = vmatpush1.bf16.msra.mxu0 %v3256_v51  ;;  %2014 = vmatpush1.bf16.msra.mxu1 %v3259_v52  ;;  %v3291_v51 = vld [vmem:[%s4449_s5 + $0x26c] ss:$16 sps:$4 sm:$0xff]   ;;  %v3286_v52 = vld [vmem:[%s4449_s5 + $0x68] ss:$16 sps:$4 sm:$0xff]  }
  0xc0   :  { %1974 = vmatprep.subr.bf16.mxu0 %v3264_v54  ;;  %2015 = vmatprep.subr.bf16.mxu1 %v3267_v55  ;;  %v3289_v54 = vld [vmem:[%s4449_s5 + $0x268] ss:$16 sps:$4 sm:$0xff]   ;;  %v3294_v55 = vld [vmem:[%s4449_s5 + $0x8c] ss:$16 sps:$4 sm:$0xff]  }
  0xc3   :  { %1975 = vmatpush1.bf16.msra.mxu0 %v3262_v56  ;;  %2016 = vmatpush1.bf16.msra.mxu1 %v3265_v57  ;;  %v3297_v56 = vld [vmem:[%s4449_s5 + $0x28c] ss:$16 sps:$4 sm:$0xff]   ;;  %v3292_v57 = vld [vmem:[%s4449_s5 + $0x88] ss:$16 sps:$4 sm:$0xff]  }
  0xc4   :  { %2026 = vmatprep.subr.bf16.mxu0 %v3270_v58  ;;  %2067 = vmatprep.subr.bf16.mxu1 %v3273_v59  ;;  %v3295_v58 = vld [vmem:[%s4449_s5 + $0x288] ss:$16 sps:$4 sm:$0xff]   ;;  %v3300_v59 = vld [vmem:[%s4449_s5 + $0xac] ss:$16 sps:$4 sm:$0xff]  }
  0xd9   :  { %v211_v60 = vpop.f32.mrb[0].mxu0  ;;  %v252_v61 = vpop.f32.mrb[0].mxu1 }
  0xda   :  { %v213_v62 = vpop.f32.mrb[1].mxu0  ;;  %v254_v63 = vpop.f32.mrb[1].mxu1 }
  0xdb   :  { %v215_v0 = vpop.f32.mrb[2].mxu0  ;;  %v256_v2 = vpop.f32.mrb[2].mxu1 }
  0xdc   :  { %v216_v3 = vpop.f32.mrb[3].mxu0  ;;  %v257_v4 = vpop.f32.mrb[3].mxu1  ;;  %v3309_v0 = vld [vmem:[%s4449_s5 + $0x2cc] ss:$16 sps:$4 sm:$0xff]   ;;  %v3304_v2 = vld [vmem:[%s4449_s5 + $0xc8] ss:$16 sps:$4 sm:$0xff]  }
  0xdd   :  { %v3307_v3 = vld [vmem:[%s4449_s5 + $0x2c8] ss:$16 sps:$4 sm:$0xff]   ;;  %v3312_v4 = vld [vmem:[%s4449_s5 + $0xec] ss:$16 sps:$4 sm:$0xff]  }
 0x119   :  { %v628_v13 = vpop.f32.mrb[4].mxu0  ;;  %v669_v17 = vpop.f32.mrb[4].mxu1 }
 0x11a   :  { %v629_v16 = vadd.f32 %v628_v13, %v211_v60  ;;  %v630_v18 = vpop.f32.mrb[5].mxu0  ;;  %v670_v20 = vadd.f32 %v669_v17, %v252_v61  ;;  %v671_v22 = vpop.f32.mrb[5].mxu1  ;;  %v3303_v60 = vld [vmem:[%s4449_s5 + $0x2ac] ss:$16 sps:$4 sm:$0xff]   ;;  %v3298_v61 = vld [vmem:[%s4449_s5 + $0xa8] ss:$16 sps:$4 sm:$0xff]  }
 0x11b   :  { %v631_v21 = vadd.f32 %v630_v18, %v213_v62  ;;  %v632_v23 = vpop.f32.mrb[6].mxu0  ;;  %v672_v25 = vadd.f32 %v671_v22, %v254_v63  ;;  %v673_v26 = vpop.f32.mrb[6].mxu1  ;;  %v3301_v62 = vld [vmem:[%s4449_s5 + $0x2a8] ss:$16 sps:$4 sm:$0xff]   ;;  %v3306_v63 = vld [vmem:[%s4449_s5 + $0xcc] ss:$16 sps:$4 sm:$0xff]  }
 0x11c   :  { %v698_v24 = vadd.f32 %v681_v12, %v629_v16  ;;  %v633_v27 = vpop.f32.mrb[7].mxu0  ;;  %v700_v28 = vadd.f32 %v689_v14, %v670_v20  ;;  %v674_v30 = vpop.f32.mrb[7].mxu1  ;;  %v3318_v12 = vld [vmem:[%s4449_s5 + $0x10c] ss:$16 sps:$4 sm:$0xff]   ;;  %v3316_v14 = vld [vmem:[%s4449_s5 + $0x108] ss:$16 sps:$4 sm:$0xff]  }
 0x11d   :  { %v699_v29 = vadd.f32 %v685_v15, %v631_v21  ;;  %v701_v32 = vadd.f32 %v693_v19, %v672_v25  ;;  %v3321_v13 = vld [vmem:[%s4449_s5 + $0x30c] ss:$16 sps:$4 sm:$0xff]   ;;  %v3319_v15 = vld [vmem:[%s4449_s5 + $0x308] ss:$16 sps:$4 sm:$0xff]  }
 0x11e   :  { %v702_v31 = vmax.f32 %v698_v24, 0.0  ;;  %v704_v33 = vmax.f32 %v700_v28, 0.0  ;;  %v3324_v16 = vld [vmem:[%s4449_s5 + $0x12c] ss:$16 sps:$4 sm:$0xff]   ;;  %v3322_v18 = vld [vmem:[%s4449_s5 + $0x128] ss:$16 sps:$4 sm:$0xff]  }
 0x11f   :  { %v703_v34 = vmax.f32 %v699_v29, 0.0  ;;  %v705_v35 = vmax.f32 %v701_v32, 0.0  ;;  %v3327_v17 = vld [vmem:[%s4449_s5 + $0x32c] ss:$16 sps:$4 sm:$0xff]   ;;  %v3325_v19 = vld [vmem:[%s4449_s5 + $0x328] ss:$16 sps:$4 sm:$0xff]  }
 0x120   :  { %v4107_v38 = vpack.c.bf16 %v702_v31, %v702_v31  ;;  %v4112_v41 = vpack.c.bf16 %v704_v33, %v704_v33  ;;  %v3330_v20 = vld [vmem:[%s4449_s5 + $0x14c] ss:$16 sps:$4 sm:$0xff]   ;;  %v3328_v22 = vld [vmem:[%s4449_s5 + $0x148] ss:$16 sps:$4 sm:$0xff]  }
 0x121   :  { %v707_v36 = vpack.c.bf16 %v703_v34, %v703_v34  ;;  %v709_v39 = vpack.c.bf16 %v705_v35, %v705_v35  ;;  %v3333_v21 = vld [vmem:[%s4449_s5 + $0x34c] ss:$16 sps:$4 sm:$0xff]   ;;  %v3331_v23 = vld [vmem:[%s4449_s5 + $0x348] ss:$16 sps:$4 sm:$0xff]  }
 0x122   :  { %v3336_v24 = vld [vmem:[%s4449_s5 + $0x16c] ss:$16 sps:$4 sm:$0xff]   ;;  %v3334_v26 = vld [vmem:[%s4449_s5 + $0x168] ss:$16 sps:$4 sm:$0xff]  }
 0x123   :  { %1976 = vmatprep.mubr.bf16.mxu0 %v707_v36  ;;  %2017 = vmatprep.mubr.bf16.mxu1 %v709_v39  ;;  %v3339_v25 = vld [vmem:[%s4449_s5 + $0x36c] ss:$16 sps:$4 sm:$0xff]   ;;  %v3337_v27 = vld [vmem:[%s4449_s5 + $0x368] ss:$16 sps:$4 sm:$0xff]  }
 0x124   :  { %1977 = vmatmul.mubr.bf16.vlgmr.msra.gmra.mrb[12].mxu0 %v4107_v38  ;;  %2018 = vmatmul.mubr.bf16.vlgmr.msra.gmra.mrb[12].mxu1 %v4112_v41  ;;  %v3342_v28 = vld [vmem:[%s4449_s5 + $0x18c] ss:$16 sps:$4 sm:$0xff]   ;;  %v3340_v30 = vld [vmem:[%s4449_s5 + $0x188] ss:$16 sps:$4 sm:$0xff]  }
 0x125   :  { %2027 = vmatpush1.bf16.msra.mxu0 %v3268_v37  ;;  %2068 = vmatpush1.bf16.msra.mxu1 %v3271_v40  ;;  %v3345_v29 = vld [vmem:[%s4449_s5 + $0x38c] ss:$16 sps:$4 sm:$0xff]   ;;  %v3343_v31 = vld [vmem:[%s4449_s5 + $0x388] ss:$16 sps:$4 sm:$0xff]  }
 0x126   :  { %2058 = vmatprep.mubr.bf16.mxu0 %v707_v36  ;;  %2099 = vmatprep.mubr.bf16.mxu1 %v709_v39  ;;  %v3348_v32 = vld [vmem:[%s4449_s5 + $0x1ac] ss:$16 sps:$4 sm:$0xff]   ;;  %v3346_v34 = vld [vmem:[%s4449_s5 + $0x1a8] ss:$16 sps:$4 sm:$0xff]  }
 0x127   :  { %2028 = vmatprep.subr.bf16.mxu0 %v3276_v42  ;;  %2069 = vmatprep.subr.bf16.mxu1 %v3279_v43  ;;  %v3351_v33 = vld [vmem:[%s4449_s5 + $0x3ac] ss:$16 sps:$4 sm:$0xff]   ;;  %v3349_v35 = vld [vmem:[%s4449_s5 + $0x3a8] ss:$16 sps:$4 sm:$0xff]  }
 0x128   :  { %v3354_v36 = vld [vmem:[%s4449_s5 + $0x1cc] ss:$16 sps:$4 sm:$0xff]   ;;  %v3352_v39 = vld [vmem:[%s4449_s5 + $0x1c8] ss:$16 sps:$4 sm:$0xff]  }
 0x129   :  { %2029 = vmatpush1.bf16.msra.mxu0 %v3274_v44  ;;  %2070 = vmatpush1.bf16.msra.mxu1 %v3277_v45  ;;  %v3357_v37 = vld [vmem:[%s4449_s5 + $0x3cc] ss:$16 sps:$4 sm:$0xff]   ;;  %v3355_v42 = vld [vmem:[%s4449_s5 + $0x3c8] ss:$16 sps:$4 sm:$0xff]  }
 0x12a   :  { %2030 = vmatprep.subr.bf16.mxu0 %v3282_v46  ;;  %2071 = vmatprep.subr.bf16.mxu1 %v3285_v47  ;;  %v3360_v43 = vld [vmem:[%s4449_s5 + $0x1ec] ss:$16 sps:$4 sm:$0xff]  }
 0x12b   :  { %v3363_v46 = vld [vmem:[%s4449_s5 + $0x3ec] ss:$16 sps:$4 sm:$0xff]  }
 0x12d   :  { %2031 = vmatpush1.bf16.msra.mxu0 %v3280_v48  ;;  %2072 = vmatpush1.bf16.msra.mxu1 %v3283_v49 }
 0x12e   :  { %2032 = vmatprep.subr.bf16.mxu0 %v3288_v50  ;;  %2073 = vmatprep.subr.bf16.mxu1 %v3291_v51  ;;  %v3358_v51 = vld [vmem:[%s4449_s5 + $0x1e8] ss:$16 sps:$4 sm:$0xff]  }
 0x131   :  { %2033 = vmatpush1.bf16.msra.mxu0 %v3286_v52  ;;  %2074 = vmatpush1.bf16.msra.mxu1 %v3289_v54  ;;  %v3361_v54 = vld [vmem:[%s4449_s5 + $0x3e8] ss:$16 sps:$4 sm:$0xff]  }
 0x132   :  { %2034 = vmatprep.subr.bf16.mxu0 %v3294_v55  ;;  %2075 = vmatprep.subr.bf16.mxu1 %v3297_v56  ;;  %v3366_v55 = vld [vmem:[%s4450_s8 + $0x4] ss:$16 sps:$4 sm:$0xff]   ;;  %v3369_v56 = vld [vmem:[%s4450_s8 + $0xc] ss:$16 sps:$4 sm:$0xff]  }
 0x135   :  { %2035 = vmatpush1.bf16.msra.mxu0 %v3292_v57  ;;  %2076 = vmatpush1.bf16.msra.mxu1 %v3295_v58  ;;  %v3364_v57 = vld [vmem:[%s4450_s8] ss:$16 sps:$4 sm:$0xff]   ;;  %v3367_v58 = vld [vmem:[%s4450_s8 + $0x8] ss:$16 sps:$4 sm:$0xff]  }
 0x136   :  { %2036 = vmatprep.subr.bf16.mxu0 %v3300_v59  ;;  %2077 = vmatprep.subr.bf16.mxu1 %v3303_v60  ;;  %v3370_v59 = vld [vmem:[%s4452_s10 + $0x40] sm:$0xff]   ;;  %v3375_v60 = vld [vmem:[%s4452_s10 + $0xc8] sm:$0xff]  }
 0x139   :  { %2037 = vmatpush1.bf16.msra.mxu0 %v3298_v61  ;;  %2078 = vmatpush1.bf16.msra.mxu1 %v3301_v62  ;;  %v3376_v61 = vld [vmem:[%s4452_s10 + $0x8] sm:$0xff]  }
 0x13a   :  { %2038 = vmatprep.subr.bf16.mxu0 %v3306_v63  ;;  %2079 = vmatprep.subr.bf16.mxu1 %v3309_v0  ;;  %v3377_v62 = vld [vmem:[%s4452_s10 + $0x88] sm:$0xff]   ;;  %v3378_v63 = vld [vmem:[%s4452_s10 + $0x50] sm:$0xff]  }
 0x13b   :  { %v3379_v0 = vld [vmem:[%s4452_s10 + $0xd0] sm:$0xff]  }
 0x13d   :  { %2039 = vmatpush1.bf16.msra.mxu0 %v3304_v2  ;;  %2080 = vmatpush1.bf16.msra.mxu1 %v3307_v3  ;;  %v3380_v2 = vld [vmem:[%s4452_s10 + $0x10] sm:$0xff]  }
 0x13e   :  { %2040 = vmatprep.subr.bf16.mxu0 %v3312_v4  ;;  %2081 = vmatprep.subr.bf16.mxu1 %v3315_v53  ;;  %v3381_v3 = vld [vmem:[%s4452_s10 + $0x90] sm:$0xff]   ;;  %v3382_v4 = vld [vmem:[%s4452_s10 + $0x58] sm:$0xff]  }
 0x13f   :  { %v3383_v53 = vld [vmem:[%s4452_s10 + $0xd8] sm:$0xff]  }
 0x141   :  { %2041 = vmatpush1.bf16.msra.mxu0 %v3310_v5  ;;  %2082 = vmatpush1.bf16.msra.mxu1 %v3313_v8  ;;  %v3384_v5 = vld [vmem:[%s4452_s10 + $0x18] sm:$0xff]  }
 0x142   :  { %2042 = vmatprep.subr.bf16.mxu0 %v3318_v12  ;;  %2083 = vmatprep.subr.bf16.mxu1 %v3321_v13  ;;  %v3385_v8 = vld [vmem:[%s4452_s10 + $0x98] sm:$0xff]   ;;  %v3386_v12 = vld [vmem:[%s4452_s10 + $0x60] sm:$0xff]  }
 0x143   :  { %v3387_v13 = vld [vmem:[%s4452_s10 + $0xe0] sm:$0xff]  }
 0x145   :  { %2043 = vmatpush1.bf16.msra.mxu0 %v3316_v14  ;;  %2084 = vmatpush1.bf16.msra.mxu1 %v3319_v15  ;;  %v3388_v14 = vld [vmem:[%s4452_s10 + $0x20] sm:$0xff]  }
 0x146   :  { %2044 = vmatprep.subr.bf16.mxu0 %v3324_v16  ;;  %2085 = vmatprep.subr.bf16.mxu1 %v3327_v17  ;;  %v3389_v15 = vld [vmem:[%s4452_s10 + $0xa0] sm:$0xff]   ;;  %v3390_v16 = vld [vmem:[%s4452_s10 + $0x68] sm:$0xff]  }
 0x147   :  { %v3391_v17 = vld [vmem:[%s4452_s10 + $0xe8] sm:$0xff]  }
 0x149   :  { %2045 = vmatpush1.bf16.msra.mxu0 %v3322_v18  ;;  %2086 = vmatpush1.bf16.msra.mxu1 %v3325_v19  ;;  %v3392_v18 = vld [vmem:[%s4452_s10 + $0x28] sm:$0xff]  }
 0x14a   :  { %2046 = vmatprep.subr.bf16.mxu0 %v3330_v20  ;;  %2087 = vmatprep.subr.bf16.mxu1 %v3333_v21  ;;  %v3393_v19 = vld [vmem:[%s4452_s10 + $0xa8] sm:$0xff]   ;;  %v3394_v20 = vld [vmem:[%s4452_s10 + $0x70] sm:$0xff]  }
 0x14b   :  { %v3395_v21 = vld [vmem:[%s4452_s10 + $0xf0] sm:$0xff]  }
 0x14d   :  { %2047 = vmatpush1.bf16.msra.mxu0 %v3328_v22  ;;  %2088 = vmatpush1.bf16.msra.mxu1 %v3331_v23  ;;  %v3396_v22 = vld [vmem:[%s4452_s10 + $0x30] sm:$0xff]  }
 0x14e   :  { %2048 = vmatprep.subr.bf16.mxu0 %v3336_v24  ;;  %2089 = vmatprep.subr.bf16.mxu1 %v3339_v25  ;;  %v3397_v23 = vld [vmem:[%s4452_s10 + $0xb0] sm:$0xff]   ;;  %v3398_v24 = vld [vmem:[%s4452_s10 + $0x78] sm:$0xff]  }
 0x14f   :  { %v3399_v25 = vld [vmem:[%s4452_s10 + $0xf8] sm:$0xff]  }
 0x151   :  { %2049 = vmatpush1.bf16.msra.mxu0 %v3334_v26  ;;  %2090 = vmatpush1.bf16.msra.mxu1 %v3337_v27  ;;  %v3400_v26 = vld [vmem:[%s4452_s10 + $0x38] sm:$0xff]  }
 0x152   :  { %2050 = vmatprep.subr.bf16.mxu0 %v3342_v28  ;;  %2091 = vmatprep.subr.bf16.mxu1 %v3345_v29  ;;  %v3401_v27 = vld [vmem:[%s4452_s10 + $0xb8] sm:$0xff]  }
 0x155   :  { %2051 = vmatpush1.bf16.msra.mxu0 %v3340_v30  ;;  %2092 = vmatpush1.bf16.msra.mxu1 %v3343_v31 }
 0x156   :  { %2052 = vmatprep.subr.bf16.mxu0 %v3348_v32  ;;  %2093 = vmatprep.subr.bf16.mxu1 %v3351_v33 }
 0x159   :  { %2053 = vmatpush1.bf16.msra.mxu0 %v3346_v34  ;;  %v4281_v40 = vpop.f32.mrb[8].mxu0  ;;  %2094 = vmatpush1.bf16.msra.mxu1 %v3349_v35  ;;  %v4291_v45 = vpop.f32.mrb[8].mxu1 }
 0x15a   :  { %2054 = vmatprep.subr.bf16.mxu0 %v3354_v36  ;;  %v4289_v44 = vpop.f32.mrb[9].mxu0  ;;  %2095 = vmatprep.subr.bf16.mxu1 %v3357_v37  ;;  %v4296_v48 = vpop.f32.mrb[9].mxu1 }
 0x15b   :  { %v1260_v47 = vpop.f32.mrb[10].mxu0  ;;  %v1301_v50 = vpop.f32.mrb[10].mxu1 }
 0x15c   :  { %v1261_v49 = vpop.f32.mrb[11].mxu0  ;;  %v1302_v52 = vpop.f32.mrb[11].mxu1 }
 0x15d   :  { %2055 = vmatpush1.bf16.msra.mxu0 %v3352_v39  ;;  %2096 = vmatpush1.bf16.msra.mxu1 %v3355_v42 }
 0x15e   :  { %2056 = vmatprep.subr.bf16.mxu0 %v3360_v43  ;;  %2097 = vmatprep.subr.bf16.mxu1 %v3363_v46 }
 0x161   :  { %2057 = vmatpush1.bf16.msra.mxu0 %v3358_v51  ;;  %2098 = vmatpush1.bf16.msra.mxu1 %v3361_v54 }
 0x162   :  { %2132 = vmatprep.subr.bf16.mxu0 %v3366_v55  ;;  %2173 = vmatprep.subr.bf16.mxu1 %v3369_v56 }
 0x164   :  { %2059 = vmatmul.mubr.bf16.vlgmr.msra.gmra.mrb[16].mxu0 %v4107_v38  ;;  %2100 = vmatmul.mubr.bf16.vlgmr.msra.gmra.mrb[16].mxu1 %v4112_v41  ;;  %v3371_v38 = vld [vmem:[%s4452_s10 + $0xc0] sm:$0xff]  }
 0x165   :  { %2133 = vmatpush1.bf16.msra.mxu0 %v3364_v57  ;;  %2174 = vmatpush1.bf16.msra.mxu1 %v3367_v58  ;;  %v3372_v41 = vld [vmem:[%s4452_s10] sm:$0xff]  }
 0x166   :  { %2164 = vmatprep.mubr.bf16.mxu0 %v3402_v1  ;;  %2205 = vmatprep.mubr.bf16.mxu1 %v3402_v1  ;;  %v3373_v1 = vld [vmem:[%s4452_s10 + $0x80] sm:$0xff]  }
 0x167   :  { %2927 = vmatprep.subr.bf16.mxu0 %v3370_v59  ;;  %2949 = vmatprep.subr.bf16.mxu1 %v3371_v38  ;;  %v2218_v57 = vld [vmem:[%s4453_s6] sm:$0xf] }
 0x168   :  { %v2244_v58 = vld [vmem:[%s4454_s9] sm:$0xf]  ;;  %v2227_v38 = vrot.slane %v2218_v57, %v4096_v10 }
 0x16c   :  { %2892 = vmatmul.mubr.msk.bf16.vlgmr.msra.gmra.mrb[20].mxu0 %vm173_vm0, %v3485_v6  ;;  %2893 = vmatmul.mubr.msk.bf16.vlgmr.msra.gmra.mrb[20].mxu1 %vm173_vm0, %v3485_v6  ;;  %v3374_v6 = vld [vmem:[%s4452_s10 + $0x48] sm:$0xff]  }
 0x16d   :  { %2928 = vmatpush3.bf16.msra.mxu0 %v3372_v41  ;;  %2950 = vmatpush3.bf16.msra.mxu1 %v3373_v1  ;;  %v2249_v1 = vrot.slane %v2244_v58, %v4089_v7 }
 0x16e   :  { %2929 = vmatprep.subr.bf16.mxu0 %v3374_v6  ;;  %2951 = vmatprep.subr.bf16.mxu1 %v3375_v60 }
 0x171   :  { %2930 = vmatpush3.bf16.msra.mxu0 %v3376_v61  ;;  %2952 = vmatpush3.bf16.msra.mxu1 %v3377_v62  ;;  %v2235_v61 = vrot.slane %v2218_v57, %v4098_v11 }
 0x172   :  { %2931 = vmatprep.subr.bf16.mxu0 %v3378_v63  ;;  %2953 = vmatprep.subr.bf16.mxu1 %v3379_v0  ;;  %v2257_v63 = vrot.slane %v2244_v58, %v4094_v9 }
 0x175   :  { %2932 = vmatpush3.bf16.msra.mxu0 %v3380_v2  ;;  %2954 = vmatpush3.bf16.msra.mxu1 %v3381_v3  ;;  %v2253_v2 = vrot.slane %v2244_v58, %v4096_v10 }
 0x176   :  { %2933 = vmatprep.subr.bf16.mxu0 %v3382_v4  ;;  %2955 = vmatprep.subr.bf16.mxu1 %v3383_v53 }
 0x179   :  { %2934 = vmatpush3.bf16.msra.mxu0 %v3384_v5  ;;  %2956 = vmatpush3.bf16.msra.mxu1 %v3385_v8  ;;  %v2261_v8 = vrot.slane %v2244_v58, %v4098_v11 }
 0x17a   :  { %2935 = vmatprep.subr.bf16.mxu0 %v3386_v12  ;;  %2957 = vmatprep.subr.bf16.mxu1 %v3387_v13 }
 0x17d   :  { %2936 = vmatpush3.bf16.msra.mxu0 %v3388_v14  ;;  %2958 = vmatpush3.bf16.msra.mxu1 %v3389_v15 }
 0x17e   :  { %2937 = vmatprep.subr.bf16.mxu0 %v3390_v16  ;;  %2959 = vmatprep.subr.bf16.mxu1 %v3391_v17 }
 0x181   :  { %2938 = vmatpush3.bf16.msra.mxu0 %v3392_v18  ;;  %2960 = vmatpush3.bf16.msra.mxu1 %v3393_v19 }
 0x182   :  { %2939 = vmatprep.subr.bf16.mxu0 %v3394_v20  ;;  %2961 = vmatprep.subr.bf16.mxu1 %v3395_v21 }
 0x185   :  { %2940 = vmatpush3.bf16.msra.mxu0 %v3396_v22  ;;  %2962 = vmatpush3.bf16.msra.mxu1 %v3397_v23 }
 0x186   :  { %2941 = vmatprep.subr.bf16.mxu0 %v3398_v24  ;;  %2963 = vmatprep.subr.bf16.mxu1 %v3399_v25 }
 0x189   :  { %2942 = vmatpush3.bf16.msra.mxu0 %v3400_v26  ;;  %2964 = vmatpush3.bf16.msra.mxu1 %v3401_v27 }
 0x1f7   :  { %v1978_v28 = vpop.f32.mrb[12].mxu0  ;;  %v2019_v30 = vpop.f32.mrb[12].mxu1 }
 0x1f8   :  { %v1979_v29 = vadd.f32 %v1978_v28, %v4281_v40  ;;  %v1980_v31 = vpop.f32.mrb[13].mxu0  ;;  %v2021_v33 = vpop.f32.mrb[13].mxu1  ;;  %v2894_v28 = vld [vmem:[%s4455_s11] ss:$0 sm:$0xff] }
 0x1f9   :  { %v1981_v32 = vadd.f32 %v1980_v31, %v4289_v44  ;;  %v1982_v34 = vpop.f32.mrb[14].mxu0  ;;  %v2023_v36 = vpop.f32.mrb[14].mxu1 }
 0x1fa   :  { %v2020_v35 = vadd.f32 %v2019_v30, %v1979_v29  ;;  %v1983_v37 = vpop.f32.mrb[15].mxu0  ;;  %v2024_v42 = vpop.f32.mrb[15].mxu1 }
 0x1fb   :  { %v2022_v39 = vadd.f32 %v2021_v33, %v1981_v32 }
 0x237   :  { %v2060_v43 = vpop.f32.mrb[16].mxu0  ;;  %v2101_v47 = vpop.f32.mrb[16].mxu1 }
 0x238   :  { %v2061_v46 = vadd.f32 %v2060_v43, %v4291_v45  ;;  %v2062_v49 = vpop.f32.mrb[17].mxu0  ;;  %v2103_v51 = vpop.f32.mrb[17].mxu1  ;;  %v2223_v45 = vrot.slane %v2218_v57, %v4089_v7 }
 0x239   :  { %v2063_v50 = vadd.f32 %v2062_v49, %v4296_v48  ;;  %v2064_v40 = vpop.f32.mrb[18].mxu0  ;;  %v2105_v54 = vpop.f32.mrb[18].mxu1  ;;  %v2231_v48 = vrot.slane %v2218_v57, %v4094_v9 }
 0x23a   :  { %v2102_v52 = vadd.f32 %v2101_v47, %v2061_v46  ;;  %v2065_v55 = vpop.f32.mrb[19].mxu0  ;;  %v2106_v56 = vpop.f32.mrb[19].mxu1 }
 0x23b   :  { %v2104_v44 = vadd.f32 %v2103_v51, %v2063_v50 }
 0x23f   :  { %v2166_v59 = vpop.f32.mrb[20].mxu0  ;;  %v2207_v6 = vpop.f32.mrb[20].mxu1 }
 0x240   :  { %v2214_v41 = vadd.f32 %v2166_v59, %v2020_v35  ;;  %v2168_v60 = vpop.f32.mrb[21].mxu0  ;;  %v2216_v62 = vadd.f32 %v2207_v6, %v2102_v52  ;;  %v2209_v3 = vpop.f32.mrb[21].mxu1 }
 0x241   :  { %v2215_v0 = vadd.f32 %v2168_v60, %v2022_v39  ;;  %v2170_v4 = vpop.f32.mrb[22].mxu0  ;;  %v2217_v5 = vadd.f32 %v2209_v3, %v2104_v44  ;;  %v2211_v12 = vpop.f32.mrb[22].mxu1 }
 0x242   :  { %v2240_v53 = vadd.f32 %v2223_v45, %v2214_v41  ;;  %v2171_v13 = vpop.f32.mrb[23].mxu0  ;;  %v2242_v14 = vadd.f32 %v2231_v48, %v2216_v62  ;;  %v2212_v15 = vpop.f32.mrb[23].mxu1 }
 0x243   :  { %v2241_v7 = vadd.f32 %v2227_v38, %v2215_v0  ;;  %v2243_v17 = vadd.f32 %v2235_v61, %v2217_v5 }
 0x244   :  { %v2266_v16 = vadd.f32 %v2249_v1, %v2240_v53  ;;  %v2268_v18 = vadd.f32 %v2257_v63, %v2242_v14 }
 0x245   :  { %v2267_v19 = vadd.f32 %v2253_v2, %v2241_v7  ;;  %v2269_v9 = vadd.f32 %v2261_v8, %v2243_v17 }
 0x246   :  { %v2270_v20 = vmax.f32 %v2266_v16, 0.0  ;;  %v2272_v21 = vmax.f32 %v2268_v18, 0.0 }
 0x247   :  { %v2271_v22 = vmax.f32 %v2267_v19, 0.0  ;;  %v2273_v10 = vmax.f32 %v2269_v9, 0.0 }
 0x248   :  { %v2274_v24 = vpack.c.bf16 %v2270_v20, %v2270_v20  ;;  %v2276_v26 = vpack.c.bf16 %v2272_v21, %v2272_v21 }
 0x249   :  { %v2275_v23 = vpack.c.bf16 %v2271_v22, %v2271_v22  ;;  %v2277_v25 = vpack.c.bf16 %v2273_v10, %v2273_v10 }
 0x24b   :  { %2573 = vmatprep.mubr.bf16.mxu0 %v2275_v23  ;;  %2613 = vmatprep.mubr.bf16.mxu1 %v2277_v25 }
 0x24c   :  { %2574 = vmatmul.mubr.bf16.vlgmr.msra.gmra.mrb[24].mxu0 %v2274_v24  ;;  %2614 = vmatmul.mubr.bf16.vlgmr.msra.gmra.mrb[24].mxu1 %v2276_v26 }
 0x31f   :  { %v2943_v11 = vpop.f32.mrb[24].mxu0  ;;  %v2965_v27 = vpop.f32.mrb[24].mxu1 }
 0x320   :  { %v2944_v29 = vpop.f32.mrb[25].mxu0  ;;  %v2966_v31 = vpop.f32.mrb[25].mxu1 }
 0x321   :  { %v2945_v30 = vadd.f32 %v2944_v29, %v2943_v11  ;;  %v2946_v32 = vpop.f32.mrb[26].mxu0  ;;  %v2967_v33 = vadd.f32 %v2966_v31, %v2965_v27  ;;  %v2968_v34 = vpop.f32.mrb[26].mxu1 }
 0x322   :  { %v2947_v35 = vpop.f32.mrb[27].mxu0  ;;  %v2969_v37 = vpop.f32.mrb[27].mxu1 }
 0x323   :  { %v2576_v36 = vadd.f32 %v2945_v30, %v2894_v28 }
 0x325   :  { %v2616_v39 = vadd.f32 %v2967_v33, %v2576_v36 }
 0x327   :  { %2621 = vst [vmem:[%s4456_s12] sm:$0x3] %v2616_v39 }

</bundles_post_ra>
